<compile_context>
chip_gen: v5e
topology: v5e:2x2
jax: 0.10.0
libtpu: 0.0.40
codegen_flags: <defaults>
</compile_context>

<pallas_src>
import jax
import jax.numpy as jnp
from jax.experimental import pallas as pl
from jax.experimental.pallas import tpu as pltpu


def _ffn_attention_kernel(q_ref, k_ref, wq_ref, bq_ref, wk_ref, bk_ref, wo_ref,
                          attn_ref, score_ref):
    bt, d_hidden = attn_ref.shape
    seq = score_ref.shape[1]

    # Projections (MXU, f32 accumulate). k_ref is the flattened (bt*S, D) tile.
    q_h = jnp.dot(q_ref[...], wq_ref[...],
                  preferred_element_type=jnp.float32) + bq_ref[...]          # (bt, H)
    k_h2 = jnp.dot(k_ref[...], wk_ref[...],
                   preferred_element_type=jnp.float32) + bk_ref[...]         # (bt*S, H)
    # Leading-dim split only (S % 8 == 0 in the demo) -> layout-preserving.
    k_h = k_h2.reshape(bt, seq, d_hidden)                                    # (bt, S, H)

    # Additive-attention scores: e[b, s] = (q_h[b] + k_h[b, s]) . w_out
    w_out = wo_ref[...]                                                      # (1, H)
    e_q = jnp.sum(q_h * w_out, axis=-1, keepdims=True)                       # (bt, 1)
    e_k = jnp.sum(k_h * w_out.reshape(1, 1, d_hidden), axis=-1)              # (bt, S)
    e = e_k + e_q                                                            # (bt, S)

    # TODO(synk): optional boolean-mask path (attn_weight[mask] = -1e18) would be
    #             e = jnp.where(mask_tile, -1e18, e) before the store / softmax.
    score_ref[...] = e.astype(score_ref.dtype)

    # Numerically stable softmax over S (lane axis).
    m = jnp.max(e, axis=-1, keepdims=True)
    p = jnp.exp(e - m)
    p = p / jnp.sum(p, axis=-1, keepdims=True)                               # (bt, S)

    # attn[b, :] = sum_s p[b, s] * k_h[b, s, :]  -> batched (1,S)@(S,H) matmul.
    attn3 = jnp.einsum('bqs,bsh->bqh', p[:, None, :], k_h,
                       preferred_element_type=jnp.float32)                   # (bt, 1, H)
    attn_ref[...] = attn3.reshape(bt, d_hidden).astype(attn_ref.dtype)


def ffn_attention(query, key, wq, bq, wk, bk, w_out, *, batch_tile=8):
    """FFNAttention forward (mask=None).

    query : [B, D_in]
    key   : [B, S, D_in]
    wq, wk: [D_in, H]   (nn.Linear / k=1 Conv1d weights stored transposed)
    bq, bk: [H]
    w_out : [H]         (out.weight.squeeze(0); out has bias=False)
    returns (attn [B, H], attn_weight [B, S])
    """
    B, S, D = key.shape
    H = wq.shape[1]
    assert query.shape == (B, D)
    batch_tile = max(1, min(batch_tile, B))

    key2d = key.reshape(B * S, D)        # free, contiguous reshape at XLA level
    bq2 = bq.reshape(1, H)
    bk2 = bk.reshape(1, H)
    wo2 = w_out.reshape(1, H)

    grid = (pl.cdiv(B, batch_tile),)

    # VMEM budget: double-buffered streaming tiles + (default double-buffered)
    # resident params + in-kernel f32 intermediates, x2 headroom, capped < 48 MiB
    # so it stays safely inside v7x's 64 MiB per-TC VMEM.
    bpe = jnp.dtype(query.dtype).itemsize
    stream_bytes = 2 * batch_tile * (D + S * D + H + S) * bpe
    param_bytes = 2 * (2 * D * H + 3 * H) * bpe
    interm_bytes = batch_tile * (S * H + H + 3 * S) * 4
    budget = stream_bytes + param_bytes + interm_bytes
    vmem_limit = int(min(max(2 * budget, 16 << 20), 48 << 20))

    out_shapes = (
        jax.ShapeDtypeStruct((B, H), query.dtype),   # attn
        jax.ShapeDtypeStruct((B, S), query.dtype),   # attn_weight (pre-softmax scores)
    )

    attn, attn_weight = pl.pallas_call(
        _ffn_attention_kernel,
        out_shape=out_shapes,
        grid_spec=pltpu.PrefetchScalarGridSpec(
            num_scalar_prefetch=0,
            grid=grid,
            in_specs=[
                pl.BlockSpec((batch_tile, D), lambda i: (i, 0)),      # query tile
                pl.BlockSpec((batch_tile * S, D), lambda i: (i, 0)),  # key tile (flattened)
                pl.BlockSpec((D, H), lambda i: (0, 0)),               # Wq (resident)
                pl.BlockSpec((1, H), lambda i: (0, 0)),               # bq
                pl.BlockSpec((D, H), lambda i: (0, 0)),               # Wk (resident)
                pl.BlockSpec((1, H), lambda i: (0, 0)),               # bk
                pl.BlockSpec((1, H), lambda i: (0, 0)),               # w_out
            ],
            out_specs=[
                pl.BlockSpec((batch_tile, H), lambda i: (i, 0)),      # attn
                pl.BlockSpec((batch_tile, S), lambda i: (i, 0)),      # attn_weight
            ],
        ),
        compiler_params=pltpu.CompilerParams(
            dimension_semantics=("parallel",),
            vmem_limit_bytes=vmem_limit,
        ),
    )(query, key2d, wq, bq2, wk, bk2, wo2)
    return attn, attn_weight


if __name__ == "__main__":
    # Small but lane-dense configuration: S and H are multiples of 128 so both
    # outputs store full 128-wide lanes; batch_tile=8 gives a 4-step parallel grid.
    B, S, D_in, H = 32, 128, 64, 128

    root = jax.random.PRNGKey(0)
    kq, kk, kwq, kbq, kwk, kbk, kwo = jax.random.split(root, 7)

    query = jax.random.normal(kq, (B, D_in), dtype=jnp.float32)
    key = jax.random.normal(kk, (B, S, D_in), dtype=jnp.float32)

    # Parameter init mirroring the PyTorch module (Linear/Conv1d default bounds,
    # out.weight ~ U(-1, 1) per nn.init.uniform_). Stored transposed as [in, out].
    bound = 1.0 / (D_in ** 0.5)
    wq = jax.random.uniform(kwq, (D_in, H), jnp.float32, -bound, bound)
    bq = jax.random.uniform(kbq, (H,), jnp.float32, -bound, bound)
    wk = jax.random.uniform(kwk, (D_in, H), jnp.float32, -bound, bound)
    bk = jax.random.uniform(kbk, (H,), jnp.float32, -bound, bound)
    w_out = jax.random.uniform(kwo, (H,), jnp.float32, -1.0, 1.0)

    attn, attn_weight = ffn_attention(query, key, wq, bq, wk, bk, w_out, batch_tile=8)
    attn = jax.block_until_ready(attn)
    attn_weight = jax.block_until_ready(attn_weight)

    # Pure-JAX reference (same math as FFNAttention.forward with mask=None).
    q_h = query @ wq + bq
    k_h = jnp.einsum('bsd,dh->bsh', key, wk) + bk
    e_ref = (q_h @ w_out)[:, None] + jnp.einsum('bsh,h->bs', k_h, w_out)
    p_ref = jax.nn.softmax(e_ref, axis=-1)
    attn_ref = jnp.einsum('bs,bsh->bh', p_ref, k_h)

    assert attn.shape == (B, H) and attn_weight.shape == (B, S)
    assert jnp.allclose(attn_weight, e_ref, atol=1e-4, rtol=1e-4), \
        float(jnp.max(jnp.abs(attn_weight - e_ref)))
    assert jnp.allclose(attn, attn_ref, atol=1e-4, rtol=1e-4), \
        float(jnp.max(jnp.abs(attn - attn_ref)))

    print("KERNEL_OK")
</pallas_src>

<mosaic_0001>
module attributes {stable_mosaic.version = 11 : i64} {
  func.func @_ffn_attention_kernel(%arg0: i32, %arg1: memref<8x64xf32, #tpu.memory_space<vmem>>, %arg2: memref<1024x64xf32, #tpu.memory_space<vmem>>, %arg3: memref<64x128xf32, #tpu.memory_space<vmem>>, %arg4: memref<1x128xf32, #tpu.memory_space<vmem>>, %arg5: memref<64x128xf32, #tpu.memory_space<vmem>>, %arg6: memref<1x128xf32, #tpu.memory_space<vmem>>, %arg7: memref<1x128xf32, #tpu.memory_space<vmem>>, %arg8: memref<8x128xf32, #tpu.memory_space<vmem>>, %arg9: memref<8x128xf32, #tpu.memory_space<vmem>>) attributes {dimension_semantics = [#tpu.dimension_semantics<parallel>], iteration_bounds = array<i64: 4>, scalar_prefetch = 0 : i64, scratch_operands = 0 : i64, tpu.core_type = #tpu.core_type<tc>, window_params = [{transform_indices = @transform_0, window_bounds = array<i64: 8, 64>}, {transform_indices = @transform_1, window_bounds = array<i64: 1024, 64>}, {pipeline_mode = #tpu.pipeline_mode<synchronous>, transform_indices = @transform_2, window_bounds = array<i64: 64, 128>}, {pipeline_mode = #tpu.pipeline_mode<synchronous>, transform_indices = @transform_3, window_bounds = array<i64: 1, 128>}, {pipeline_mode = #tpu.pipeline_mode<synchronous>, transform_indices = @transform_4, window_bounds = array<i64: 64, 128>}, {pipeline_mode = #tpu.pipeline_mode<synchronous>, transform_indices = @transform_5, window_bounds = array<i64: 1, 128>}, {pipeline_mode = #tpu.pipeline_mode<synchronous>, transform_indices = @transform_6, window_bounds = array<i64: 1, 128>}, {transform_indices = @transform_7, window_bounds = array<i64: 8, 128>}, {transform_indices = @transform_8, window_bounds = array<i64: 8, 128>}]} {
    %c0 = arith.constant 0 : index
    %c0_0 = arith.constant 0 : index
    %0 = vector.load %arg1[%c0, %c0_0] : memref<8x64xf32, #tpu.memory_space<vmem>>, vector<8x64xf32>
    %c0_1 = arith.constant 0 : index
    %c0_2 = arith.constant 0 : index
    %1 = vector.load %arg3[%c0_1, %c0_2] : memref<64x128xf32, #tpu.memory_space<vmem>>, vector<64x128xf32>
    %cst = arith.constant dense<0.000000e+00> : vector<8x128xf32>
    %2 = tpu.matmul %0, %1, %cst {dimension_numbers = #tpu.dot_dimension_numbers<[1], [0], [0], [1], [0, 0, 1, 1], [], []>} : vector<8x64xf32>, vector<64x128xf32>, vector<8x128xf32> -> vector<8x128xf32>
    %c0_3 = arith.constant 0 : index
    %c0_4 = arith.constant 0 : index
    %3 = vector.load %arg4[%c0_3, %c0_4] : memref<1x128xf32, #tpu.memory_space<vmem>>, vector<1x128xf32>
    %4 = vector.broadcast %3 : vector<1x128xf32> to vector<8x128xf32>
    %5 = arith.addf %2, %4 : vector<8x128xf32>
    %c0_5 = arith.constant 0 : index
    %c0_6 = arith.constant 0 : index
    %6 = vector.load %arg2[%c0_5, %c0_6] : memref<1024x64xf32, #tpu.memory_space<vmem>>, vector<1024x64xf32>
    %c0_7 = arith.constant 0 : index
    %c0_8 = arith.constant 0 : index
    %7 = vector.load %arg5[%c0_7, %c0_8] : memref<64x128xf32, #tpu.memory_space<vmem>>, vector<64x128xf32>
    %cst_9 = arith.constant dense<0.000000e+00> : vector<1024x128xf32>
    %8 = tpu.matmul %6, %7, %cst_9 {dimension_numbers = #tpu.dot_dimension_numbers<[1], [0], [0], [1], [0, 0, 1, 1], [], []>} : vector<1024x64xf32>, vector<64x128xf32>, vector<1024x128xf32> -> vector<1024x128xf32>
    %c0_10 = arith.constant 0 : index
    %c0_11 = arith.constant 0 : index
    %9 = vector.load %arg6[%c0_10, %c0_11] : memref<1x128xf32, #tpu.memory_space<vmem>>, vector<1x128xf32>
    %10 = vector.broadcast %9 : vector<1x128xf32> to vector<1024x128xf32>
    %11 = arith.addf %8, %10 : vector<1024x128xf32>
    %12 = vector.shape_cast %11 : vector<1024x128xf32> to vector<8x128x128xf32>
    %c0_12 = arith.constant 0 : index
    %c0_13 = arith.constant 0 : index
    %13 = vector.load %arg7[%c0_12, %c0_13] : memref<1x128xf32, #tpu.memory_space<vmem>>, vector<1x128xf32>
    %14 = vector.broadcast %13 : vector<1x128xf32> to vector<8x128xf32>
    %15 = arith.mulf %5, %14 : vector<8x128xf32>
    %cst_14 = arith.constant dense<0.000000e+00> : vector<8xf32>
    %16 = vector.multi_reduction <add>, %15, %cst_14 [1] : vector<8x128xf32> to vector<8xf32>
    %17 = vector.shape_cast %16 : vector<8xf32> to vector<8x1xf32>
    %18 = vector.shape_cast %13 : vector<1x128xf32> to vector<1x1x128xf32>
    %19 = vector.broadcast %18 : vector<1x1x128xf32> to vector<8x128x128xf32>
    %20 = arith.mulf %12, %19 : vector<8x128x128xf32>
    %cst_15 = arith.constant dense<0.000000e+00> : vector<8x128xf32>
    %21 = vector.multi_reduction <add>, %20, %cst_15 [2] : vector<8x128x128xf32> to vector<8x128xf32>
    %22 = vector.broadcast %17 : vector<8x1xf32> to vector<8x128xf32>
    %23 = arith.addf %21, %22 : vector<8x128xf32>
    %c0_16 = arith.constant 0 : index
    %c0_17 = arith.constant 0 : index
    %24 = vector.load %arg9[%c0_16, %c0_17] : memref<8x128xf32, #tpu.memory_space<vmem>>, vector<8x128xf32>
    tpu.vector_store %arg9[%c0_16, %c0_17], %23 {strides = array<i32>} : memref<8x128xf32, #tpu.memory_space<vmem>>, vector<8x128xf32>,
    %cst_18 = arith.constant dense<0xFF800000> : vector<8xf32>
    %25 = vector.multi_reduction <maximumf>, %23, %cst_18 [1] : vector<8x128xf32> to vector<8xf32>
    %26 = vector.shape_cast %25 : vector<8xf32> to vector<8x1xf32>
    %27 = vector.broadcast %26 : vector<8x1xf32> to vector<8x128xf32>
    %28 = arith.subf %23, %27 : vector<8x128xf32>
    %29 = math.exp %28 : vector<8x128xf32>
    %cst_19 = arith.constant dense<0.000000e+00> : vector<8xf32>
    %30 = vector.multi_reduction <add>, %29, %cst_19 [1] : vector<8x128xf32> to vector<8xf32>
    %31 = vector.shape_cast %30 : vector<8xf32> to vector<8x1xf32>
    %32 = vector.broadcast %31 : vector<8x1xf32> to vector<8x128xf32>
    %33 = arith.divf %29, %32 : vector<8x128xf32>
    %34 = vector.shape_cast %33 : vector<8x128xf32> to vector<8x1x128xf32>
    "tpu.trace_start"() <{level = 10 : i32, message = "bqs,bsh->bqh"}> : () -> ()
    %cst_20 = arith.constant dense<0.000000e+00> : vector<8x1x128xf32>
    %35 = tpu.matmul %34, %12, %cst_20 {dimension_numbers = #tpu.dot_dimension_numbers<[2], [1], [1], [2], [0, 0, 0, 1, 1, 2], [0], [0]>} : vector<8x1x128xf32>, vector<8x128x128xf32>, vector<8x1x128xf32> -> vector<8x1x128xf32>
    "tpu.trace_stop"() : () -> ()
    %36 = vector.shape_cast %35 : vector<8x1x128xf32> to vector<8x128xf32>
    %c0_21 = arith.constant 0 : index
    %c0_22 = arith.constant 0 : index
    %37 = vector.load %arg8[%c0_21, %c0_22] : memref<8x128xf32, #tpu.memory_space<vmem>>, vector<8x128xf32>
    tpu.vector_store %arg8[%c0_21, %c0_22], %36 {strides = array<i32>} : memref<8x128xf32, #tpu.memory_space<vmem>>, vector<8x128xf32>,
    return
  }
  func.func @transform_0(%arg0: i32) -> (i32, i32) {
    %c0_i32 = arith.constant 0 : i32
    %c0_i32_0 = arith.constant 0 : i32
    return %arg0, %c0_i32 : i32, i32
  }
  func.func @transform_1(%arg0: i32) -> (i32, i32) {
    %c0_i32 = arith.constant 0 : i32
    %c0_i32_0 = arith.constant 0 : i32
    return %arg0, %c0_i32 : i32, i32
  }
  func.func @transform_2(%arg0: i32) -> (i32, i32) {
    %c0_i32 = arith.constant 0 : i32
    %c0_i32_0 = arith.constant 0 : i32
    %c0_i32_1 = arith.constant 0 : i32
    return %c0_i32, %c0_i32_0 : i32, i32
  }
  func.func @transform_3(%arg0: i32) -> (i32, i32) {
    %c0_i32 = arith.constant 0 : i32
    %c0_i32_0 = arith.constant 0 : i32
    %c0_i32_1 = arith.constant 0 : i32
    return %c0_i32, %c0_i32_0 : i32, i32
  }
  func.func @transform_4(%arg0: i32) -> (i32, i32) {
    %c0_i32 = arith.constant 0 : i32
    %c0_i32_0 = arith.constant 0 : i32
    %c0_i32_1 = arith.constant 0 : i32
    return %c0_i32, %c0_i32_0 : i32, i32
  }
  func.func @transform_5(%arg0: i32) -> (i32, i32) {
    %c0_i32 = arith.constant 0 : i32
    %c0_i32_0 = arith.constant 0 : i32
    %c0_i32_1 = arith.constant 0 : i32
    return %c0_i32, %c0_i32_0 : i32, i32
  }
  func.func @transform_6(%arg0: i32) -> (i32, i32) {
    %c0_i32 = arith.constant 0 : i32
    %c0_i32_0 = arith.constant 0 : i32
    %c0_i32_1 = arith.constant 0 : i32
    return %c0_i32, %c0_i32_0 : i32, i32
  }
  func.func @transform_7(%arg0: i32) -> (i32, i32) {
    %c0_i32 = arith.constant 0 : i32
    %c0_i32_0 = arith.constant 0 : i32
    return %arg0, %c0_i32 : i32, i32
  }
  func.func @transform_8(%arg0: i32) -> (i32, i32) {
    %c0_i32 = arith.constant 0 : i32
    %c0_i32_0 = arith.constant 0 : i32
    return %arg0, %c0_i32 : i32, i32
  }
}

</mosaic_0001>

<bundles_post_ra>
// kernel: tpu_custom_call.1
= control target key start
LH: loop header
LB: loop body
LE: loop exit
PB: predicated region body
PF: predicated region fallthrough
CT: control target
= control target key end

     0   :  { %s10655_s0 = inlined_call_operand.vmem [shape: f32[32,64], index: 0, kind: input, shape index: {}]   ;;  %s10656_s1 = inlined_call_operand.vmem [shape: f32[4096,64], index: 1, kind: input, shape index: {}]   ;;  %s10657_s2 = inlined_call_operand.vmem [shape: f32[64,128], index: 2, kind: input, shape index: {}]   ;;  %s10658_s3 = inlined_call_operand.vmem [shape: f32[1,128], index: 3, kind: input, shape index: {}]   ;;  %s10659_s4 = inlined_call_operand.vmem [shape: f32[64,128], index: 4, kind: input, shape index: {}]   ;;  %s10660_s5 = inlined_call_operand.vmem [shape: f32[1,128], index: 5, kind: input, shape index: {}]   ;;  %s10661_s6 = inlined_call_operand.vmem [shape: f32[1,128], index: 6, kind: input, shape index: {}]   ;;  %s10662_s7 = inlined_call_operand.hbm [shape: f32[32,128], index: 7, kind: output, shape index: {0}]   ;;  %s10663_s8 = inlined_call_operand.hbm [shape: f32[32,128], index: 8, kind: output, shape index: {1}]  }
   0x1   :  { %10960 = sst [smem:[#allocation235_spill]] %s10655_s0 }
   0x2   :  { %10961 = sst [smem:[#allocation236_spill]] %s10656_s1 }
   0x3   :  { %10962 = sst [smem:[#allocation237_spill]] %s10657_s2 }
   0x4   :  { %14 = vsyncpa [#allocation3], 0 }
   0x5   :  { %16 = vsyncpa [#allocation3 + $0x1], 0 }
   0x6   :  { %17 = vsyncpa [#allocation5], 0 }
   0x7   :  { %19 = vsyncpa [#allocation5 + $0x1], 0  ;;  %s6116_s27 = smov 0   ;;  %s6118_s28 = smov 0  }
   0x8   :  { %s6120_s29 = smov 0   ;;  %s6122_s30 = smov 0  }
   0x9 LB: > { %s6137_s9 = sadd.s32 4294967295, %s6068_s30   ;;  %s5161_s10 = sadd.s32 4294967294, %s6068_s30   ;;  %s6068_s30 = sphi %s6122_s30, %s11843_s30   ;;  %s6064_s29 = sphi %s6120_s29, %s11842_s29   ;;  %s6060_s28 = sphi %s6118_s28, %s11841_s28   ;;  %s6056_s27 = sphi %s6116_s27, %s11840_s27  }
   0xa   : > { %s6141_s11 = sadd.s32 1, %s6068_s30   ;;  %s189_s12 = sadd.s32 1, %s6064_s29 }
   0xb   : > { %s186_s13 = ssub.s32 %s6068_s30, %s6141_s11  ;;  %p199_p0 = scmp.ne.s32.totalorder %s6064_s29, %s6060_s28 }
   0xc   : > { %p187_p1 = scmp.eq.s32.totalorder %s186_s13, 0  ;;  %p200_p2 = scmp.eq.s32.totalorder %s6137_s9, 3 }
   0xd   : > { %p205_p3 = scmp.ne.s32.totalorder %s6060_s28, %s6056_s27  ;;  %p206_p4 = scmp.eq.s32.totalorder %s5161_s10, 3 }
   0xe   : > { %s6152_s14 = scalar_select %p187_p1, %s6064_s29, %s189_s12  }
   0xf   : > { %p6154_p5 = por %p200_p2, %p199_p0  ;;  %p6158_p6 = por %p206_p4, %p205_p3 }
  0x10   : > { %p5164_p7 = scmp.ge.s32.totalorder %s6068_s30, 1  ;;  %p281_p8 = scmp.lt.s32.totalorder %s6068_s30, 5 }
  0x12   : > { %p282_p9 = pnand %p5164_p7, %p281_p8 }
  0x14   : > { %285 = sbr.rel (%p282_p9) target bundleno = 2636 (0xa4c), region = 48 }
  0x19   : > { %s10965_s2 = sld [smem:[#allocation237_spill]]  ;;  %v506_v1 = vld [vmem:[%s10659_s4 + $0x38] sm:$0xff]  ;;  %p324_p10 = scmp.lt.s32.totalorder %s6137_s9, 3  ;;  %v505_v3 = vld [vmem:[%s10659_s4 + $0x30] sm:$0xff]  ;;  %v504_v5 = vld [vmem:[%s10659_s4 + $0x28] sm:$0xff]  ;;  %vm347_vm0 = vcmask 523264  }
  0x1a   : > { %s5168_s23 = sshll.u32 %s6137_s9, 7  ;;  %5305 = vmatpush.msra.mxu1 %v506_v1  ;;  %5306 = vmatpush.msra.mxu2 %v506_v1  ;;  %v503_v7 = vld [vmem:[%s10659_s4 + $0x20] sm:$0xff]  ;;  %v502_v9 = vld [vmem:[%s10659_s4 + $0x18] sm:$0xff]  ;;  %v501_v11 = vld [vmem:[%s10659_s4 + $0x10] sm:$0xff]  ;;  %s10966_s0 = sld [smem:[#allocation235_spill]]  ;;  %vm2349_vm1 = vcmask 130112  }
  0x1b   : > { %p329_p11 = scmp.lt.s32.totalorder %s5168_s23, 511  ;;  %5307 = vmatpush.msra.mxu3 %v506_v1  ;;  %v500_v13 = vld [vmem:[%s10659_s4 + $0x8] sm:$0xff]  ;;  %s10967_s1 = sld [smem:[#allocation236_spill]]  ;;  %v499_v15 = vld [vmem:[%s10659_s4] sm:$0xff]  ;;  %vm2353_vm2 = vcmask 195712   ;;  %vm2357_vm3 = vcmask 261312  }
  0x1c   : > { %5308 = vmatpush.msra.mxu1 %v505_v3  ;;  %s325_s17 = scalar_select %p324_p10, %s6137_s9, 3  ;;  %5309 = vmatpush.msra.mxu2 %v505_v3  ;;  %vm2361_vm4 = vcmask 326912   ;;  %vm2365_vm5 = vcmask 392512   ;;  %vm10831_vm6 = vcmask 458112   ;;  %vm10953_vm7 = vcmask 523712  }
  0x1d   : > { %5310 = vmatpush.msra.mxu3 %v505_v3  ;;  %s11845_s23 = smov (!%p329_p11, %s5168_s23), 511  ;;  %vm10950_vm8 = vcmask 589312   ;;  %vm10949_vm9 = vcmask 654912   ;;  %vm10834_vm10 = vcmask 720512   ;;  %vm10833_vm11 = vcmask 786112  }
  0x1e   : > { %5311 = vmatpush.msra.mxu1 %v504_v5  ;;  %5312 = vmatpush.msra.mxu2 %v504_v5  ;;  %s5167_s10 = sshll.u32 %s325_s17, 3  ;;  %s5169_s20 = sshll.u32 %s11845_s23, 3  ;;  %vm10836_vm12 = vcmask 851712   ;;  %vm10948_vm13 = vcmask 917312   ;;  %vm10947_vm14 = vcmask 982912   ;;  %vm10946_vm15 = vcmask 1048512  }
  0x1f   : > { %v342_v0 = vld [vmem:[%s10965_s2 + $0x38] sm:$0xff]  ;;  %v341_v2 = vld [vmem:[%s10965_s2 + $0x30] sm:$0xff]  ;;  %v340_v4 = vld [vmem:[%s10965_s2 + $0x28] sm:$0xff]  ;;  %5313 = vmatpush.msra.mxu3 %v504_v5 }
  0x20   : > { %359 = vmatpush.msra.mxu0 %v342_v0  ;;  %v339_v6 = vld [vmem:[%s10965_s2 + $0x20] sm:$0xff]  ;;  %v338_v8 = vld [vmem:[%s10965_s2 + $0x18] sm:$0xff]  ;;  %5314 = vmatpush.msra.mxu1 %v503_v7  ;;  %v337_v10 = vld [vmem:[%s10965_s2 + $0x10] sm:$0xff]  ;;  %s327_s12 = scalar_lea.vmem %s10966_s0, %s5167_s10  ;;  %s5301_s10 = sshll.u32 %s6137_s9, 3 }
  0x21   : > { %5315 = vmatpush.msra.mxu2 %v503_v7  ;;  %5316 = vmatpush.msra.mxu3 %v503_v7  ;;  %v336_v12 = vld [vmem:[%s10965_s2 + $0x8] sm:$0xff]  ;;  %s6215_s18 = scalar_lea.vmem %s10967_s1, %s5169_s20  ;;  %v335_v14 = vld [vmem:[%s10965_s2] sm:$0xff]  ;;  %s5052_s25 = scalar_lea.hbm %s10663_s8, %s5301_s10 }
  0x22   : > { %360 = vmatpush.msra.mxu0 %v341_v2  ;;  %5317 = vmatpush.msra.mxu1 %v502_v9  ;;  %v334_v16 = vld [vmem:[%s327_s12] sm:$0xff]  ;;  %v473_v19 = vld [vmem:[%s6215_s18 + $0x330] sm:$0xff]  ;;  %v404_v20 = vld [vmem:[%s6215_s18 + $0x108] sm:$0xff]  ;;  %s5056_s12 = sshll.u32 %s5052_s25, 4  ;;  %s5994_s0 = scalar_lea.hbm %s10663_s8, 32  ;;  %s5057_s12 = int_to_ptr.hbm [resolvable:$true] %s5056_s12 }
  0x23   : > { %5318 = vmatpush.msra.mxu2 %v502_v9  ;;  %5319 = vmatpush.msra.mxu3 %v502_v9  ;;  %v403_v17 = vld [vmem:[%s6215_s18 + $0x100] sm:$0xff]  ;;  %v444_v21 = vld [vmem:[%s6215_s18 + $0x248] sm:$0xff]  ;;  %v474_v22 = vld [vmem:[%s6215_s18 + $0x338] sm:$0xff]  ;;  %s5988_s23 = sshra.s32 %s5057_s12, 4  ;;  %s5989_s23 = int_to_ptr.hbm [resolvable:$true] %s5988_s23 }
  0x24   : > { %361 = vmatpush.msra.mxu0 %v340_v4  ;;  %5320 = vmatpush.msra.mxu1 %v501_v11  ;;  %v443_v18 = vld [vmem:[%s6215_s18 + $0x240] sm:$0xff]  ;;  %v405_v24 = vld [vmem:[%s6215_s18 + $0x110] sm:$0xff]  ;;  %v372_v27 = vld [vmem:[%s6215_s18 + $0x8] sm:$0xff]  ;;  %s5990_s19 = scalar_lea.hbm %s5989_s23, 8  ;;  %p5995_p1 = scmp.lt.s32.totalorder %s5989_s23, %s10663_s8 }
  0x25   : > { %5321 = vmatpush.msra.mxu2 %v501_v11  ;;  %5322 = vmatpush.msra.mxu3 %v501_v11  ;;  %v371_v23 = vld [vmem:[%s6215_s18] sm:$0xff]  ;;  %v445_v25 = vld [vmem:[%s6215_s18 + $0x250] sm:$0xff]  ;;  %v406_v28 = vld [vmem:[%s6215_s18 + $0x118] sm:$0xff]  ;;  %p5991_p12 = scmp.ne.s32.totalorder %s5989_s23, %s5990_s19  ;;  %p5996_p2 = scmp.lt.s32.totalorder %s5994_s0, %s5990_s19 }
  0x26   : > { %362 = vmatpush.msra.mxu0 %v339_v6  ;;  %5323 = vmatpush.msra.mxu1 %v500_v13  ;;  %v475_v26 = vld [vmem:[%s6215_s18 + $0x340] sm:$0xff]  ;;  %v446_v29 = vld [vmem:[%s6215_s18 + $0x258] sm:$0xff]  ;;  %v476_v30 = vld [vmem:[%s6215_s18 + $0x348] sm:$0xff] }
  0x27   : > { %5324 = vmatpush.msra.mxu2 %v500_v13  ;;  %5325 = vmatpush.msra.mxu3 %v500_v13  ;;  %v373_v31 = vld [vmem:[%s6215_s18 + $0x10] sm:$0xff]  ;;  %v407_v32 = vld [vmem:[%s6215_s18 + $0x120] sm:$0xff]  ;;  %v374_v35 = vld [vmem:[%s6215_s18 + $0x18] sm:$0xff]  ;;  %p5992_p13 = pnand %p5991_p12, %p6154_p5  ;;  %p5997_p3 = por %p5996_p2, %p5995_p1 }
  0x28   : > { %363 = vmatpush.msra.mxu0 %v338_v8  ;;  %5326 = vmatpush.msra.mxu1 %v499_v15  ;;  %v447_v33 = vld [vmem:[%s6215_s18 + $0x260] sm:$0xff]  ;;  %v477_v34 = vld [vmem:[%s6215_s18 + $0x350] sm:$0xff]  ;;  %v408_v36 = vld [vmem:[%s6215_s18 + $0x128] sm:$0xff] }
  0x29   : > { %5327 = vmatpush.msra.mxu2 %v499_v15  ;;  %5203 = vmatmul.msk.f32.vlgmr.msra.gmra.mxu1 %vm347_vm0, %v403_v17  ;;  %v448_v37 = vld [vmem:[%s6215_s18 + $0x268] sm:$0xff]  ;;  %v478_v38 = vld [vmem:[%s6215_s18 + $0x358] sm:$0xff]  ;;  %v375_v39 = vld [vmem:[%s6215_s18 + $0x20] sm:$0xff]  ;;  %p5993_p0 = pneg %p5992_p13 }
  0x2a   : > { %364 = vmatpush.msra.mxu0 %v337_v10  ;;  %5243 = vmatmul.msk.f32.vlgmr.msra.gmra.mxu2 %vm347_vm0, %v443_v18  ;;  %v409_v40 = vld [vmem:[%s6215_s18 + $0x130] sm:$0xff]  ;;  %v479_v42 = vld [vmem:[%s6215_s18 + $0x360] sm:$0xff]  ;;  %v376_v43 = vld [vmem:[%s6215_s18 + $0x28] sm:$0xff] }
  0x2b   : > { %5328 = vmatpush.msra.mxu3 %v499_v15  ;;  %v449_v41 = vld [vmem:[%s6215_s18 + $0x270] sm:$0xff]  ;;  %v410_v44 = vld [vmem:[%s6215_s18 + $0x138] sm:$0xff]  ;;  %v480_v46 = vld [vmem:[%s6215_s18 + $0x368] sm:$0xff]  ;;  %p5998_p4 = pnand %p5997_p3, %p5993_p0 }
  0x2c   : > { %365 = vmatpush.msra.mxu0 %v336_v12  ;;  %5273 = vmatmul.msk.f32.vlgmr.msra.gmra.mxu3 %vm347_vm0, %v473_v19  ;;  %v450_v45 = vld [vmem:[%s6215_s18 + $0x278] sm:$0xff]  ;;  %v377_v47 = vld [vmem:[%s6215_s18 + $0x30] sm:$0xff]  ;;  %v411_v48 = vld [vmem:[%s6215_s18 + $0x140] sm:$0xff] }
  0x2d   : > { %v451_v49 = vld [vmem:[%s6215_s18 + $0x280] sm:$0xff]  ;;  %v481_v50 = vld [vmem:[%s6215_s18 + $0x370] sm:$0xff]  ;;  %v378_v51 = vld [vmem:[%s6215_s18 + $0x38] sm:$0xff] }
  0x2e   : > { %366 = vmatpush.msra.mxu0 %v335_v14  ;;  %v412_v52 = vld [vmem:[%s6215_s18 + $0x148] sm:$0xff]  ;;  %v482_v54 = vld [vmem:[%s6215_s18 + $0x378] sm:$0xff]  ;;  %v379_v55 = vld [vmem:[%s6215_s18 + $0x40] sm:$0xff] }
  0x2f   : > { %5170 = vmatmul.msk.f32.vlgmr.msra.gmra.mxu0 %vm347_vm0, %v334_v16  ;;  %v452_v53 = vld [vmem:[%s6215_s18 + $0x288] sm:$0xff]  ;;  %v413_v56 = vld [vmem:[%s6215_s18 + $0x150] sm:$0xff]  ;;  %v483_v58 = vld [vmem:[%s6215_s18 + $0x380] sm:$0xff] }
  0x30   : > { %903 = vmatpush.msrb.mxu0 %v506_v1  ;;  %v453_v57 = vld [vmem:[%s6215_s18 + $0x290] sm:$0xff]  ;;  %v380_v59 = vld [vmem:[%s6215_s18 + $0x48] sm:$0xff]  ;;  %v414_v60 = vld [vmem:[%s6215_s18 + $0x158] sm:$0xff] }
  0x31   : > { %5204 = vmatmul.msk.f32.gmra.mxu1 %vm347_vm0, %v404_v20  ;;  %v454_v61 = vld [vmem:[%s6215_s18 + $0x298] sm:$0xff]  ;;  %v484_v62 = vld [vmem:[%s6215_s18 + $0x388] sm:$0xff]  ;;  %v381_v63 = vld [vmem:[%s6215_s18 + $0x50] sm:$0xff] }
  0x32   : > { %904 = vmatpush.msrb.mxu0 %v505_v3  ;;  %5244 = vmatmul.msk.f32.gmra.mxu2 %vm347_vm0, %v444_v21  ;;  %v415_v0 = vld [vmem:[%s6215_s18 + $0x160] sm:$0xff]  ;;  %v485_v2 = vld [vmem:[%s6215_s18 + $0x390] sm:$0xff]  ;;  %v382_v3 = vld [vmem:[%s6215_s18 + $0x58] sm:$0xff] }
  0x33   : > { %v455_v1 = vld [vmem:[%s6215_s18 + $0x2a0] sm:$0xff]  ;;  %v416_v4 = vld [vmem:[%s6215_s18 + $0x168] sm:$0xff]  ;;  %v486_v6 = vld [vmem:[%s6215_s18 + $0x398] sm:$0xff] }
  0x34   : > { %905 = vmatpush.msrb.mxu0 %v504_v5  ;;  %5274 = vmatmul.msk.f32.gmra.mxu3 %vm347_vm0, %v474_v22  ;;  %v456_v5 = vld [vmem:[%s6215_s18 + $0x2a8] sm:$0xff]  ;;  %v417_v8 = vld [vmem:[%s6215_s18 + $0x170] sm:$0xff]  ;;  %v487_v10 = vld [vmem:[%s6215_s18 + $0x3a0] sm:$0xff] }
  0x35   : > { %v418_v12 = vld [vmem:[%s6215_s18 + $0x178] sm:$0xff]  ;;  %v5697_v14 = vld [vmem:[%s10658_s3] ss:$0 sm:$0xff]  ;;  %v385_v17 = vld [vmem:[%s6215_s18 + $0x70] sm:$0xff] }
  0x36   : > { %906 = vmatpush.msrb.mxu0 %v503_v7  ;;  %v383_v7 = vld [vmem:[%s6215_s18 + $0x60] sm:$0xff] }
  0x37   : > { %v419_v20 = vld [vmem:[%s6215_s18 + $0x180] sm:$0xff] }
  0x38   : > { %907 = vmatpush.msrb.mxu0 %v502_v9  ;;  %v457_v9 = vld [vmem:[%s6215_s18 + $0x2b0] sm:$0xff]  ;;  %v459_v21 = vld [vmem:[%s6215_s18 + $0x2c0] sm:$0xff] }
  0x39   : > { %5205 = vmatmul.msk.f32.gmra.mxu1 %vm347_vm0, %v405_v24 }
  0x3a   : > { %908 = vmatpush.msrb.mxu0 %v501_v11  ;;  %5245 = vmatmul.msk.f32.gmra.mxu2 %vm347_vm0, %v445_v25  ;;  %v384_v11 = vld [vmem:[%s6215_s18 + $0x68] sm:$0xff] }
  0x3c   : > { %909 = vmatpush.msrb.mxu0 %v500_v13  ;;  %5275 = vmatmul.msk.f32.gmra.mxu3 %vm347_vm0, %v475_v26  ;;  %v458_v13 = vld [vmem:[%s6215_s18 + $0x2b8] sm:$0xff] }
  0x3d   : > { %v386_v26 = vld [vmem:[%s6215_s18 + $0x78] sm:$0xff] }
  0x3e   : > { %910 = vmatpush.msrb.mxu0 %v499_v15  ;;  %v6352_v15 = vld [vmem:[%s10661_s6] ss:$0 sm:$0xff] }
  0x3f   : > { %5171 = vmatmul.msk.f32.vlgmr.msrb.gmra.mxu0 %vm347_vm0, %v371_v23  ;;  %v6362_v23 = vld [vmem:[%s10660_s5] ss:$0 sm:$0xff] }
  0x41   : > { %5206 = vmatmul.msk.f32.gmra.mxu1 %vm347_vm0, %v406_v28 }
  0x42   : > { %5246 = vmatmul.msk.f32.gmra.mxu2 %vm347_vm0, %v446_v29  ;;  %v420_v29 = vld [vmem:[%s6215_s18 + $0x188] sm:$0xff] }
  0x44   : > { %5276 = vmatmul.msk.f32.gmra.mxu3 %vm347_vm0, %v476_v30 }
  0x47   : > { %5172 = vmatmul.msk.f32.gmra.mxu0 %vm347_vm0, %v372_v27 }
  0x49   : > { %5207 = vmatmul.msk.f32.gmra.mxu1 %vm347_vm0, %v407_v32 }
  0x4a   : > { %5247 = vmatmul.msk.f32.gmra.mxu2 %vm347_vm0, %v447_v33 }
  0x4c   : > { %5277 = vmatmul.msk.f32.gmra.mxu3 %vm347_vm0, %v477_v34  ;;  %v488_v34 = vld [vmem:[%s6215_s18 + $0x3a8] sm:$0xff] }
  0x4f   : > { %5173 = vmatmul.msk.f32.gmra.mxu0 %vm347_vm0, %v373_v31  ;;  %v460_v31 = vld [vmem:[%s6215_s18 + $0x2c8] sm:$0xff] }
  0x51   : > { %5208 = vmatmul.msk.f32.gmra.mxu1 %vm347_vm0, %v408_v36 }
  0x52   : > { %5248 = vmatmul.msk.f32.gmra.mxu2 %vm347_vm0, %v448_v37 }
  0x54   : > { %5278 = vmatmul.msk.f32.gmra.mxu3 %vm347_vm0, %v478_v38  ;;  %v387_v38 = vld [vmem:[%s6215_s18 + $0x80] sm:$0xff] }
  0x57   : > { %5174 = vmatmul.msk.f32.gmra.mxu0 %vm347_vm0, %v374_v35 }
  0x59   : > { %5209 = vmatmul.msk.f32.gmra.mxu1 %vm347_vm0, %v409_v40 }
  0x5a   : > { %5249 = vmatmul.msk.f32.gmra.mxu2 %vm347_vm0, %v449_v41 }
  0x5c   : > { %5279 = vmatmul.msk.f32.gmra.mxu3 %vm347_vm0, %v479_v42  ;;  %v421_v42 = vld [vmem:[%s6215_s18 + $0x190] sm:$0xff] }
  0x5f   : > { %5175 = vmatmul.msk.f32.gmra.mxu0 %vm347_vm0, %v375_v39 }
  0x61   : > { %5210 = vmatmul.msk.f32.gmra.mxu1 %vm347_vm0, %v410_v44  ;;  %v461_v44 = vld [vmem:[%s6215_s18 + $0x2d0] sm:$0xff] }
  0x62   : > { %5250 = vmatmul.msk.f32.gmra.mxu2 %vm347_vm0, %v450_v45 }
  0x64   : > { %5280 = vmatmul.msk.f32.gmra.mxu3 %vm347_vm0, %v480_v46 }
  0x67   : > { %5176 = vmatmul.msk.f32.gmra.mxu0 %vm347_vm0, %v376_v43 }
  0x69   : > { %5211 = vmatmul.msk.f32.gmra.mxu1 %vm347_vm0, %v411_v48 }
  0x6a   : > { %5251 = vmatmul.msk.f32.gmra.mxu2 %vm347_vm0, %v451_v49 }
  0x6c   : > { %5281 = vmatmul.msk.f32.gmra.mxu3 %vm347_vm0, %v481_v50 }
  0x6f   : > { %5177 = vmatmul.msk.f32.gmra.mxu0 %vm347_vm0, %v377_v47 }
  0x71   : > { %5212 = vmatmul.msk.f32.gmra.mxu1 %vm347_vm0, %v412_v52  ;;  %v388_v52 = vld [vmem:[%s6215_s18 + $0x88] sm:$0xff] }
  0x72   : > { %5252 = vmatmul.msk.f32.gmra.mxu2 %vm347_vm0, %v452_v53 }
  0x74   : > { %5282 = vmatmul.msk.f32.gmra.mxu3 %vm347_vm0, %v482_v54 }
  0x77   : > { %5178 = vmatmul.msk.f32.gmra.mxu0 %vm347_vm0, %v378_v51 }
  0x79   : > { %5213 = vmatmul.msk.f32.gmra.mxu1 %vm347_vm0, %v413_v56  ;;  %v422_v56 = vld [vmem:[%s6215_s18 + $0x198] sm:$0xff] }
  0x7a   : > { %5253 = vmatmul.msk.f32.gmra.mxu2 %vm347_vm0, %v453_v57 }
  0x7c   : > { %5283 = vmatmul.msk.f32.gmra.mxu3 %vm347_vm0, %v483_v58  ;;  %v462_v58 = vld [vmem:[%s6215_s18 + $0x2d8] sm:$0xff] }
  0x7f   : > { %5179 = vmatmul.msk.f32.gmra.mxu0 %vm347_vm0, %v379_v55 }
  0x81   : > { %5214 = vmatmul.msk.f32.gmra.mxu1 %vm347_vm0, %v414_v60 }
  0x82   : > { %5254 = vmatmul.msk.f32.gmra.mxu2 %vm347_vm0, %v454_v61 }
  0x84   : > { %5284 = vmatmul.msk.f32.gmra.mxu3 %vm347_vm0, %v484_v62 }
  0x87   : > { %5180 = vmatmul.msk.f32.gmra.mxu0 %vm347_vm0, %v380_v59 }
  0x89   : > { %5215 = vmatmul.msk.f32.gmra.mxu1 %vm347_vm0, %v415_v0 }
  0x8a   : > { %5255 = vmatmul.msk.f32.gmra.mxu2 %vm347_vm0, %v455_v1 }
  0x8c   : > { %5285 = vmatmul.msk.f32.gmra.mxu3 %vm347_vm0, %v485_v2  ;;  %v389_v2 = vld [vmem:[%s6215_s18 + $0x90] sm:$0xff] }
  0x8f   : > { %5181 = vmatmul.msk.f32.gmra.mxu0 %vm347_vm0, %v381_v63 }
  0x91   : > { %5216 = vmatmul.msk.f32.gmra.mxu1 %vm347_vm0, %v416_v4  ;;  %v423_v4 = vld [vmem:[%s6215_s18 + $0x1a0] sm:$0xff] }
  0x92   : > { %5256 = vmatmul.msk.f32.gmra.mxu2 %vm347_vm0, %v456_v5 }
  0x94   : > { %5286 = vmatmul.msk.f32.gmra.mxu3 %vm347_vm0, %v486_v6 }
  0x97   : > { %5182 = vmatmul.msk.f32.gmra.mxu0 %vm347_vm0, %v382_v3 }
  0x99   : > { %5217 = vmatmul.msk.f32.gmra.mxu1 %vm347_vm0, %v417_v8 }
  0x9a   : > { %5257 = vmatmul.msk.f32.gmra.mxu2 %vm347_vm0, %v457_v9 }
  0x9c   : > { %5287 = vmatmul.msk.f32.gmra.mxu3 %vm347_vm0, %v487_v10 }
  0x9f   : > { %5183 = vmatmul.msk.f32.gmra.mxu0 %vm347_vm0, %v383_v7  ;;  %v463_v7 = vld [vmem:[%s6215_s18 + $0x2e0] sm:$0xff] }
  0xa1   : > { %5218 = vmatmul.msk.f32.gmra.mxu1 %vm347_vm0, %v418_v12 }
  0xa2   : > { %5258 = vmatmul.msk.f32.gmra.mxu2 %vm347_vm0, %v458_v13 }
  0xa4   : > { %5288 = vmatmul.msk.f32.gmra.mxu3 %vm347_vm0, %v488_v34  ;;  %v425_v34 = vld [vmem:[%s6215_s18 + $0x1b0] sm:$0xff] }
  0xa6   : > { %v1008_v19 = vpop.f32.mrf.mxu1 }
  0xa7   : > { %5184 = vmatmul.msk.f32.gmra.mxu0 %vm347_vm0, %v384_v11  ;;  %v6367_v24 = vadd.f32 %v6362_v23, %v1008_v19 }
  0xa9   : > { %5219 = vmatmul.msk.f32.gmra.mxu1 %vm347_vm0, %v419_v20  ;;  %v1335_v32 = vmul.f32 %v6352_v15, %v6367_v24  ;;  %v464_v20 = vld [vmem:[%s6215_s18 + $0x2e8] sm:$0xff] }
  0xaa   : > { %5259 = vmatmul.msk.f32.gmra.mxu2 %vm347_vm0, %v459_v21 }
  0xac   : > { %v368_v16 = vpop.f32.mrf.mxu0 }
  0xad   : > { %v369_v18 = vadd.f32 %v5697_v14, %v368_v16  ;;  %v1128_v25 = vpop.f32.mrf.mxu2  ;;  %v390_v14 = vld [vmem:[%s6215_s18 + $0x98] sm:$0xff] }
  0xae   : > { %v6371_v27 = vadd.f32 %v6362_v23, %v1128_v25  ;;  %v1011_v28 = vpop.f32.mrf.mxu1 }
  0xaf   : > { %5185 = vmatmul.msk.f32.gmra.mxu0 %vm347_vm0, %v385_v17  ;;  %v1300_v22 = vmul.f32 %v6352_v15, %v369_v18  ;;  %v1218_v30 = vpop.f32.mrf.mxu3  ;;  %v6409_v49 = vadd.f32 %v6362_v23, %v1011_v28  ;;  %v424_v18 = vld [vmem:[%s6215_s18 + $0x1a8] sm:$0xff] }
  0xb0   : > { %v1375_v33 = vmul.f32 %v6352_v15, %v6371_v27  ;;  %v6384_v35 = vadd.f32 %v6362_v23, %v1218_v30 }
  0xb1   : > { %1301 = vadd.xlane.f32.xlu0 %v1300_v22  ;;  %5220 = vmatmul.msk.f32.gmra.mxu1 %vm347_vm0, %v420_v29  ;;  %v1336_v59 = vmul.f32 %v6352_v15, %v6409_v49 }
  0xb2   : > { %5260 = vmatmul.msk.f32.gmra.mxu2 %vm347_vm0, %v460_v31  ;;  %1575 = vadd.xlane.f32.xlu1 %v1375_v33  ;;  %10968 = vst [vmem:[#allocation8_spill] sm:$0xff] %v6384_v35  ;;  %v1405_v45 = vmul.f32 %v6352_v15, %v6384_v35  ;;  %v391_v31 = vld [vmem:[%s6215_s18 + $0xa0] sm:$0xff] }
  0xb5   : > { %v1131_v36 = vpop.f32.mrf.mxu2 }
  0xb6   : > { %v6389_v39 = vadd.f32 %v6362_v23, %v1131_v36  ;;  %v1014_v41 = vpop.f32.mrf.mxu1 }
  0xb7   : > { %5186 = vmatmul.msk.f32.gmra.mxu0 %vm347_vm0, %v386_v26  ;;  %v1221_v43 = vpop.f32.mrf.mxu3  ;;  %v6426_v61 = vadd.f32 %v6362_v23, %v1014_v41 }
  0xb8   : > { %v1376_v46 = vmul.f32 %v6352_v15, %v6389_v39  ;;  %v6406_v48 = vadd.f32 %v6362_v23, %v1221_v43 }
  0xb9   : > { %1495 = vadd.xlane.f32.xlu0 %v1335_v32  ;;  %5221 = vmatmul.msk.f32.gmra.mxu1 %vm347_vm0, %v421_v42  ;;  %v1337_v5 = vmul.f32 %v6352_v15, %v6426_v61 }
  0xba   : > { %5261 = vmatmul.msk.f32.gmra.mxu2 %vm347_vm0, %v461_v44  ;;  %1577 = vadd.xlane.f32.xlu2 %v1376_v46  ;;  %10969 = vst [vmem:[#allocation9_spill] sm:$0xff] %v6406_v48  ;;  %v1406_v55 = vmul.f32 %v6352_v15, %v6406_v48 }
  0xbb   : > { %1635 = vadd.xlane.f32.xlu1 %v1405_v45 }
  0xbc   : > { %v912_v37 = vpop.f32.mrf.mxu0 }
  0xbd   : > { %v6392_v40 = vadd.f32 %v6362_v23, %v912_v37  ;;  %v1134_v50 = vpop.f32.mrf.mxu2  ;;  %v465_v37 = vld [vmem:[%s6215_s18 + $0x2f0] sm:$0xff] }
  0xbe   : > { %v6413_v53 = vadd.f32 %v6362_v23, %v1134_v50  ;;  %v1017_v54 = vpop.f32.mrf.mxu1  ;;  %v392_v50 = vld [vmem:[%s6215_s18 + $0xa8] sm:$0xff] }
  0xbf   : > { %5187 = vmatmul.msk.f32.gmra.mxu0 %vm347_vm0, %v387_v38  ;;  %v1303_v47 = vmul.f32 %v6352_v15, %v6392_v40  ;;  %v1224_v57 = vpop.f32.mrf.mxu3  ;;  %v6450_v10 = vadd.f32 %v6362_v23, %v1017_v54 }
  0xc0   : > { %v1377_v60 = vmul.f32 %v6352_v15, %v6413_v53  ;;  %v6433_v63 = vadd.f32 %v6362_v23, %v1224_v57 }
  0xc1   : > { %1431 = vadd.xlane.f32.xlu0 %v1303_v47  ;;  %5222 = vmatmul.msk.f32.gmra.mxu1 %vm347_vm0, %v422_v56  ;;  %v1338_v22 = vmul.f32 %v6352_v15, %v6450_v10 }
  0xc2   : > { %5262 = vmatmul.msk.f32.gmra.mxu2 %vm347_vm0, %v462_v58  ;;  %1637 = vadd.xlane.f32.xlu2 %v1406_v55  ;;  %10970 = vst [vmem:[#allocation10_spill] sm:$0xff] %v6433_v63  ;;  %v1407_v9 = vmul.f32 %v6352_v15, %v6433_v63  ;;  %v466_v55 = vld [vmem:[%s6215_s18 + $0x2f8] sm:$0xff] }
  0xc3   : > { %1497 = vadd.xlane.f32.xlu1 %v1336_v59 }
  0xc4   : > { %v915_v51 = vpop.f32.mrf.mxu0 }
  0xc5   : > { %v6430_v62 = vadd.f32 %v6362_v23, %v915_v51  ;;  %v1137_v0 = vpop.f32.mrf.mxu2 }
  0xc6   : > { %v6436_v3 = vpop.f32.mrf.mxu1  ;;  %v6476_v28 = vadd.f32 %v6362_v23, %v1137_v0 }
  0xc7   : > { %5188 = vmatmul.msk.f32.gmra.mxu0 %vm347_vm0, %v388_v52  ;;  %v1227_v6 = vpop.f32.mrf.mxu3  ;;  %v1304_v8 = vmul.f32 %v6352_v15, %v6430_v62  ;;  %v426_v52 = vld [vmem:[%s6215_s18 + $0x1b8] sm:$0xff]  ;;  %v6521_v59 = vadd.f32 %v6362_v23, %v6436_v3 }
  0xc8   : > { %v1378_v38 = vmul.f32 %v6352_v15, %v6476_v28  ;;  %v6497_v44 = vadd.f32 %v6362_v23, %v1227_v6  ;;  %v427_v6 = vld [vmem:[%s6215_s18 + $0x1c0] sm:$0xff] }
  0xc9   : > { %1579 = vadd.xlane.f32.xlu0 %v1377_v60  ;;  %5223 = vmatmul.msk.f32.gmra.mxu1 %vm347_vm0, %v423_v4  ;;  %v393_v4 = vld [vmem:[%s6215_s18 + $0xb0] sm:$0xff]  ;;  %v1339_v3 = vmul.f32 %v6352_v15, %v6521_v59 }
  0xca   : > { %5263 = vmatmul.msk.f32.gmra.mxu2 %vm347_vm0, %v463_v7  ;;  %1499 = vadd.xlane.f32.xlu2 %v1337_v5  ;;  %10972 = vst [vmem:[#allocation12_spill] sm:$0xff] %v6497_v44  ;;  %v1408_v56 = vmul.f32 %v6352_v15, %v6497_v44  ;;  %v434_v44 = vld [vmem:[%s6215_s18 + $0x1f8] sm:$0xff] }
  0xcb   : > { %1433 = vadd.xlane.f32.xlu1 %v1304_v8 }
  0xcc   : > { %v918_v1 = vpop.f32.mrf.mxu0 }
  0xcd   : > { %v6453_v11 = vadd.f32 %v6362_v23, %v918_v1  ;;  %v1140_v12 = vpop.f32.mrf.mxu2 }
  0xce   : > { %v6459_v17 = vpop.f32.mrf.mxu1  ;;  %v6472_v26 = vadd.f32 %v6362_v23, %v1140_v12 }
  0xcf   : > { %5189 = vmatmul.msk.f32.gmra.mxu0 %vm347_vm0, %v389_v2  ;;  %v1230_v19 = vpop.f32.mrf.mxu3  ;;  %v1305_v21 = vmul.f32 %v6352_v15, %v6453_v11 }
  0xd0   : > { %v1379_v36 = vmul.f32 %v6352_v15, %v6472_v26  ;;  %v6493_v43 = vadd.f32 %v6362_v23, %v1230_v19  ;;  %v394_v19 = vld [vmem:[%s6215_s18 + $0xb8] sm:$0xff] }
  0xd1   : > { %1639 = vadd.xlane.f32.xlu0 %v1407_v9  ;;  %5224 = vmatmul.msk.f32.gmra.mxu1 %vm347_vm0, %v424_v18  ;;  %v6540_v9 = vadd.f32 %v6362_v23, %v6459_v17 }
  0xd2   : > { %5264 = vmatmul.msk.f32.gmra.mxu2 %vm347_vm0, %v464_v20  ;;  %10971 = vst [vmem:[#allocation11_spill] sm:$0xff] %v6493_v43  ;;  %v1409_v54 = vmul.f32 %v6352_v15, %v6493_v43 }
  0xd3   : > { %1435 = vadd.xlane.f32.xlu1 %v1305_v21  ;;  %v428_v21 = vld [vmem:[%s6215_s18 + $0x1c8] sm:$0xff]  ;;  %v1340_v17 = vmul.f32 %v6352_v15, %v6540_v9 }
  0xd4   : > { %v921_v13 = vpop.f32.mrf.mxu0 }
  0xd5   : > { %v6457_v16 = vadd.f32 %v6362_v23, %v921_v13  ;;  %v1143_v29 = vpop.f32.mrf.mxu2 }
  0xd6   : > { %v6480_v32 = vadd.f32 %v6362_v23, %v1143_v29  ;;  %v1026_v33 = vpop.f32.mrf.mxu1 }
  0xd7   : > { %5190 = vmatmul.msk.f32.gmra.mxu0 %vm347_vm0, %v390_v14  ;;  %v1306_v25 = vmul.f32 %v6352_v15, %v6457_v16  ;;  %v1233_v42 = vpop.f32.mrf.mxu3  ;;  %v6543_v12 = vadd.f32 %v6362_v23, %v1026_v33 }
  0xd8   : > { %v1380_v41 = vmul.f32 %v6352_v15, %v6480_v32  ;;  %v6500_v45 = vadd.f32 %v6362_v23, %v1233_v42  ;;  %v429_v42 = vld [vmem:[%s6215_s18 + $0x1d0] sm:$0xff] }
  0xd9   : > { %1437 = vadd.xlane.f32.xlu2 %v1306_v25  ;;  %1501 = vadd.xlane.f32.xlu0 %v1338_v22  ;;  %v1341_v29 = vmul.f32 %v6352_v15, %v6543_v12 }
  0xda   : > { %5225 = vmatmul.msk.f32.gmra.mxu1 %vm347_vm0, %v425_v34  ;;  %5265 = vmatmul.msk.f32.gmra.mxu2 %vm347_vm0, %v465_v37  ;;  %10973 = vst [vmem:[#allocation13_spill] sm:$0xff] %v6500_v45  ;;  %v1410_v57 = vmul.f32 %v6352_v15, %v6500_v45 }
  0xdb   : > { %1581 = vadd.xlane.f32.xlu1 %v1378_v38  ;;  %v395_v38 = vld [vmem:[%s6215_s18 + $0xc0] sm:$0xff] }
  0xdc   : > { %v924_v30 = vpop.f32.mrf.mxu0 }
  0xdd   : > { %v1146_v46 = vpop.f32.mrf.mxu2  ;;  %v6516_v58 = vadd.f32 %v6362_v23, %v924_v30  ;;  %v489_v30 = vld [vmem:[%s6215_s18 + $0x3b0] sm:$0xff] }
  0xde   : > { %v6503_v51 = vpop.f32.mrf.mxu1  ;;  %v6546_v13 = vadd.f32 %v6362_v23, %v1146_v46  ;;  %5289 = vmatmul.msk.f32.gmra.mxu3 %vm347_vm0, %v489_v30 }
  0xdf   : > { %5191 = vmatmul.msk.f32.gmra.mxu0 %vm347_vm0, %v391_v31  ;;  %v1236_v0 = vpop.f32.mrf.mxu3  ;;  %v1307_v7 = vmul.f32 %v6352_v15, %v6516_v58 }
  0xe0   : > { %v1381_v25 = vmul.f32 %v6352_v15, %v6546_v13  ;;  %v6569_v34 = vadd.f32 %v6362_v23, %v1236_v0 }
  0xe1   : > { %1583 = vadd.xlane.f32.xlu2 %v1379_v36  ;;  %1585 = vadd.xlane.f32.xlu0 %v1380_v41 }
  0xe2   : > { %5226 = vmatmul.msk.f32.gmra.mxu1 %vm347_vm0, %v426_v52  ;;  %5266 = vmatmul.msk.f32.gmra.mxu2 %vm347_vm0, %v466_v55  ;;  %10974 = vst [vmem:[#allocation14_spill] sm:$0xff] %v6569_v34 }
  0xe3   : > { %1641 = vadd.xlane.f32.xlu1 %v1408_v56 }
  0xe4   : > { %v927_v47 = vpop.f32.mrf.mxu0 }
  0xe5   : > { %v6524_v60 = vadd.f32 %v6362_v23, %v927_v47  ;;  %v1149_v1 = vpop.f32.mrf.mxu2  ;;  %v1411_v47 = vmul.f32 %v6352_v15, %v6569_v34 }
  0xe6   : > { %v6527_v5 = vpop.f32.mrf.mxu1  ;;  %v6562_v31 = vadd.f32 %v6362_v23, %v1149_v1 }
  0xe7   : > { %5192 = vmatmul.msk.f32.gmra.mxu0 %vm347_vm0, %v392_v50  ;;  %v1308_v8 = vmul.f32 %v6352_v15, %v6524_v60  ;;  %v1239_v22 = vpop.f32.mrf.mxu3 }
  0xe8   : > { %v1382_v46 = vmul.f32 %v6352_v15, %v6562_v31  ;;  %v6585_v55 = vadd.f32 %v6362_v23, %v1239_v22 }
  0xe9   : > { %1643 = vadd.xlane.f32.xlu2 %v1409_v54  ;;  %1645 = vadd.xlane.f32.xlu0 %v1410_v57  ;;  %v490_v54 = vld [vmem:[%s6215_s18 + $0x3b8] sm:$0xff] }
  0xea   : > { %5227 = vmatmul.msk.f32.gmra.mxu1 %vm347_vm0, %v427_v6  ;;  %10975 = vst [vmem:[#allocation15_spill] sm:$0xff] %v6585_v55  ;;  %5290 = vmatmul.msk.f32.gmra.mxu3 %vm347_vm0, %v490_v54 }
  0xeb   : > { %1503 = vadd.xlane.f32.xlu1 %v1339_v3  ;;  %v1412_v3 = vmul.f32 %v6352_v15, %v6585_v55 }
  0xec   : > { %v930_v2 = vpop.f32.mrf.mxu0 }
  0xed   : > { %v1152_v14 = vpop.f32.mrf.mxu2  ;;  %v6589_v56 = vadd.f32 %v6362_v23, %v930_v2 }
  0xee   : > { %v6549_v20 = vpop.f32.mrf.mxu1  ;;  %v6566_v33 = vadd.f32 %v6362_v23, %v1152_v14 }
  0xef   : > { %5193 = vmatmul.msk.f32.gmra.mxu0 %vm347_vm0, %v393_v4  ;;  %v1242_v52 = vpop.f32.mrf.mxu3  ;;  %v396_v4 = vld [vmem:[%s6215_s18 + $0xc8] sm:$0xff]  ;;  %v1309_v2 = vmul.f32 %v6352_v15, %v6589_v56 }
  0xf0   : > { %v1383_v50 = vmul.f32 %v6352_v15, %v6566_v33  ;;  %v6592_v57 = vadd.f32 %v6362_v23, %v1242_v52 }
  0xf1   : > { %1439 = vadd.xlane.f32.xlu2 %v1307_v7  ;;  %1441 = vadd.xlane.f32.xlu0 %v1308_v8  ;;  %v430_v7 = vld [vmem:[%s6215_s18 + $0x1d8] sm:$0xff] }
  0xf2   : > { %5228 = vmatmul.msk.f32.gmra.mxu1 %vm347_vm0, %v428_v21  ;;  %10976 = vst [vmem:[#allocation16_spill] sm:$0xff] %v6592_v57  ;;  %v1413_v8 = vmul.f32 %v6352_v15, %v6592_v57 }
  0xf3   : > { %1587 = vadd.xlane.f32.xlu1 %v1381_v25 }
  0xf4   : > { %v933_v18 = vpop.f32.mrf.mxu0 }
  0xf5   : > { %v1155_v36 = vpop.f32.mrf.mxu2  ;;  %v6609_v14 = vadd.f32 %v6362_v23, %v933_v18  ;;  %v431_v18 = vld [vmem:[%s6215_s18 + $0x1e0] sm:$0xff] }
  0xf6   : > { %v6572_v41 = vpop.f32.mrf.mxu1 }
  0xf7   : > { %5194 = vmatmul.msk.f32.gmra.mxu0 %vm347_vm0, %v394_v19  ;;  %v6613_v19 = vadd.f32 %v6362_v23, %v6503_v51 }
  0xf9   : > { %1505 = vadd.xlane.f32.xlu2 %v1340_v17  ;;  %1507 = vadd.xlane.f32.xlu0 %v1341_v29  ;;  %v1245_v17 = vpop.f32.mrf.mxu3  ;;  %v397_v29 = vld [vmem:[%s6215_s18 + $0xd0] sm:$0xff]  ;;  %v1342_v51 = vmul.f32 %v6352_v15, %v6613_v19 }
  0xfa   : > { %5229 = vmatmul.msk.f32.gmra.mxu1 %vm347_vm0, %v429_v42  ;;  %v491_v42 = vld [vmem:[%s6215_s18 + $0x3c0] sm:$0xff] }
  0xfb   : > { %1647 = vadd.xlane.f32.xlu1 %v1411_v47  ;;  %5291 = vmatmul.msk.f32.gmra.mxu3 %vm347_vm0, %v491_v42  ;;  %v6640_v47 = vadd.f32 %v6362_v23, %v6549_v20  ;;  %v399_v42 = vld [vmem:[%s6215_s18 + $0xe0] sm:$0xff] }
  0xfc   : > { %v936_v37 = vpop.f32.mrf.mxu0 }
  0xfd   : > { %v1158_v0 = vpop.f32.mrf.mxu2  ;;  %v6616_v21 = vadd.f32 %v6362_v23, %v936_v37  ;;  %v1344_v20 = vmul.f32 %v6352_v15, %v6640_v47 }
  0xfe   : > { %v6597_v6 = vpop.f32.mrf.mxu1 }
  0xff   : > { %5195 = vmatmul.msk.f32.gmra.mxu0 %vm347_vm0, %v395_v38  ;;  %v1310_v38 = vmul.f32 %v6352_v15, %v6609_v14  ;;  %v1311_v37 = vmul.f32 %v6352_v15, %v6616_v21 }
 0x101   : > { %1589 = vadd.xlane.f32.xlu2 %v1382_v46  ;;  %1591 = vadd.xlane.f32.xlu0 %v1383_v50  ;;  %v6636_v46 = vadd.f32 %v6362_v23, %v6527_v5  ;;  %v6643_v50 = vadd.f32 %v6362_v23, %v1155_v36  ;;  %v1248_v36 = vpop.f32.mrf.mxu3 }
 0x102   : > { %5230 = vmatmul.msk.f32.gmra.mxu1 %vm347_vm0, %v430_v7 }
 0x103   : > { %1443 = vadd.xlane.f32.xlu1 %v1309_v2  ;;  %v1343_v5 = vmul.f32 %v6352_v15, %v6636_v46  ;;  %v1384_v2 = vmul.f32 %v6352_v15, %v6643_v50 }
 0x104   : > { %v6594_v1 = vpop.f32.mrf.mxu0 }
 0x105   : > { %v1161_v22 = vpop.f32.mrf.mxu2 }
 0x106   : > { %v6621_v30 = vpop.f32.mrf.mxu1 }
 0x107   : > { %5196 = vmatmul.msk.f32.gmra.mxu0 %vm347_vm0, %v396_v4  ;;  %v398_v4 = vld [vmem:[%s6215_s18 + $0xd8] sm:$0xff] }
 0x109   : > { %1649 = vadd.xlane.f32.xlu2 %v1412_v3  ;;  %1651 = vadd.xlane.f32.xlu0 %v1413_v8  ;;  %v432_v3 = vld [vmem:[%s6215_s18 + $0x1e8] sm:$0xff] }
 0x10a   : > { %5231 = vmatmul.msk.f32.gmra.mxu1 %vm347_vm0, %v431_v18  ;;  %v492_v8 = vld [vmem:[%s6215_s18 + $0x3c8] sm:$0xff]  ;;  %v6663_v18 = vadd.f32 %v6362_v23, %v1161_v22 }
 0x10b   : > { %1509 = vadd.xlane.f32.xlu1 %v1342_v51  ;;  %5292 = vmatmul.msk.f32.gmra.mxu3 %vm347_vm0, %v492_v8  ;;  %v6689_v8 = vadd.f32 %v6362_v23, %v6594_v1 }
 0x10c   : > { %v6618_v25 = vpop.f32.mrf.mxu0 }
 0x10d   : > { %v6645_v52 = vpop.f32.mrf.mxu2  ;;  %v1312_v1 = vmul.f32 %v6352_v15, %v6689_v8 }
 0x10e   : > { %v1047_v7 = vpop.f32.mrf.mxu1 }
 0x10f   : > { %5197 = vmatmul.msk.f32.gmra.mxu0 %vm347_vm0, %v397_v29  ;;  %v6659_v29 = vadd.f32 %v6362_v23, %v1158_v0  ;;  %v433_v0 = vld [vmem:[%s6215_s18 + $0x1f0] sm:$0xff] }
 0x111   : > { %1445 = vadd.xlane.f32.xlu2 %v1310_v38  ;;  %1447 = vadd.xlane.f32.xlu0 %v1311_v37  ;;  %v6666_v38 = vadd.f32 %v6362_v23, %v1245_v17  ;;  %v1386_v17 = vmul.f32 %v6352_v15, %v6663_v18 }
 0x112   : > { %5232 = vmatmul.msk.f32.gmra.mxu1 %vm347_vm0, %v432_v3  ;;  %v1385_v3 = vmul.f32 %v6352_v15, %v6659_v29 }
 0x113   : > { %10977 = vst [vmem:[#allocation17_spill] sm:$0xff] %v6666_v38  ;;  %1593 = vadd.xlane.f32.xlu1 %v1384_v2  ;;  %v1414_v22 = vmul.f32 %v6352_v15, %v6666_v38  ;;  %v493_v2 = vld [vmem:[%s6215_s18 + $0x3d0] sm:$0xff] }
 0x114   : > { %v945_v54 = vpop.f32.mrf.mxu0  ;;  %5293 = vmatmul.msk.f32.gmra.mxu3 %vm347_vm0, %v493_v2 }
 0x115   : > { %v6668_v51 = vpop.f32.mrf.mxu2 }
 0x117   : > { %5198 = vmatmul.msk.f32.gmra.mxu0 %vm347_vm0, %v398_v4  ;;  %v1050_v4 = vpop.f32.mrf.mxu1 }
 0x119   : > { %1511 = vadd.xlane.f32.xlu2 %v1343_v5  ;;  %1513 = vadd.xlane.f32.xlu0 %v1344_v20  ;;  %v1251_v5 = vpop.f32.mrf.mxu3  ;;  %v6684_v20 = vadd.f32 %v6362_v23, %v1248_v36 }
 0x11a   : > { %5233 = vmatmul.msk.f32.gmra.mxu1 %vm347_vm0, %v433_v0  ;;  %v6692_v35 = vadd.f32 %v6362_v23, %v1251_v5  ;;  %v400_v0 = vld [vmem:[%s6215_s18 + $0xe8] sm:$0xff]  ;;  %v1045_v5 = vadd.f32 %v6362_v23, %v6621_v30 }
 0x11b   : > { %10978 = vst [vmem:[#allocation18_spill] sm:$0xff] %v6684_v20  ;;  %1653 = vadd.xlane.f32.xlu1 %v1414_v22  ;;  %v1415_v36 = vmul.f32 %v6352_v15, %v6684_v20 }
 0x11c   : > { %v6670_v37 = vpop.f32.mrf.mxu0  ;;  %10979 = vst [vmem:[#allocation19_spill] sm:$0xff] %v6692_v35  ;;  %v1416_v22 = vmul.f32 %v6352_v15, %v6692_v35  ;;  %v402_v35 = vld [vmem:[%s6215_s18 + $0xf8] sm:$0xff] }
 0x11f   : > { %5199 = vmatmul.msk.f32.gmra.mxu0 %vm347_vm0, %v399_v42  ;;  %v1170_v42 = vpop.f32.mrf.mxu2  ;;  %v1053_v63 = vpop.f32.mrf.mxu1 }
 0x120   : > { %v6702_v2 = vadd.f32 %v6362_v23, %v1053_v63  ;;  %v6716_v63 = vadd.f32 %v6362_v23, %v6618_v25  ;;  %v401_v25 = vld [vmem:[%s6215_s18 + $0xf0] sm:$0xff] }
 0x121   : > { %1595 = vadd.xlane.f32.xlu2 %v1385_v3  ;;  %1597 = vadd.xlane.f32.xlu0 %v1386_v17  ;;  %v6699_v3 = vadd.f32 %v6362_v23, %v1050_v4  ;;  %v6710_v17 = vadd.f32 %v6362_v23, %v1047_v7  ;;  %v1039_v4 = vadd.f32 %v6362_v23, %v6572_v41 }
 0x122   : > { %5234 = vmatmul.msk.f32.gmra.mxu1 %vm347_vm0, %v434_v44  ;;  %4398 = vmatpush.msra.mxu0 %v6702_v2  ;;  %v946_v7 = vadd.f32 %v6362_v23, %v945_v54  ;;  %v1042_v44 = vadd.f32 %v6362_v23, %v6597_v6  ;;  %v1313_v30 = vmul.f32 %v6352_v15, %v6716_v63 }
 0x123   : > { %1449 = vadd.xlane.f32.xlu1 %v1312_v1  ;;  %v1345_v54 = vmul.f32 %v6352_v15, %v1039_v4  ;;  %v6739_v1 = vadd.f32 %v6362_v23, %v6645_v52 }
 0x124   : > { %v951_v48 = vpop.f32.mrf.mxu0  ;;  %4399 = vmatpush.msra.mxu0 %v6699_v3  ;;  %v1314_v6 = vmul.f32 %v6352_v15, %v946_v7  ;;  %v1346_v45 = vmul.f32 %v6352_v15, %v1042_v44 }
 0x125   : > { %v1387_v52 = vmul.f32 %v6352_v15, %v6739_v1 }
 0x126   : > { %4400 = vmatpush.msra.mxu0 %v6710_v17 }
 0x127   : > { %5200 = vmatmul.msk.f32.gmra.mxu0 %vm347_vm0, %v400_v0  ;;  %v6726_v0 = vpop.f32.mrf.mxu2  ;;  %v6730_v20 = vpop.f32.mrf.mxu1 }
 0x128   : > { %4401 = vmatpush.msra.mxu0 %v1045_v5 }
 0x129   : > { %1655 = vadd.xlane.f32.xlu2 %v1415_v36  ;;  %1657 = vadd.xlane.f32.xlu0 %v1416_v22  ;;  %v1254_v36 = vpop.f32.mrf.mxu3 }
 0x12a   : > { %4402 = vmatpush.msra.mxu0 %v1042_v44  ;;  %v6767_v44 = vadd.f32 %v6362_v23, %v1254_v36 }
 0x12b   : > { %1515 = vadd.xlane.f32.xlu1 %v1345_v54  ;;  %v952_v54 = vadd.f32 %v6362_v23, %v951_v48 }
 0x12c   : > { %v954_v41 = vpop.f32.mrf.mxu0  ;;  %4403 = vmatpush.msra.mxu0 %v1039_v4  ;;  %10980 = vst [vmem:[#allocation20_spill] sm:$0xff] %v6767_v44 }
 0x12e   : > { %4404 = vmatpush.msra.mxu0 %v6640_v47  ;;  %v1347_v47 = vmul.f32 %v6352_v15, %v1045_v5 }
 0x12f   : > { %5201 = vmatmul.msk.f32.gmra.mxu0 %vm347_vm0, %v401_v25  ;;  %v6741_v22 = vpop.f32.mrf.mxu2  ;;  %v955_v25 = vadd.f32 %v6362_v23, %v954_v41 }
 0x130   : > { %4405 = vmatpush.msra.mxu0 %v6636_v46  ;;  %v949_v46 = vadd.f32 %v6362_v23, %v6670_v37  ;;  %v1417_v37 = vmul.f32 %v6352_v15, %v6767_v44 }
 0x131   : > { %1451 = vadd.xlane.f32.xlu2 %v1313_v30  ;;  %1453 = vadd.xlane.f32.xlu0 %v1314_v6  ;;  %v6750_v30 = vpop.f32.mrf.mxu1  ;;  %v1257_v4 = vpop.f32.mrf.mxu3  ;;  %v6070_v6 = vmov 0  }
 0x132   : > { %4406 = vmatpush.msra.mxu0 %v6613_v19  ;;  %v6788_v5 = vadd.f32 %v6362_v23, %v1257_v4  ;;  %5375 = vset.pattern.permute.xlu0 %v6070_v6 }
 0x133   : > { %1599 = vadd.xlane.f32.xlu1 %v1387_v52  ;;  %5374 = vset.pattern.permute.xlu2 %v6070_v6 }
 0x134   : > { %v957_v43 = vpop.f32.mrf.mxu0  ;;  %4407 = vmatpush.msra.mxu0 %v6543_v12  ;;  %10981 = vst [vmem:[#allocation21_spill] sm:$0xff] %v6788_v5  ;;  %5376 = vset.pattern.permute.xlu1 %v6070_v6 }
 0x135   : > { %v6748_v34 = vadd.f32 %v6362_v23, %v957_v43  ;;  %v6762_v43 = vadd.f32 %v6362_v23, %v6668_v51 }
 0x136   : > { %4408 = vmatpush.msra.mxu0 %v6540_v9 }
 0x137   : > { %5202 = vmatmul.msk.f32.gmra.mxu0 %vm347_vm0, %v402_v35  ;;  %4166 = vmatpush.msrb.mxu2 %v6748_v34  ;;  %v6770_v35 = vadd.f32 %v6362_v23, %v1170_v42  ;;  %v6773_v48 = vpop.f32.mrf.mxu2 }
 0x138   : > { %4409 = vmatpush.msra.mxu0 %v6521_v59 }
 0x139   : > { %1517 = vadd.xlane.f32.xlu2 %v1346_v45  ;;  %4167 = vmatpush.msrb.mxu2 %v955_v25  ;;  %v1388_v45 = vmul.f32 %v6352_v15, %v6762_v43  ;;  %v6780_v51 = vpop.f32.mrf.mxu1  ;;  %v1389_v12 = vmul.f32 %v6352_v15, %v6770_v35  ;;  %v1260_v42 = vpop.f32.mrf.mxu3 }
 0x13a   : > { %1519 = vadd.xlane.f32.xlu0 %v1347_v47  ;;  %4410 = vmatpush.msra.mxu0 %v6450_v10  ;;  %v6794_v9 = vadd.f32 %v6362_v23, %v1260_v42  ;;  %v1418_v10 = vmul.f32 %v6352_v15, %v6788_v5  ;;  %v6850_v47 = vpop.xlane.xlu2 %1577  ;;  %v494_v42 = vld [vmem:[%s6215_s18 + $0x3d8] sm:$0xff] }
 0x13b   : > { %4168 = vmatpush.msrb.mxu2 %v952_v54  ;;  %1659 = vadd.xlane.f32.xlu1 %v1417_v37 }
 0x13c   : > { %v6775_v19 = vpop.f32.mrf.mxu0  ;;  %4411 = vmatpush.msra.mxu0 %v6426_v61  ;;  %10982 = vst [vmem:[#allocation22_spill] sm:$0xff] %v6794_v9  ;;  %v1315_v61 = vmul.f32 %v6352_v15, %v949_v46  ;;  %5294 = vmatmul.msk.f32.gmra.mxu3 %vm347_vm0, %v494_v42 }
 0x13d   : > { %4169 = vmatpush.msrb.mxu2 %v949_v46 }
 0x13e   : > { %4412 = vmatpush.msra.mxu0 %v6409_v49 }
 0x13f   : > { %4170 = vmatpush.msrb.mxu2 %v946_v7  ;;  %v6796_v59 = vpop.f32.mrf.mxu2 }
 0x140   : > { %4413 = vmatpush.msra.mxu0 %v6367_v24  ;;  %v1348_v24 = vmul.f32 %v6352_v15, %v6710_v17  ;;  %v1349_v17 = vmul.f32 %v6352_v15, %v6699_v3 }
 0x141   : > { %1601 = vadd.xlane.f32.xlu2 %v1388_v45  ;;  %4171 = vmatpush.msrb.mxu2 %v6716_v63  ;;  %v6804_v36 = vpop.f32.mrf.mxu1  ;;  %v1419_v63 = vmul.f32 %v6352_v15, %v6794_v9  ;;  %v1263_v52 = vpop.f32.mrf.mxu3  ;;  %v496_v9 = vld [vmem:[%s6215_s18 + $0x3e8] sm:$0xff] }
 0x142   : > { %1603 = vadd.xlane.f32.xlu0 %v1389_v12 }
 0x143   : > { %4172 = vmatpush.msrb.mxu2 %v6689_v8  ;;  %1455 = vadd.xlane.f32.xlu1 %v1315_v61 }
 0x144   : > { %v6799_v7 = vpop.f32.mrf.mxu0 }
 0x145   : > { %4173 = vmatpush.msrb.mxu2 %v6616_v21  ;;  %v1316_v21 = vmul.f32 %v6352_v15, %v952_v54 }
 0x147   : > { %4174 = vmatpush.msrb.mxu2 %v6609_v14  ;;  %v6813_v49 = vpop.f32.mrf.mxu2  ;;  %v1317_v14 = vmul.f32 %v6352_v15, %v955_v25  ;;  %v6836_v25 = vpop.xlane.xlu0 %1301 }
 0x148   : > { %v6867_v61 = vperm.slane %v6836_v25, 0 }
 0x149   : > { %1661 = vadd.xlane.f32.xlu2 %v1418_v10  ;;  %4175 = vmatpush.msrb.mxu2 %v6589_v56  ;;  %v6819_v41 = vpop.f32.mrf.mxu1  ;;  %v6863_v10 = vpop.xlane.xlu2 %1637 }
 0x14a   : > { %1663 = vadd.xlane.f32.xlu0 %v1419_v63  ;;  %10985 = vst [vmem:[#allocation25_spill] sm:$0xff] %v6863_v10 }
 0x14b   : > { %4176 = vmatpush.msrb.mxu2 %v6524_v60  ;;  %v6828_v60 = vadd.f32 %v6362_v23, %v6726_v0  ;;  %1521 = vadd.xlane.f32.xlu1 %v1348_v24 }
 0x14c   : > { %v6816_v8 = vpop.f32.mrf.mxu0 }
 0x14d   : > { %4177 = vmatpush.msrb.mxu2 %v6516_v58  ;;  %v1390_v0 = vmul.f32 %v6352_v15, %v6828_v60 }
 0x14f   : > { %4178 = vmatpush.msrb.mxu2 %v6457_v16  ;;  %v1188_v58 = vpop.f32.mrf.mxu2  ;;  %v1496_v46 = vpop.xlane.xlu0 %1495 }
 0x151   : > { %1457 = vadd.xlane.f32.xlu2 %v1316_v21  ;;  %4179 = vmatpush.msrb.mxu2 %v6453_v11  ;;  %v6838_v16 = vpop.f32.mrf.mxu1  ;;  %v1350_v11 = vmul.f32 %v6352_v15, %v6702_v2  ;;  %v6856_v2 = vpop.xlane.xlu1 %1575  ;;  %v6870_v21 = vperm.slane %v6836_v25, 2 }
 0x152   : > { %1459 = vadd.xlane.f32.xlu0 %v1317_v14  ;;  %10984 = vst [vmem:[#allocation24_spill] sm:$0xff] %v6856_v2 }
 0x153   : > { %4180 = vmatpush.msrb.mxu2 %v6430_v62  ;;  %1605 = vadd.xlane.f32.xlu1 %v1390_v0  ;;  %v6846_v62 = vadd.f32 %v6362_v23, %v1263_v52 }
 0x154   : > { %v6832_v56 = vpop.f32.mrf.mxu0 }
 0x155   : > { %4181 = vmatpush.msrb.mxu2 %v6392_v40  ;;  %10983 = vst [vmem:[#allocation23_spill] sm:$0xff] %v6846_v62  ;;  %v1420_v54 = vmul.f32 %v6352_v15, %v6846_v62 }
 0x157   : > { %v1191_v3 = vpop.f32.mrf.mxu2  ;;  %v1432_v63 = vpop.xlane.xlu0 %1431 }
 0x158   : > { %v6875_v6 = vadd.f32 %v6867_v61, %v1432_v63  ;;  %v6891_v42 = vadd.f32 %v6362_v23, %v1191_v3  ;;  %v495_v63 = vld [vmem:[%s6215_s18 + $0x3e0] sm:$0xff]  ;;  %v6904_v3 = vadd.f32 %v6362_v23, %v6813_v49  ;;  %v1180_v49 = vadd.f32 %v6362_v23, %v6773_v48 }
 0x159   : > { %1523 = vadd.xlane.f32.xlu2 %v1349_v17  ;;  %v6852_v40 = vpop.f32.mrf.mxu1  ;;  %v6872_v24 = vpop.xlane.xlu1 %1635  ;;  %5295 = vmatmul.msk.f32.gmra.mxu3 %vm347_vm0, %v495_v63 }
 0x15a   : > { %1525 = vadd.xlane.f32.xlu0 %v1350_v11  ;;  %10986 = vst [vmem:[#allocation26_spill] sm:$0xff] %v6872_v24 }
 0x15b   : > { %1665 = vadd.xlane.f32.xlu1 %v1420_v54  ;;  %10987 = vst [vmem:[#allocation27_spill] sm:$0xff] %v6875_v6  ;;  %v6888_v54 = vadd.f32 %v6870_v21, %v1496_v46  ;;  %v1500_v46 = vpop.xlane.xlu2 %1499 }
 0x15c   : > { %v6848_v4 = vpop.f32.mrf.mxu0  ;;  %v6912_v63 = vadd.f32 %v6870_v21, %v1500_v46 }
 0x15d   : > { %10988 = vst [vmem:[#allocation28_spill] sm:$0xff] %v6888_v54 }
 0x15e   : > { %10989 = vst [vmem:[#allocation29_spill] sm:$0xff] %v6912_v63 }
 0x15f   : > { %v1194_v45 = vpop.f32.mrf.mxu2 }
 0x160   : > { %v6878_v17 = vadd.f32 %v6362_v23, %v1194_v45  ;;  %v6898_v45 = vadd.f32 %v6362_v23, %v1188_v58 }
 0x161   : > { %v6860_v12 = vpop.f32.mrf.mxu1  ;;  %v1498_v44 = vpop.xlane.xlu1 %1497  ;;  %5296 = vmatmul.msk.f32.gmra.mxu3 %vm347_vm0, %v496_v9 }
 0x162   : > { %v6928_v46 = vadd.f32 %v6870_v21, %v1498_v44  ;;  %v1266_v55 = vpop.f32.mrf.mxu3 }
 0x164   : > { %v6858_v37 = vpop.f32.mrf.mxu0  ;;  %10990 = vst [vmem:[#allocation30_spill] sm:$0xff] %v6928_v46 }
 0x167   : > { %v1197_v14 = vpop.f32.mrf.mxu2 }
 0x168   : > { %v6881_v0 = vadd.f32 %v6362_v23, %v1197_v14  ;;  %v6909_v14 = vadd.f32 %v6362_v23, %v6796_v59  ;;  %v1177_v59 = vadd.f32 %v6362_v23, %v6741_v22 }
 0x169   : > { %v6885_v52 = vpop.f32.mrf.mxu1 }
 0x16a   : > { %4746 = vmatpush.msrb.mxu0 %v6881_v0  ;;  %v1391_v57 = vmul.f32 %v6352_v15, %v1177_v59 }
 0x16c   : > { %v6883_v11 = vpop.f32.mrf.mxu0  ;;  %4747 = vmatpush.msrb.mxu0 %v6878_v17 }
 0x16e   : > { %1961 = vperm.xlu0 %5375, %v6875_v6   ;;  %4748 = vmatpush.msrb.mxu0 %v6891_v42 }
 0x170   : > { %4749 = vmatpush.msrb.mxu0 %v6898_v45 }
 0x171   : > { %2057 = vperm.xlu2 %5374, %v6888_v54   ;;  %v6917_v5 = vpop.f32.mrf.mxu1 }
 0x172   : > { %4750 = vmatpush.msrb.mxu0 %v6904_v3 }
 0x174   : > { %v6914_v58 = vpop.f32.mrf.mxu0  ;;  %4751 = vmatpush.msrb.mxu0 %v6909_v14  ;;  %2060 = vperm.xlu1 %5376, %v6928_v46   ;;  %v7031_v46 = vld [vmem:[%s10660_s5] ss:$0 sm:$0xff] }
 0x176   : > { %2063 = vperm.xlu0 %5375, %v6912_v63   ;;  %4752 = vmatpush.msrb.mxu0 %v1180_v49 }
 0x178   : > { %4753 = vmatpush.msrb.mxu0 %v1177_v59  ;;  %v1318_v59 = vmul.f32 %v6352_v15, %v6748_v34 }
 0x179   : > { %v1086_v48 = vpop.f32.mrf.mxu1 }
 0x17a   : > { %4754 = vmatpush.msrb.mxu0 %v6828_v60 }
 0x17c   : > { %v6932_v62 = vpop.f32.mrf.mxu0  ;;  %4755 = vmatpush.msrb.mxu0 %v6770_v35 }
 0x17e   : > { %4756 = vmatpush.msrb.mxu0 %v6762_v43 }
 0x180   : > { %4757 = vmatpush.msrb.mxu0 %v6739_v1  ;;  %v6950_v1 = vadd.f32 %v6362_v23, %v1266_v55  ;;  %v6964_v55 = vadd.f32 %v6362_v23, %v6775_v19 }
 0x181   : > { %v1089_v22 = vpop.f32.mrf.mxu1 }
 0x182   : > { %4758 = vmatpush.msrb.mxu0 %v6663_v18  ;;  %10991 = vst [vmem:[#allocation31_spill] sm:$0xff] %v6950_v1  ;;  %v1421_v38 = vmul.f32 %v6352_v15, %v6950_v1  ;;  %v1319_v34 = vmul.f32 %v6352_v15, %v6964_v55 }
 0x184   : > { %v6937_v9 = vpop.f32.mrf.mxu0  ;;  %4759 = vmatpush.msrb.mxu0 %v6659_v29  ;;  %v1392_v29 = vmul.f32 %v6352_v15, %v1180_v49  ;;  %v6970_v49 = vadd.f32 %v6362_v23, %v6730_v20 }
 0x186   : > { %4760 = vmatpush.msrb.mxu0 %v6643_v50 }
 0x188   : > { %4761 = vmatpush.msrb.mxu0 %v6566_v33  ;;  %v1269_v33 = vpop.f32.mrf.mxu3 }
 0x189   : > { %v1092_v60 = vpop.f32.mrf.mxu1  ;;  %v6958_v54 = vadd.f32 %v6362_v23, %v1269_v33 }
 0x18b   : > { %10992 = vst [vmem:[#allocation32_spill] sm:$0xff] %v6958_v54 }
 0x18c   : > { %v6943_v44 = vpop.f32.mrf.mxu0 }
 0x191   : > { %v1095_v43 = vpop.f32.mrf.mxu1 }
 0x192   : > { %v6987_v20 = vadd.f32 %v6362_v23, %v1095_v43  ;;  %v7005_v43 = vadd.f32 %v6362_v23, %v1089_v22  ;;  %v1063_v22 = vadd.f32 %v6362_v23, %v6780_v51 }
 0x194   : > { %v6946_v35 = vpop.f32.mrf.mxu0 }
 0x199   : > { %v1098_v50 = vpop.f32.mrf.mxu1 }
 0x19a   : > { %1607 = vadd.xlane.f32.xlu2 %v1391_v57  ;;  %v6966_v57 = vpop.xlane.xlu2 %1437  ;;  %v6977_v63 = vadd.f32 %v6362_v23, %v1098_v50  ;;  %v6994_v50 = vadd.f32 %v6362_v23, %v6750_v30 }
 0x19c   : > { %v6952_v18 = vpop.f32.mrf.mxu0 }
 0x19e   : > { %1461 = vadd.xlane.f32.xlu1 %v1318_v59  ;;  %v1351_v59 = vmul.f32 %v6352_v15, %v6970_v49 }
 0x1a0   : > { %1609 = vadd.xlane.f32.xlu0 %v1392_v29  ;;  %v1422_v29 = vmul.f32 %v6352_v15, %v6958_v54  ;;  %v6999_v54 = vadd.f32 %v6362_v23, %v1092_v60  ;;  %v7011_v15 = vld [vmem:[%s10661_s6] ss:$0 sm:$0xff] }
 0x1a1   : > { %v1101_v33 = vpop.f32.mrf.mxu1  ;;  %v1352_v60 = vmul.f32 %v7011_v15, %v6994_v50 }
 0x1a2   : > { %1667 = vadd.xlane.f32.xlu2 %v1421_v38  ;;  %v6980_v19 = vadd.f32 %v6362_v23, %v1101_v33  ;;  %v6984_v38 = vadd.f32 %v6362_v23, %v6799_v7  ;;  %v6996_v33 = vpop.f32.mrf.mxu3  ;;  %v7002_v7 = vpop.xlane.xlu2 %1583 }
 0x1a4   : > { %v999_v1 = vpop.f32.mrf.mxu0  ;;  %4514 = vmatpush.msra.mxu2 %v6980_v19  ;;  %v1320_v30 = vmul.f32 %v7011_v15, %v6984_v38 }
 0x1a5   : > { %v7062_v10 = vadd.f32 %v7031_v46, %v999_v1  ;;  %v7077_v1 = vadd.f32 %v7031_v46, %v6819_v41  ;;  %v7094_v41 = vadd.f32 %v7031_v46, %v6943_v44  ;;  %v7112_v44 = vadd.f32 %v7031_v46, %v6932_v62 }
 0x1a6   : > { %4515 = vmatpush.msra.mxu2 %v6977_v63  ;;  %1527 = vadd.xlane.f32.xlu1 %v1351_v59  ;;  %v7025_v59 = vadd.f32 %v6362_v23, %v6917_v5 }
 0x1a8   : > { %1669 = vadd.xlane.f32.xlu0 %v1422_v29  ;;  %4516 = vmatpush.msra.mxu2 %v6987_v20 }
 0x1aa   : > { %1463 = vadd.xlane.f32.xlu2 %v1319_v34  ;;  %v7018_v34 = vadd.f32 %v6362_v23, %v1086_v48  ;;  %4517 = vmatpush.msra.mxu2 %v6999_v54  ;;  %v7035_v48 = vadd.f32 %v7031_v46, %v6885_v52  ;;  %v7038_v51 = vpop.f32.mrf.mxu3  ;;  %v7042_v23 = vadd.f32 %v7031_v46, %v6860_v12  ;;  %v7047_v6 = vpop.xlane.xlu2 %1643 }
 0x1ab   : > { %10993 = vst [vmem:[#allocation33_spill] sm:$0xff] %v7047_v6  ;;  %v7058_v12 = vadd.f32 %v7031_v46, %v6852_v40  ;;  %v7065_v6 = vpop.xlane.xlu0 %1579  ;;  %v1434_v40 = vpop.xlane.xlu1 %1433 }
 0x1ac   : > { %v1002_v29 = vpop.f32.mrf.mxu0  ;;  %4518 = vmatpush.msra.mxu2 %v7005_v43  ;;  %10994 = vst [vmem:[#allocation34_spill] sm:$0xff] %v7065_v6  ;;  %v7122_v6 = vadd.f32 %v7031_v46, %v6914_v58 }
 0x1ad   : > { %v7050_v24 = vadd.f32 %v7031_v46, %v1002_v29  ;;  %v1072_v29 = vadd.f32 %v7031_v46, %v6838_v16  ;;  %v7083_v16 = vadd.f32 %v7031_v46, %v6946_v35 }
 0x1ae   : > { %4519 = vmatpush.msra.mxu2 %v7018_v34 }
 0x1b0   : > { %1465 = vadd.xlane.f32.xlu0 %v1320_v30  ;;  %4520 = vmatpush.msra.mxu2 %v7025_v59  ;;  %v1353_v30 = vmul.f32 %v7011_v15, %v1063_v22 }
 0x1b2   : > { %1529 = vadd.xlane.f32.xlu2 %v1352_v60  ;;  %v467_v60 = vld [vmem:[%s6215_s18 + $0x300] sm:$0xff]  ;;  %4521 = vmatpush.msra.mxu2 %v7035_v48  ;;  %v1278_v2 = vpop.f32.mrf.mxu3  ;;  %v7099_v35 = vpop.xlane.xlu2 %1439 }
 0x1b3   : > { %5267 = vmatmul.msk.f32.gmra.mxu2 %vm347_vm0, %v467_v60  ;;  %v468_v60 = vld [vmem:[%s6215_s18 + $0x308] sm:$0xff] }
 0x1b4   : > { %v1005_v5 = vpop.f32.mrf.mxu0  ;;  %4522 = vmatpush.msra.mxu2 %v7042_v23 }
 0x1b5   : > { %v7053_v52 = vadd.f32 %v7031_v46, %v1005_v5  ;;  %v7072_v5 = vadd.f32 %v7031_v46, %v6952_v18  ;;  %v7088_v18 = vadd.f32 %v7031_v46, %v6804_v36  ;;  %v7103_v36 = vadd.f32 %v7031_v46, %v6937_v9 }
 0x1b6   : > { %4523 = vmatpush.msra.mxu2 %v7058_v12  ;;  %v7118_v9 = vadd.f32 %v6867_v61, %v1434_v40 }
 0x1b7   : > { %4282 = vmatpush.msrb.mxu3 %v7053_v52 }
 0x1b8   : > { %1531 = vadd.xlane.f32.xlu0 %v1353_v30  ;;  %4524 = vmatpush.msra.mxu2 %v1072_v29  ;;  %v1395_v30 = vmul.f32 %v7011_v15, %v6898_v45  ;;  %v7108_v45 = vadd.f32 %v7031_v46, %v1278_v2  ;;  %10997 = vst [vmem:[#allocation37_spill] sm:$0xff] %v7118_v9  ;;  %v1436_v2 = vpop.xlane.xlu1 %1435 }
 0x1b9   : > { %4283 = vmatpush.msrb.mxu3 %v7050_v24  ;;  %v7137_v58 = vadd.f32 %v6867_v61, %v1436_v2  ;;  %v967_v2 = vadd.f32 %v7031_v46, %v6816_v8  ;;  %v7169_v8 = vadd.f32 %v6867_v61, %v6966_v57  ;;  %v1354_v57 = vmul.f32 %v7011_v15, %v7088_v18 }
 0x1ba   : > { %4525 = vmatpush.msra.mxu2 %v7077_v1  ;;  %10995 = vst [vmem:[#allocation35_spill] sm:$0xff] %v7108_v45  ;;  %v1425_v62 = vmul.f32 %v7011_v15, %v7108_v45 }
 0x1bb   : > { %4284 = vmatpush.msrb.mxu3 %v7062_v10  ;;  %5268 = vmatmul.msk.f32.gmra.mxu2 %vm347_vm0, %v468_v60  ;;  %v7115_v60 = vpop.xlane.xlu0 %1639  ;;  %10998 = vst [vmem:[#allocation38_spill] sm:$0xff] %v7137_v58 }
 0x1bc   : > { %4526 = vmatpush.msra.mxu2 %v7088_v18  ;;  %10996 = vst [vmem:[#allocation36_spill] sm:$0xff] %v7115_v60  ;;  %v7131_v60 = vadd.f32 %v7031_v46, %v6883_v11  ;;  %v973_v11 = vadd.f32 %v7031_v46, %v6848_v4  ;;  %v1398_v18 = vmul.f32 %v7011_v15, %v6881_v0 }
 0x1bd   : > { %4285 = vmatpush.msrb.mxu3 %v7072_v5  ;;  %11000 = vst [vmem:[#allocation40_spill] sm:$0xff] %v7169_v8  ;;  %v7228_v0 = vadd.f32 %v6867_v61, %v7099_v35 }
 0x1be   : > { %4527 = vmatpush.msra.mxu2 %v1063_v22  ;;  %v7147_v22 = vpop.xlane.xlu2 %1505  ;;  %v1323_v40 = vmul.f32 %v7011_v15, %v973_v11 }
 0x1bf   : > { %4286 = vmatpush.msrb.mxu3 %v7083_v16  ;;  %1964 = vperm.xlu1 %5376, %v7118_v9   ;;  %11005 = vst [vmem:[#allocation45_spill] sm:$0xff] %v7228_v0 }
 0x1c0   : > { %1615 = vadd.xlane.f32.xlu0 %v1395_v30  ;;  %4528 = vmatpush.msra.mxu2 %v6994_v50  ;;  %v469_v30 = vld [vmem:[%s6215_s18 + $0x310] sm:$0xff]  ;;  %v7141_v50 = vadd.f32 %v7031_v46, %v6858_v37 }
 0x1c1   : > { %4287 = vmatpush.msrb.mxu3 %v7094_v41 }
 0x1c2   : > { %4529 = vmatpush.msra.mxu2 %v6970_v49  ;;  %v970_v49 = vadd.f32 %v7031_v46, %v6832_v56  ;;  %v1356_v56 = vmul.f32 %v7011_v15, %v1072_v29  ;;  %v471_v29 = vld [vmem:[%s6215_s18 + $0x320] sm:$0xff] }
 0x1c3   : > { %4288 = vmatpush.msrb.mxu3 %v7103_v36  ;;  %5269 = vmatmul.msk.f32.gmra.mxu2 %vm347_vm0, %v469_v30  ;;  %v1502_v37 = vpop.xlane.xlu0 %1501 }
 0x1c4   : > { %v7158_v4 = vadd.f32 %v6870_v21, %v1502_v37 }
 0x1c5   : > { %4289 = vmatpush.msrb.mxu3 %v7112_v44 }
 0x1c6   : > { %10999 = vst [vmem:[#allocation39_spill] sm:$0xff] %v7158_v4 }
 0x1c7   : > { %4290 = vmatpush.msrb.mxu3 %v7122_v6 }
 0x1c8   : > { %1675 = vadd.xlane.f32.xlu0 %v1425_v62  ;;  %v7161_v62 = vpop.xlane.xlu2 %1589 }
 0x1c9   : > { %4291 = vmatpush.msrb.mxu3 %v7131_v60 }
 0x1ca   : > { %1967 = vperm.xlu2 %5374, %v7137_v58  }
 0x1cb   : > { %4292 = vmatpush.msrb.mxu3 %v7141_v50 }
 0x1cd   : > { %4293 = vmatpush.msrb.mxu3 %v973_v11  ;;  %v472_v11 = vld [vmem:[%s6215_s18 + $0x328] sm:$0xff] }
 0x1cf   : > { %4294 = vmatpush.msrb.mxu3 %v970_v49 }
 0x1d0   : > { %1471 = vadd.xlane.f32.xlu0 %v1323_v40  ;;  %v498_v40 = vld [vmem:[%s6215_s18 + $0x3f8] sm:$0xff] }
 0x1d1   : > { %4295 = vmatpush.msrb.mxu3 %v967_v2 }
 0x1d2   : > { %2066 = vperm.xlu2 %5374, %v7158_v4  }
 0x1d3   : > { %4296 = vmatpush.msrb.mxu3 %v6984_v38  ;;  %v7175_v38 = vpop.xlane.xlu2 %1649 }
 0x1d5   : > { %4297 = vmatpush.msrb.mxu3 %v6964_v55  ;;  %v7200_v55 = vadd.f32 %v7031_v46, %v7038_v51  ;;  %v1322_v51 = vmul.f32 %v7011_v15, %v970_v49 }
 0x1d7   : > { %4630 = vmatpush.msra.mxu3 %v6562_v31  ;;  %11003 = vst [vmem:[#allocation43_spill] sm:$0xff] %v7200_v55 }
 0x1d8   : > { %1537 = vadd.xlane.f32.xlu0 %v1356_v56  ;;  %v1355_v56 = vmul.f32 %v7011_v15, %v7077_v1 }
 0x1d9   : > { %4631 = vmatpush.msra.mxu3 %v6546_v13 }
 0x1da   : > { %1970 = vperm.xlu2 %5374, %v7169_v8  }
 0x1db   : > { %4632 = vmatpush.msra.mxu3 %v6480_v32  ;;  %v1446_v31 = vpop.xlane.xlu2 %1445  ;;  %v1393_v32 = vmul.f32 %v7011_v15, %v6909_v14  ;;  %v470_v14 = vld [vmem:[%s6215_s18 + $0x318] sm:$0xff] }
 0x1dc   : > { %v7182_v13 = vadd.f32 %v6867_v61, %v1446_v31  ;;  %5270 = vmatmul.msk.f32.gmra.mxu2 %vm347_vm0, %v470_v14  ;;  %v7222_v31 = vpop.xlane.xlu0 %1585 }
 0x1dd   : > { %4633 = vmatpush.msra.mxu3 %v6472_v26  ;;  %v7189_v26 = vadd.f32 %v7031_v46, %v6996_v33  ;;  %v497_v33 = vld [vmem:[%s6215_s18 + $0x3f0] sm:$0xff] }
 0x1de   : > { %11001 = vst [vmem:[#allocation41_spill] sm:$0xff] %v7182_v13  ;;  %5297 = vmatmul.msk.f32.gmra.mxu3 %vm347_vm0, %v497_v33  ;;  %v7247_v33 = vpop.xlane.xlu1 %1581 }
 0x1df   : > { %4634 = vmatpush.msra.mxu3 %v6476_v28  ;;  %11002 = vst [vmem:[#allocation42_spill] sm:$0xff] %v7189_v26  ;;  %v1281_v28 = vpop.f32.mrf.mxu3 }
 0x1e1   : > { %4635 = vmatpush.msra.mxu3 %v6413_v53  ;;  %v1394_v53 = vmul.f32 %v7011_v15, %v6904_v3  ;;  %v1424_v3 = vmul.f32 %v7011_v15, %v7200_v55 }
 0x1e3   : > { %4636 = vmatpush.msra.mxu3 %v6389_v39  ;;  %v1423_v39 = vmul.f32 %v7011_v15, %v7189_v26 }
 0x1e4   : > { %5271 = vmatmul.msk.f32.gmra.mxu2 %vm347_vm0, %v471_v29 }
 0x1e5   : > { %4637 = vmatpush.msra.mxu3 %v6371_v27  ;;  %v1321_v27 = vmul.f32 %v7011_v15, %v967_v2 }
 0x1e6   : > { %5298 = vmatmul.msk.f32.gmra.mxu3 %vm347_vm0, %v498_v40 }
 0x1e7   : > { %v1284_v30 = vpop.f32.mrf.mxu3 }
 0x1e9   : > { %1611 = vadd.xlane.f32.xlu1 %v1393_v32  ;;  %v7230_v32 = vpop.xlane.xlu2 %1511 }
 0x1ec   : > { %1982 = vperm.xlu0 %5375, %v7182_v13   ;;  %5272 = vmatmul.msk.f32.gmra.mxu2 %vm347_vm0, %v472_v11  ;;  %v7260_v11 = vadd.f32 %v7031_v46, %v1281_v28  ;;  %v435_v28 = vld [vmem:[%s6215_s18 + $0x200] sm:$0xff] }
 0x1ed   : > { %5235 = vmatmul.msk.f32.gmra.mxu1 %vm347_vm0, %v435_v28  ;;  %v436_v28 = vld [vmem:[%s6215_s18 + $0x208] sm:$0xff] }
 0x1ee   : > { %11009 = vst [vmem:[#allocation49_spill] sm:$0xff] %v7260_v11 }
 0x1ef   : > { %v1287_v37 = vpop.f32.mrf.mxu3 }
 0x1f0   : > { %v7218_v2 = vadd.f32 %v7031_v46, %v1287_v37  ;;  %v1426_v37 = vmul.f32 %v7011_v15, %v7260_v11  ;;  %v437_v11 = vld [vmem:[%s6215_s18 + $0x210] sm:$0xff] }
 0x1f1   : > { %1671 = vadd.xlane.f32.xlu1 %v1423_v39  ;;  %v1326_v39 = vmul.f32 %v7011_v15, %v7122_v6  ;;  %v7237_v1 = vpop.xlane.xlu2 %1595 }
 0x1f2   : > { %11004 = vst [vmem:[#allocation44_spill] sm:$0xff] %v7218_v2  ;;  %v1428_v49 = vmul.f32 %v7011_v15, %v7218_v2 }
 0x1f5   : > { %5236 = vmatmul.msk.f32.gmra.mxu1 %vm347_vm0, %v436_v28 }
 0x1f9   : > { %1467 = vadd.xlane.f32.xlu1 %v1321_v27  ;;  %v7235_v27 = vpop.xlane.xlu0 %1645 }
 0x1fd   : > { %5237 = vmatmul.msk.f32.gmra.mxu1 %vm347_vm0, %v437_v11 }
 0x201   : > { %1533 = vadd.xlane.f32.xlu1 %v1354_v57  ;;  %v1442_v14 = vpop.xlane.xlu0 %1441  ;;  %v7245_v57 = vpop.xlane.xlu2 %1655 }
 0x202   : > { %v7242_v35 = vadd.f32 %v6867_v61, %v1442_v14 }
 0x203   : > { %1613 = vadd.xlane.f32.xlu2 %v1394_v53  ;;  %v1359_v53 = vmul.f32 %v7011_v15, %v7035_v48  ;;  %v1396_v48 = vmul.f32 %v7011_v15, %v6891_v42 }
 0x204   : > { %11006 = vst [vmem:[#allocation46_spill] sm:$0xff] %v7242_v35 }
 0x209   : > { %v1452_v6 = vpop.xlane.xlu2 %1451 }
 0x20a   : > { %v7252_v29 = vadd.f32 %v6867_v61, %v1452_v6 }
 0x20b   : > { %1673 = vadd.xlane.f32.xlu2 %v1424_v3  ;;  %v7249_v3 = vpop.xlane.xlu1 %1641 }
 0x20c   : > { %11007 = vst [vmem:[#allocation47_spill] sm:$0xff] %v7249_v3 }
 0x20d   : > { %11008 = vst [vmem:[#allocation48_spill] sm:$0xff] %v7252_v29 }
 0x213   : > { %1469 = vadd.xlane.f32.xlu2 %v1322_v51  ;;  %v7257_v51 = vpop.xlane.xlu1 %1503 }
 0x216   : > { %1621 = vadd.xlane.f32.xlu0 %v1398_v18 }
 0x21a   : > { %1973 = vperm.xlu1 %5376, %v7228_v0  }
 0x21b   : > { %1535 = vadd.xlane.f32.xlu2 %v1355_v56  ;;  %v7264_v40 = vpop.xlane.xlu1 %1587  ;;  %v1397_v56 = vmul.f32 %v7011_v15, %v6878_v17 }
 0x21e   : > { %1681 = vadd.xlane.f32.xlu0 %v1428_v49 }
 0x223   : > { %v7271_v42 = vpop.xlane.xlu1 %1647 }
 0x224   : > { %11011 = vst [vmem:[#allocation51_spill] sm:$0xff] %v7271_v42 }
 0x226   : > { %1477 = vadd.xlane.f32.xlu0 %v1326_v39  ;;  %v7269_v39 = vadd.f32 %v7031_v46, %v1284_v30  ;;  %v1325_v30 = vmul.f32 %v7011_v15, %v7131_v60  ;;  %v1358_v60 = vmul.f32 %v7011_v15, %v7042_v23 }
 0x228   : > { %11010 = vst [vmem:[#allocation50_spill] sm:$0xff] %v7269_v39 }
 0x22b   : > { %v1444_v17 = vpop.xlane.xlu1 %1443 }
 0x22e   : > { %1543 = vadd.xlane.f32.xlu0 %v1359_v53  ;;  %v1427_v53 = vmul.f32 %v7011_v15, %v7269_v39 }
 0x233   : > { %1976 = vperm.xlu2 %5374, %v7242_v35   ;;  %v7328_v39 = vpop.xlane.xlu1 %1509  ;;  %v1364_v35 = vmul.f32 %v7011_v15, %v6987_v20 }
 0x236   : > { %v1200_v18 = vpop.f32.mrf.mxu2 }
 0x23b   : > { %v7343_v2 = vpop.xlane.xlu1 %1593 }
 0x23e   : > { %v1203_v49 = vpop.f32.mrf.mxu2 }
 0x242   : > { %1991 = vperm.xlu0 %5375, %v7252_v29  }
 0x244   : > { %1617 = vadd.xlane.f32.xlu1 %v1396_v48  ;;  %v7282_v48 = vpop.xlane.xlu0 %1507 }
 0x246   : > { %v1206_v14 = vpop.f32.mrf.mxu2 }
 0x247   : > { %v7278_v6 = vadd.f32 %v7031_v46, %v1206_v14  ;;  %v1329_v14 = vmul.f32 %v7011_v15, %v7094_v41 }
 0x249   : > { %11012 = vst [vmem:[#allocation52_spill] sm:$0xff] %v7278_v6 }
 0x24c   : > { %1677 = vadd.xlane.f32.xlu1 %v1426_v37  ;;  %v1401_v37 = vmul.f32 %v7011_v15, %v7278_v6  ;;  %v7298_v26 = vpop.xlane.xlu0 %1591 }
 0x25c   : > { %1619 = vadd.xlane.f32.xlu2 %v1397_v56  ;;  %v7287_v56 = vadd.f32 %v6867_v61, %v1444_v17 }
 0x25e   : > { %11013 = vst [vmem:[#allocation53_spill] sm:$0xff] %v7287_v56 }
 0x261   : > { %v1290_v45 = vpop.f32.mrf.mxu3 }
 0x264   : > { %1679 = vadd.xlane.f32.xlu2 %v1427_v53  ;;  %v7292_v53 = vpop.xlane.xlu2 %1517 }
 0x265   : > { %1979 = vperm.xlu1 %5376, %v7287_v56  }
 0x26c   : > { %1475 = vadd.xlane.f32.xlu2 %v1325_v30  ;;  %1627 = vadd.xlane.f32.xlu0 %v1401_v37  ;;  %v7300_v17 = vpop.xlane.xlu2 %1601  ;;  %v1362_v30 = vmul.f32 %v7011_v15, %v7005_v43  ;;  %v7304_v37 = vpop.xlane.xlu0 %1651  ;;  %v1324_v43 = vmul.f32 %v7011_v15, %v7141_v50  ;;  %v7332_v50 = vadd.f32 %v7031_v46, %v1290_v45  ;;  %v439_v45 = vld [vmem:[%s6215_s18 + $0x220] sm:$0xff] }
 0x26e   : > { %11017 = vst [vmem:[#allocation57_spill] sm:$0xff] %v7332_v50 }
 0x274   : > { %1541 = vadd.xlane.f32.xlu2 %v1358_v60  ;;  %1483 = vadd.xlane.f32.xlu0 %v1329_v14  ;;  %v7306_v28 = vpop.xlane.xlu2 %1661  ;;  %v1448_v55 = vpop.xlane.xlu0 %1447  ;;  %v1357_v14 = vmul.f32 %v7011_v15, %v7058_v12 }
 0x275   : > { %v7309_v23 = vadd.f32 %v6867_v61, %v1448_v55  ;;  %v7323_v55 = vadd.f32 %v7031_v46, %v1200_v18  ;;  %v1429_v18 = vmul.f32 %v7011_v15, %v7332_v50  ;;  %v7357_v50 = vpop.xlane.xlu1 %1653 }
 0x276   : > { %11021 = vst [vmem:[#allocation61_spill] sm:$0xff] %v7357_v50 }
 0x277   : > { %11014 = vst [vmem:[#allocation54_spill] sm:$0xff] %v7309_v23 }
 0x278   : > { %11016 = vst [vmem:[#allocation56_spill] sm:$0xff] %v7323_v55 }
 0x27c   : > { %1549 = vadd.xlane.f32.xlu0 %v1362_v30  ;;  %v1458_v41 = vpop.xlane.xlu2 %1457  ;;  %v7320_v30 = vpop.f32.mrf.mxu2 }
 0x27d   : > { %v7313_v60 = vadd.f32 %v6867_v61, %v1458_v41  ;;  %v1399_v41 = vmul.f32 %v7011_v15, %v7323_v55 }
 0x27f   : > { %11015 = vst [vmem:[#allocation55_spill] sm:$0xff] %v7313_v60 }
 0x284   : > { %v7334_v12 = vpop.f32.mrf.mxu2 }
 0x28c   : > { %1985 = vperm.xlu2 %5374, %v7309_v23   ;;  %v1215_v55 = vpop.f32.mrf.mxu2 }
 0x28d   : > { %v7349_v6 = vadd.f32 %v7031_v46, %v1215_v55  ;;  %v1332_v55 = vmul.f32 %v7011_v15, %v7062_v10  ;;  %v1361_v10 = vmul.f32 %v7011_v15, %v7018_v34 }
 0x28f   : > { %1473 = vadd.xlane.f32.xlu1 %v1324_v43  ;;  %v438_v43 = vld [vmem:[%s6215_s18 + $0x218] sm:$0xff]  ;;  %11019 = vst [vmem:[#allocation59_spill] sm:$0xff] %v7349_v6 }
 0x290   : > { %2000 = vperm.xlu0 %5375, %v7313_v60   ;;  %5238 = vmatmul.msk.f32.gmra.mxu1 %vm347_vm0, %v438_v43 }
 0x297   : > { %1539 = vadd.xlane.f32.xlu1 %v1357_v14  ;;  %v7341_v14 = vadd.f32 %v7031_v46, %v1203_v49  ;;  %v1404_v49 = vmul.f32 %v7011_v15, %v7349_v6 }
 0x298   : > { %5239 = vmatmul.msk.f32.gmra.mxu1 %vm347_vm0, %v439_v45  ;;  %v7367_v45 = vpop.xlane.xlu0 %1513 }
 0x299   : > { %11018 = vst [vmem:[#allocation58_spill] sm:$0xff] %v7341_v14  ;;  %v1400_v11 = vmul.f32 %v7011_v15, %v7341_v14  ;;  %v7361_v14 = vpop.xlane.xlu2 %1523 }
 0x29f   : > { %1623 = vadd.xlane.f32.xlu1 %v1399_v41  ;;  %v1293_v41 = vpop.f32.mrf.mxu3 }
 0x2a0   : > { %v7353_v43 = vadd.f32 %v7031_v46, %v1293_v41  ;;  %v1450_v41 = vpop.xlane.xlu1 %1449 }
 0x2a1   : > { %v7370_v6 = vadd.f32 %v6867_v61, %v1450_v41  ;;  %v7372_v4 = vpop.permute.xlu2 %2057  ;;  %v7389_v41 = vadd.f32 %v6870_v21, %v7147_v22  ;;  %v441_v22 = vld [vmem:[%s6215_s18 + $0x230] sm:$0xff] }
 0x2a2   : > { %11020 = vst [vmem:[#allocation60_spill] sm:$0xff] %v7353_v43 }
 0x2a3   : > { %11022 = vst [vmem:[#allocation62_spill] sm:$0xff] %v7370_v6 }
 0x2a4   : > { %11023 = vst [vmem:[#allocation63_spill] sm:$0xff] %v7372_v4 }
 0x2a5   : > { %11024 = vst [vmem:[#allocation64_spill] sm:$0xff] %v7389_v41 }
 0x2a7   : > { %1683 = vadd.xlane.f32.xlu1 %v1429_v18  ;;  %v1430_v18 = vmul.f32 %v7011_v15, %v7353_v43  ;;  %v440_v43 = vld [vmem:[%s6215_s18 + $0x228] sm:$0xff] }
 0x2a8   : > { %5240 = vmatmul.msk.f32.gmra.mxu1 %vm347_vm0, %v440_v43  ;;  %v7415_v23 = vpop.xlane.xlu1 %1515 }
 0x2b0   : > { %5241 = vmatmul.msk.f32.gmra.mxu1 %vm347_vm0, %v441_v22 }
 0x2b5   : > { %1625 = vadd.xlane.f32.xlu2 %v1400_v11  ;;  %v1328_v11 = vmul.f32 %v7011_v15, %v7103_v36  ;;  %v7379_v36 = vpop.xlane.xlu0 %1597 }
 0x2ba   : > { %1633 = vadd.xlane.f32.xlu0 %v1404_v49  ;;  %v1365_v49 = vmul.f32 %v7011_v15, %v6977_v63 }
 0x2bd   : > { %1685 = vadd.xlane.f32.xlu2 %v1430_v18  ;;  %v7381_v18 = vpop.xlane.xlu2 %1607 }
 0x2c0   : > { %1988 = vperm.xlu1 %5376, %v7370_v6  }
 0x2c2   : > { %1489 = vadd.xlane.f32.xlu0 %v1332_v55  ;;  %v7383_v55 = vpop.xlane.xlu0 %1657 }
 0x2c5   : > { %1481 = vadd.xlane.f32.xlu2 %v1328_v11  ;;  %v7385_v11 = vpop.xlane.xlu2 %1667 }
 0x2ca   : > { %1555 = vadd.xlane.f32.xlu0 %v1365_v49  ;;  %v1454_v63 = vpop.xlane.xlu0 %1453  ;;  %v7393_v49 = vperm.slane %v6836_v25, 1 }
 0x2cd   : > { %1547 = vadd.xlane.f32.xlu2 %v1361_v10  ;;  %v1464_v34 = vpop.xlane.xlu2 %1463  ;;  %v7396_v10 = vadd.f32 %v6867_v61, %v1454_v63  ;;  %v442_v63 = vld [vmem:[%s6215_s18 + $0x238] sm:$0xff]  ;;  %s8748_s18 = sand.u32 1, %s6060_s28  }
 0x2ce   : > { %v7400_v60 = vadd.f32 %v7393_v49, %v1464_v34  ;;  %v1360_v34 = vmul.f32 %v7011_v15, %v7025_v59  ;;  %5242 = vmatmul.msk.f32.gmra.mxu1 %vm347_vm0, %v442_v63  ;;  %v7431_v59 = vadd.f32 %v7031_v46, %v7334_v12  ;;  %v1331_v12 = vmul.f32 %v7011_v15, %v7072_v5  ;;  %s10959_s22 = sshll.u32 %s8748_s18, 3  ;;  %s5028_s13 = scalar_lea.sflag [#allocation5], %s8748_s18 }
 0x2cf   : > { %11025 = vst [vmem:[#allocation65_spill] sm:$0xff] %v7396_v10  ;;  %v7462_v5 = vadd.f32 %v6870_v21, %v7230_v32  ;;  %v1330_v32 = vmul.f32 %v7011_v15, %v7083_v16  ;;  %vm10832_vm0 = vcmask 1041409   ;;  %s8776_s24 = scalar_lea.vmem [#allocation4], %s10959_s22 }
 0x2d0   : > { %11026 = vst [vmem:[#allocation66_spill] sm:$0xff] %v7400_v60  ;;  %s5054_s26 = sshll.u32 %s8776_s24, 4  ;;  %s5055_s26 = int_to_ptr.vmem [resolvable:$true] %s5054_s26 }
 0x2d1   : > { %11030 = vst [vmem:[#allocation70_spill] sm:$0xff] %v7431_v59 }
 0x2d2   : > { %11034 = vst [vmem:[#allocation74_spill] sm:$0xff] %v7462_v5 }
 0x2d5   : > { %v7409_v29 = vpop.xlane.xlu2 %1529 }
 0x2dd   : > { %v7417_v43 = vpop.permute.xlu2 %1967 }
 0x2de   : > { %2072 = vperm.xlu0 %5375, %v7389_v41   ;;  %v1327_v41 = vmul.f32 %v7011_v15, %v7112_v44  ;;  %11027 = vst [vmem:[#allocation67_spill] sm:$0xff] %v7417_v43  ;;  %v1104_v44 = vpop.f32.mrf.mxu1 }
 0x2e5   : > { %1994 = vperm.xlu2 %5374, %v7396_v10   ;;  %v7427_v6 = vpop.permute.xlu2 %2066 }
 0x2e6   : > { %2009 = vperm.xlu0 %5375, %v7400_v60   ;;  %v7421_v60 = vadd.f32 %v7031_v46, %v7320_v30  ;;  %11029 = vst [vmem:[#allocation69_spill] sm:$0xff] %v7427_v6  ;;  %v1107_v63 = vpop.f32.mrf.mxu1  ;;  %v1403_v30 = vmul.f32 %v7011_v15, %v7431_v59 }
 0x2e7   : > { %v7434_v56 = vadd.f32 %v7031_v46, %v1107_v63 }
 0x2e8   : > { %11028 = vst [vmem:[#allocation68_spill] sm:$0xff] %v7421_v60  ;;  %v1402_v22 = vmul.f32 %v7011_v15, %v7421_v60  ;;  %v7446_v60 = vpop.xlane.xlu0 %1519 }
 0x2ea   : > { %1479 = vadd.xlane.f32.xlu1 %v1327_v41  ;;  %v7425_v41 = vpop.xlane.xlu1 %1599 }
 0x2ed   : > { %v7440_v13 = vpop.permute.xlu2 %1970 }
 0x2ee   : > { %11032 = vst [vmem:[#allocation72_spill] sm:$0xff] %v7440_v13 }
 0x2f0   : > { %v7456_v58 = vpop.xlane.xlu0 %1603 }
 0x2f2   : > { %1545 = vadd.xlane.f32.xlu1 %v1360_v34  ;;  %v7438_v34 = vpop.xlane.xlu1 %1659 }
 0x2f3   : > { %11031 = vst [vmem:[#allocation71_spill] sm:$0xff] %v7438_v34 }
 0x2f5   : > { %v7448_v0 = vpop.xlane.xlu2 %1613 }
 0x2fa   : > { %1629 = vadd.xlane.f32.xlu1 %v1402_v22  ;;  %v1368_v22 = vmul.f32 %v7011_v15, %v7434_v56  ;;  %v1456_v63 = vpop.xlane.xlu1 %1455 }
 0x2fb   : > { %v7451_v59 = vadd.f32 %v6867_v61, %v1456_v63 }
 0x2fd   : > { %11033 = vst [vmem:[#allocation73_spill] sm:$0xff] %v7451_v59 }
 0x302   : > { %v7475_v8 = vpop.xlane.xlu1 %1521 }
 0x30a   : > { %v7479_v9 = vpop.xlane.xlu1 %1605 }
 0x30e   : > { %1631 = vadd.xlane.f32.xlu2 %v1403_v30  ;;  %v7458_v30 = vpop.xlane.xlu2 %1673 }
 0x310   : > { %1561 = vadd.xlane.f32.xlu0 %v1368_v22  ;;  %v7465_v22 = vpop.xlane.xlu0 %1663 }
 0x312   : > { %v7488_v6 = vpop.xlane.xlu1 %1665 }
 0x313   : > { %1997 = vperm.xlu1 %5376, %v7451_v59   ;;  %11037 = vst [vmem:[#allocation77_spill] sm:$0xff] %v7488_v6 }
 0x316   : > { %1487 = vadd.xlane.f32.xlu2 %v1331_v12  ;;  %v1470_v12 = vpop.xlane.xlu2 %1469 }
 0x317   : > { %v7468_v63 = vadd.f32 %v7393_v49, %v1470_v12 }
 0x318   : > { %v1460_v20 = vpop.xlane.xlu0 %1459 }
 0x319   : > { %11035 = vst [vmem:[#allocation75_spill] sm:$0xff] %v7468_v63  ;;  %v7472_v59 = vadd.f32 %v6867_v61, %v1460_v20 }
 0x31a   : > { %v7495_v43 = vpop.permute.xlu1 %2060 }
 0x31b   : > { %11036 = vst [vmem:[#allocation76_spill] sm:$0xff] %v7472_v59 }
 0x31c   : > { %11040 = vst [vmem:[#allocation80_spill] sm:$0xff] %v7495_v43 }
 0x31e   : > { %1553 = vadd.xlane.f32.xlu2 %v1364_v35  ;;  %v1110_v35 = vpop.f32.mrf.mxu1  ;;  %v7481_v12 = vpop.xlane.xlu2 %1535 }
 0x31f   : > { %v7535_v50 = vadd.f32 %v7031_v46, %v1110_v35 }
 0x320   : > { %v7485_v10 = vpop.xlane.xlu0 %1525 }
 0x322   : > { %v1462_v6 = vpop.xlane.xlu1 %1461 }
 0x324   : > { %2081 = vperm.xlu0 %5375, %v7462_v5  }
 0x326   : > { %v1113_v5 = vpop.f32.mrf.mxu1  ;;  %v7490_v13 = vpop.permute.xlu2 %1976 }
 0x327   : > { %11038 = vst [vmem:[#allocation78_spill] sm:$0xff] %v7490_v13  ;;  %v7505_v13 = vadd.f32 %v6867_v61, %v1462_v6 }
 0x329   : > { %11042 = vst [vmem:[#allocation82_spill] sm:$0xff] %v7505_v13 }
 0x32a   : > { %v7554_v35 = vpop.xlane.xlu1 %1527 }
 0x32c   : > { %2018 = vperm.xlu0 %5375, %v7468_v63   ;;  %v1363_v63 = vmul.f32 %v7011_v15, %v6999_v54  ;;  %v1334_v54 = vmul.f32 %v7011_v15, %v7053_v52  ;;  %v7515_v52 = vadd.f32 %v6870_v21, %v7292_v53 }
 0x32e   : > { %v1116_v20 = vpop.f32.mrf.mxu1  ;;  %v7497_v4 = vpop.xlane.xlu2 %1619  ;;  %11043 = vst [vmem:[#allocation83_spill] sm:$0xff] %v7515_v52 }
 0x336   : > { %2003 = vperm.xlu2 %5374, %v7472_v59   ;;  %v1117_v59 = vadd.f32 %v7031_v46, %v1116_v20  ;;  %v1105_v20 = vadd.f32 %v7031_v46, %v1104_v44  ;;  %v1119_v34 = vpop.f32.mrf.mxu1 }
 0x337   : > { %v7529_v53 = vadd.f32 %v7031_v46, %v1119_v34  ;;  %v7545_v34 = vadd.f32 %v6870_v21, %v7282_v48 }
 0x338   : > { %v1371_v16 = vmul.f32 %v7011_v15, %v1117_v59 }
 0x339   : > { %11046 = vst [vmem:[#allocation86_spill] sm:$0xff] %v7545_v34 }
 0x33d   : > { %1485 = vadd.xlane.f32.xlu1 %v1330_v32  ;;  %v7493_v32 = vpop.permute.xlu0 %1961 }
 0x33e   : > { %11039 = vst [vmem:[#allocation79_spill] sm:$0xff] %v7493_v32  ;;  %v1367_v32 = vmul.f32 %v7011_v15, %v1105_v20  ;;  %v1122_v44 = vpop.f32.mrf.mxu1 }
 0x345   : > { %1551 = vadd.xlane.f32.xlu1 %v1363_v63  ;;  %v7501_v63 = vpop.permute.xlu0 %2063 }
 0x346   : > { %11041 = vst [vmem:[#allocation81_spill] sm:$0xff] %v7501_v63 }
 0x34b   : > { %v1125_v6 = vpop.f32.mrf.mxu1 }
 0x34d   : > { %v7511_v43 = vpop.xlane.xlu0 %1609 }
 0x355   : > { %v7518_v63 = vpop.xlane.xlu0 %1669 }
 0x356   : > { %1567 = vadd.xlane.f32.xlu0 %v1371_v16  ;;  %v7508_v16 = vpop.xlane.xlu2 %1679 }
 0x35e   : > { %2006 = vperm.xlu1 %5376, %v7505_v13   ;;  %v7525_v13 = vadd.f32 %v7031_v46, %v1122_v44 }
 0x35f   : > { %1493 = vadd.xlane.f32.xlu2 %v1334_v54  ;;  %v1476_v54 = vpop.xlane.xlu2 %1475 }
 0x360   : > { %v7521_v61 = vadd.f32 %v7393_v49, %v1476_v54  ;;  %v1466_v54 = vpop.xlane.xlu0 %1465 }
 0x361   : > { %v7538_v44 = vadd.f32 %v7393_v49, %v1466_v54 }
 0x362   : > { %11044 = vst [vmem:[#allocation84_spill] sm:$0xff] %v7521_v61 }
 0x363   : > { %11045 = vst [vmem:[#allocation85_spill] sm:$0xff] %v7538_v44 }
 0x367   : > { %1559 = vadd.xlane.f32.xlu2 %v1367_v32  ;;  %v1126_v32 = vadd.f32 %v7031_v46, %v1125_v6 }
 0x368   : > { %v7556_v6 = vpop.xlane.xlu0 %1531 }
 0x369   : > { %4638 = vmatpush.msra.mxu3 %v1126_v32  ;;  %v1374_v54 = vmul.f32 %v7011_v15, %v1126_v32  ;;  %v7580_v32 = vadd.f32 %v6870_v21, %v7361_v14  ;;  %v7597_v14 = vperm.slane %v6836_v25, 3 }
 0x36a   : > { %2090 = vperm.xlu0 %5375, %v7515_v52   ;;  %v1114_v52 = vadd.f32 %v7031_v46, %v1113_v5  ;;  %v1333_v46 = vmul.f32 %v7011_v15, %v7050_v24 }
 0x36b   : > { %4639 = vmatpush.msra.mxu3 %v7525_v13  ;;  %11052 = vst [vmem:[#allocation92_spill] sm:$0xff] %v7580_v32 }
 0x36d   : > { %4640 = vmatpush.msra.mxu3 %v7529_v53 }
 0x36f   : > { %4641 = vmatpush.msra.mxu3 %v1117_v59 }
 0x371   : > { %4642 = vmatpush.msra.mxu3 %v1114_v52 }
 0x372   : > { %2027 = vperm.xlu0 %5375, %v7521_v61   ;;  %v1542_v61 = vpop.xlane.xlu2 %1541 }
 0x373   : > { %4643 = vmatpush.msra.mxu3 %v7535_v50 }
 0x375   : > { %4644 = vmatpush.msra.mxu3 %v7434_v56  ;;  %v1366_v56 = vmul.f32 %v7011_v15, %v6980_v19  ;;  %v1370_v19 = vmul.f32 %v7011_v15, %v1114_v52 }
 0x377   : > { %4645 = vmatpush.msra.mxu3 %v1105_v20  ;;  %v7560_v20 = vpop.permute.xlu1 %1964 }
 0x378   : > { %11048 = vst [vmem:[#allocation88_spill] sm:$0xff] %v7560_v20 }
 0x37a   : > { %v7547_v5 = vpop.permute.xlu2 %1985 }
 0x37b   : > { %11047 = vst [vmem:[#allocation87_spill] sm:$0xff] %v7547_v5 }
 0x37f   : > { %2012 = vperm.xlu2 %5374, %v7538_v44   ;;  %v7567_v24 = vpop.xlane.xlu1 %1611 }
 0x382   : > { %v7552_v59 = vpop.xlane.xlu2 %1625 }
 0x387   : > { %2075 = vperm.xlu2 %5374, %v7545_v34   ;;  %v7565_v34 = vpop.xlane.xlu0 %1615 }
 0x388   : > { %1491 = vadd.xlane.f32.xlu1 %v1333_v46  ;;  %v7571_v46 = vpop.xlane.xlu1 %1671 }
 0x389   : > { %11050 = vst [vmem:[#allocation90_spill] sm:$0xff] %v7571_v46 }
 0x38a   : > { %v7562_v48 = vpop.xlane.xlu2 %1685 }
 0x38f   : > { %v7569_v5 = vpop.xlane.xlu0 %1675 }
 0x390   : > { %1557 = vadd.xlane.f32.xlu1 %v1366_v56  ;;  %11049 = vst [vmem:[#allocation89_spill] sm:$0xff] %v7569_v5  ;;  %v7576_v56 = vadd.f32 %v6870_v21, %v7257_v51  ;;  %v1468_v20 = vpop.xlane.xlu1 %1467 }
 0x391   : > { %v7585_v46 = vadd.f32 %v7393_v49, %v1468_v20  ;;  %v7603_v20 = vadd.f32 %v7597_v14, %v7409_v29  ;;  %v7621_v29 = vadd.f32 %v6870_v21, %v7367_v45 }
 0x392   : > { %v1482_v44 = vpop.xlane.xlu2 %1481  ;;  %11051 = vst [vmem:[#allocation91_spill] sm:$0xff] %v7576_v56 }
 0x393   : > { %11053 = vst [vmem:[#allocation93_spill] sm:$0xff] %v7585_v46  ;;  %v7590_v52 = vadd.f32 %v7393_v49, %v1482_v44 }
 0x394   : > { %11056 = vst [vmem:[#allocation96_spill] sm:$0xff] %v7603_v20 }
 0x395   : > { %11055 = vst [vmem:[#allocation95_spill] sm:$0xff] %v7590_v52 }
 0x396   : > { %11060 = vst [vmem:[#allocation100_spill] sm:$0xff] %v7621_v29 }
 0x39a   : > { %v1548_v42 = vpop.xlane.xlu2 %1547 }
 0x39c   : > { %1573 = vadd.xlane.f32.xlu0 %v1374_v54  ;;  %v1472_v54 = vpop.xlane.xlu0 %1471 }
 0x39d   : > { %v7609_v44 = vadd.f32 %v7393_v49, %v1472_v54  ;;  %v7628_v54 = vpop.xlane.xlu1 %1533 }
 0x39f   : > { %11058 = vst [vmem:[#allocation98_spill] sm:$0xff] %v7609_v44 }
 0x3a2   : > { %v7587_v3 = vpop.permute.xlu2 %1994 }
 0x3a3   : > { %11054 = vst [vmem:[#allocation94_spill] sm:$0xff] %v7587_v3 }
 0x3a4   : > { %v7594_v51 = vpop.xlane.xlu0 %1537 }
 0x3a9   : > { %2069 = vperm.xlu1 %5376, %v7576_v56  }
 0x3b0   : > { %1565 = vadd.xlane.f32.xlu2 %v1370_v19  ;;  %2099 = vperm.xlu0 %5375, %v7580_v32   ;;  %v7599_v19 = vpop.xlane.xlu2 %1631  ;;  %v7606_v32 = vpop.permute.xlu0 %1982 }
 0x3b1   : > { %2015 = vperm.xlu1 %5376, %v7585_v46   ;;  %11057 = vst [vmem:[#allocation97_spill] sm:$0xff] %v7606_v32 }
 0x3b8   : > { %2036 = vperm.xlu0 %5375, %v7590_v52   ;;  %v7613_v52 = vadd.f32 %v7597_v14, %v7481_v12  ;;  %v1488_v56 = vpop.xlane.xlu2 %1487  ;;  %v7617_v46 = vpop.xlane.xlu0 %1621 }
 0x3ba   : > { %11059 = vst [vmem:[#allocation99_spill] sm:$0xff] %v7613_v52 }
 0x3c0   : > { %2108 = vperm.xlu0 %5375, %v7603_v20   ;;  %v7624_v20 = vadd.f32 %v7393_v49, %v1488_v56  ;;  %v1554_v12 = vpop.xlane.xlu2 %1553  ;;  %v7630_v3 = vpop.xlane.xlu0 %1681  ;;  %v1369_v56 = vmul.f32 %v7011_v15, %v7535_v50 }
 0x3c1   : > { %11062 = vst [vmem:[#allocation102_spill] sm:$0xff] %v7630_v3  ;;  %v7655_v50 = vadd.f32 %v7597_v14, %v1554_v12  ;;  %v7672_v12 = vadd.f32 %v6870_v21, %v7328_v39 }
 0x3c2   : > { %11061 = vst [vmem:[#allocation101_spill] sm:$0xff] %v7624_v20 }
 0x3c3   : > { %11069 = vst [vmem:[#allocation109_spill] sm:$0xff] %v7655_v50 }
 0x3c4   : > { %11073 = vst [vmem:[#allocation113_spill] sm:$0xff] %v7672_v12 }
 0x3c8   : > { %2021 = vperm.xlu2 %5374, %v7609_v44   ;;  %2117 = vperm.xlu0 %5375, %v7613_v52   ;;  %v7633_v52 = vadd.f32 %v7597_v14, %v1542_v61  ;;  %v7636_v44 = vpop.permute.xlu1 %1973  ;;  %v7638_v45 = vpop.permute.xlu2 %2003 }
 0x3c9   : > { %11064 = vst [vmem:[#allocation104_spill] sm:$0xff] %v7636_v44 }
 0x3ca   : > { %11063 = vst [vmem:[#allocation103_spill] sm:$0xff] %v7633_v52 }
 0x3cb   : > { %11065 = vst [vmem:[#allocation105_spill] sm:$0xff] %v7638_v45 }
 0x3d0   : > { %2084 = vperm.xlu2 %5374, %v7621_v29   ;;  %2045 = vperm.xlu0 %5375, %v7624_v20   ;;  %v1478_v29 = vpop.xlane.xlu0 %1477  ;;  %v7643_v20 = vadd.f32 %v7597_v14, %v1548_v42  ;;  %v7646_v32 = vpop.xlane.xlu1 %1617 }
 0x3d1   : > { %v7685_v39 = vadd.f32 %v7393_v49, %v1478_v29 }
 0x3d2   : > { %11066 = vst [vmem:[#allocation106_spill] sm:$0xff] %v7643_v20  ;;  %v1494_v61 = vpop.xlane.xlu2 %1493 }
 0x3d3   : > { %v7649_v3 = vadd.f32 %v7393_v49, %v1494_v61  ;;  %v1373_v61 = vmul.f32 %v7011_v15, %v7525_v13  ;;  %11075 = vst [vmem:[#allocation115_spill] sm:$0xff] %v7685_v39 }
 0x3d5   : > { %11067 = vst [vmem:[#allocation107_spill] sm:$0xff] %v7649_v3 }
 0x3d8   : > { %2126 = vperm.xlu0 %5375, %v7633_v52   ;;  %v1544_v52 = vpop.xlane.xlu0 %1543  ;;  %v7652_v45 = vpop.xlane.xlu1 %1677 }
 0x3d9   : > { %11068 = vst [vmem:[#allocation108_spill] sm:$0xff] %v7652_v45 }
 0x3da   : > { %v1560_v42 = vpop.xlane.xlu2 %1559 }
 0x3db   : > { %1563 = vadd.xlane.f32.xlu1 %v1369_v56  ;;  %v7661_v56 = vperm.slane %v6836_v25, 4 }
 0x3e0   : > { %2135 = vperm.xlu0 %5375, %v7643_v20   ;;  %v7657_v44 = vpop.permute.xlu0 %1991  ;;  %v7665_v20 = vpop.permute.xlu1 %1979 }
 0x3e1   : > { %11070 = vst [vmem:[#allocation110_spill] sm:$0xff] %v7657_v44 }
 0x3e2   : > { %11071 = vst [vmem:[#allocation111_spill] sm:$0xff] %v7665_v20  ;;  %v7687_v5 = vpop.permute.xlu2 %2012 }
 0x3e3   : > { %11076 = vst [vmem:[#allocation116_spill] sm:$0xff] %v7687_v5  ;;  %v7707_v5 = vadd.f32 %v6870_v21, %v7485_v10  ;;  %v1372_v10 = vmul.f32 %v7011_v15, %v7529_v53 }
 0x3e5   : > { %11081 = vst [vmem:[#allocation121_spill] sm:$0xff] %v7707_v5 }
 0x3e8   : > { %2054 = vperm.xlu0 %5375, %v7649_v3   ;;  %v7668_v3 = vadd.f32 %v7661_v56, %v1560_v42  ;;  %v7674_v45 = vpop.xlane.xlu0 %1627 }
 0x3ea   : > { %11072 = vst [vmem:[#allocation112_spill] sm:$0xff] %v7668_v3 }
 0x3f0   : > { %2144 = vperm.xlu0 %5375, %v7655_v50   ;;  %v1474_v50 = vpop.xlane.xlu1 %1473  ;;  %v1484_v13 = vpop.xlane.xlu0 %1483 }
 0x3f1   : > { %v7679_v44 = vadd.f32 %v7393_v49, %v1474_v50  ;;  %v7696_v50 = vadd.f32 %v6870_v21, %v7446_v60 }
 0x3f3   : > { %11074 = vst [vmem:[#allocation114_spill] sm:$0xff] %v7679_v44 }
 0x3f4   : > { %2078 = vperm.xlu1 %5376, %v7672_v12   ;;  %11078 = vst [vmem:[#allocation118_spill] sm:$0xff] %v7696_v50  ;;  %v7699_v12 = vpop.permute.xlu2 %2075 }
 0x3f5   : > { %11079 = vst [vmem:[#allocation119_spill] sm:$0xff] %v7699_v12 }
 0x3f8   : > { %2153 = vperm.xlu0 %5375, %v7668_v3   ;;  %v7682_v42 = vpop.xlane.xlu1 %1539  ;;  %v1550_v20 = vpop.xlane.xlu0 %1549 }
 0x3f9   : > { %1571 = vadd.xlane.f32.xlu2 %v1373_v61 }
 0x3fc   : > { %2024 = vperm.xlu1 %5376, %v7679_v44  }
 0x400   : > { %v7690_v61 = vpop.xlane.xlu1 %1623  ;;  %v7692_v3 = vpop.permute.xlu0 %2000 }
 0x401   : > { %11077 = vst [vmem:[#allocation117_spill] sm:$0xff] %v7692_v3 }
 0x408   : > { %v7701_v44 = vpop.xlane.xlu1 %1683  ;;  %v7703_v29 = vpop.xlane.xlu0 %1633 }
 0x409   : > { %11080 = vst [vmem:[#allocation120_spill] sm:$0xff] %v7701_v44 }
 0x410   : > { %v7713_v60 = vpop.permute.xlu1 %1988  ;;  %v1490_v12 = vpop.xlane.xlu0 %1489 }
 0x411   : > { %2030 = vperm.xlu2 %5374, %v7685_v39  }
 0x418   : > { %v1480_v44 = vpop.xlane.xlu1 %1479 }
 0x419   : > { %2093 = vperm.xlu2 %5374, %v7696_v50   ;;  %v7717_v50 = vadd.f32 %v7393_v49, %v1484_v13  ;;  %v1556_v13 = vpop.xlane.xlu0 %1555 }
 0x41b   : > { %11083 = vst [vmem:[#allocation123_spill] sm:$0xff] %v7717_v50 }
 0x420   : > { %v7741_v15 = vpop.xlane.xlu1 %1545 }
 0x421   : > { %2102 = vperm.xlu2 %5374, %v7707_v5   ;;  %v7724_v5 = vadd.f32 %v7661_v56, %v6850_v47  ;;  %v7739_v47 = vadd.f32 %v7597_v14, %v7594_v51  ;;  %v7743_v53 = vpop.permute.xlu0 %2072  ;;  %v7760_v51 = vadd.f32 %v7597_v14, %v1544_v52  ;;  %v7777_v52 = vadd.f32 %v6870_v21, %v7475_v8 }
 0x423   : > { %v1566_v39 = vpop.xlane.xlu2 %1565  ;;  %11084 = vst [vmem:[#allocation124_spill] sm:$0xff] %v7724_v5 }
 0x424   : > { %v7711_v3 = vadd.f32 %v7661_v56, %v1566_v39  ;;  %v7729_v39 = vadd.f32 %v7597_v14, %v7556_v6  ;;  %11087 = vst [vmem:[#allocation127_spill] sm:$0xff] %v7739_v47  ;;  %v7747_v6 = vadd.f32 %v7393_v49, %v1490_v12 }
 0x425   : > { %11090 = vst [vmem:[#allocation130_spill] sm:$0xff] %v7760_v51 }
 0x426   : > { %11082 = vst [vmem:[#allocation122_spill] sm:$0xff] %v7711_v3  ;;  %2162 = vperm.xlu0 %5375, %v7711_v3   ;;  %1569 = vadd.xlane.f32.xlu1 %v1372_v10  ;;  %v7734_v3 = vadd.f32 %v7661_v56, %v7002_v7 }
 0x427   : > { %11085 = vst [vmem:[#allocation125_spill] sm:$0xff] %v7729_v39 }
 0x428   : > { %11086 = vst [vmem:[#allocation126_spill] sm:$0xff] %v7734_v3  ;;  %v7749_v10 = vpop.xlane.xlu1 %1629 }
 0x429   : > { %2039 = vperm.xlu2 %5374, %v7717_v50   ;;  %11088 = vst [vmem:[#allocation128_spill] sm:$0xff] %v7747_v6  ;;  %v7752_v7 = vpop.permute.xlu0 %2009  ;;  %v7788_v50 = vadd.f32 %v7597_v14, %v7554_v35  ;;  %v11098_v35 = vld [vmem:[#allocation34_spill] sm:$0xff] }
 0x42a   : > { %11093 = vst [vmem:[#allocation133_spill] sm:$0xff] %v7777_v52 }
 0x42b   : > { %11095 = vst [vmem:[#allocation135_spill] sm:$0xff] %v7788_v50 }
 0x42e   : > { %2180 = vperm.xlu0 %5375, %v7724_v5  }
 0x430   : > { %v7762_v5 = vpop.permute.xlu1 %1997 }
 0x431   : > { %2111 = vperm.xlu2 %5374, %v7729_v39   ;;  %v1562_v12 = vpop.xlane.xlu0 %1561  ;;  %v7770_v39 = vadd.f32 %v7597_v14, %v1550_v20 }
 0x433   : > { %11092 = vst [vmem:[#allocation132_spill] sm:$0xff] %v7770_v39 }
 0x436   : > { %2189 = vperm.xlu0 %5375, %v7734_v3   ;;  %v7756_v3 = vadd.f32 %v6870_v21, %v7415_v23  ;;  %v7794_v21 = vadd.f32 %v7661_v56, %v1562_v12 }
 0x438   : > { %11089 = vst [vmem:[#allocation129_spill] sm:$0xff] %v7756_v3  ;;  %v1486_v23 = vpop.xlane.xlu1 %1485 }
 0x439   : > { %2120 = vperm.xlu2 %5374, %v7739_v47   ;;  %v7766_v47 = vadd.f32 %v7393_v49, %v1480_v44  ;;  %v7784_v44 = vpop.permute.xlu2 %2021  ;;  %11096 = vst [vmem:[#allocation136_spill] sm:$0xff] %v7794_v21 }
 0x43b   : > { %11091 = vst [vmem:[#allocation131_spill] sm:$0xff] %v7766_v47 }
 0x43f   : > { %2087 = vperm.xlu1 %5376, %v7756_v3   ;;  %v7807_v3 = vadd.f32 %v7661_v56, %v11098_v35  ;;  %v7827_v35 = vadd.f32 %v7597_v14, %v7682_v42  ;;  %v7843_v42 = vperm.slane %v6836_v25, 5 }
 0x440   : > { %v1552_v20 = vpop.xlane.xlu1 %1551 }
 0x441   : > { %2048 = vperm.xlu2 %5374, %v7747_v6   ;;  %v7773_v6 = vpop.permute.xlu0 %2081  ;;  %11099 = vst [vmem:[#allocation34_spill] sm:$0xff] %v7807_v3 }
 0x442   : > { %11103 = vst [vmem:[#allocation141_spill] sm:$0xff] %v7827_v35 }
 0x447   : > { %2033 = vperm.xlu1 %5376, %v7766_v47  }
 0x448   : > { %v7797_v8 = vpop.permute.xlu1 %2006 }
 0x449   : > { %2129 = vperm.xlu2 %5374, %v7760_v51   ;;  %v7781_v51 = vadd.f32 %v7597_v14, %v1556_v13  ;;  %v7800_v13 = vadd.f32 %v7393_v49, %v1486_v23 }
 0x44b   : > { %11094 = vst [vmem:[#allocation134_spill] sm:$0xff] %v7781_v51 }
 0x44c   : > { %11097 = vst [vmem:[#allocation137_spill] sm:$0xff] %v7800_v13 }
 0x44f   : > { %2096 = vperm.xlu1 %5376, %v7777_v52  }
 0x450   : > { %v1492_v12 = vpop.xlane.xlu1 %1491 }
 0x451   : > { %2138 = vperm.xlu2 %5374, %v7770_v39   ;;  %v7790_v39 = vpop.permute.xlu0 %2018 }
 0x457   : > { %2105 = vperm.xlu1 %5376, %v7788_v50  }
 0x459   : > { %2147 = vperm.xlu2 %5374, %v7781_v51   ;;  %v7802_v51 = vpop.permute.xlu2 %2084  ;;  %v1568_v52 = vpop.xlane.xlu0 %1567 }
 0x45f   : > { %2042 = vperm.xlu1 %5376, %v7800_v13   ;;  %v7821_v13 = vadd.f32 %v7661_v56, %v1568_v52 }
 0x461   : > { %2156 = vperm.xlu2 %5374, %v7794_v21   ;;  %v7812_v21 = vadd.f32 %v7597_v14, %v7628_v54  ;;  %v7814_v47 = vpop.permute.xlu0 %2090  ;;  %11102 = vst [vmem:[#allocation140_spill] sm:$0xff] %v7821_v13  ;;  %v7831_v54 = vadd.f32 %v7661_v56, %v7161_v62  ;;  %v7850_v62 = vadd.f32 %v7843_v42, %v7237_v1 }
 0x462   : > { %v7869_v1 = vadd.f32 %v7843_v42, %v7300_v17  ;;  %v7888_v17 = vadd.f32 %v7843_v42, %v7381_v18  ;;  %v7904_v18 = vadd.f32 %v7843_v42, %v7448_v0  ;;  %v7924_v0 = vadd.f32 %v7843_v42, %v7497_v4 }
 0x463   : > { %11100 = vst [vmem:[#allocation138_spill] sm:$0xff] %v7812_v21 }
 0x464   : > { %11104 = vst [vmem:[#allocation142_spill] sm:$0xff] %v7831_v54 }
 0x465   : > { %11107 = vst [vmem:[#allocation145_spill] sm:$0xff] %v7850_v62 }
 0x466   : > { %11110 = vst [vmem:[#allocation148_spill] sm:$0xff] %v7869_v1 }
 0x467   : > { %2114 = vperm.xlu1 %5376, %v7812_v21   ;;  %11113 = vst [vmem:[#allocation151_spill] sm:$0xff] %v7888_v17 }
 0x468   : > { %11116 = vst [vmem:[#allocation154_spill] sm:$0xff] %v7904_v18 }
 0x469   : > { %2183 = vperm.xlu2 %5374, %v7807_v3   ;;  %v1558_v3 = vpop.xlane.xlu1 %1557  ;;  %v7838_v52 = vpop.permute.xlu0 %2027  ;;  %11119 = vst [vmem:[#allocation157_spill] sm:$0xff] %v7924_v0 }
 0x46c   : > { %v1572_v50 = vpop.xlane.xlu2 %1571 }
 0x46d   : > { %v7817_v23 = vadd.f32 %v7661_v56, %v1572_v50  ;;  %v7836_v50 = vadd.f32 %v7661_v56, %v7222_v31  ;;  %v7857_v31 = vadd.f32 %v7843_v42, %v7298_v26 }
 0x46f   : > { %11101 = vst [vmem:[#allocation139_spill] sm:$0xff] %v7817_v23  ;;  %2171 = vperm.xlu0 %5375, %v7817_v23   ;;  %2123 = vperm.xlu1 %5376, %v7827_v35  }
 0x470   : > { %11105 = vst [vmem:[#allocation143_spill] sm:$0xff] %v7836_v50 }
 0x471   : > { %2165 = vperm.xlu2 %5374, %v7821_v13   ;;  %v7846_v13 = vadd.f32 %v7393_v49, %v1492_v12  ;;  %v7852_v23 = vpop.permute.xlu1 %2069  ;;  %11108 = vst [vmem:[#allocation146_spill] sm:$0xff] %v7857_v31  ;;  %v7865_v49 = vadd.f32 %v7597_v14, %v7741_v15  ;;  %v7884_v15 = vadd.f32 %v7597_v14, %v1552_v20 }
 0x472   : > { %v7900_v20 = vadd.f32 %v7597_v14, %v1558_v3 }
 0x473   : > { %11106 = vst [vmem:[#allocation144_spill] sm:$0xff] %v7846_v13 }
 0x474   : > { %11109 = vst [vmem:[#allocation147_spill] sm:$0xff] %v7865_v49 }
 0x475   : > { %11112 = vst [vmem:[#allocation150_spill] sm:$0xff] %v7884_v15 }
 0x476   : > { %11115 = vst [vmem:[#allocation153_spill] sm:$0xff] %v7900_v20 }
 0x477   : > { %2198 = vperm.xlu0 %5375, %v7831_v54   ;;  %2051 = vperm.xlu1 %5376, %v7846_v13   ;;  %v1574_v54 = vpop.xlane.xlu0 %1573 }
 0x478   : > { %v7873_v26 = vadd.f32 %v7661_v56, %v1574_v54  ;;  %v7893_v54 = vadd.f32 %v7843_v42, %v7379_v36  ;;  %v7911_v36 = vadd.f32 %v7843_v42, %v7456_v58  ;;  %v7929_v58 = vadd.f32 %v7843_v42, %v7511_v43 }
 0x479   : > { %2192 = vperm.xlu2 %5374, %v7836_v50   ;;  %v7860_v50 = vpop.permute.xlu2 %2030 }
 0x47a   : > { %11111 = vst [vmem:[#allocation149_spill] sm:$0xff] %v7873_v26 }
 0x47b   : > { %11114 = vst [vmem:[#allocation152_spill] sm:$0xff] %v7893_v54 }
 0x47c   : > { %11117 = vst [vmem:[#allocation155_spill] sm:$0xff] %v7911_v36 }
 0x47d   : > { %11120 = vst [vmem:[#allocation158_spill] sm:$0xff] %v7929_v58 }
 0x47f   : > { %2207 = vperm.xlu0 %5375, %v7850_v62   ;;  %2132 = vperm.xlu1 %5376, %v7865_v49   ;;  %v7875_v12 = vpop.permute.xlu0 %2099  ;;  %v7877_v62 = vpop.permute.xlu1 %2015 }
 0x481   : > { %2201 = vperm.xlu2 %5374, %v7857_v31   ;;  %v7881_v31 = vpop.permute.xlu2 %2093 }
 0x487   : > { %2216 = vperm.xlu0 %5375, %v7869_v1   ;;  %2141 = vperm.xlu1 %5376, %v7884_v15   ;;  %v1564_v49 = vpop.xlane.xlu1 %1563  ;;  %v7896_v1 = vpop.permute.xlu0 %2036 }
 0x488   : > { %v7920_v14 = vadd.f32 %v7661_v56, %v1564_v49  ;;  %v7938_v49 = vperm.slane %v6836_v25, 6 }
 0x489   : > { %2174 = vperm.xlu2 %5374, %v7873_v26   ;;  %v7906_v26 = vpop.permute.xlu2 %2102 }
 0x48a   : > { %11118 = vst [vmem:[#allocation156_spill] sm:$0xff] %v7920_v14 }
 0x48f   : > { %2225 = vperm.xlu0 %5375, %v7888_v17   ;;  %2150 = vperm.xlu1 %5376, %v7900_v20   ;;  %v7913_v17 = vpop.permute.xlu1 %2078  ;;  %v7917_v3 = vpop.permute.xlu0 %2108 }
 0x491   : > { %2210 = vperm.xlu2 %5374, %v7893_v54   ;;  %v7931_v54 = vpop.permute.xlu2 %2039 }
 0x497   : > { %2234 = vperm.xlu0 %5375, %v7904_v18   ;;  %2159 = vperm.xlu1 %5376, %v7920_v14   ;;  %v7934_v18 = vpop.permute.xlu1 %2024  ;;  %v7946_v14 = vadd.f32 %v7938_v49, %v7552_v59  ;;  %v7948_v43 = vpop.permute.xlu0 %2117  ;;  %v7964_v59 = vadd.f32 %v7938_v49, %v7599_v19  ;;  %v11130_v19 = vld [vmem:[#allocation25_spill] sm:$0xff] }
 0x499   : > { %2219 = vperm.xlu2 %5374, %v7911_v36   ;;  %v11121_v36 = vld [vmem:[#allocation24_spill] sm:$0xff]  ;;  %11123 = vst [vmem:[#allocation159_spill] sm:$0xff] %v7946_v14 }
 0x49a   : > { %v7942_v4 = vadd.f32 %v7661_v56, %v11121_v36  ;;  %11126 = vst [vmem:[#allocation162_spill] sm:$0xff] %v7964_v59 }
 0x49c   : > { %11122 = vst [vmem:[#allocation24_spill] sm:$0xff] %v7942_v4 }
 0x49f   : > { %2243 = vperm.xlu0 %5375, %v7924_v0   ;;  %2177 = vperm.xlu1 %5376, %v7942_v4   ;;  %v7953_v0 = vadd.f32 %v7843_v42, %v7565_v34  ;;  %v1570_v20 = vpop.xlane.xlu1 %1569  ;;  %v7969_v34 = vadd.f32 %v7843_v42, %v7617_v46  ;;  %v7971_v4 = vpop.permute.xlu0 %2045  ;;  %v7988_v46 = vadd.f32 %v7938_v49, %v7674_v45 }
 0x4a0   : > { %v7960_v36 = vadd.f32 %v7661_v56, %v1570_v20  ;;  %v7979_v20 = vadd.f32 %v7661_v56, %v7247_v33  ;;  %v7998_v33 = vadd.f32 %v7661_v56, %v7264_v40  ;;  %v8009_v45 = vadd.f32 %v7938_v49, %v7703_v29  ;;  %v11140_v29 = vld [vmem:[#allocation36_spill] sm:$0xff] }
 0x4a1   : > { %2228 = vperm.xlu2 %5374, %v7929_v58   ;;  %11124 = vst [vmem:[#allocation160_spill] sm:$0xff] %v7953_v0  ;;  %v7956_v58 = vpop.permute.xlu2 %2111  ;;  %v8019_v56 = vadd.f32 %v7843_v42, %v7343_v2  ;;  %v8037_v2 = vperm.slane %v6836_v25, 7 }
 0x4a2   : > { %11125 = vst [vmem:[#allocation161_spill] sm:$0xff] %v7960_v36 }
 0x4a3   : > { %11127 = vst [vmem:[#allocation163_spill] sm:$0xff] %v7969_v34 }
 0x4a4   : > { %11129 = vst [vmem:[#allocation165_spill] sm:$0xff] %v7979_v20 }
 0x4a5   : > { %11132 = vst [vmem:[#allocation166_spill] sm:$0xff] %v7988_v46 }
 0x4a6   : > { %11133 = vst [vmem:[#allocation167_spill] sm:$0xff] %v7998_v33 }
 0x4a7   : > { %2252 = vperm.xlu0 %5375, %v7946_v14   ;;  %2168 = vperm.xlu1 %5376, %v7960_v36   ;;  %11137 = vst [vmem:[#allocation169_spill] sm:$0xff] %v8009_v45 }
 0x4a8   : > { %11138 = vst [vmem:[#allocation170_spill] sm:$0xff] %v8019_v56 }
 0x4a9   : > { %2237 = vperm.xlu2 %5374, %v7953_v0   ;;  %v7975_v14 = vpop.permute.xlu2 %2120  ;;  %v7983_v0 = vadd.f32 %v7938_v49, %v11130_v19  ;;  %v11134_v19 = vld [vmem:[#allocation33_spill] sm:$0xff] }
 0x4aa   : > { %11128 = vst [vmem:[#allocation164_spill] sm:$0xff] %v7975_v14  ;;  %v8002_v36 = vadd.f32 %v7938_v49, %v11134_v19  ;;  %v8023_v19 = vadd.f32 %v7938_v49, %v7175_v38  ;;  %v8041_v38 = vadd.f32 %v7843_v42, %v7425_v41  ;;  %v8066_v41 = vadd.f32 %v8037_v2, %v7306_v28 }
 0x4ab   : > { %11131 = vst [vmem:[#allocation25_spill] sm:$0xff] %v7983_v0  ;;  %v8083_v28 = vadd.f32 %v7843_v42, %v7567_v24  ;;  %v8102_v24 = vadd.f32 %v7843_v42, %v7646_v32  ;;  %v8127_v32 = vadd.f32 %v8037_v2, %v7508_v16  ;;  %v8144_v16 = vadd.f32 %v7938_v49, %v7749_v10  ;;  %v11173_v10 = vld [vmem:[#allocation26_spill] sm:$0xff] }
 0x4ac   : > { %11135 = vst [vmem:[#allocation33_spill] sm:$0xff] %v8002_v36 }
 0x4ad   : > { %11139 = vst [vmem:[#allocation171_spill] sm:$0xff] %v8023_v19 }
 0x4ae   : > { %11143 = vst [vmem:[#allocation173_spill] sm:$0xff] %v8041_v38 }
 0x4af   : > { %2261 = vperm.xlu0 %5375, %v7964_v59   ;;  %2186 = vperm.xlu1 %5376, %v7979_v20   ;;  %11148 = vst [vmem:[#allocation178_spill] sm:$0xff] %v8066_v41 }
 0x4b0   : > { %11152 = vst [vmem:[#allocation182_spill] sm:$0xff] %v8083_v28 }
 0x4b1   : > { %2246 = vperm.xlu2 %5374, %v7969_v34   ;;  %v7991_v59 = vpop.permute.xlu1 %2087  ;;  %v7993_v34 = vpop.permute.xlu0 %2126  ;;  %11156 = vst [vmem:[#allocation186_spill] sm:$0xff] %v8102_v24 }
 0x4b2   : > { %v8004_v20 = vpop.permute.xlu2 %2048  ;;  %11162 = vst [vmem:[#allocation192_spill] sm:$0xff] %v8127_v32 }
 0x4b3   : > { %11136 = vst [vmem:[#allocation168_spill] sm:$0xff] %v8004_v20 }
 0x4b4   : > { %11167 = vst [vmem:[#allocation197_spill] sm:$0xff] %v8144_v16 }
 0x4b7   : > { %2270 = vperm.xlu0 %5375, %v7983_v0   ;;  %2195 = vperm.xlu1 %5376, %v7998_v33   ;;  %v11180_v33 = vld [vmem:[#allocation47_spill] sm:$0xff] }
 0x4b9   : > { %2255 = vperm.xlu2 %5374, %v7988_v46   ;;  %v8012_v0 = vpop.permute.xlu1 %2033  ;;  %v8015_v40 = vpop.permute.xlu0 %2135  ;;  %v8028_v46 = vadd.f32 %v7938_v49, %v11140_v29 }
 0x4bb   : > { %11141 = vst [vmem:[#allocation36_spill] sm:$0xff] %v8028_v46 }
 0x4bf   : > { %2279 = vperm.xlu0 %5375, %v8002_v36   ;;  %2204 = vperm.xlu1 %5376, %v8019_v56   ;;  %v8030_v36 = vpop.permute.xlu2 %2129  ;;  %v8045_v56 = vadd.f32 %v8037_v2, %v7245_v57  ;;  %v8062_v57 = vadd.f32 %v7843_v42, %v7479_v9 }
 0x4c0   : > { %11142 = vst [vmem:[#allocation172_spill] sm:$0xff] %v8030_v36 }
 0x4c1   : > { %2264 = vperm.xlu2 %5374, %v8009_v45   ;;  %v8033_v45 = vpop.permute.xlu1 %2096  ;;  %11144 = vst [vmem:[#allocation174_spill] sm:$0xff] %v8045_v56  ;;  %v8047_v29 = vpop.permute.xlu0 %2054 }
 0x4c2   : > { %11147 = vst [vmem:[#allocation177_spill] sm:$0xff] %v8062_v57 }
 0x4c7   : > { %2288 = vperm.xlu0 %5375, %v8023_v19   ;;  %2213 = vperm.xlu1 %5376, %v8041_v38   ;;  %v8052_v19 = vadd.f32 %v7938_v49, %v7235_v27  ;;  %v8071_v27 = vadd.f32 %v7938_v49, %v7304_v37  ;;  %v8092_v37 = vadd.f32 %v8037_v2, %v7383_v55 }
 0x4c8   : > { %v8113_v55 = vadd.f32 %v8037_v2, %v7465_v22  ;;  %v8132_v22 = vadd.f32 %v8037_v2, %v7518_v63  ;;  %v11169_v63 = vld [vmem:[#allocation89_spill] sm:$0xff] }
 0x4c9   : > { %2273 = vperm.xlu2 %5374, %v8028_v46   ;;  %11145 = vst [vmem:[#allocation175_spill] sm:$0xff] %v8052_v19  ;;  %v8055_v25 = vpop.permute.xlu1 %2105  ;;  %v8057_v46 = vpop.permute.xlu2 %2138 }
 0x4ca   : > { %11146 = vst [vmem:[#allocation176_spill] sm:$0xff] %v8057_v46 }
 0x4cb   : > { %11149 = vst [vmem:[#allocation179_spill] sm:$0xff] %v8071_v27 }
 0x4cc   : > { %11154 = vst [vmem:[#allocation184_spill] sm:$0xff] %v8092_v37 }
 0x4cd   : > { %11158 = vst [vmem:[#allocation188_spill] sm:$0xff] %v8113_v55 }
 0x4ce   : > { %11163 = vst [vmem:[#allocation193_spill] sm:$0xff] %v8132_v22 }
 0x4cf   : > { %2297 = vperm.xlu0 %5375, %v8045_v56   ;;  %2222 = vperm.xlu1 %5376, %v8062_v57   ;;  %v8073_v56 = vpop.permute.xlu0 %2144 }
 0x4d1   : > { %2282 = vperm.xlu2 %5374, %v8052_v19   ;;  %v8076_v38 = vpop.permute.xlu1 %2042  ;;  %v8079_v9 = vpop.permute.xlu2 %2147  ;;  %v8087_v19 = vadd.f32 %v8037_v2, %v7385_v11  ;;  %v8106_v11 = vadd.f32 %v8037_v2, %v7458_v30  ;;  %v8123_v30 = vadd.f32 %v7938_v49, %v7690_v61 }
 0x4d2   : > { %11150 = vst [vmem:[#allocation180_spill] sm:$0xff] %v8076_v38 }
 0x4d3   : > { %11151 = vst [vmem:[#allocation181_spill] sm:$0xff] %v8079_v9 }
 0x4d4   : > { %11153 = vst [vmem:[#allocation183_spill] sm:$0xff] %v8087_v19 }
 0x4d5   : > { %11157 = vst [vmem:[#allocation187_spill] sm:$0xff] %v8106_v11 }
 0x4d6   : > { %11161 = vst [vmem:[#allocation191_spill] sm:$0xff] %v8123_v30 }
 0x4d7   : > { %2306 = vperm.xlu0 %5375, %v8066_v41   ;;  %2231 = vperm.xlu1 %5376, %v8083_v28  }
 0x4d9   : > { %2291 = vperm.xlu2 %5374, %v8071_v27   ;;  %v8095_v41 = vpop.permute.xlu1 %2114  ;;  %v8097_v27 = vpop.permute.xlu0 %2153 }
 0x4da   : > { %11155 = vst [vmem:[#allocation185_spill] sm:$0xff] %v8095_v41  ;;  %v8108_v28 = vpop.permute.xlu2 %2156 }
 0x4df   : > { %2315 = vperm.xlu0 %5375, %v8087_v19   ;;  %2240 = vperm.xlu1 %5376, %v8102_v24   ;;  %v8163_v24 = vadd.f32 %v7938_v49, %v11173_v10 }
 0x4e1   : > { %2300 = vperm.xlu2 %5374, %v8092_v37   ;;  %v8116_v19 = vpop.permute.xlu1 %2123  ;;  %v8118_v37 = vpop.permute.xlu0 %2162  ;;  %11174 = vst [vmem:[#allocation26_spill] sm:$0xff] %v8163_v24 }
 0x4e2   : > { %11159 = vst [vmem:[#allocation189_spill] sm:$0xff] %v8116_v19  ;;  %v8134_v42 = vpop.permute.xlu2 %2183 }
 0x4e3   : > { %11160 = vst [vmem:[#allocation190_spill] sm:$0xff] %v8118_v37 }
 0x4e4   : > { %11164 = vst [vmem:[#allocation194_spill] sm:$0xff] %v8134_v42 }
 0x4e7   : > { %2324 = vperm.xlu0 %5375, %v8106_v11   ;;  %2249 = vperm.xlu1 %5376, %v8123_v30   ;;  %v8153_v30 = vadd.f32 %v8037_v2, %v11169_v63 }
 0x4e9   : > { %2309 = vperm.xlu2 %5374, %v8113_v55   ;;  %v8137_v11 = vpop.permute.xlu1 %2051  ;;  %v8140_v61 = vpop.permute.xlu0 %2180  ;;  %v8148_v55 = vadd.f32 %v8037_v2, %v7562_v48  ;;  %11170 = vst [vmem:[#allocation89_spill] sm:$0xff] %v8153_v30 }
 0x4ea   : > { %11165 = vst [vmem:[#allocation195_spill] sm:$0xff] %v8137_v11 }
 0x4eb   : > { %11166 = vst [vmem:[#allocation196_spill] sm:$0xff] %v8140_v61 }
 0x4ec   : > { %11168 = vst [vmem:[#allocation198_spill] sm:$0xff] %v8148_v55 }
 0x4ef   : > { %2333 = vperm.xlu0 %5375, %v8127_v32   ;;  %2258 = vperm.xlu1 %5376, %v8144_v16   ;;  %v11176_v16 = vld [vmem:[#allocation102_spill] sm:$0xff] }
 0x4f0   : > { %v8170_v63 = vadd.f32 %v8037_v2, %v11176_v16 }
 0x4f1   : > { %2318 = vperm.xlu2 %5374, %v8132_v22   ;;  %v8156_v32 = vpop.permute.xlu1 %2132  ;;  %v8158_v22 = vpop.permute.xlu2 %2165 }
 0x4f2   : > { %11171 = vst [vmem:[#allocation199_spill] sm:$0xff] %v8156_v32  ;;  %v8165_v48 = vpop.permute.xlu0 %2189 }
 0x4f3   : > { %11172 = vst [vmem:[#allocation200_spill] sm:$0xff] %v8158_v22 }
 0x4f4   : > { %11175 = vst [vmem:[#allocation201_spill] sm:$0xff] %v8165_v48 }
 0x4f5   : > { %11177 = vst [vmem:[#allocation102_spill] sm:$0xff] %v8170_v63 }
 0x4f7   : > { %2342 = vperm.xlu0 %5375, %v8148_v55   ;;  %2267 = vperm.xlu1 %5376, %v8163_v24   ;;  %v11184_v24 = vld [vmem:[#allocation51_spill] sm:$0xff] }
 0x4f8   : > { %v8188_v16 = vadd.f32 %v7938_v49, %v11184_v24 }
 0x4f9   : > { %2327 = vperm.xlu2 %5374, %v8153_v30   ;;  %v8172_v57 = vpop.permute.xlu1 %2141  ;;  %v8175_v55 = vpop.permute.xlu2 %2192  ;;  %v8179_v30 = vadd.f32 %v7938_v49, %v11180_v33  ;;  %v11188_v33 = vld [vmem:[#allocation61_spill] sm:$0xff] }
 0x4fa   : > { %11178 = vst [vmem:[#allocation202_spill] sm:$0xff] %v8172_v57  ;;  %v8181_v10 = vpop.permute.xlu0 %2171  ;;  %v8199_v13 = vadd.f32 %v7938_v49, %v11188_v33  ;;  %v11198_v33 = vld [vmem:[#allocation77_spill] sm:$0xff] }
 0x4fb   : > { %11179 = vst [vmem:[#allocation203_spill] sm:$0xff] %v8175_v55  ;;  %v11193_v55 = vld [vmem:[#allocation71_spill] sm:$0xff] }
 0x4fc   : > { %11181 = vst [vmem:[#allocation47_spill] sm:$0xff] %v8179_v30  ;;  %v8210_v57 = vadd.f32 %v8037_v2, %v11193_v55  ;;  %v11202_v55 = vld [vmem:[#allocation90_spill] sm:$0xff] }
 0x4fd   : > { %11182 = vst [vmem:[#allocation204_spill] sm:$0xff] %v8181_v10  ;;  %v8230_v32 = vadd.f32 %v8037_v2, %v11202_v55  ;;  %v11211_v55 = vld [vmem:[#allocation120_spill] sm:$0xff] }
 0x4fe   : > { %11185 = vst [vmem:[#allocation51_spill] sm:$0xff] %v8188_v16 }
 0x4ff   : > { %2276 = vperm.xlu1 %5376, %v8179_v30   ;;  %11189 = vst [vmem:[#allocation61_spill] sm:$0xff] %v8199_v13 }
 0x500   : > { %11194 = vst [vmem:[#allocation71_spill] sm:$0xff] %v8210_v57 }
 0x501   : > { %2336 = vperm.xlu2 %5374, %v8170_v63   ;;  %v8184_v15 = vpop.permute.xlu1 %2150  ;;  %v8190_v35 = vpop.permute.xlu2 %2201  ;;  %11203 = vst [vmem:[#allocation90_spill] sm:$0xff] %v8230_v32 }
 0x502   : > { %11183 = vst [vmem:[#allocation205_spill] sm:$0xff] %v8184_v15  ;;  %v8193_v63 = vpop.permute.xlu0 %2198 }
 0x503   : > { %11186 = vst [vmem:[#allocation206_spill] sm:$0xff] %v8190_v35 }
 0x504   : > { %11187 = vst [vmem:[#allocation207_spill] sm:$0xff] %v8193_v63 }
 0x507   : > { %2285 = vperm.xlu1 %5376, %v8188_v16  }
 0x509   : > { %v8195_v21 = vpop.permute.xlu1 %2159  ;;  %v8202_v30 = vpop.permute.xlu2 %2174 }
 0x50a   : > { %11190 = vst [vmem:[#allocation208_spill] sm:$0xff] %v8202_v30  ;;  %v8206_v24 = vpop.permute.xlu0 %2207 }
 0x50b   : > { %11192 = vst [vmem:[#allocation210_spill] sm:$0xff] %v8206_v24 }
 0x50f   : > { %2294 = vperm.xlu1 %5376, %v8199_v13   ;;  %v8221_v13 = vadd.f32 %v8037_v2, %v11198_v33 }
 0x511   : > { %v8204_v15 = vpop.permute.xlu1 %2177  ;;  %v8215_v63 = vpop.permute.xlu2 %2210  ;;  %11199 = vst [vmem:[#allocation77_spill] sm:$0xff] %v8221_v13 }
 0x512   : > { %11191 = vst [vmem:[#allocation209_spill] sm:$0xff] %v8204_v15  ;;  %v8217_v49 = vpop.permute.xlu0 %2216 }
 0x513   : > { %11196 = vst [vmem:[#allocation212_spill] sm:$0xff] %v8215_v63 }
 0x514   : > { %11197 = vst [vmem:[#allocation213_spill] sm:$0xff] %v8217_v49  ;;  %v11206_v49 = vld [vmem:[#allocation108_spill] sm:$0xff] }
 0x515   : > { %v8239_v33 = vadd.f32 %v8037_v2, %v11206_v49 }
 0x517   : > { %2303 = vperm.xlu1 %5376, %v8210_v57   ;;  %11207 = vst [vmem:[#allocation108_spill] sm:$0xff] %v8239_v33 }
 0x519   : > { %v8213_v16 = vpop.permute.xlu1 %2168  ;;  %v8226_v15 = vpop.permute.xlu2 %2219 }
 0x51a   : > { %11195 = vst [vmem:[#allocation211_spill] sm:$0xff] %v8213_v16  ;;  %v8232_v57 = vpop.permute.xlu0 %2225 }
 0x51b   : > { %11201 = vst [vmem:[#allocation215_spill] sm:$0xff] %v8226_v15  ;;  %v8250_v15 = vadd.f32 %v8037_v2, %v11211_v55 }
 0x51c   : > { %11204 = vst [vmem:[#allocation216_spill] sm:$0xff] %v8232_v57 }
 0x51d   : > { %11212 = vst [vmem:[#allocation120_spill] sm:$0xff] %v8250_v15 }
 0x51f   : > { %2312 = vperm.xlu1 %5376, %v8221_v13  }
 0x521   : > { %v8224_v11 = vpop.permute.xlu1 %2186  ;;  %v8241_v10 = vpop.permute.xlu2 %2228 }
 0x522   : > { %11200 = vst [vmem:[#allocation214_spill] sm:$0xff] %v8224_v11  ;;  %v8244_v13 = vpop.permute.xlu0 %2234 }
 0x523   : > { %11208 = vst [vmem:[#allocation218_spill] sm:$0xff] %v8241_v10 }
 0x524   : > { %11209 = vst [vmem:[#allocation219_spill] sm:$0xff] %v8244_v13 }
 0x527   : > { %2321 = vperm.xlu1 %5376, %v8230_v32  }
 0x529   : > { %v8235_v30 = vpop.permute.xlu1 %2195  ;;  %v8253_v32 = vpop.permute.xlu2 %2237 }
 0x52a   : > { %11205 = vst [vmem:[#allocation217_spill] sm:$0xff] %v8235_v30  ;;  %v8257_v49 = vpop.permute.xlu0 %2243 }
 0x52b   : > { %11213 = vst [vmem:[#allocation221_spill] sm:$0xff] %v8253_v32  ;;  %v2344_v32 = vlaneseq }
 0x52c   : > { %11215 = vst [vmem:[#allocation223_spill] sm:$0xff] %v8257_v49 }
 0x52f   : > { %2330 = vperm.xlu1 %5376, %v8239_v33  }
 0x531   : > { %v8246_v11 = vpop.permute.xlu1 %2204  ;;  %v8261_v10 = vpop.permute.xlu2 %2246 }
 0x532   : > { %11210 = vst [vmem:[#allocation220_spill] sm:$0xff] %v8246_v11  ;;  %v8263_v33 = vpop.permute.xlu0 %2252 }
 0x533   : > { %11217 = vst [vmem:[#allocation225_spill] sm:$0xff] %v8261_v10 }
 0x534   : > { %11218 = vst [vmem:[#allocation226_spill] sm:$0xff] %v8263_v33 }
 0x537   : > { %2339 = vperm.xlu1 %5376, %v8250_v15  }
 0x539   : > { %v8255_v30 = vpop.permute.xlu1 %2213  ;;  %v8267_v38 = vpop.permute.xlu2 %2255 }
 0x53a   : > { %11214 = vst [vmem:[#allocation222_spill] sm:$0xff] %v8255_v30  ;;  %v8269_v2 = vpop.permute.xlu0 %2261 }
 0x53b   : > { %11220 = vst [vmem:[#allocation228_spill] sm:$0xff] %v8267_v38 }
 0x53c   : > { %11221 = vst [vmem:[#allocation229_spill] sm:$0xff] %v8269_v2 }
 0x541   : > { %v8259_v57 = vpop.permute.xlu1 %2222  ;;  %v8273_v15 = vpop.permute.xlu2 %2264 }
 0x542   : > { %11216 = vst [vmem:[#allocation224_spill] sm:$0xff] %v8259_v57  ;;  %v8275_v19 = vpop.permute.xlu0 %2270  ;;  %v8279_v57 = vand.u32 127, %v2344_v32 }
 0x543   : > { %11223 = vst [vmem:[#allocation231_spill] sm:$0xff] %v8273_v15 }
 0x544   : > { %11224 = vst [vmem:[#allocation232_spill] sm:$0xff] %v8275_v19  ;;  %v8282_v10 = vadd.s32 4294967288, %v8279_v57  ;;  %v8293_v22 = vadd.s32 4294967280, %v8279_v57  ;;  %v11230_v19 = vld [vmem:[#allocation80_spill] sm:$0xff]  ;;  %v8298_v30 = vadd.s32 4294967264, %v8279_v57  ;;  %v8312_v42 = vadd.s32 4294967248, %v8279_v57 }
 0x546   : > { %v2439_v32 = vperm.slane %v11230_v19, %v8282_v10  ;;  %v11233_v19 = vld [vmem:[#allocation67_spill] sm:$0xff] }
 0x547   : > { %v2352_v24 = vperm.slane %v11233_v19, %v8293_v22  ;;  %v11238_v19 = vld [vmem:[#allocation78_spill] sm:$0xff] }
 0x549   : > { %v8265_v13 = vpop.permute.xlu1 %2231  ;;  %v8286_v38 = vpop.permute.xlu2 %2273 }
 0x54a   : > { %11219 = vst [vmem:[#allocation227_spill] sm:$0xff] %v8265_v13  ;;  %v11226_v13 = vld [vmem:[#allocation88_spill] sm:$0xff]  ;;  %v8300_v16 = vpop.permute.xlu0 %2279 }
 0x54b   : > { %v2348_v63 = vperm.slane %v11226_v13, %v8282_v10  ;;  %11227 = vst [vmem:[#allocation88_spill] sm:$0xff] %v8286_v38  ;;  %v8303_v13 = vadd.s32 4294967272, %v8279_v57  ;;  %v8306_v38 = vadd.s32 4294967256, %v8279_v57 }
 0x54d   : > { %v2364_v41 = vperm.slane %v11238_v19, %v8306_v38 }
 0x551   : > { %v8271_v55 = vpop.permute.xlu1 %2240  ;;  %v8346_v61 = vpop.permute.xlu2 %2282 }
 0x552   : > { %11222 = vst [vmem:[#allocation230_spill] sm:$0xff] %v8271_v55  ;;  %v11229_v55 = vld [vmem:[#allocation79_spill] sm:$0xff] }
 0x553   : > { %v2346_v15 = vperm.slane %v11229_v55, %v8279_v57  ;;  %11231 = vst [vmem:[#allocation79_spill] sm:$0xff] %v8300_v16  ;;  %v11232_v55 = vld [vmem:[#allocation63_spill] sm:$0xff]  ;;  %v11234_v16 = vld [vmem:[#allocation72_spill] sm:$0xff] }
 0x554   : > { %v2356_v9 = vperm.slane %v11234_v16, %v8303_v13  ;;  %v8329_v16 = vadd.s32 4294967240, %v8279_v57  ;;  %11241 = vst [vmem:[#allocation63_spill] sm:$0xff] %v8346_v61  ;;  %v11249_v61 = vld [vmem:[#allocation119_spill] sm:$0xff] }
 0x555   : > { %v2350_v33 = vsel %vm2349_vm1, %v2348_v63, %v2346_v15  ;;  %v11237_v15 = vld [vmem:[#allocation69_spill] sm:$0xff]  ;;  %v2449_v11 = vperm.slane %v11249_v61, %v8312_v42 }
 0x556   : > { %v2443_v63 = vperm.slane %v11237_v15, %v8303_v13  ;;  %v2354_v35 = vsel %vm2353_vm2, %v2352_v24, %v2350_v33  ;;  %v8338_v15 = vadd.s32 4294967224, %v8279_v57  ;;  %v2445_v24 = vperm.slane %v7852_v23, %v8298_v30  ;;  %v11253_v61 = vld [vmem:[#allocation117_spill] sm:$0xff] }
 0x559   : > { %v8277_v49 = vpop.permute.xlu1 %2249 }
 0x55a   : > { %11225 = vst [vmem:[#allocation233_spill] sm:$0xff] %v8277_v49  ;;  %v11235_v49 = vld [vmem:[#allocation81_spill] sm:$0xff] }
 0x55b   : > { %v2441_v46 = vperm.slane %v11235_v49, %v8293_v22  ;;  %v11239_v49 = vld [vmem:[#allocation111_spill] sm:$0xff] }
 0x561   : > { %v8288_v2 = vpop.permute.xlu1 %2258 }
 0x562   : > { %11228 = vst [vmem:[#allocation234_spill] sm:$0xff] %v8288_v2  ;;  %v2438_v2 = vperm.slane %v11232_v55, %v8279_v57  ;;  %v11236_v55 = vld [vmem:[#allocation104_spill] sm:$0xff] }
 0x563   : > { %v2360_v48 = vperm.slane %v11236_v55, %v8298_v30  ;;  %v2358_v55 = vsel %vm2357_vm3, %v2356_v9, %v2354_v35  ;;  %v8351_v35 = vadd.s32 4294967216, %v8279_v57  ;;  %v11242_v9 = vld [vmem:[#allocation97_spill] sm:$0xff] }
 0x564   : > { %v2440_v36 = vsel %vm2349_vm1, %v2439_v32, %v2438_v2  ;;  %v2368_v2 = vperm.slane %v11239_v49, %v8312_v42  ;;  %v8334_v32 = vadd.s32 4294967232, %v8279_v57  ;;  %v2372_v37 = vperm.slane %v11242_v9, %v8329_v16 }
 0x565   : > { %v2442_v19 = vsel %vm2353_vm2, %v2441_v46, %v2440_v36  ;;  %v2362_v20 = vsel %vm2361_vm4, %v2360_v48, %v2358_v55  ;;  %v8358_v46 = vpop.permute.xlu0 %2288  ;;  %v2380_v48 = vperm.slane %v7713_v60, %v8338_v15  ;;  %v8377_v9 = vadd.s32 4294967192, %v8279_v57 }
 0x566   : > { %v2444_v49 = vsel %vm2357_vm3, %v2443_v63, %v2442_v19  ;;  %v2366_v14 = vsel %vm2365_vm5, %v2364_v41, %v2362_v20  ;;  %11244 = vst [vmem:[#allocation67_spill] sm:$0xff] %v8358_v46  ;;  %v8363_v20 = vadd.s32 4294967208, %v8279_v57  ;;  %v2447_v63 = vperm.slane %v7743_v53, %v8306_v38 }
 0x567   : > { %v2370_v23 = vsel %vm10831_vm6, %v2368_v2, %v2366_v14  ;;  %v2446_v41 = vsel %vm2361_vm4, %v2445_v24, %v2444_v49  ;;  %v8369_v14 = vadd.s32 4294967200, %v8279_v57  ;;  %v11245_v2 = vld [vmem:[#allocation116_spill] sm:$0xff]  ;;  %11247 = vst [vmem:[#allocation72_spill] sm:$0xff] %v8377_v9  ;;  %v2410_v24 = vperm.slane %v7877_v62, %v8293_v22 }
 0x568   : > { %v2408_v55 = vperm.slane %v11245_v2, %v8282_v10  ;;  %v2374_v60 = vsel %vm10953_vm7, %v2372_v37, %v2370_v23  ;;  %v2407_v53 = vperm.slane %v7752_v7, %v8279_v57  ;;  %v2448_v46 = vsel %vm2365_vm5, %v2447_v63, %v2446_v41  ;;  %v11248_v37 = vld [vmem:[#allocation94_spill] sm:$0xff] }
 0x569   : > { %v8342_v33 = vpop.permute.xlu1 %2267  ;;  %v2451_v2 = vperm.slane %v7913_v17, %v8329_v16  ;;  %v2388_v23 = vperm.slane %v11248_v37, %v8363_v20  ;;  %v2392_v7 = vperm.slane %v7762_v5, %v8369_v14  ;;  %v2450_v63 = vsel %vm10831_vm6, %v2449_v11, %v2448_v46 }
 0x56a   : > { %11240 = vst [vmem:[#allocation80_spill] sm:$0xff] %v8342_v33  ;;  %v11243_v33 = vld [vmem:[#allocation87_spill] sm:$0xff]  ;;  %v2409_v17 = vsel %vm2349_vm1, %v2408_v55, %v2407_v53  ;;  %v2412_v5 = vperm.slane %v7790_v39, %v8303_v13  ;;  %v2453_v53 = vperm.slane %v7773_v6, %v8334_v32  ;;  %v2414_v11 = vperm.slane %v7784_v44, %v8298_v30 }
 0x56b   : > { %v2376_v36 = vperm.slane %v11243_v33, %v8334_v32  ;;  %v11246_v33 = vld [vmem:[#allocation110_spill] sm:$0xff]  ;;  %v2411_v41 = vsel %vm2353_vm2, %v2410_v24, %v2409_v17  ;;  %v2452_v37 = vsel %vm10953_vm7, %v2451_v2, %v2450_v63  ;;  %v2416_v2 = vperm.slane %v7934_v18, %v8306_v38 }
 0x56c   : > { %v2384_v19 = vperm.slane %v11246_v33, %v8351_v35  ;;  %v2413_v39 = vsel %vm2357_vm3, %v2412_v5, %v2411_v41  ;;  %v2457_v44 = vperm.slane %v7991_v59, %v8351_v35  ;;  %v2418_v59 = vperm.slane %v7838_v52, %v8312_v42 }
 0x56d   : > { %v2378_v49 = vsel %vm10950_vm8, %v2376_v36, %v2374_v60  ;;  %v8397_v36 = vadd.s32 4294967184, %v8279_v57  ;;  %v2396_v60 = vperm.slane %v11253_v61, %v8377_v9  ;;  %v2415_v41 = vsel %vm2361_vm4, %v2414_v11, %v2413_v39 }
 0x56e   : > { %v2382_v33 = vsel %vm10949_vm9, %v2380_v48, %v2378_v49  ;;  %v8401_v48 = vadd.s32 4294967176, %v8279_v57  ;;  %v2417_v61 = vsel %vm2365_vm5, %v2416_v2, %v2415_v41  ;;  %v2476_v52 = vperm.slane %v7948_v43, %v8298_v30 }
 0x56f   : > { %11251 = vst [vmem:[#allocation104_spill] sm:$0xff] %v8397_v36  ;;  %v2386_v49 = vsel %vm10834_vm10, %v2384_v19, %v2382_v33  ;;  %v11254_v19 = vld [vmem:[#allocation105_spill] sm:$0xff]  ;;  %v8424_v33 = vpop.permute.xlu0 %2297  ;;  %v2465_v5 = vperm.slane %v7875_v12, %v8397_v36  ;;  %v2419_v11 = vsel %vm10831_vm6, %v2418_v59, %v2417_v61  ;;  %v2500_v39 = vperm.slane %v8097_v27, %v8279_v57  ;;  %v11256_v61 = vld [vmem:[#allocation190_spill] sm:$0xff] }
 0x570   : > { %11252 = vst [vmem:[#allocation69_spill] sm:$0xff] %v8401_v48  ;;  %v2390_v55 = vsel %vm10833_vm11, %v2388_v23, %v2386_v49  ;;  %v2400_v24 = vperm.slane %v11254_v19, %v8397_v36  ;;  %v2404_v6 = vperm.slane %v7797_v8, %v8401_v48  ;;  %v2454_v23 = vsel %vm10950_vm8, %v2453_v53, %v2452_v37  ;;  %v11266_v19 = vld [vmem:[#allocation181_spill] sm:$0xff] }
 0x571   : > { %v8392_v62 = vpop.permute.xlu1 %2276  ;;  %v2394_v46 = vsel %vm10836_vm12, %v2392_v7, %v2390_v55  ;;  %v2455_v7 = vperm.slane %v7802_v51, %v8338_v15  ;;  %v2424_v37 = vperm.slane %v7896_v1, %v8338_v15  ;;  %v2420_v55 = vperm.slane %v7860_v50, %v8329_v16 }
 0x572   : > { %11250 = vst [vmem:[#allocation81_spill] sm:$0xff] %v8392_v62  ;;  %v8411_v62 = vpop.permute.xlu2 %2291  ;;  %v2398_v17 = vsel %vm10948_vm13, %v2396_v60, %v2394_v46  ;;  %v2459_v60 = vperm.slane %v7814_v47, %v8363_v20  ;;  %v2470_v53 = vperm.slane %v7917_v3, %v8282_v10  ;;  %v2422_v47 = vperm.slane %v8012_v0, %v8334_v32 }
 0x573   : > { %v2402_v63 = vsel %vm10947_vm14, %v2400_v24, %v2398_v17  ;;  %v2456_v8 = vsel %vm10949_vm9, %v2455_v7, %v2454_v23  ;;  %v2482_v1 = vperm.slane %v7993_v34, %v8329_v16  ;;  %v2463_v50 = vperm.slane %v8033_v45, %v8377_v9 }
 0x574   : > { %v8441_v49 = vsel %vm10946_vm15, %v2404_v6, %v2402_v63  ;;  %v2458_v51 = vsel %vm10834_vm10, %v2457_v44, %v2456_v8  ;;  %v2461_v24 = vperm.slane %v7881_v31, %v8369_v14  ;;  %v2421_v2 = vsel %vm10953_vm7, %v2420_v55, %v2419_v11  ;;  %v11255_v63 = vld [vmem:[#allocation220_spill] sm:$0xff] }
 0x575   : > { %v2460_v46 = vsel %vm10833_vm11, %v2459_v60, %v2458_v51  ;;  %v2467_v45 = vperm.slane %v7906_v26, %v8401_v48  ;;  %v2469_v6 = vperm.slane %v8055_v25, %v8279_v57  ;;  %v2426_v44 = vperm.slane %v7931_v54, %v8351_v35  ;;  %v11258_v51 = vld [vmem:[#allocation196_spill] sm:$0xff] }
 0x576   : > { %v2423_v7 = vsel %vm10950_vm8, %v2422_v47, %v2421_v2  ;;  %v2501_v31 = vperm.slane %v8108_v28, %v8282_v10  ;;  %v2462_v27 = vsel %vm10836_vm12, %v2461_v24, %v2460_v46  ;;  %v2472_v26 = vperm.slane %v7956_v58, %v8293_v22  ;;  %v11257_v28 = vld [vmem:[#allocation164_spill] sm:$0xff]  ;;  %v11262_v2 = vld [vmem:[#allocation201_spill] sm:$0xff] }
 0x577   : > { %v8485_v23 = vpop.permute.xlu0 %2306  ;;  %v2464_v41 = vsel %vm10948_vm13, %v2463_v50, %v2462_v27  ;;  %v2503_v25 = vperm.slane %v8195_v21, %v8293_v22  ;;  %v2532_v54 = vperm.slane %v11255_v63, %v8282_v10  ;;  %v2505_v8 = vperm.slane %v11256_v61, %v8303_v13  ;;  %v11259_v55 = vld [vmem:[#allocation168_spill] sm:$0xff]  ;;  %v11260_v21 = vld [vmem:[#allocation185_spill] sm:$0xff]  ;;  %v11261_v50 = vld [vmem:[#allocation206_spill] sm:$0xff] }
 0x578   : > { %v2478_v59 = vperm.slane %v11257_v28, %v8306_v38  ;;  %v2425_v11 = vsel %vm10949_vm9, %v2424_v37, %v2423_v7  ;;  %v2471_v47 = vsel %vm2349_vm1, %v2470_v53, %v2469_v6  ;;  %v2474_v46 = vperm.slane %v11260_v21, %v8303_v13  ;;  %v11263_v63 = vld [vmem:[#allocation172_spill] sm:$0xff]  ;;  %v11265_v21 = vld [vmem:[#allocation233_spill] sm:$0xff] }
 0x579   : > { %v8435_v18 = vpop.permute.xlu1 %2285  ;;  %v2531_v24 = vperm.slane %v11261_v50, %v8279_v57  ;;  %v2502_v28 = vsel %vm2349_vm1, %v2501_v31, %v2500_v39  ;;  %v2466_v0 = vsel %vm10947_vm14, %v2465_v5, %v2464_v41  ;;  %v11264_v37 = vld [vmem:[#allocation176_spill] sm:$0xff]  ;;  %v2562_v50 = vperm.slane %v11265_v21, %v8279_v57  ;;  %v11267_v39 = vld [vmem:[#allocation210_spill] sm:$0xff] }
 0x57a   : > { %v8468_v3 = vpop.permute.xlu2 %2300  ;;  %v2504_v53 = vsel %vm2353_vm2, %v2503_v25, %v2502_v28  ;;  %v2427_v58 = vsel %vm10834_vm10, %v2426_v44, %v2425_v11  ;;  %v2473_v60 = vsel %vm2353_vm2, %v2472_v26, %v2471_v47  ;;  %v2534_v5 = vperm.slane %v11267_v39, %v8293_v22  ;;  %v11268_v41 = vld [vmem:[#allocation194_spill] sm:$0xff]  ;;  %v11270_v26 = vld [vmem:[#allocation211_spill] sm:$0xff]  ;;  %v11272_v27 = vld [vmem:[#allocation200_spill] sm:$0xff] }
 0x57b   : > { %v2533_v6 = vsel %vm2349_vm1, %v2532_v54, %v2531_v24  ;;  %v8535_v31 = vsel %vm10946_vm15, %v2467_v45, %v2466_v0  ;;  %v2475_v54 = vsel %vm2357_vm3, %v2474_v46, %v2473_v60  ;;  %v11269_v24 = vld [vmem:[#allocation226_spill] sm:$0xff]  ;;  %v2506_v44 = vsel %vm2357_vm3, %v2505_v8, %v2504_v53  ;;  %v11273_v60 = vld [vmem:[#allocation212_spill] sm:$0xff] }
 0x57c   : > { %v2563_v28 = vperm.slane %v11269_v24, %v8282_v10  ;;  %v2509_v11 = vperm.slane %v11270_v26, %v8306_v38  ;;  %v2535_v47 = vsel %vm2353_vm2, %v2534_v5, %v2533_v6  ;;  %v11271_v0 = vld [vmem:[#allocation222_spill] sm:$0xff]  ;;  %v2507_v25 = vperm.slane %v11272_v27, %v8298_v30  ;;  %v11275_v6 = vld [vmem:[#allocation189_spill] sm:$0xff] }
 0x57d   : > { %v2538_v45 = vperm.slane %v11271_v0, %v8298_v30  ;;  %v2536_v46 = vperm.slane %v11273_v60, %v8303_v13  ;;  %v11274_v8 = vld [vmem:[#allocation234_spill] sm:$0xff]  ;;  %v2477_v26 = vsel %vm2361_vm4, %v2476_v52, %v2475_v54  ;;  %v2480_v5 = vperm.slane %v11275_v6, %v8312_v42  ;;  %v11276_v0 = vld [vmem:[#allocation228_spill] sm:$0xff] }
 0x57e   : > { %v2564_v7 = vsel %vm2349_vm1, %v2563_v28, %v2562_v50  ;;  %v2567_v53 = vperm.slane %v11274_v8, %v8303_v13  ;;  %v2565_v43 = vperm.slane %v11276_v0, %v8293_v22  ;;  %v2594_v27 = vperm.slane %v8468_v3, %v8282_v10  ;;  %v11277_v60 = vld [vmem:[#allocation180_spill] sm:$0xff] }
 0x57f   : > { %v8554_v24 = vpop.permute.xlu0 %2315  ;;  %v2428_v61 = vperm.slane %v11277_v60, %v8363_v20  ;;  %v2508_v12 = vsel %vm2361_vm4, %v2507_v25, %v2506_v44  ;;  %v2537_v50 = vsel %vm2357_vm3, %v2536_v46, %v2535_v47  ;;  %v2593_v8 = vperm.slane %v8424_v33, %v8279_v57  ;;  %v11278_v3 = vld [vmem:[#allocation204_spill] sm:$0xff]  ;;  %v11279_v25 = vld [vmem:[#allocation213_spill] sm:$0xff] }
 0x580   : > { %v2510_v52 = vsel %vm2365_vm5, %v2509_v11, %v2508_v12  ;;  %v2539_v54 = vsel %vm2361_vm4, %v2538_v45, %v2537_v50  ;;  %v2566_v6 = vsel %vm2353_vm2, %v2565_v43, %v2564_v7  ;;  %v2511_v0 = vperm.slane %v11278_v3, %v8312_v42  ;;  %v11280_v12 = vld [vmem:[#allocation208_spill] sm:$0xff]  ;;  %v11281_v45 = vld [vmem:[#allocation229_spill] sm:$0xff] }
 0x581   : > { %v8493_v17 = vpop.permute.xlu1 %2294  ;;  %v2479_v60 = vsel %vm2365_vm5, %v2478_v59, %v2477_v26  ;;  %v2540_v44 = vperm.slane %v11279_v25, %v8306_v38  ;;  %v2568_v47 = vsel %vm2357_vm3, %v2567_v53, %v2566_v6  ;;  %v2513_v11 = vperm.slane %v11280_v12, %v8329_v16  ;;  %v11282_v59 = vld [vmem:[#allocation224_spill] sm:$0xff]  ;;  %v11283_v53 = vld [vmem:[#allocation215_spill] sm:$0xff] }
 0x582   : > { %v8542_v21 = vpop.permute.xlu2 %2309  ;;  %v2569_v33 = vperm.slane %v11281_v45, %v8298_v30  ;;  %v2595_v43 = vsel %vm2349_vm1, %v2594_v27, %v2593_v8  ;;  %v2512_v7 = vsel %vm10831_vm6, %v2511_v0, %v2510_v52  ;;  %v2544_v26 = vperm.slane %v11282_v59, %v8329_v16  ;;  %v11286_v25 = vld [vmem:[#allocation231_spill] sm:$0xff] }
 0x583   : > { %v2541_v46 = vsel %vm2365_vm5, %v2540_v44, %v2539_v54  ;;  %v2598_v6 = vperm.slane %v8485_v23, %v8303_v13  ;;  %v2429_v52 = vsel %vm10833_vm11, %v2428_v61, %v2427_v58  ;;  %v2571_v44 = vperm.slane %v11286_v25, %v8306_v38  ;;  %v11287_v61 = vld [vmem:[#allocation209_spill] sm:$0xff] }
 0x584   : > { %v2570_v3 = vsel %vm2361_vm4, %v2569_v33, %v2568_v47  ;;  %v2514_v47 = vsel %vm10953_vm7, %v2513_v11, %v2512_v7  ;;  %v2515_v34 = vperm.slane %v11287_v61, %v8334_v32  ;;  %v11288_v11 = vperm.slane %v7971_v4, %v8369_v14 }
 0x585   : > { %v2604_v25 = vperm.slane %v8554_v24, %v8312_v42  ;;  %v11299_v24 = vld [vmem:[#allocation88_spill] sm:$0xff] }
 0x586   : > { %v2431_v7 = vsel %vm10836_vm12, %v11288_v11, %v2429_v52  ;;  %v11293_v52 = vld [vmem:[#allocation227_spill] sm:$0xff] }
 0x587   : > { %v2325_v33 = vpop.permute.xlu0 %2324 }
 0x589   : > { %v2304_v39 = vpop.permute.xlu1 %2303 }
 0x58a   : > { %v2596_v28 = vperm.slane %v2304_v39, %v8293_v22  ;;  %v2481_v39 = vsel %vm10831_vm6, %v2480_v5, %v2479_v60  ;;  %v2542_v5 = vperm.slane %v11283_v53, %v8312_v42  ;;  %v11284_v60 = vld [vmem:[#allocation80_spill] sm:$0xff]  ;;  %v2319_v23 = vpop.permute.xlu2 %2318 }
 0x58b   : > { %v2573_v27 = vperm.slane %v11284_v60, %v8312_v42  ;;  %v2483_v54 = vsel %vm10953_vm7, %v2482_v1, %v2481_v39  ;;  %v2600_v39 = vperm.slane %v8542_v21, %v8298_v30  ;;  %v11292_v60 = vld [vmem:[#allocation195_spill] sm:$0xff] }
 0x58c   : > { %v2597_v50 = vsel %vm2353_vm2, %v2596_v28, %v2595_v43  ;;  %v11285_v28 = vld [vmem:[#allocation199_spill] sm:$0xff]  ;;  %v2543_v12 = vsel %vm10831_vm6, %v2542_v5, %v2541_v46  ;;  %v2572_v43 = vsel %vm2365_vm5, %v2571_v44, %v2570_v3  ;;  %v11289_v46 = vperm.slane %v11263_v63, %v8334_v32 }
 0x58d   : > { %v2486_v0 = vperm.slane %v11285_v28, %v8338_v15  ;;  %v2599_v45 = vsel %vm2357_vm3, %v2598_v6, %v2597_v50  ;;  %v2545_v1 = vsel %vm10953_vm7, %v2544_v26, %v2543_v12  ;;  %v11290_v50 = vld [vmem:[#allocation216_spill] sm:$0xff]  ;;  %v2574_v26 = vsel %vm10831_vm6, %v2573_v27, %v2572_v43  ;;  %v11294_v27 = vld [vmem:[#allocation218_spill] sm:$0xff] }
 0x58e   : > { %v2485_v59 = vsel %vm10950_vm8, %v11289_v46, %v2483_v54  ;;  %v2546_v53 = vperm.slane %v11290_v50, %v8334_v32  ;;  %v2516_v5 = vsel %vm10950_vm8, %v2515_v34, %v2514_v47  ;;  %v11291_v6 = vld [vmem:[#allocation232_spill] sm:$0xff]  ;;  %v2601_v4 = vsel %vm2361_vm4, %v2600_v39, %v2599_v45  ;;  %v11295_v47 = vld [vmem:[#allocation81_spill] sm:$0xff]  ;;  %v11297_v34 = vld [vmem:[#allocation202_spill] sm:$0xff] }
 0x58f   : > { %v2487_v21 = vsel %vm10949_vm9, %v2486_v0, %v2485_v59  ;;  %v2575_v3 = vperm.slane %v11291_v6, %v8329_v16  ;;  %v2550_v54 = vperm.slane %v11293_v52, %v8351_v35  ;;  %v2548_v0 = vperm.slane %v11294_v27, %v8338_v15  ;;  %v11300_v46 = vld [vmem:[#allocation214_spill] sm:$0xff] }
 0x590   : > { %v2547_v63 = vsel %vm10950_vm8, %v2546_v53, %v2545_v1  ;;  %v2579_v12 = vperm.slane %v11295_v47, %v8338_v15  ;;  %v11296_v45 = vperm.slane %v8015_v40, %v8351_v35  ;;  %v2492_v1 = vperm.slane %v11297_v34, %v8369_v14 }
 0x591   : > { %v2313_v8 = vpop.permute.xlu1 %2312  ;;  %v2576_v44 = vsel %vm10953_vm7, %v2575_v3, %v2574_v26  ;;  %v2577_v43 = vperm.slane %v11299_v24, %v8334_v32  ;;  %v2521_v59 = vperm.slane %v11300_v46, %v8363_v20  ;;  %v2549_v50 = vsel %vm10949_vm9, %v2548_v0, %v2547_v63  ;;  %v11310_v46 = vld [vmem:[#allocation63_spill] sm:$0xff] }
 0x592   : > { %v2602_v58 = vperm.slane %v2313_v8, %v8306_v38  ;;  %v2434_v8 = vperm.slane %v11292_v60, %v8397_v36  ;;  %v2489_v61 = vsel %vm10834_vm10, %v11296_v45, %v2487_v21  ;;  %v11301_v26 = vperm.slane %v11259_v55, %v8377_v9  ;;  %v2328_v63 = vpop.permute.xlu2 %2327 }
 0x593   : > { %v2551_v21 = vsel %vm10834_vm10, %v2550_v54, %v2549_v50  ;;  %v2578_v6 = vsel %vm10950_vm8, %v2577_v43, %v2576_v44  ;;  %v11303_v55 = vperm.slane %v11264_v37, %v8363_v20  ;;  %v2334_v37 = vpop.permute.xlu0 %2333  ;;  %v2585_v34 = vperm.slane %v8435_v18, %v8369_v14  ;;  %v11309_v43 = vld [vmem:[#allocation221_spill] sm:$0xff] }
 0x594   : > { %v2603_v28 = vsel %vm2365_vm5, %v2602_v58, %v2601_v4  ;;  %v11298_v58 = vperm.slane %v11258_v51, %v8338_v15  ;;  %v2433_v51 = vsel %vm10948_vm13, %v11301_v26, %v2431_v7  ;;  %v11302_v4 = vld [vmem:[#allocation219_spill] sm:$0xff]  ;;  %v2580_v52 = vsel %vm10949_vm9, %v2579_v12, %v2578_v6  ;;  %v11306_v12 = vld [vmem:[#allocation230_spill] sm:$0xff] }
 0x595   : > { %v2605_v40 = vsel %vm10831_vm6, %v2604_v25, %v2603_v28  ;;  %v2435_v3 = vsel %vm10947_vm14, %v2434_v8, %v2433_v51  ;;  %v2552_v60 = vperm.slane %v11302_v4, %v8363_v20  ;;  %v2491_v7 = vsel %vm10833_vm11, %v11303_v55, %v2489_v61  ;;  %v11305_v28 = vld [vmem:[#allocation79_spill] sm:$0xff] }
 0x596   : > { %v2518_v39 = vsel %vm10949_vm9, %v11298_v58, %v2516_v5  ;;  %v2606_v5 = vperm.slane %v2319_v23, %v8329_v16  ;;  %vm10835_vm6 = vcmask 1042434   ;;  %v11304_v23 = vperm.slane %v11268_v41, %v8351_v35  ;;  %v11307_v58 = vld [vmem:[#allocation203_spill] sm:$0xff] }
 0x597   : > { %v2581_v8 = vperm.slane %v11305_v28, %v8351_v35  ;;  %v2493_v0 = vsel %vm10836_vm12, %v2492_v1, %v2491_v7  ;;  %v2553_v44 = vsel %vm10833_vm11, %v2552_v60, %v2551_v21  ;;  %v2556_v45 = vperm.slane %v11306_v12, %v8377_v9  ;;  %v11316_v7 = vld [vmem:[#allocation223_spill] sm:$0xff] }
 0x598   : > { %v2520_v54 = vsel %vm10834_vm10, %v11304_v23, %v2518_v39  ;;  %v2607_v27 = vsel %vm10953_vm7, %v2606_v5, %v2605_v40  ;;  %v2610_v41 = vperm.slane %v2325_v33, %v8338_v15  ;;  %v2525_v1 = vperm.slane %v11307_v58, %v8377_v9 }
 0x599   : > { %v2322_v11 = vpop.permute.xlu1 %2321  ;;  %v2522_v25 = vsel %vm10833_vm11, %v2521_v59, %v2520_v54  ;;  %v2582_v61 = vsel %vm10834_vm10, %v2581_v8, %v2580_v52  ;;  %v11308_v39 = vperm.slane %v8047_v29, %v8401_v48  ;;  %v2583_v59 = vperm.slane %v11310_v46, %v8363_v20  ;;  %v11313_v29 = vld [vmem:[#allocation217_spill] sm:$0xff]  ;;  %v11317_v54 = vld [vmem:[#allocation67_spill] sm:$0xff] }
 0x59a   : > { %v2608_v53 = vperm.slane %v2322_v11, %v8334_v32  ;;  %v2554_v11 = vperm.slane %v11309_v43, %v8369_v14  ;;  %v11311_v33 = vperm.slane %v8073_v56, %v8377_v9  ;;  %v11312_v18 = vperm.slane %v11262_v2, %v8369_v14  ;;  %v11315_v2 = vld [vmem:[#allocation205_spill] sm:$0xff] }
 0x59b   : > { %v2437_v24 = vsel %vm10946_vm15, %v11308_v39, %v2435_v3  ;;  %v2612_v5 = vperm.slane %v2328_v63, %v8351_v35  ;;  %v2584_v6 = vsel %vm10833_vm11, %v2583_v59, %v2582_v61  ;;  %v11314_v3 = vld [vmem:[#allocation207_spill] sm:$0xff]  ;;  %v2498_v60 = vperm.slane %v11315_v2, %v8401_v48  ;;  %v11321_v2 = vld [vmem:[#allocation37_spill] sm:$0xff] }
 0x59c   : > { %v2609_v47 = vsel %vm10950_vm8, %v2608_v53, %v2607_v27  ;;  %v2495_v50 = vsel %vm10948_vm13, %v11311_v33, %v2493_v0  ;;  %v2524_v40 = vsel %vm10836_vm12, %v11312_v18, %v2522_v25  ;;  %v2527_v53 = vperm.slane %v11313_v29, %v8397_v36 }
 0x59d   : > { %v2611_v26 = vsel %vm10949_vm9, %v2610_v41, %v2609_v47  ;;  %v2555_v21 = vsel %vm10836_vm12, %v2554_v11, %v2553_v44  ;;  %v2529_v4 = vperm.slane %v11314_v3, %v8401_v48  ;;  %v2586_v55 = vsel %vm10836_vm12, %v2585_v34, %v2584_v6  ;;  %v2337_v41 = vpop.permute.xlu2 %2336  ;;  %v11320_v3 = vld [vmem:[#allocation65_spill] sm:$0xff] }
 0x59e   : > { %v2557_v52 = vsel %vm10948_vm13, %v2556_v45, %v2555_v21  ;;  %v2558_v23 = vperm.slane %v11316_v7, %v8397_v36  ;;  %v2526_v63 = vsel %vm10948_vm13, %v2525_v1, %v2524_v40  ;;  %v2587_v28 = vperm.slane %v11317_v54, %v8377_v9  ;;  %v11323_v54 = vld [vmem:[#allocation93_spill] sm:$0xff] }
 0x59f   : > { %v2613_v8 = vsel %vm10834_vm10, %v2612_v5, %v2611_v26  ;;  %v2625_v27 = vsel %vm10832_vm0, %v2437_v24, %v8441_v49  ;;  %v11318_v0 = vperm.slane %v11266_v19, %v8397_v36  ;;  %v2528_v44 = vsel %vm10947_vm14, %v2527_v53, %v2526_v63  ;;  %v11319_v19 = vld [vmem:[#allocation225_spill] sm:$0xff]  ;;  %v2343_v24 = vpop.permute.xlu0 %2342 }
 0x5a0   : > { %v2559_v12 = vsel %vm10947_vm14, %v2558_v23, %v2557_v52  ;;  %v2616_v45 = vperm.slane %v2334_v37, %v8369_v14  ;;  %v2588_v61 = vsel %vm10948_vm13, %v2587_v28, %v2586_v55  ;;  %v2591_v34 = vperm.slane %v8493_v17, %v8401_v48  ;;  %v11322_v52 = vld [vmem:[#allocation27_spill] sm:$0xff] }
 0x5a1   : > { %v2331_v51 = vpop.permute.xlu1 %2330  ;;  %v2497_v25 = vsel %vm10947_vm14, %v11318_v0, %v2495_v50  ;;  %vm10945_vm0 = vcmask 1043459   ;;  %v2560_v58 = vperm.slane %v11319_v19, %v8401_v48  ;;  %v2589_v1 = vperm.slane %v8411_v62, %v8397_v36  ;;  %v11325_v0 = vld [vmem:[#allocation38_spill] sm:$0xff] }
 0x5a2   : > { %v2614_v56 = vperm.slane %v2331_v51, %v8363_v20  ;;  %v2499_v49 = vsel %vm10946_vm15, %v2498_v60, %v2497_v25  ;;  %v2627_v37 = vsel %vm10835_vm6, %v8535_v31, %v2625_v27  ;;  %v2530_v39 = vsel %vm10946_vm15, %v2529_v4, %v2528_v44  ;;  %v11330_v19 = vld [vmem:[#allocation46_spill] sm:$0xff] }
 0x5a3   : > { %v2618_v43 = vperm.slane %v2337_v41, %v8377_v9  ;;  %v2561_v46 = vsel %vm10946_vm15, %v2560_v58, %v2559_v12  ;;  %v2590_v59 = vsel %vm10947_vm14, %v2589_v1, %v2588_v61  ;;  %vm10933_vm10 = vcmask 1045509   ;;  %v11331_v1 = vld [vmem:[#allocation45_spill] sm:$0xff] }
 0x5a4   : > { %v2615_v47 = vsel %vm10833_vm11, %v2614_v56, %v2613_v8  ;;  %vm10944_vm11 = vcmask 1044484   ;;  %v2629_v62 = vsel %vm10945_vm0, %v2499_v49, %v2627_v37  ;;  %v2592_v33 = vsel %vm10946_vm15, %v2591_v34, %v2590_v59  ;;  %v11324_v8 = vld [vmem:[#allocation40_spill] sm:$0xff]  ;;  %v11329_v34 = vld [vmem:[#allocation114_spill] sm:$0xff]  ;;  %v11335_v59 = vld [vmem:[#allocation131_spill] sm:$0xff] }
 0x5a5   : > { %v2617_v17 = vsel %vm10836_vm12, %v2616_v45, %v2615_v47  ;;  %vm10931_vm6 = vcmask 1046534   ;;  %v2622_v50 = vperm.slane %v2343_v24, %v8401_v48  ;;  %v2631_v40 = vsel %vm10944_vm11, %v2530_v39, %v2629_v62 }
 0x5a6   : > { %v2619_v18 = vsel %vm10948_vm13, %v2618_v43, %v2617_v17  ;;  %vm10926_vm12 = vcmask 1047559   ;;  %v2633_v53 = vsel %vm10933_vm10, %v2561_v46, %v2631_v40  ;;  %vm11534_vm10 = vcmask 851712  }
 0x5a7   : > { %v2635_v51 = vsel %vm10931_vm6, %v2592_v33, %v2633_v53  ;;  %vm11532_vm6 = vcmask 786112  }
 0x5a9   : > { %v2340_v11 = vpop.permute.xlu1 %2339 }
 0x5aa   : > { %v2620_v31 = vperm.slane %v2340_v11, %v8397_v36 }
 0x5ac   : > { %v2621_v29 = vsel %vm10947_vm14, %v2620_v31, %v2619_v18  ;;  %v11336_v31 = vld [vmem:[#allocation41_spill] sm:$0xff] }
 0x5ad   : > { %v2623_v26 = vsel %vm10946_vm15, %v2622_v50, %v2621_v29  ;;  %v11337_v50 = vld [vmem:[#allocation53_spill] sm:$0xff] }
 0x5ae   : > { %v2637_v21 = vsel %vm10926_vm12, %v2623_v26, %v2635_v51  ;;  %vm11520_vm12 = vcmask 458112  }
 0x5af   : > { %2640 = vmax.xlane.f32.xlu2 %v2637_v21  ;;  %2639 = vst [vmem:[%s8776_s24] sm:$0xff] %v2637_v21 }
 0x622   : > { %v8779_v5 = vpop.xlane.xlu2 %2640 }
 0x623   : > { %v8782_v6 = vperm.slane %v8779_v5, 0  ;;  %v8785_v56 = vperm.slane %v8779_v5, 1 }
 0x625   : > { %v2670_v4 = vsub.f32 %v11320_v3, %v8782_v6  ;;  %v2660_v60 = vsub.f32 %v11321_v2, %v8782_v6  ;;  %v2659_v55 = vsub.f32 %v11322_v52, %v8782_v6  ;;  %v2677_v28 = vsub.f32 %v11323_v54, %v8785_v56  ;;  %v11341_v3 = vld [vmem:[#allocation137_spill] sm:$0xff]  ;;  %v11342_v2 = vld [vmem:[#allocation62_spill] sm:$0xff] }
 0x626   : > { %v2662_v27 = vsub.f32 %v11324_v8, %v8782_v6  ;;  %v2661_v25 = vsub.f32 %v11325_v0, %v8782_v6  ;;  %v2680_v49 = vsub.f32 %v11329_v34, %v8785_v56  ;;  %v2664_v58 = vsub.f32 %v11330_v19, %v8782_v6  ;;  %v11343_v52 = vld [vmem:[#allocation54_spill] sm:$0xff] }
 0x627   : > { %v2809_v7 = vmul.f32 1.442695, %v2670_v4  ;;  %v2789_v23 = vmul.f32 1.442695, %v2660_v60  ;;  %v2787_v63 = vmul.f32 1.442695, %v2659_v55  ;;  %v2663_v37 = vsub.f32 %v11331_v1, %v8782_v6 }
 0x628   : > { %v2823_v44 = vmul.f32 1.442695, %v2677_v28  ;;  %v2793_v47 = vmul.f32 1.442695, %v2662_v27  ;;  %v2791_v45 = vmul.f32 1.442695, %v2661_v25  ;;  %v2683_v62 = vsub.f32 %v11335_v59, %v8785_v56 }
 0x629   : > { %5700 = vpow2.f32 %v2809_v7  ;;  %v2829_v39 = vmul.f32 1.442695, %v2680_v49  ;;  %v2797_v24 = vmul.f32 1.442695, %v2664_v58  ;;  %v2795_v43 = vmul.f32 1.442695, %v2663_v37 }
 0x62a   : > { %5702 = vpow2.f32 %v2789_v23  ;;  %v2666_v33 = vsub.f32 %v11336_v31, %v8782_v6  ;;  %v2665_v18 = vsub.f32 %v11337_v50, %v8782_v6  ;;  %v2835_v40 = vmul.f32 1.442695, %v2683_v62  ;;  %v11347_v27 = vld [vmem:[#allocation144_spill] sm:$0xff]  ;;  %v11348_v25 = vld [vmem:[#allocation73_spill] sm:$0xff]  ;;  %v11355_v31 = vld [vmem:[#allocation55_spill] sm:$0xff] }
 0x62b   : > { %5704 = vpow2.f32 %v2787_v63  ;;  %v2686_v4 = vsub.f32 %v11341_v3, %v8785_v56  ;;  %v2668_v60 = vsub.f32 %v11342_v2, %v8782_v6  ;;  %v2667_v55 = vsub.f32 %v11343_v52, %v8782_v6  ;;  %v11354_v59 = vld [vmem:[#allocation76_spill] sm:$0xff] }
 0x62c   : > { %5706 = vpow2.f32 %v2823_v44  ;;  %v2801_v29 = vmul.f32 1.442695, %v2666_v33  ;;  %v2799_v26 = vmul.f32 1.442695, %v2665_v18  ;;  %v2689_v0 = vsub.f32 %v11347_v27, %v8785_v56 }
 0x62d   : > { %5708 = vpow2.f32 %v2793_v47  ;;  %v2841_v7 = vmul.f32 1.442695, %v2686_v4  ;;  %v2805_v23 = vmul.f32 1.442695, %v2668_v60  ;;  %v2803_v54 = vmul.f32 1.442695, %v2667_v55 }
 0x62e   : > { %5710 = vpow2.f32 %v2791_v45  ;;  %v2671_v44 = vsub.f32 %v11348_v25, %v8782_v6  ;;  %v11349_v47 = vld [vmem:[#allocation48_spill] sm:$0xff]  ;;  %v8860_v34 = vperm.slane %v8779_v5, 2  ;;  %v2847_v49 = vmul.f32 1.442695, %v2689_v0  ;;  %v11359_v4 = vld [vmem:[#allocation91_spill] sm:$0xff]  ;;  %v11360_v60 = vld [vmem:[#allocation66_spill] sm:$0xff] }
 0x62f   : > { %v8799_v12 = vpop.eup %5700  ;;  %5712 = vpow2.f32 %v2829_v39  ;;  %v2669_v45 = vsub.f32 %v11349_v47, %v8782_v6  ;;  %v2673_v62 = vsub.f32 %v11354_v59, %v8782_v6  ;;  %v2672_v33 = vsub.f32 %v11355_v31, %v8782_v6  ;;  %v11361_v55 = vld [vmem:[#allocation82_spill] sm:$0xff]  ;;  %v11365_v47 = vld [vmem:[#allocation113_spill] sm:$0xff] }
 0x630   : > { %11326 = vst [vmem:[#allocation78_spill] sm:$0xff] %v8799_v12  ;;  %v8801_v41 = vpop.eup %5702  ;;  %3205 = vperm.xlu2 %5374, %v8799_v12   ;;  %5714 = vpow2.f32 %v2797_v24  ;;  %v2811_v19 = vmul.f32 1.442695, %v2671_v44  ;;  %v11353_v24 = vld [vmem:[#allocation30_spill] sm:$0xff]  ;;  %v2695_v2 = vsub.f32 %v11359_v4, %v8860_v34  ;;  %v2675_v52 = vsub.f32 %v11360_v60, %v8785_v56 }
 0x631   : > { %11327 = vst [vmem:[#allocation111_spill] sm:$0xff] %v8801_v41  ;;  %v8804_v61 = vpop.eup %5704  ;;  %3175 = vperm.xlu0 %5375, %v8801_v41   ;;  %5716 = vpow2.f32 %v2795_v43  ;;  %v2807_v1 = vmul.f32 1.442695, %v2669_v45  ;;  %v2692_v43 = vsub.f32 %v11353_v24, %v8860_v34  ;;  %v2815_v18 = vmul.f32 1.442695, %v2673_v62 }
 0x632   : > { %11328 = vst [vmem:[#allocation97_spill] sm:$0xff] %v8804_v61  ;;  %3172 = vperm.xlu1 %5376, %v8804_v61   ;;  %v8814_v17 = vpop.eup %5706  ;;  %5718 = vpow2.f32 %v2835_v40  ;;  %v2698_v45 = vsub.f32 %v11365_v47, %v8860_v34  ;;  %v11377_v47 = vld [vmem:[#allocation133_spill] sm:$0xff] }
 0x633   : > { %11332 = vst [vmem:[#allocation87_spill] sm:$0xff] %v8814_v17  ;;  %v8816_v11 = vpop.eup %5708  ;;  %5720 = vpow2.f32 %v2801_v29  ;;  %v2853_v50 = vmul.f32 1.442695, %v2692_v43  ;;  %v2813_v29 = vmul.f32 1.442695, %v2672_v33 }
 0x634   : > { %11333 = vst [vmem:[#allocation116_spill] sm:$0xff] %v8816_v11  ;;  %v8819_v46 = vpop.eup %5710  ;;  %5722 = vpow2.f32 %v2799_v26  ;;  %v2865_v24 = vmul.f32 1.442695, %v2698_v45  ;;  %v2704_v45 = vsub.f32 %v11377_v47, %v8860_v34 }
 0x635   : > { %11334 = vst [vmem:[#allocation110_spill] sm:$0xff] %v8819_v46  ;;  %v8829_v53 = vpop.eup %5712  ;;  %5724 = vpow2.f32 %v2841_v7  ;;  %v2674_v7 = vsub.f32 %v11361_v55, %v8782_v6  ;;  %v11366_v6 = vld [vmem:[#allocation75_spill] sm:$0xff] }
 0x636   : > { %11338 = vst [vmem:[#allocation94_spill] sm:$0xff] %v8829_v53  ;;  %v8831_v51 = vpop.eup %5714  ;;  %5726 = vpow2.f32 %v2805_v23  ;;  %v2859_v23 = vmul.f32 1.442695, %v2695_v2  ;;  %v11373_v2 = vld [vmem:[#allocation98_spill] sm:$0xff] }
 0x637   : > { %11339 = vst [vmem:[#allocation119_spill] sm:$0xff] %v8831_v51  ;;  %v8834_v21 = vpop.eup %5716  ;;  %5728 = vpow2.f32 %v2803_v54  ;;  %v2819_v54 = vmul.f32 1.442695, %v2675_v52  ;;  %v2817_v0 = vmul.f32 1.442695, %v2674_v7  ;;  %v2679_v60 = vsub.f32 %v11373_v2, %v8785_v56  ;;  %v11383_v2 = vld [vmem:[#allocation135_spill] sm:$0xff] }
 0x638   : > { %3226 = vperm.xlu2 %5374, %v8814_v17   ;;  %11340 = vst [vmem:[#allocation117_spill] sm:$0xff] %v8834_v21  ;;  %v8844_v63 = vpop.eup %5718  ;;  %5730 = vpow2.f32 %v2847_v49  ;;  %v2678_v49 = vsub.f32 %v11366_v6, %v8785_v56  ;;  %v11378_v6 = vld [vmem:[#allocation95_spill] sm:$0xff] }
 0x639   : > { %3181 = vperm.xlu0 %5375, %v8816_v11   ;;  %11344 = vst [vmem:[#allocation105_spill] sm:$0xff] %v8844_v63  ;;  %v8846_v28 = vpop.eup %5720  ;;  %5732 = vpow2.f32 %v2811_v19  ;;  %v11367_v19 = vld [vmem:[#allocation85_spill] sm:$0xff] }
 0x63a   : > { %3178 = vperm.xlu1 %5376, %v8819_v46   ;;  %11345 = vst [vmem:[#allocation220_spill] sm:$0xff] %v8846_v28  ;;  %v8849_v8 = vpop.eup %5722  ;;  %5734 = vpow2.f32 %v2807_v1  ;;  %v2676_v1 = vsub.f32 %v11367_v19, %v8785_v56  ;;  %v2825_v43 = vmul.f32 1.442695, %v2678_v49  ;;  %v2684_v49 = vsub.f32 %v11378_v6, %v8785_v56  ;;  %v11379_v19 = vld [vmem:[#allocation115_spill] sm:$0xff] }
 0x63b   : > { %11346 = vst [vmem:[#allocation190_spill] sm:$0xff] %v8849_v8  ;;  %v8862_v58 = vpop.eup %5724  ;;  %5736 = vpow2.f32 %v2853_v50  ;;  %v11371_v50 = vld [vmem:[#allocation129_spill] sm:$0xff] }
 0x63c   : > { %11350 = vst [vmem:[#allocation164_spill] sm:$0xff] %v8862_v58  ;;  %v8864_v37 = vpop.eup %5726  ;;  %5738 = vpow2.f32 %v2815_v18  ;;  %v2821_v62 = vmul.f32 1.442695, %v2676_v1  ;;  %v2701_v18 = vsub.f32 %v11371_v50, %v8860_v34  ;;  %v2682_v1 = vsub.f32 %v11379_v19, %v8785_v56 }
 0x63d   : > { %11351 = vst [vmem:[#allocation196_spill] sm:$0xff] %v8864_v37  ;;  %v8867_v39 = vpop.eup %5728  ;;  %5740 = vpow2.f32 %v2813_v29  ;;  %v11372_v29 = vld [vmem:[#allocation84_spill] sm:$0xff] }
 0x63e   : > { %11352 = vst [vmem:[#allocation168_spill] sm:$0xff] %v8867_v39  ;;  %v8877_v40 = vpop.eup %5730  ;;  %5742 = vpow2.f32 %v2859_v23  ;;  %v2681_v4 = vsub.f32 %v11372_v29, %v8785_v56  ;;  %v2871_v52 = vmul.f32 1.442695, %v2701_v18  ;;  %v2827_v23 = vmul.f32 1.442695, %v2679_v60 }
 0x63f   : > { %11356 = vst [vmem:[#allocation185_spill] sm:$0xff] %v8877_v40  ;;  %v8879_v26 = vpop.eup %5732  ;;  %5744 = vpow2.f32 %v2819_v54  ;;  %v2833_v18 = vmul.f32 1.442695, %v2682_v1 }
 0x640   : > { %3235 = vperm.xlu2 %5374, %v8829_v53   ;;  %11357 = vst [vmem:[#allocation206_spill] sm:$0xff] %v8879_v26  ;;  %v8882_v3 = vpop.eup %5734  ;;  %5746 = vpow2.f32 %v2817_v0  ;;  %v2831_v55 = vmul.f32 1.442695, %v2681_v4 }
 0x641   : > { %3187 = vperm.xlu0 %5375, %v8831_v51   ;;  %11358 = vst [vmem:[#allocation201_spill] sm:$0xff] %v8882_v3  ;;  %v8892_v27 = vpop.eup %5736  ;;  %5748 = vpow2.f32 %v2865_v24  ;;  %v8938_v24 = vperm.slane %v8779_v5, 3 }
 0x642   : > { %3184 = vperm.xlu1 %5376, %v8834_v21   ;;  %11362 = vst [vmem:[#allocation172_spill] sm:$0xff] %v8892_v27  ;;  %v8894_v25 = vpop.eup %5738  ;;  %5750 = vpow2.f32 %v2825_v43  ;;  %v2877_v43 = vmul.f32 1.442695, %v2704_v45 }
 0x643   : > { %11363 = vst [vmem:[#allocation176_spill] sm:$0xff] %v8894_v25  ;;  %v8897_v44 = vpop.eup %5740  ;;  %5752 = vpow2.f32 %v2821_v62  ;;  %v2837_v62 = vmul.f32 1.442695, %v2684_v49  ;;  %v2707_v60 = vsub.f32 %v11383_v2, %v8938_v24  ;;  %v11390_v2 = vld [vmem:[#allocation107_spill] sm:$0xff] }
 0x644   : > { %11364 = vst [vmem:[#allocation233_spill] sm:$0xff] %v8897_v44  ;;  %v8907_v59 = vpop.eup %5742  ;;  %5754 = vpow2.f32 %v2871_v52  ;;  %v11384_v52 = vld [vmem:[#allocation101_spill] sm:$0xff] }
 0x645   : > { %11368 = vst [vmem:[#allocation181_spill] sm:$0xff] %v8907_v59  ;;  %v8909_v31 = vpop.eup %5744  ;;  %5756 = vpow2.f32 %v2831_v55  ;;  %v2687_v55 = vsub.f32 %v11384_v52, %v8785_v56  ;;  %v2883_v45 = vmul.f32 1.442695, %v2707_v60  ;;  %v2690_v60 = vsub.f32 %v11390_v2, %v8785_v56  ;;  %v11391_v52 = vld [vmem:[#allocation128_spill] sm:$0xff] }
 0x646   : > { %11369 = vst [vmem:[#allocation210_spill] sm:$0xff] %v8909_v31  ;;  %v8912_v33 = vpop.eup %5746  ;;  %5758 = vpow2.f32 %v2827_v23  ;;  %v11385_v23 = vld [vmem:[#allocation123_spill] sm:$0xff] }
 0x647   : > { %11370 = vst [vmem:[#allocation194_spill] sm:$0xff] %v8912_v33  ;;  %v8922_v7 = vpop.eup %5748  ;;  %5760 = vpow2.f32 %v2877_v43  ;;  %v2685_v47 = vsub.f32 %v11385_v23, %v8785_v56  ;;  %v2843_v6 = vmul.f32 1.442695, %v2687_v55  ;;  %v2688_v55 = vsub.f32 %v11391_v52, %v8785_v56  ;;  %v11396_v56 = vld [vmem:[#allocation29_spill] sm:$0xff] }
 0x648   : > { %3244 = vperm.xlu2 %5374, %v8844_v63   ;;  %11374 = vst [vmem:[#allocation226_spill] sm:$0xff] %v8922_v7  ;;  %v8924_v54 = vpop.eup %5750  ;;  %5762 = vpow2.f32 %v2837_v62  ;;  %v11389_v62 = vld [vmem:[#allocation138_spill] sm:$0xff] }
 0x649   : > { %3193 = vperm.xlu0 %5375, %v8846_v28   ;;  %11375 = vst [vmem:[#allocation211_spill] sm:$0xff] %v8924_v54  ;;  %v8927_v0 = vpop.eup %5752  ;;  %5764 = vpow2.f32 %v2833_v18  ;;  %v2839_v19 = vmul.f32 1.442695, %v2685_v47  ;;  %v2710_v18 = vsub.f32 %v11389_v62, %v8938_v24  ;;  %v2849_v47 = vmul.f32 1.442695, %v2690_v60 }
 0x64a   : > { %3190 = vperm.xlu1 %5376, %v8849_v8   ;;  %11376 = vst [vmem:[#allocation222_spill] sm:$0xff] %v8927_v0  ;;  %v8940_v50 = vpop.eup %5754  ;;  %5766 = vpow2.f32 %v2883_v45  ;;  %v2693_v62 = vsub.f32 %v11396_v56, %v8860_v34 }
 0x64b   : > { %11380 = vst [vmem:[#allocation200_spill] sm:$0xff] %v8940_v50  ;;  %v8942_v29 = vpop.eup %5756  ;;  %5768 = vpow2.f32 %v2843_v6  ;;  %v2889_v23 = vmul.f32 1.442695, %v2710_v18  ;;  %v11395_v6 = vld [vmem:[#allocation141_spill] sm:$0xff]  ;;  %v11397_v18 = vld [vmem:[#allocation28_spill] sm:$0xff] }
 0x64c   : > { %11381 = vst [vmem:[#allocation212_spill] sm:$0xff] %v8942_v29  ;;  %v8945_v4 = vpop.eup %5758  ;;  %5770 = vpow2.f32 %v2839_v19  ;;  %v2713_v19 = vsub.f32 %v11395_v6, %v8938_v24  ;;  %v2691_v2 = vsub.f32 %v11397_v18, %v8860_v34  ;;  %v2855_v52 = vmul.f32 1.442695, %v2693_v62  ;;  %v11404_v62 = vld [vmem:[#allocation39_spill] sm:$0xff] }
 0x64d   : > { %11382 = vst [vmem:[#allocation234_spill] sm:$0xff] %v8945_v4  ;;  %v8955_v49 = vpop.eup %5760  ;;  %5772 = vpow2.f32 %v2889_v23  ;;  %v2694_v18 = vsub.f32 %v11404_v62, %v8860_v34 }
 0x64e   : > { %11386 = vst [vmem:[#allocation189_spill] sm:$0xff] %v8955_v49  ;;  %v8957_v1 = vpop.eup %5762  ;;  %5774 = vpow2.f32 %v2849_v47  ;;  %v2895_v60 = vmul.f32 1.442695, %v2713_v19  ;;  %v11403_v19 = vld [vmem:[#allocation64_spill] sm:$0xff] }
 0x64f   : > { %11387 = vst [vmem:[#allocation228_spill] sm:$0xff] %v8957_v1  ;;  %v8960_v43 = vpop.eup %5764  ;;  %v2696_v56 = vsub.f32 %v11403_v19, %v8860_v34 }
 0x650   : > { %3253 = vperm.xlu2 %5374, %v8862_v58   ;;  %11388 = vst [vmem:[#allocation180_spill] sm:$0xff] %v8960_v43 }
 0x651   : > { %3199 = vperm.xlu0 %5375, %v8864_v37  }
 0x652   : > { %3196 = vperm.xlu1 %5376, %v8867_v39  }
 0x658   : > { %3262 = vperm.xlu2 %5374, %v8877_v40  }
 0x659   : > { %3208 = vperm.xlu0 %5375, %v8879_v26  }
 0x65a   : > { %3202 = vperm.xlu1 %5376, %v8882_v3  }
 0x660   : > { %3271 = vperm.xlu2 %5374, %v8892_v27   ;;  %v2851_v27 = vmul.f32 1.442695, %v2691_v2 }
 0x661   : > { %3214 = vperm.xlu0 %5375, %v8894_v25  }
 0x662   : > { %3211 = vperm.xlu1 %5376, %v8897_v44  }
 0x668   : > { %3280 = vperm.xlu2 %5374, %v8907_v59  }
 0x669   : > { %3220 = vperm.xlu0 %5375, %v8909_v31  }
 0x66a   : > { %3217 = vperm.xlu1 %5376, %v8912_v33  }
 0x670   : > { %3289 = vperm.xlu2 %5374, %v8922_v7   ;;  %v2845_v7 = vmul.f32 1.442695, %v2688_v55 }
 0x671   : > { %3229 = vperm.xlu0 %5375, %v8924_v54  }
 0x672   : > { %3223 = vperm.xlu1 %5376, %v8927_v0   ;;  %5776 = vpow2.f32 %v2845_v7  ;;  %v11402_v7 = vld [vmem:[#allocation147_spill] sm:$0xff] }
 0x673   : > { %5778 = vpow2.f32 %v2895_v60  ;;  %v2716_v47 = vsub.f32 %v11402_v7, %v8938_v24  ;;  %v11409_v7 = vld [vmem:[#allocation74_spill] sm:$0xff] }
 0x674   : > { %5780 = vpow2.f32 %v2855_v52  ;;  %v11408_v52 = vld [vmem:[#allocation150_spill] sm:$0xff] }
 0x675   : > { %5782 = vpow2.f32 %v2851_v27  ;;  %v2901_v2 = vmul.f32 1.442695, %v2716_v47  ;;  %v2719_v27 = vsub.f32 %v11408_v52, %v8938_v24  ;;  %v2699_v47 = vsub.f32 %v11409_v7, %v8860_v34 }
 0x677   : > { %5784 = vpow2.f32 %v2901_v2 }
 0x678   : > { %3298 = vperm.xlu2 %5374, %v8940_v50  }
 0x679   : > { %3238 = vperm.xlu0 %5375, %v8942_v29  }
 0x67a   : > { %3232 = vperm.xlu1 %5376, %v8945_v4  }
 0x680   : > { %3307 = vperm.xlu2 %5374, %v8955_v49   ;;  %v8970_v49 = vpop.eup %5766 }
 0x681   : > { %3247 = vperm.xlu0 %5375, %v8957_v1   ;;  %11392 = vst [vmem:[#allocation204_spill] sm:$0xff] %v8970_v49  ;;  %v8972_v40 = vpop.eup %5768 }
 0x682   : > { %3241 = vperm.xlu1 %5376, %v8960_v43   ;;  %11393 = vst [vmem:[#allocation213_spill] sm:$0xff] %v8972_v40  ;;  %v8975_v45 = vpop.eup %5770 }
 0x683   : > { %11394 = vst [vmem:[#allocation208_spill] sm:$0xff] %v8975_v45  ;;  %v8985_v55 = vpop.eup %5772 }
 0x684   : > { %11398 = vst [vmem:[#allocation229_spill] sm:$0xff] %v8985_v55  ;;  %v8987_v58 = vpop.eup %5774 }
 0x685   : > { %11399 = vst [vmem:[#allocation224_spill] sm:$0xff] %v8987_v58  ;;  %v8990_v23 = vpop.eup %5776 }
 0x686   : > { %11400 = vst [vmem:[#allocation215_spill] sm:$0xff] %v8990_v23 }
 0x688   : > { %3316 = vperm.xlu2 %5374, %v8970_v49  }
 0x689   : > { %3256 = vperm.xlu0 %5375, %v8972_v40   ;;  %v2857_v40 = vmul.f32 1.442695, %v2694_v18  ;;  %v2907_v18 = vmul.f32 1.442695, %v2719_v27  ;;  %v11415_v27 = vld [vmem:[#allocation83_spill] sm:$0xff] }
 0x68a   : > { %3250 = vperm.xlu1 %5376, %v8975_v45   ;;  %v8992_v6 = vpop.permute.xlu2 %3205  ;;  %v9002_v45 = vpop.eup %5778  ;;  %v2702_v7 = vsub.f32 %v11415_v27, %v8860_v34  ;;  %v11420_v27 = vld [vmem:[#allocation156_spill] sm:$0xff] }
 0x68b   : > { %11401 = vst [vmem:[#allocation80_spill] sm:$0xff] %v8992_v6 }
 0x68c   : > { %11405 = vst [vmem:[#allocation199_spill] sm:$0xff] %v9002_v45  ;;  %v2873_v4 = vmul.f32 1.442695, %v2702_v7 }
 0x690   : > { %3325 = vperm.xlu2 %5374, %v8985_v55   ;;  %v2861_v55 = vmul.f32 1.442695, %v2696_v56  ;;  %v11410_v56 = vld [vmem:[#allocation86_spill] sm:$0xff] }
 0x691   : > { %3265 = vperm.xlu0 %5375, %v8987_v58   ;;  %v9004_v58 = vpop.eup %5780  ;;  %v2697_v62 = vsub.f32 %v11410_v56, %v8860_v34  ;;  %v11416_v56 = vld [vmem:[#allocation100_spill] sm:$0xff] }
 0x692   : > { %3259 = vperm.xlu1 %5376, %v8990_v23   ;;  %11406 = vst [vmem:[#allocation231_spill] sm:$0xff] %v9004_v58  ;;  %v9007_v60 = vpop.eup %5782  ;;  %5786 = vpow2.f32 %v2861_v55  ;;  %v9015_v19 = vpop.permute.xlu2 %3226  ;;  %v2867_v23 = vmul.f32 1.442695, %v2699_v47  ;;  %v11414_v55 = vld [vmem:[#allocation153_spill] sm:$0xff] }
 0x693   : > { %11407 = vst [vmem:[#allocation209_spill] sm:$0xff] %v9007_v60  ;;  %5788 = vpow2.f32 %v2857_v40  ;;  %v9019_v53 = vpop.eup %5784  ;;  %v2863_v2 = vmul.f32 1.442695, %v2697_v62  ;;  %v2722_v40 = vsub.f32 %v11414_v55, %v8938_v24  ;;  %v2700_v62 = vsub.f32 %v11416_v56, %v8860_v34 }
 0x694   : > { %11411 = vst [vmem:[#allocation216_spill] sm:$0xff] %v9019_v53  ;;  %5790 = vpow2.f32 %v2907_v18 }
 0x695   : > { %5792 = vpow2.f32 %v2867_v23  ;;  %v2913_v55 = vmul.f32 1.442695, %v2722_v40  ;;  %v2869_v23 = vmul.f32 1.442695, %v2700_v62  ;;  %v11421_v40 = vld [vmem:[#allocation92_spill] sm:$0xff]  ;;  %v11422_v62 = vld [vmem:[#allocation118_spill] sm:$0xff] }
 0x696   : > { %5794 = vpow2.f32 %v2863_v2  ;;  %v2705_v7 = vsub.f32 %v11421_v40, %v8860_v34 }
 0x697   : > { %5796 = vpow2.f32 %v2913_v55 }
 0x698   : > { %3334 = vperm.xlu2 %5374, %v9002_v45   ;;  %5798 = vpow2.f32 %v2873_v4 }
 0x699   : > { %3274 = vperm.xlu0 %5375, %v9004_v58   ;;  %v9021_v58 = vpop.eup %5786  ;;  %5800 = vpow2.f32 %v2869_v23  ;;  %v11426_v23 = vld [vmem:[#allocation161_spill] sm:$0xff] }
 0x69a   : > { %3268 = vperm.xlu1 %5376, %v9007_v60   ;;  %11412 = vst [vmem:[#allocation232_spill] sm:$0xff] %v9021_v58  ;;  %v9024_v52 = vpop.eup %5788  ;;  %v9039_v60 = vperm.slane %v8779_v5, 4  ;;  %v9041_v18 = vpop.permute.xlu2 %3235 }
 0x69b   : > { %11413 = vst [vmem:[#allocation195_spill] sm:$0xff] %v9024_v52 }
 0x69c   : > { %v2725_v56 = vsub.f32 %v11420_v27, %v9039_v60  ;;  %v2728_v40 = vsub.f32 %v11426_v23, %v9039_v60 }
 0x69e   : > { %v2919_v31 = vmul.f32 1.442695, %v2725_v56  ;;  %v11427_v56 = vld [vmem:[#allocation96_spill] sm:$0xff]  ;;  %v2925_v45 = vmul.f32 1.442695, %v2728_v40  ;;  %v11434_v40 = vld [vmem:[#allocation99_spill] sm:$0xff] }
 0x6a0   : > { %3343 = vperm.xlu2 %5374, %v9019_v53   ;;  %5802 = vpow2.f32 %v2919_v31 }
 0x6a1   : > { %3283 = vperm.xlu0 %5375, %v9021_v58  }
 0x6a2   : > { %3277 = vperm.xlu1 %5376, %v9024_v52   ;;  %v9043_v52 = vpop.eup %5790  ;;  %v9064_v54 = vpop.permute.xlu2 %3244 }
 0x6a3   : > { %v9032_v47 = vpop.permute.xlu0 %3175  ;;  %11417 = vst [vmem:[#allocation227_spill] sm:$0xff] %v9043_v52  ;;  %v9045_v1 = vpop.eup %5792 }
 0x6a4   : > { %v9036_v53 = vpop.permute.xlu1 %3172  ;;  %11418 = vst [vmem:[#allocation218_spill] sm:$0xff] %v9045_v1  ;;  %v9048_v2 = vpop.eup %5794 }
 0x6a5   : > { %11419 = vst [vmem:[#allocation81_spill] sm:$0xff] %v9048_v2  ;;  %v9062_v55 = vpop.eup %5796 }
 0x6a6   : > { %11423 = vst [vmem:[#allocation202_spill] sm:$0xff] %v9062_v55 }
 0x6a8   : > { %3352 = vperm.xlu2 %5374, %v9043_v52   ;;  %v2703_v52 = vsub.f32 %v11422_v62, %v8860_v34 }
 0x6a9   : > { %3292 = vperm.xlu0 %5375, %v9045_v1   ;;  %v2879_v1 = vmul.f32 1.442695, %v2705_v7  ;;  %v2708_v7 = vsub.f32 %v11427_v56, %v8938_v24 }
 0x6aa   : > { %3286 = vperm.xlu1 %5376, %v9048_v2   ;;  %v2875_v27 = vmul.f32 1.442695, %v2703_v52  ;;  %v9066_v2 = vpop.eup %5798  ;;  %v11428_v52 = vld [vmem:[#allocation121_spill] sm:$0xff]  ;;  %v9090_v56 = vpop.permute.xlu2 %3253 }
 0x6ab   : > { %v9056_v63 = vpop.permute.xlu0 %3181  ;;  %11424 = vst [vmem:[#allocation88_spill] sm:$0xff] %v9066_v2  ;;  %v9069_v4 = vpop.eup %5800  ;;  %5804 = vpow2.f32 %v2879_v1  ;;  %v2885_v44 = vmul.f32 1.442695, %v2708_v7 }
 0x6ac   : > { %v9060_v0 = vpop.permute.xlu1 %3178  ;;  %11425 = vst [vmem:[#allocation214_spill] sm:$0xff] %v9069_v4  ;;  %5806 = vpow2.f32 %v2875_v27  ;;  %v9083_v31 = vpop.eup %5802 }
 0x6ad   : > { %11429 = vst [vmem:[#allocation219_spill] sm:$0xff] %v9083_v31  ;;  %5808 = vpow2.f32 %v2925_v45 }
 0x6ae   : > { %11432 = vst [vmem:[#allocation203_spill] sm:$0xff] %v9090_v56  ;;  %5810 = vpow2.f32 %v2885_v44 }
 0x6b0   : > { %3361 = vperm.xlu2 %5374, %v9062_v55   ;;  %v2706_v55 = vsub.f32 %v11428_v52, %v8860_v34  ;;  %v11433_v34 = vld [vmem:[#allocation24_spill] sm:$0xff]  ;;  %v11435_v52 = vld [vmem:[#allocation125_spill] sm:$0xff] }
 0x6b1   : > { %3301 = vperm.xlu0 %5375, %v9066_v2   ;;  %v9085_v23 = vpop.eup %5804  ;;  %v2731_v27 = vsub.f32 %v11433_v34, %v9039_v60 }
 0x6b2   : > { %3295 = vperm.xlu1 %5376, %v9069_v4   ;;  %v2881_v26 = vmul.f32 1.442695, %v2706_v55  ;;  %11430 = vst [vmem:[#allocation79_spill] sm:$0xff] %v9085_v23  ;;  %v9088_v1 = vpop.eup %5806  ;;  %v2711_v55 = vsub.f32 %v11434_v40, %v8938_v24  ;;  %v2709_v4 = vsub.f32 %v11435_v52, %v8938_v24  ;;  %v9117_v52 = vpop.permute.xlu2 %3262 }
 0x6b3   : > { %v9077_v62 = vpop.permute.xlu0 %3187  ;;  %11431 = vst [vmem:[#allocation230_spill] sm:$0xff] %v9088_v1  ;;  %v2931_v33 = vmul.f32 1.442695, %v2731_v27  ;;  %v9104_v45 = vpop.eup %5808  ;;  %v11440_v27 = vld [vmem:[#allocation103_spill] sm:$0xff] }
 0x6b4   : > { %v9081_v17 = vpop.permute.xlu1 %3184  ;;  %5812 = vpow2.f32 %v2881_v26  ;;  %11436 = vst [vmem:[#allocation221_spill] sm:$0xff] %v9104_v45  ;;  %v2887_v25 = vmul.f32 1.442695, %v2709_v4  ;;  %v9106_v34 = vpop.eup %5810  ;;  %v11439_v26 = vld [vmem:[#allocation165_spill] sm:$0xff] }
 0x6b5   : > { %11437 = vst [vmem:[#allocation63_spill] sm:$0xff] %v9106_v34  ;;  %5814 = vpow2.f32 %v2931_v33  ;;  %v2734_v40 = vsub.f32 %v11439_v26, %v9039_v60 }
 0x6b6   : > { %11441 = vst [vmem:[#allocation207_spill] sm:$0xff] %v9117_v52 }
 0x6b7   : > { %v2937_v33 = vmul.f32 1.442695, %v2734_v40 }
 0x6b8   : > { %3370 = vperm.xlu2 %5374, %v9083_v31  }
 0x6b9   : > { %3310 = vperm.xlu0 %5375, %v9085_v23   ;;  %v2891_v23 = vmul.f32 1.442695, %v2711_v55  ;;  %v2714_v55 = vsub.f32 %v11440_v27, %v8938_v24 }
 0x6ba   : > { %3304 = vperm.xlu1 %5376, %v9088_v1   ;;  %v9109_v44 = vpop.eup %5812 }
 0x6bb   : > { %v9098_v7 = vpop.permute.xlu0 %3193  ;;  %11438 = vst [vmem:[#allocation217_spill] sm:$0xff] %v9109_v44  ;;  %5816 = vpow2.f32 %v2891_v23  ;;  %v9125_v37 = vpop.eup %5814 }
 0x6bc   : > { %v9102_v31 = vpop.permute.xlu1 %3190  ;;  %5818 = vpow2.f32 %v2887_v25  ;;  %11444 = vst [vmem:[#allocation223_spill] sm:$0xff] %v9125_v37  ;;  %v11447_v25 = vld [vmem:[#allocation167_spill] sm:$0xff] }
 0x6bd   : > { %5820 = vpow2.f32 %v2937_v33  ;;  %v2737_v27 = vsub.f32 %v11447_v25, %v9039_v60  ;;  %v9147_v33 = vpop.permute.xlu2 %3271 }
 0x6bf   : > { %v2943_v25 = vmul.f32 1.442695, %v2737_v27  ;;  %v11456_v27 = vld [vmem:[#allocation109_spill] sm:$0xff] }
 0x6c0   : > { %3379 = vperm.xlu2 %5374, %v9104_v45   ;;  %v11443_v45 = vld [vmem:[#allocation127_spill] sm:$0xff] }
 0x6c1   : > { %3319 = vperm.xlu0 %5375, %v9106_v34   ;;  %v2712_v1 = vsub.f32 %v11443_v45, %v8938_v24  ;;  %v2897_v34 = vmul.f32 1.442695, %v2714_v55  ;;  %v11448_v45 = vld [vmem:[#allocation106_spill] sm:$0xff] }
 0x6c2   : > { %3313 = vperm.xlu1 %5376, %v9109_v44   ;;  %v9127_v44 = vpop.eup %5816  ;;  %v2717_v40 = vsub.f32 %v11448_v45, %v8938_v24  ;;  %v11455_v45 = vld [vmem:[#allocation170_spill] sm:$0xff] }
 0x6c3   : > { %v9119_v4 = vpop.permute.xlu0 %3199  ;;  %v2893_v26 = vmul.f32 1.442695, %v2712_v1  ;;  %11445 = vst [vmem:[#allocation67_spill] sm:$0xff] %v9127_v44  ;;  %v9130_v23 = vpop.eup %5818  ;;  %5822 = vpow2.f32 %v2897_v34  ;;  %v11450_v1 = vld [vmem:[#allocation130_spill] sm:$0xff] }
 0x6c4   : > { %11442 = vst [vmem:[#allocation205_spill] sm:$0xff] %v9119_v4  ;;  %v9123_v49 = vpop.permute.xlu1 %3196  ;;  %v2903_v12 = vmul.f32 1.442695, %v2717_v40  ;;  %v2720_v40 = vsub.f32 %v11456_v27, %v8938_v24 }
 0x6c5   : > { %11446 = vst [vmem:[#allocation225_spill] sm:$0xff] %v9130_v23  ;;  %5824 = vpow2.f32 %v2893_v26  ;;  %v9170_v21 = vpop.permute.xlu2 %3280 }
 0x6c6   : > { %5826 = vpow2.f32 %v2943_v25 }
 0x6c7   : > { %5828 = vpow2.f32 %v2903_v12 }
 0x6c8   : > { %3388 = vperm.xlu2 %5374, %v9125_v37   ;;  %v2715_v37 = vsub.f32 %v11450_v1, %v8938_v24 }
 0x6c9   : > { %3328 = vperm.xlu0 %5375, %v9127_v44   ;;  %v9145_v44 = vperm.slane %v8779_v5, 5 }
 0x6ca   : > { %3322 = vperm.xlu1 %5376, %v9130_v23   ;;  %v9149_v23 = vpop.eup %5820  ;;  %v2899_v34 = vmul.f32 1.442695, %v2715_v37  ;;  %v11458_v37 = vld [vmem:[#allocation132_spill] sm:$0xff] }
 0x6cb   : > { %v9138_v55 = vpop.permute.xlu0 %3208  ;;  %11452 = vst [vmem:[#allocation27_spill] sm:$0xff] %v9149_v23  ;;  %v9151_v3 = vpop.eup %5822  ;;  %v2740_v1 = vsub.f32 %v11455_v45, %v9145_v44 }
 0x6cc   : > { %11449 = vst [vmem:[#allocation65_spill] sm:$0xff] %v9138_v55  ;;  %v9142_v39 = vpop.permute.xlu1 %3202  ;;  %v9154_v26 = vpop.eup %5824  ;;  %5830 = vpow2.f32 %v2899_v34  ;;  %v11463_v34 = vld [vmem:[#allocation173_spill] sm:$0xff] }
 0x6cd   : > { %11451 = vst [vmem:[#allocation37_spill] sm:$0xff] %v9142_v39  ;;  %v2949_v51 = vmul.f32 1.442695, %v2740_v1  ;;  %v9168_v25 = vpop.eup %5826  ;;  %v2743_v27 = vsub.f32 %v11463_v34, %v9145_v44  ;;  %v11464_v1 = vld [vmem:[#allocation112_spill] sm:$0xff] }
 0x6ce   : > { %11453 = vst [vmem:[#allocation93_spill] sm:$0xff] %v9151_v3 }
 0x6cf   : > { %11454 = vst [vmem:[#allocation40_spill] sm:$0xff] %v9154_v26  ;;  %5832 = vpow2.f32 %v2949_v51  ;;  %v2955_v8 = vmul.f32 1.442695, %v2743_v27  ;;  %v11471_v27 = vld [vmem:[#allocation122_spill] sm:$0xff] }
 0x6d0   : > { %3397 = vperm.xlu2 %5374, %v9149_v23   ;;  %v2718_v23 = vsub.f32 %v11458_v37, %v8938_v24  ;;  %11460 = vst [vmem:[#allocation46_spill] sm:$0xff] %v9168_v25 }
 0x6d1   : > { %3337 = vperm.xlu0 %5375, %v9151_v3   ;;  %v2909_v3 = vmul.f32 1.442695, %v2720_v40  ;;  %v2723_v40 = vsub.f32 %v11464_v1, %v9039_v60  ;;  %v9196_v1 = vpop.permute.xlu2 %3289 }
 0x6d2   : > { %3331 = vperm.xlu1 %5376, %v9154_v26   ;;  %v2905_v45 = vmul.f32 1.442695, %v2718_v23  ;;  %v9172_v26 = vpop.eup %5828  ;;  %v11465_v23 = vld [vmem:[#allocation134_spill] sm:$0xff] }
 0x6d3   : > { %v9162_v2 = vpop.permute.xlu0 %3214  ;;  %11461 = vst [vmem:[#allocation45_spill] sm:$0xff] %v9172_v26  ;;  %v9175_v12 = vpop.eup %5830  ;;  %5834 = vpow2.f32 %v2909_v3 }
 0x6d4   : > { %11457 = vst [vmem:[#allocation38_spill] sm:$0xff] %v9162_v2  ;;  %v9166_v50 = vpop.permute.xlu1 %3211  ;;  %5836 = vpow2.f32 %v2905_v45 }
 0x6d5   : > { %11459 = vst [vmem:[#allocation114_spill] sm:$0xff] %v9166_v50  ;;  %v9189_v51 = vpop.eup %5832  ;;  %5838 = vpow2.f32 %v2955_v8 }
 0x6d6   : > { %11462 = vst [vmem:[#allocation131_spill] sm:$0xff] %v9175_v12 }
 0x6d7   : > { %11467 = vst [vmem:[#allocation53_spill] sm:$0xff] %v9189_v51 }
 0x6d8   : > { %3406 = vperm.xlu2 %5374, %v9168_v25   ;;  %v2721_v25 = vsub.f32 %v11465_v23, %v8938_v24  ;;  %v11470_v24 = vld [vmem:[#allocation177_spill] sm:$0xff]  ;;  %v11472_v23 = vld [vmem:[#allocation136_spill] sm:$0xff] }
 0x6d9   : > { %3346 = vperm.xlu0 %5375, %v9172_v26   ;;  %v2915_v26 = vmul.f32 1.442695, %v2723_v40  ;;  %v9191_v34 = vpop.eup %5834  ;;  %v2746_v45 = vsub.f32 %v11470_v24, %v9145_v44 }
 0x6da   : > { %3340 = vperm.xlu1 %5376, %v9175_v12   ;;  %v2911_v58 = vmul.f32 1.442695, %v2721_v25  ;;  %11468 = vst [vmem:[#allocation137_spill] sm:$0xff] %v9191_v34  ;;  %v9194_v3 = vpop.eup %5836  ;;  %v2726_v25 = vsub.f32 %v11471_v27, %v9039_v60 }
 0x6db   : > { %v9183_v37 = vpop.permute.xlu0 %3220  ;;  %11469 = vst [vmem:[#allocation62_spill] sm:$0xff] %v9194_v3  ;;  %5840 = vpow2.f32 %v2915_v26  ;;  %v2961_v59 = vmul.f32 1.442695, %v2746_v45  ;;  %v9210_v8 = vpop.eup %5838  ;;  %v11477_v45 = vld [vmem:[#allocation139_spill] sm:$0xff] }
 0x6dc   : > { %v9187_v28 = vpop.permute.xlu1 %3217  ;;  %5842 = vpow2.f32 %v2911_v58  ;;  %11473 = vst [vmem:[#allocation54_spill] sm:$0xff] %v9210_v8  ;;  %v11476_v58 = vld [vmem:[#allocation182_spill] sm:$0xff] }
 0x6dd   : > { %11466 = vst [vmem:[#allocation41_spill] sm:$0xff] %v9187_v28  ;;  %5844 = vpow2.f32 %v2961_v59  ;;  %v2749_v27 = vsub.f32 %v11476_v58, %v9145_v44 }
 0x6df   : > { %v2967_v59 = vmul.f32 1.442695, %v2749_v27 }
 0x6e0   : > { %3415 = vperm.xlu2 %5374, %v9189_v51   ;;  %v2724_v51 = vsub.f32 %v11472_v23, %v9039_v60  ;;  %v9223_v23 = vpop.permute.xlu2 %3298 }
 0x6e1   : > { %3355 = vperm.xlu0 %5375, %v9191_v34   ;;  %v2921_v34 = vmul.f32 1.442695, %v2726_v25  ;;  %v9212_v24 = vpop.eup %5840  ;;  %v2729_v25 = vsub.f32 %v11477_v45, %v9039_v60 }
 0x6e2   : > { %3349 = vperm.xlu1 %5376, %v9194_v3   ;;  %v2917_v41 = vmul.f32 1.442695, %v2724_v51  ;;  %11474 = vst [vmem:[#allocation144_spill] sm:$0xff] %v9212_v24  ;;  %v9215_v26 = vpop.eup %5842  ;;  %v11478_v3 = vld [vmem:[#allocation140_spill] sm:$0xff] }
 0x6e3   : > { %v9204_v40 = vpop.permute.xlu0 %3229  ;;  %11475 = vst [vmem:[#allocation73_spill] sm:$0xff] %v9215_v26  ;;  %5846 = vpow2.f32 %v2921_v34  ;;  %v9231_v11 = vpop.eup %5844 }
 0x6e4   : > { %v9208_v12 = vpop.permute.xlu1 %3223  ;;  %5848 = vpow2.f32 %v2917_v41  ;;  %11479 = vst [vmem:[#allocation48_spill] sm:$0xff] %v9231_v11  ;;  %v11482_v41 = vld [vmem:[#allocation186_spill] sm:$0xff] }
 0x6e5   : > { %5850 = vpow2.f32 %v2967_v59  ;;  %v2752_v45 = vsub.f32 %v11482_v41, %v9145_v44 }
 0x6e7   : > { %v2973_v41 = vmul.f32 1.442695, %v2752_v45  ;;  %v11490_v45 = vld [vmem:[#allocation126_spill] sm:$0xff] }
 0x6e8   : > { %3424 = vperm.xlu2 %5374, %v9210_v8   ;;  %v2727_v8 = vsub.f32 %v11478_v3, %v9039_v60  ;;  %v11483_v3 = vld [vmem:[#allocation124_spill] sm:$0xff]  ;;  %v9253_v59 = vpop.permute.xlu2 %3307 }
 0x6e9   : > { %3364 = vperm.xlu0 %5375, %v9212_v24   ;;  %v2927_v24 = vmul.f32 1.442695, %v2729_v25  ;;  %v2732_v27 = vsub.f32 %v11483_v3, %v9039_v60  ;;  %v11489_v3 = vld [vmem:[#allocation191_spill] sm:$0xff] }
 0x6ea   : > { %3358 = vperm.xlu1 %5376, %v9215_v26   ;;  %v2923_v58 = vmul.f32 1.442695, %v2727_v8  ;;  %v9233_v26 = vpop.eup %5846  ;;  %v11485_v8 = vld [vmem:[#allocation149_spill] sm:$0xff] }
 0x6eb   : > { %v9225_v51 = vpop.permute.xlu0 %3238  ;;  %11480 = vst [vmem:[#allocation30_spill] sm:$0xff] %v9233_v26  ;;  %v9236_v34 = vpop.eup %5848  ;;  %5852 = vpow2.f32 %v2927_v24  ;;  %v2933_v43 = vmul.f32 1.442695, %v2732_v27  ;;  %v2735_v27 = vsub.f32 %v11490_v45, %v9039_v60 }
 0x6ec   : > { %v9229_v61 = vpop.permute.xlu1 %3232  ;;  %11481 = vst [vmem:[#allocation76_spill] sm:$0xff] %v9236_v34  ;;  %5854 = vpow2.f32 %v2923_v58 }
 0x6ed   : > { %5856 = vpow2.f32 %v2973_v41 }
 0x6ee   : > { %5858 = vpow2.f32 %v2933_v43 }
 0x6f0   : > { %3433 = vperm.xlu2 %5374, %v9231_v11   ;;  %v2730_v11 = vsub.f32 %v11485_v8, %v9039_v60  ;;  %v9276_v52 = vpop.permute.xlu2 %3316 }
 0x6f1   : > { %3373 = vperm.xlu0 %5375, %v9233_v26   ;;  %v9251_v26 = vperm.slane %v8779_v5, 6 }
 0x6f2   : > { %3367 = vperm.xlu1 %5376, %v9236_v34   ;;  %v9255_v34 = vpop.eup %5850  ;;  %v2929_v24 = vmul.f32 1.442695, %v2730_v11  ;;  %v11492_v11 = vld [vmem:[#allocation34_spill] sm:$0xff] }
 0x6f3   : > { %v9244_v25 = vpop.permute.xlu0 %3247  ;;  %11486 = vst [vmem:[#allocation91_spill] sm:$0xff] %v9255_v34  ;;  %v9257_v29 = vpop.eup %5852  ;;  %v2755_v8 = vsub.f32 %v11489_v3, %v9251_v26 }
 0x6f4   : > { %11484 = vst [vmem:[#allocation55_spill] sm:$0xff] %v9244_v25  ;;  %v9248_v46 = vpop.permute.xlu1 %3241  ;;  %v9260_v58 = vpop.eup %5854  ;;  %5860 = vpow2.f32 %v2929_v24  ;;  %v11496_v24 = vld [vmem:[#allocation197_spill] sm:$0xff] }
 0x6f5   : > { %11487 = vst [vmem:[#allocation66_spill] sm:$0xff] %v9257_v29  ;;  %v2979_v55 = vmul.f32 1.442695, %v2755_v8  ;;  %v9274_v41 = vpop.eup %5856  ;;  %v2758_v45 = vsub.f32 %v11496_v24, %v9251_v26  ;;  %v11497_v8 = vld [vmem:[#allocation142_spill] sm:$0xff] }
 0x6f6   : > { %11488 = vst [vmem:[#allocation82_spill] sm:$0xff] %v9260_v58 }
 0x6f7   : > { %11493 = vst [vmem:[#allocation75_spill] sm:$0xff] %v9274_v41  ;;  %5862 = vpow2.f32 %v2979_v55  ;;  %v2985_v6 = vmul.f32 1.442695, %v2758_v45  ;;  %v11505_v45 = vld [vmem:[#allocation145_spill] sm:$0xff] }
 0x6f8   : > { %3442 = vperm.xlu2 %5374, %v9255_v34   ;;  %v2733_v34 = vsub.f32 %v11492_v11, %v9039_v60 }
 0x6f9   : > { %3382 = vperm.xlu0 %5375, %v9257_v29   ;;  %v2939_v29 = vmul.f32 1.442695, %v2735_v27  ;;  %v2738_v27 = vsub.f32 %v11497_v8, %v9039_v60  ;;  %v9302_v8 = vpop.permute.xlu2 %3325 }
 0x6fa   : > { %3376 = vperm.xlu1 %5376, %v9260_v58   ;;  %v2935_v3 = vmul.f32 1.442695, %v2733_v34  ;;  %v9278_v58 = vpop.eup %5858  ;;  %v11499_v34 = vld [vmem:[#allocation143_spill] sm:$0xff] }
 0x6fb   : > { %v9268_v28 = vpop.permute.xlu0 %3256  ;;  %11494 = vst [vmem:[#allocation85_spill] sm:$0xff] %v9278_v58  ;;  %v9281_v43 = vpop.eup %5860  ;;  %5864 = vpow2.f32 %v2939_v29 }
 0x6fc   : > { %11491 = vst [vmem:[#allocation113_spill] sm:$0xff] %v9268_v28  ;;  %v9272_v2 = vpop.permute.xlu1 %3250  ;;  %5866 = vpow2.f32 %v2935_v3 }
 0x6fd   : > { %11495 = vst [vmem:[#allocation129_spill] sm:$0xff] %v9281_v43  ;;  %v9295_v55 = vpop.eup %5862  ;;  %5868 = vpow2.f32 %v2985_v6 }
 0x6fe   : > { %11501 = vst [vmem:[#allocation133_spill] sm:$0xff] %v9295_v55 }
 0x700   : > { %3451 = vperm.xlu2 %5374, %v9274_v41   ;;  %v2736_v41 = vsub.f32 %v11499_v34, %v9039_v60  ;;  %v11504_v60 = vld [vmem:[#allocation26_spill] sm:$0xff] }
 0x701   : > { %3391 = vperm.xlu0 %5375, %v9278_v58   ;;  %v2945_v58 = vmul.f32 1.442695, %v2738_v27  ;;  %v9297_v24 = vpop.eup %5864  ;;  %v2761_v3 = vsub.f32 %v11504_v60, %v9251_v26  ;;  %v11506_v34 = vld [vmem:[#allocation146_spill] sm:$0xff] }
 0x702   : > { %3385 = vperm.xlu1 %5376, %v9281_v43   ;;  %v2941_v28 = vmul.f32 1.442695, %v2736_v41  ;;  %11502 = vst [vmem:[#allocation95_spill] sm:$0xff] %v9297_v24  ;;  %v9300_v29 = vpop.eup %5866  ;;  %v2741_v41 = vsub.f32 %v11505_v45, %v9145_v44  ;;  %v2739_v43 = vsub.f32 %v11506_v34, %v9145_v44 }
 0x703   : > { %v9289_v11 = vpop.permute.xlu0 %3265  ;;  %11503 = vst [vmem:[#allocation115_spill] sm:$0xff] %v9300_v29  ;;  %5870 = vpow2.f32 %v2945_v58  ;;  %v9312_v56 = vpop.eup %5868 }
 0x704   : > { %11498 = vst [vmem:[#allocation84_spill] sm:$0xff] %v9289_v11  ;;  %v9293_v50 = vpop.permute.xlu1 %3259  ;;  %5872 = vpow2.f32 %v2941_v28  ;;  %v2991_v11 = vmul.f32 1.442695, %v2761_v3  ;;  %v2947_v6 = vmul.f32 1.442695, %v2739_v43  ;;  %v11510_v28 = vld [vmem:[#allocation47_spill] sm:$0xff]  ;;  %v3618_v3 = vperm.slane %v9147_v33, %v8282_v10 }
 0x705   : > { %11500 = vst [vmem:[#allocation98_spill] sm:$0xff] %v9293_v50  ;;  %v2951_v50 = vmul.f32 1.442695, %v2741_v41  ;;  %v2764_v45 = vsub.f32 %v11510_v28, %v9251_v26  ;;  %v11511_v43 = vld [vmem:[#allocation148_spill] sm:$0xff] }
 0x706   : > { %11507 = vst [vmem:[#allocation135_spill] sm:$0xff] %v9312_v56  ;;  %5874 = vpow2.f32 %v2991_v11  ;;  %v2744_v41 = vsub.f32 %v11511_v43, %v9145_v44  ;;  %v11512_v11 = vld [vmem:[#allocation152_spill] sm:$0xff] }
 0x707   : > { %5876 = vpow2.f32 %v2951_v50  ;;  %v2997_v39 = vmul.f32 1.442695, %v2764_v45 }
 0x708   : > { %3460 = vperm.xlu2 %5374, %v9295_v55   ;;  %5878 = vpow2.f32 %v2947_v6 }
 0x709   : > { %3400 = vperm.xlu0 %5375, %v9297_v24   ;;  %v9314_v24 = vpop.eup %5870  ;;  %5880 = vpow2.f32 %v2997_v39 }
 0x70a   : > { %3394 = vperm.xlu1 %5376, %v9300_v29   ;;  %11508 = vst [vmem:[#allocation101_spill] sm:$0xff] %v9314_v24  ;;  %v9318_v58 = vpop.eup %5872  ;;  %v2742_v29 = vsub.f32 %v11512_v11, %v9145_v44  ;;  %v11518_v11 = vld [vmem:[#allocation155_spill] sm:$0xff] }
 0x70b   : > { %v3275_v27 = vpop.permute.xlu0 %3274  ;;  %11509 = vst [vmem:[#allocation123_spill] sm:$0xff] %v9318_v58 }
 0x70c   : > { %v3269_v55 = vpop.permute.xlu1 %3268  ;;  %v3620_v34 = vperm.slane %v3275_v27, %v8293_v22  ;;  %v9335_v50 = vpop.eup %5874  ;;  %v2953_v4 = vmul.f32 1.442695, %v2742_v29  ;;  %v11517_v29 = vld [vmem:[#allocation151_spill] sm:$0xff] }
 0x70d   : > { %v3617_v60 = vperm.slane %v3269_v55, %v8279_v57  ;;  %v9328_v55 = vpop.permute.xlu2 %3334  ;;  %11513 = vst [vmem:[#allocation138_spill] sm:$0xff] %v9335_v50  ;;  %v9338_v25 = vpop.eup %5876 }
 0x70e   : > { %11514 = vst [vmem:[#allocation107_spill] sm:$0xff] %v9338_v25  ;;  %v9342_v6 = vpop.eup %5878 }
 0x70f   : > { %v3619_v28 = vsel %vm2349_vm1, %v3618_v3, %v3617_v60  ;;  %11515 = vst [vmem:[#allocation128_spill] sm:$0xff] %v9342_v6  ;;  %v3624_v60 = vperm.slane %v9170_v21, %v8298_v30  ;;  %v2747_v3 = vsub.f32 %v11517_v29, %v9145_v44 }
 0x710   : > { %3469 = vperm.xlu2 %5374, %v9312_v56   ;;  %v3621_v43 = vsel %vm2353_vm2, %v3620_v34, %v3619_v28  ;;  %v2745_v28 = vsub.f32 %v11518_v11, %v9145_v44 }
 0x711   : > { %3409 = vperm.xlu0 %5375, %v9314_v24  }
 0x712   : > { %3403 = vperm.xlu1 %5376, %v9318_v58   ;;  %v2957_v58 = vmul.f32 1.442695, %v2744_v41 }
 0x713   : > { %v3284_v56 = vpop.permute.xlu0 %3283 }
 0x714   : > { %v3278_v24 = vpop.permute.xlu1 %3277  ;;  %5882 = vpow2.f32 %v2957_v58  ;;  %v3626_v21 = vperm.slane %v3284_v56, %v8306_v38  ;;  %v3630_v56 = vperm.slane %v9196_v1, %v8329_v16 }
 0x715   : > { %v3622_v33 = vperm.slane %v3278_v24, %v8303_v13  ;;  %v11516_v24 = vld [vmem:[#allocation51_spill] sm:$0xff]  ;;  %5884 = vpow2.f32 %v2953_v4  ;;  %v9356_v39 = vpop.permute.xlu2 %3343 }
 0x716   : > { %v2767_v45 = vsub.f32 %v11516_v24, %v9251_v26 }
 0x717   : > { %v3623_v27 = vsel %vm2357_vm3, %v3622_v33, %v3621_v43 }
 0x718   : > { %3478 = vperm.xlu2 %5374, %v9335_v50   ;;  %v3625_v41 = vsel %vm2361_vm4, %v3624_v60, %v3623_v27  ;;  %v3003_v24 = vmul.f32 1.442695, %v2767_v45  ;;  %v2959_v60 = vmul.f32 1.442695, %v2745_v28  ;;  %v11522_v45 = vld [vmem:[#allocation61_spill] sm:$0xff] }
 0x719   : > { %3418 = vperm.xlu0 %5375, %v9338_v25   ;;  %v3627_v58 = vsel %vm2365_vm5, %v3626_v21, %v3625_v41  ;;  %v2963_v25 = vmul.f32 1.442695, %v2747_v3  ;;  %v2770_v3 = vsub.f32 %v11522_v45, %v9251_v26  ;;  %v11523_v41 = vld [vmem:[#allocation154_spill] sm:$0xff] }
 0x71a   : > { %3412 = vperm.xlu1 %5376, %v9342_v6   ;;  %v9360_v6 = vpop.eup %5880  ;;  %5886 = vpow2.f32 %v3003_v24  ;;  %v2750_v11 = vsub.f32 %v11523_v41, %v9145_v44  ;;  %v9381_v24 = vperm.slane %v8779_v5, 7  ;;  %v3636_v5 = vperm.slane %v9223_v23, %v8351_v35 }
 0x71b   : > { %v3293_v34 = vpop.permute.xlu0 %3292  ;;  %11519 = vst [vmem:[#allocation141_spill] sm:$0xff] %v9360_v6  ;;  %v9363_v4 = vpop.eup %5882  ;;  %5888 = vpow2.f32 %v2963_v25 }
 0x71c   : > { %v3287_v33 = vpop.permute.xlu1 %3286  ;;  %v9366_v29 = vpop.eup %5884  ;;  %5890 = vpow2.f32 %v2959_v60  ;;  %v3632_v1 = vperm.slane %v3293_v34, %v8334_v32 }
 0x71d   : > { %v3628_v43 = vperm.slane %v3287_v33, %v8312_v42  ;;  %11521 = vst [vmem:[#allocation29_spill] sm:$0xff] %v9366_v29  ;;  %v11524_v33 = vld [vmem:[#allocation158_spill] sm:$0xff] }
 0x71f   : > { %v3629_v27 = vsel %vm11520_vm12, %v3628_v43, %v3627_v58  ;;  %v2748_v43 = vsub.f32 %v11524_v33, %v9145_v44  ;;  %vm11530_vm12 = vcmask 720512  }
 0x720   : > { %3487 = vperm.xlu2 %5374, %v9360_v6   ;;  %v3631_v28 = vsel %vm10953_vm7, %v3630_v56, %v3629_v27  ;;  %v2969_v6 = vmul.f32 1.442695, %v2750_v11  ;;  %v9385_v41 = vpop.eup %5886  ;;  %v9387_v27 = vpop.permute.xlu2 %3352 }
 0x721   : > { %3427 = vperm.xlu0 %5375, %v9363_v4   ;;  %v3633_v25 = vsel %vm10950_vm8, %v3632_v1, %v3631_v28  ;;  %11525 = vst [vmem:[#allocation28_spill] sm:$0xff] %v9385_v41  ;;  %v2965_v56 = vmul.f32 1.442695, %v2748_v43  ;;  %v9390_v33 = vpop.eup %5888  ;;  %v11529_v28 = vld [vmem:[#allocation157_spill] sm:$0xff] }
 0x722   : > { %3421 = vperm.xlu1 %5376, %v9366_v29   ;;  %v3009_v29 = vmul.f32 1.442695, %v2770_v3  ;;  %11526 = vst [vmem:[#allocation147_spill] sm:$0xff] %v9390_v33  ;;  %v9393_v34 = vpop.eup %5890  ;;  %v11528_v3 = vld [vmem:[#allocation71_spill] sm:$0xff]  ;;  %v2753_v43 = vsub.f32 %v11529_v28, %v9145_v44 }
 0x723   : > { %v3302_v21 = vpop.permute.xlu0 %3301  ;;  %11527 = vst [vmem:[#allocation64_spill] sm:$0xff] %v9393_v34  ;;  %v2773_v11 = vsub.f32 %v11528_v3, %v9381_v24 }
 0x724   : > { %v3296_v58 = vpop.permute.xlu1 %3295  ;;  %5892 = vpow2.f32 %v3009_v29  ;;  %v3638_v23 = vperm.slane %v3302_v21, %v8363_v20  ;;  %v3642_v21 = vperm.slane %v9253_v59, %v8377_v9  ;;  %v11538_v59 = vld [vmem:[#allocation163_spill] sm:$0xff] }
 0x725   : > { %v3634_v45 = vperm.slane %v3296_v58, %v8338_v15  ;;  %5894 = vpow2.f32 %v2969_v6 }
 0x726   : > { %5896 = vpow2.f32 %v2965_v56 }
 0x727   : > { %v3635_v60 = vsel %vm10949_vm9, %v3634_v45, %v3633_v25  ;;  %v11531_v45 = vld [vmem:[#allocation160_spill] sm:$0xff] }
 0x728   : > { %3496 = vperm.xlu2 %5374, %v9385_v41   ;;  %v3637_v1 = vsel %vm11530_vm12, %v3636_v5, %v3635_v60  ;;  %v2751_v25 = vsub.f32 %v11531_v45, %v9145_v44  ;;  %v3015_v41 = vmul.f32 1.442695, %v2773_v11  ;;  %v9419_v5 = vpop.permute.xlu2 %3361 }
 0x729   : > { %3436 = vperm.xlu0 %5375, %v9390_v33   ;;  %v3639_v3 = vsel %vm11532_vm6, %v3638_v23, %v3637_v1  ;;  %v2754_v23 = vsub.f32 %v11538_v59, %v9145_v44  ;;  %v11539_v44 = vld [vmem:[#allocation90_spill] sm:$0xff]  ;;  %vm11549_vm6 = vcmask 458112  }
 0x72a   : > { %3430 = vperm.xlu1 %5376, %v9393_v34   ;;  %v2975_v34 = vmul.f32 1.442695, %v2753_v43  ;;  %v9409_v6 = vpop.eup %5892  ;;  %v2971_v50 = vmul.f32 1.442695, %v2751_v25  ;;  %5898 = vpow2.f32 %v3015_v41  ;;  %v11537_v43 = vld [vmem:[#allocation159_spill] sm:$0xff]  ;;  %vm11554_vm12 = vmmov %vm11549_vm6 }
 0x72b   : > { %v3311_v58 = vpop.permute.xlu0 %3310  ;;  %11533 = vst [vmem:[#allocation39_spill] sm:$0xff] %v9409_v6  ;;  %v9412_v60 = vpop.eup %5894  ;;  %v2756_v1 = vsub.f32 %v11537_v43, %v9251_v26 }
 0x72c   : > { %v3305_v33 = vpop.permute.xlu1 %3304  ;;  %v9415_v56 = vpop.eup %5896  ;;  %5900 = vpow2.f32 %v2975_v34 }
 0x72d   : > { %v3640_v29 = vperm.slane %v3305_v33, %v8369_v14  ;;  %11535 = vst [vmem:[#allocation150_spill] sm:$0xff] %v9415_v56  ;;  %v11536_v33 = vld [vmem:[#allocation77_spill] sm:$0xff]  ;;  %5902 = vpow2.f32 %v2971_v50  ;;  %v2977_v50 = vmul.f32 1.442695, %v2754_v23 }
 0x72e   : > { %v2776_v11 = vsub.f32 %v11536_v33, %v9381_v24  ;;  %v3587_v33 = vperm.slane %v9208_v12, %v8282_v10  ;;  %v11541_v12 = vld [vmem:[#allocation162_spill] sm:$0xff] }
 0x72f   : > { %v3641_v28 = vsel %vm11534_vm10, %v3640_v29, %v3639_v3  ;;  %v3644_v29 = vperm.slane %v3311_v58, %v8397_v36  ;;  %vm11551_vm10 = vmmov %vm11549_vm6 }
 0x730   : > { %3505 = vperm.xlu2 %5374, %v9409_v6   ;;  %v3643_v45 = vsel %vm10948_vm13, %v3642_v21, %v3641_v28  ;;  %v3021_v6 = vmul.f32 1.442695, %v2776_v11  ;;  %v9435_v43 = vpop.eup %5898  ;;  %v2779_v21 = vsub.f32 %v11539_v44, %v9381_v24  ;;  %v3586_v11 = vperm.slane %v9183_v37, %v8279_v57 }
 0x731   : > { %3445 = vperm.xlu0 %5375, %v9412_v60   ;;  %v3645_v34 = vsel %vm10947_vm14, %v3644_v29, %v3643_v45  ;;  %v2759_v45 = vsub.f32 %v11541_v12, %v9251_v26  ;;  %v3589_v37 = vperm.slane %v9015_v19, %v8293_v22  ;;  %v9457_v29 = vpop.permute.xlu2 %3370  ;;  %v3555_v19 = vperm.slane %v9036_v53, %v8279_v57 }
 0x732   : > { %3439 = vperm.xlu1 %5376, %v9415_v56   ;;  %v2981_v56 = vmul.f32 1.442695, %v2756_v1  ;;  %v9442_v58 = vpop.eup %5900  ;;  %5904 = vpow2.f32 %v3021_v6  ;;  %v3588_v59 = vsel %vm2349_vm1, %v3587_v33, %v3586_v11  ;;  %v3556_v6 = vperm.slane %v9032_v47, %v8282_v10 }
 0x733   : > { %v3320_v25 = vpop.permute.xlu0 %3319  ;;  %11540 = vst [vmem:[#allocation74_spill] sm:$0xff] %v9442_v58  ;;  %v9449_v1 = vpop.eup %5902  ;;  %v2987_v11 = vmul.f32 1.442695, %v2759_v45  ;;  %v3558_v47 = vperm.slane %v9060_v0, %v8293_v22  ;;  %v3653_v45 = vperm.slane %v9302_v8, %v8303_v13  ;;  %v11546_v8 = vld [vmem:[#allocation169_spill] sm:$0xff] }
 0x734   : > { %v3314_v3 = vpop.permute.xlu1 %3313  ;;  %11542 = vst [vmem:[#allocation86_spill] sm:$0xff] %v9449_v1  ;;  %v3649_v23 = vperm.slane %v3320_v25, %v8282_v10  ;;  %5906 = vpow2.f32 %v2981_v56  ;;  %v3648_v25 = vperm.slane %v9276_v52, %v8279_v57  ;;  %v11544_v56 = vld [vmem:[#allocation108_spill] sm:$0xff]  ;;  %v3591_v52 = vperm.slane %v9204_v40, %v8303_v13 }
 0x735   : > { %v3646_v41 = vperm.slane %v3314_v3, %v8401_v48  ;;  %5908 = vpow2.f32 %v2977_v50  ;;  %v2782_v12 = vsub.f32 %v11544_v56, %v9381_v24  ;;  %v3590_v50 = vsel %vm2353_vm2, %v3589_v37, %v3588_v59  ;;  %v11545_v37 = vld [vmem:[#allocation25_spill] sm:$0xff] }
 0x736   : > { %v3650_v56 = vsel %vm2349_vm1, %v3649_v23, %v3648_v25  ;;  %v3592_v0 = vsel %vm2357_vm3, %v3591_v52, %v3590_v50  ;;  %v2760_v23 = vsub.f32 %v11546_v8, %v9251_v26  ;;  %v3595_v52 = vperm.slane %v9041_v18, %v8306_v38  ;;  %v11548_v18 = vld [vmem:[#allocation120_spill] sm:$0xff] }
 0x737   : > { %v9438_v28 = vsel %vm10946_vm15, %v3646_v41, %v3645_v34  ;;  %v3027_v41 = vmul.f32 1.442695, %v2779_v21  ;;  %v11543_v34 = vld [vmem:[#allocation166_spill] sm:$0xff]  ;;  %v3593_v21 = vperm.slane %v9229_v61, %v8298_v30 }
 0x738   : > { %3514 = vperm.xlu2 %5374, %v9435_v43   ;;  %v2757_v44 = vsub.f32 %v11543_v34, %v9251_v26 }
 0x739   : > { %3454 = vperm.xlu0 %5375, %v9442_v58   ;;  %v9480_v58 = vpop.eup %5904  ;;  %5910 = vpow2.f32 %v3027_v41 }
 0x73a   : > { %3448 = vperm.xlu1 %5376, %v9449_v1   ;;  %v2983_v61 = vmul.f32 1.442695, %v2757_v44  ;;  %v9486_v1 = vpop.eup %5906  ;;  %v3560_v44 = vperm.slane %v9056_v63, %v8303_v13  ;;  %5912 = vpow2.f32 %v2987_v11  ;;  %v3033_v63 = vmul.f32 1.442695, %v2782_v12 }
 0x73b   : > { %v3329_v3 = vpop.permute.xlu0 %3328  ;;  %v9493_v25 = vpop.eup %5908  ;;  %v3597_v11 = vperm.slane %v9225_v51, %v8312_v42 }
 0x73c   : > { %v3323_v33 = vpop.permute.xlu1 %3322  ;;  %v3655_v53 = vperm.slane %v3329_v3, %v8298_v30  ;;  %11547 = vst [vmem:[#allocation153_spill] sm:$0xff] %v9493_v25  ;;  %v3557_v3 = vsel %vm2349_vm1, %v3556_v6, %v3555_v19  ;;  %5914 = vpow2.f32 %v2983_v61  ;;  %v9517_v61 = vpop.permute.xlu2 %3379 }
 0x73d   : > { %v3651_v34 = vperm.slane %v3323_v33, %v8293_v22  ;;  %v2762_v33 = vsub.f32 %v11545_v37, %v9251_v26  ;;  %v3559_v41 = vsel %vm2353_vm2, %v3558_v47, %v3557_v3  ;;  %v3564_v47 = vperm.slane %v9077_v62, %v8306_v38  ;;  %v11550_v3 = vld [vmem:[#allocation33_spill] sm:$0xff] }
 0x73e   : > { %v2989_v62 = vmul.f32 1.442695, %v2760_v23  ;;  %5916 = vpow2.f32 %v3033_v63  ;;  %v3570_v63 = vperm.slane %v9123_v49, %v8334_v32 }
 0x73f   : > { %v3652_v59 = vsel %vm2353_vm2, %v3651_v34, %v3650_v56  ;;  %v3594_v34 = vsel %vm2361_vm4, %v3593_v21, %v3592_v0  ;;  %v3599_v21 = vperm.slane %v9248_v46, %v8329_v16  ;;  %v9520_v37 = vpop.eup %5910  ;;  %v3659_v0 = vperm.slane %v9328_v55, %v8312_v42 }
 0x740   : > { %v3654_v40 = vsel %vm2357_vm3, %v3653_v45, %v3652_v59  ;;  %3523 = vperm.xlu2 %5374, %v9480_v58   ;;  %v3562_v45 = vperm.slane %v9081_v17, %v8298_v30  ;;  %v3596_v19 = vsel %vm2365_vm5, %v3595_v52, %v3594_v34  ;;  %v2785_v59 = vsub.f32 %v11548_v18, %v9381_v24  ;;  %v9532_v34 = vpop.eup %5912  ;;  %v11555_v18 = vld [vmem:[#allocation55_spill] sm:$0xff] }
 0x741   : > { %3463 = vperm.xlu0 %5375, %v9486_v1   ;;  %v3656_v50 = vsel %vm2361_vm4, %v3655_v53, %v3654_v40  ;;  %v2993_v53 = vmul.f32 1.442695, %v2762_v33  ;;  %v3561_v17 = vsel %vm2357_vm3, %v3560_v44, %v3559_v41  ;;  %v3566_v33 = vperm.slane %v9102_v31, %v8312_v42  ;;  %v11552_v31 = vld [vmem:[#allocation36_spill] sm:$0xff] }
 0x742   : > { %3457 = vperm.xlu1 %5376, %v9493_v25   ;;  %v3563_v46 = vsel %vm2361_vm4, %v3562_v45, %v3561_v17  ;;  %v3598_v40 = vsel %vm11549_vm6, %v3597_v11, %v3596_v19  ;;  %v2765_v44 = vsub.f32 %v11550_v3, %v9251_v26  ;;  %v2763_v55 = vsub.f32 %v11552_v31, %v9251_v26  ;;  %v9539_v23 = vpop.eup %5914 }
 0x743   : > { %v3338_v6 = vpop.permute.xlu0 %3337  ;;  %v3600_v52 = vsel %vm10953_vm7, %v3599_v21, %v3598_v40  ;;  %11553 = vst [vmem:[#allocation83_spill] sm:$0xff] %v9539_v23  ;;  %v3568_v45 = vperm.slane %v9098_v7, %v8329_v16  ;;  %5918 = vpow2.f32 %v2993_v53  ;;  %v3039_v11 = vmul.f32 1.442695, %v2785_v59  ;;  %v11556_v53 = vld [vmem:[#allocation205_spill] sm:$0xff] }
 0x744   : > { %v3332_v56 = vpop.permute.xlu1 %3331  ;;  %v3661_v8 = vperm.slane %v3338_v6, %v8329_v16  ;;  %v3565_v6 = vsel %vm2365_vm5, %v3564_v47, %v3563_v46  ;;  %5920 = vpow2.f32 %v2989_v62  ;;  %v3603_v47 = vperm.slane %v11555_v18, %v8338_v15  ;;  %v11557_v59 = vld [vmem:[#allocation37_spill] sm:$0xff]  ;;  %v11565_v18 = vld [vmem:[#allocation98_spill] sm:$0xff] }
 0x745   : > { %v3657_v12 = vperm.slane %v3332_v56, %v8306_v38  ;;  %v3567_v21 = vsel %vm11554_vm12, %v3566_v33, %v3565_v6  ;;  %v2999_v49 = vmul.f32 1.442695, %v2765_v44  ;;  %v2995_v33 = vmul.f32 1.442695, %v2763_v55  ;;  %v11559_v55 = vld [vmem:[#allocation203_spill] sm:$0xff] }
 0x746   : > { %v3572_v40 = vperm.slane %v11556_v53, %v8338_v15  ;;  %v3665_v62 = vperm.slane %v9356_v39, %v8338_v15  ;;  %vm11558_vm6 = vcmask 720512   ;;  %5922 = vpow2.f32 %v3039_v11  ;;  %v11566_v11 = vld [vmem:[#allocation113_spill] sm:$0xff]  ;;  %v11567_v53 = vld [vmem:[#allocation80_spill] sm:$0xff] }
 0x747   : > { %v3658_v51 = vsel %vm2365_vm5, %v3657_v12, %v3656_v50  ;;  %v3601_v50 = vperm.slane %v9064_v54, %v8334_v32  ;;  %v3605_v54 = vperm.slane %v9272_v2, %v8351_v35  ;;  %v3569_v12 = vsel %vm10953_vm7, %v3568_v45, %v3567_v21  ;;  %v11562_v21 = vld [vmem:[#allocation171_spill] sm:$0xff] }
 0x748   : > { %v3660_v41 = vsel %vm11551_vm10, %v3659_v0, %v3658_v51  ;;  %3532 = vperm.xlu2 %5374, %v9520_v37   ;;  %v9559_v0 = vpop.eup %5916  ;;  %v3571_v2 = vsel %vm10950_vm8, %v3570_v63, %v3569_v12  ;;  %v3574_v51 = vperm.slane %v11557_v59, %v8351_v35  ;;  %vm11561_vm10 = vmmov %vm11558_vm6  ;;  %v2768_v63 = vsub.f32 %v11562_v21, %v9251_v26  ;;  %v11571_v21 = vld [vmem:[#allocation65_spill] sm:$0xff] }
 0x749   : > { %3472 = vperm.xlu0 %5375, %v9532_v34   ;;  %v3662_v19 = vsel %vm10953_vm7, %v3661_v8, %v3660_v41  ;;  %v3602_v56 = vsel %vm10950_vm8, %v3601_v50, %v3600_v52  ;;  %v9570_v52 = vpop.permute.xlu2 %3388  ;;  %v9574_v31 = vpop.eup %5918  ;;  %v3607_v50 = vperm.slane %v11559_v55, %v8363_v20  ;;  %vm11564_vm12 = vcmask 786112  }
 0x74a   : > { %3466 = vperm.xlu1 %5376, %v9539_v23   ;;  %v3604_v8 = vsel %vm10949_vm9, %v3603_v47, %v3602_v56  ;;  %v9580_v45 = vpop.eup %5920  ;;  %v3611_v47 = vperm.slane %v11565_v18, %v8377_v9  ;;  %5924 = vpow2.f32 %v2999_v49  ;;  %v3609_v12 = vperm.slane %v11566_v11, %v8369_v14  ;;  %v11569_v49 = vld [vmem:[#allocation114_spill] sm:$0xff] }
 0x74b   : > { %v3347_v7 = vpop.permute.xlu0 %3346  ;;  %v3606_v3 = vsel %vm11558_vm6, %v3605_v54, %v3604_v8  ;;  %11560 = vst [vmem:[#allocation100_spill] sm:$0xff] %v9580_v45  ;;  %v3573_v54 = vsel %vm10949_vm9, %v3572_v40, %v3571_v2  ;;  %5926 = vpow2.f32 %v2995_v33  ;;  %v3005_v59 = vmul.f32 1.442695, %v2768_v63 }
 0x74c   : > { %v3341_v17 = vpop.permute.xlu1 %3340  ;;  %v3667_v44 = vperm.slane %v3347_v7, %v8351_v35  ;;  %v3608_v7 = vsel %vm11564_vm12, %v3607_v50, %v3606_v3  ;;  %v9606_v55 = vpop.eup %5922  ;;  %v11570_v50 = vld [vmem:[#allocation207_spill] sm:$0xff] }
 0x74d   : > { %v3663_v46 = vperm.slane %v3341_v17, %v8334_v32  ;;  %v3575_v17 = vsel %vm11558_vm6, %v3574_v51, %v3573_v54  ;;  %v3580_v51 = vperm.slane %v11569_v49, %v8377_v9  ;;  %vm11572_vm6 = vmmov %vm11564_vm12  ;;  %5928 = vpow2.f32 %v3005_v59 }
 0x74f   : > { %v3664_v41 = vsel %vm10950_vm8, %v3663_v46, %v3662_v19  ;;  %v11563_v19 = vld [vmem:[#allocation175_spill] sm:$0xff] }
 0x750   : > { %v3666_v39 = vsel %vm10949_vm9, %v3665_v62, %v3664_v41  ;;  %3541 = vperm.xlu2 %5374, %v9559_v0   ;;  %v2766_v56 = vsub.f32 %v11563_v19, %v9251_v26  ;;  %v3576_v62 = vperm.slane %v11567_v53, %v8363_v20  ;;  %v3671_v41 = vperm.slane %v9387_v27, %v8369_v14  ;;  %v9614_v54 = vpop.eup %5924  ;;  %v11573_v27 = vld [vmem:[#allocation174_spill] sm:$0xff] }
 0x751   : > { %3481 = vperm.xlu0 %5375, %v9574_v31   ;;  %v3668_v6 = vsel %vm11561_vm10, %v3667_v44, %v3666_v39  ;;  %vm11568_vm10 = vcmask 851712   ;;  %v3613_v39 = vperm.slane %v11570_v50, %v8397_v36  ;;  %v3578_v19 = vperm.slane %v11571_v21, %v8369_v14  ;;  %v9626_v53 = vpop.permute.xlu2 %3397 }
 0x752   : > { %3475 = vperm.xlu1 %5376, %v9580_v45   ;;  %v3610_v40 = vsel %vm11568_vm10, %v3609_v12, %v3608_v7  ;;  %v3001_v3 = vmul.f32 1.442695, %v2766_v56  ;;  %v3577_v44 = vsel %vm11564_vm12, %v3576_v62, %v3575_v17  ;;  %v2771_v18 = vsub.f32 %v11573_v27, %v9381_v24  ;;  %v11574_v17 = vld [vmem:[#allocation38_spill] sm:$0xff]  ;;  %vm11575_vm12 = vmmov %vm11568_vm10 }
 0x753   : > { %v3356_v46 = vpop.permute.xlu0 %3355  ;;  %v3612_v33 = vsel %vm10948_vm13, %v3611_v47, %v3610_v40  ;;  %v9620_v47 = vpop.eup %5926  ;;  %v3582_v11 = vperm.slane %v11574_v17, %v8397_v36  ;;  %v3579_v12 = vsel %vm11575_vm12, %v3578_v19, %v3577_v44  ;;  %vm11588_vm12 = vcmask 458112  }
 0x754   : > { %v3350_v8 = vpop.permute.xlu1 %3349  ;;  %v3673_v63 = vperm.slane %v3356_v46, %v8377_v9  ;;  %v3614_v46 = vsel %vm10947_vm14, %v3613_v39, %v3612_v33  ;;  %v3581_v62 = vsel %vm10948_vm13, %v3580_v51, %v3579_v12  ;;  %5930 = vpow2.f32 %v3001_v3  ;;  %v9646_v27 = vpop.eup %5928 }
 0x755   : > { %v3669_v2 = vperm.slane %v3350_v8, %v8363_v20  ;;  %v11576_v8 = vld [vmem:[#allocation41_spill] sm:$0xff]  ;;  %v3583_v21 = vsel %vm10947_vm14, %v3582_v11, %v3581_v62 }
 0x756   : > { %v3584_v40 = vperm.slane %v11576_v8, %v8401_v48 }
 0x757   : > { %v3670_v56 = vsel %vm11572_vm6, %v3669_v2, %v3668_v6  ;;  %v11577_v2 = vld [vmem:[#allocation84_spill] sm:$0xff]  ;;  %vm11579_vm6 = vcmask 1041409  }
 0x758   : > { %v3672_v7 = vsel %vm11568_vm10, %v3671_v41, %v3670_v56  ;;  %3550 = vperm.xlu2 %5374, %v9606_v55   ;;  %v3615_v49 = vperm.slane %v11577_v2, %v8401_v48  ;;  %v11578_v41 = vld [vmem:[#allocation179_spill] sm:$0xff]  ;;  %v3585_v19 = vsel %vm10946_vm15, %v3584_v40, %v3583_v21  ;;  %v3011_v56 = vmul.f32 1.442695, %v2771_v18 }
 0x759   : > { %3490 = vperm.xlu0 %5375, %v9614_v54   ;;  %v3674_v6 = vsel %vm10948_vm13, %v3673_v63, %v3672_v7  ;;  %v2769_v33 = vsub.f32 %v11578_v41, %v9251_v26  ;;  %v3677_v63 = vperm.slane %v9419_v5, %v8401_v48  ;;  %vm11580_vm10 = vcmask 1042434   ;;  %v11581_v5 = vld [vmem:[#allocation178_spill] sm:$0xff] }
 0x75a   : > { %3484 = vperm.xlu1 %5376, %v9620_v47   ;;  %v3616_v50 = vsel %vm10946_vm15, %v3615_v49, %v3614_v46  ;;  %v9651_v11 = vpop.eup %5930  ;;  %5932 = vpow2.f32 %v3011_v56  ;;  %v2774_v18 = vsub.f32 %v11581_v5, %v9381_v24  ;;  %v9660_v46 = vpop.permute.xlu2 %3406  ;;  %v3682_v49 = vperm.slane %v9457_v29, %v8293_v22  ;;  %v11584_v29 = vld [vmem:[#allocation183_spill] sm:$0xff] }
 0x75b   : > { %v3365_v44 = vpop.permute.xlu0 %3364  ;;  %v3803_v59 = vsel %vm11579_vm6, %v3616_v50, %v3585_v19  ;;  %v3007_v7 = vmul.f32 1.442695, %v2769_v33  ;;  %v3688_v5 = vperm.slane %v9517_v61, %v8306_v38  ;;  %v11589_v61 = vld [vmem:[#allocation187_spill] sm:$0xff]  ;;  %vm11593_vm6 = vcmask 720512  }
 0x75c   : > { %v3359_v39 = vpop.permute.xlu1 %3358  ;;  %v3804_v26 = vsel %vm11580_vm10, %v9438_v28, %v3803_v59  ;;  %v11582_v28 = vld [vmem:[#allocation184_spill] sm:$0xff]  ;;  %v3679_v40 = vperm.slane %v3365_v44, %v8279_v57  ;;  %v3017_v41 = vmul.f32 1.442695, %v2774_v18  ;;  %vm11594_vm10 = vcmask 786112  }
 0x75d   : > { %v3675_v51 = vperm.slane %v3359_v39, %v8397_v36  ;;  %5934 = vpow2.f32 %v3007_v7  ;;  %v2772_v62 = vsub.f32 %v11582_v28, %v9381_v24  ;;  %v11585_v59 = vld [vmem:[#allocation188_spill] sm:$0xff] }
 0x75e   : > { %5936 = vpow2.f32 %v3017_v41  ;;  %v2780_v41 = vsub.f32 %v11589_v61, %v9381_v24 }
 0x75f   : > { %v3676_v3 = vsel %vm10947_vm14, %v3675_v51, %v3674_v6  ;;  %v3013_v39 = vmul.f32 1.442695, %v2772_v62 }
 0x760   : > { %v3678_v17 = vsel %vm10946_vm15, %v3677_v63, %v3676_v3  ;;  %v9670_v21 = vpop.eup %5932  ;;  %v2777_v63 = vsub.f32 %v11584_v29, %v9381_v24  ;;  %v2775_v3 = vsub.f32 %v11585_v59, %v9381_v24  ;;  %v3694_v29 = vperm.slane %v9570_v52, %v8334_v32  ;;  %v11591_v52 = vld [vmem:[#allocation192_spill] sm:$0xff] }
 0x761   : > { %v9654_v12 = vsel %vm10945_vm0, %v3678_v17, %v3804_v26  ;;  %3499 = vperm.xlu0 %5375, %v9646_v27   ;;  %11583 = vst [vmem:[#allocation156_spill] sm:$0xff] %v9670_v21  ;;  %5938 = vpow2.f32 %v3013_v39 }
 0x762   : > { %3493 = vperm.xlu1 %5376, %v9651_v11   ;;  %v9682_v26 = vpop.permute.xlu2 %3415  ;;  %v3023_v18 = vmul.f32 1.442695, %v2777_v63  ;;  %v3019_v62 = vmul.f32 1.442695, %v2775_v3  ;;  %v3029_v63 = vmul.f32 1.442695, %v2780_v41 }
 0x763   : > { %v3374_v6 = vpop.permute.xlu0 %3373  ;;  %v9673_v19 = vpop.eup %5934 }
 0x764   : > { %v3368_v8 = vpop.permute.xlu1 %3367  ;;  %v3684_v33 = vperm.slane %v3374_v6, %v8303_v13  ;;  %5940 = vpow2.f32 %v3023_v18 }
 0x765   : > { %v3680_v2 = vperm.slane %v3368_v8, %v8282_v10  ;;  %v9689_v8 = vpop.eup %5936  ;;  %5942 = vpow2.f32 %v3019_v62 }
 0x766   : > { %11586 = vst [vmem:[#allocation92_spill] sm:$0xff] %v9689_v8  ;;  %5944 = vpow2.f32 %v3029_v63 }
 0x767   : > { %v3681_v50 = vsel %vm2349_vm1, %v3680_v2, %v3679_v40  ;;  %v9692_v2 = vpop.eup %5938 }
 0x768   : > { %v3683_v51 = vsel %vm2353_vm2, %v3682_v49, %v3681_v50  ;;  %11587 = vst [vmem:[#allocation118_spill] sm:$0xff] %v9692_v2  ;;  %v11590_v50 = vld [vmem:[#allocation193_spill] sm:$0xff] }
 0x769   : > { %3508 = vperm.xlu0 %5375, %v9670_v21   ;;  %v3685_v44 = vsel %vm2357_vm3, %v3684_v33, %v3683_v51  ;;  %v2778_v39 = vsub.f32 %v11590_v50, %v9381_v24 }
 0x76a   : > { %3502 = vperm.xlu1 %5376, %v9673_v19  }
 0x76b   : > { %v3383_v56 = vpop.permute.xlu0 %3382 }
 0x76c   : > { %v3377_v7 = vpop.permute.xlu1 %3376  ;;  %v3690_v6 = vperm.slane %v3383_v56, %v8312_v42  ;;  %v9704_v56 = vpop.permute.xlu2 %3424 }
 0x76d   : > { %v3686_v17 = vperm.slane %v3377_v7, %v8298_v30  ;;  %v3025_v7 = vmul.f32 1.442695, %v2778_v39 }
 0x76f   : > { %v3687_v28 = vsel %vm2361_vm4, %v3686_v17, %v3685_v44  ;;  %v9708_v17 = vpop.eup %5940  ;;  %5946 = vpow2.f32 %v3025_v7 }
 0x770   : > { %v3689_v40 = vsel %vm2365_vm5, %v3688_v5, %v3687_v28  ;;  %v9711_v18 = vpop.eup %5942  ;;  %v2783_v28 = vsub.f32 %v11591_v52, %v9381_v24 }
 0x771   : > { %3517 = vperm.xlu0 %5375, %v9689_v8   ;;  %v3691_v49 = vsel %vm11588_vm12, %v3690_v6, %v3689_v40  ;;  %v11592_v40 = vld [vmem:[#allocation89_spill] sm:$0xff]  ;;  %vm11595_vm12 = vcmask 851712  }
 0x772   : > { %3511 = vperm.xlu1 %5376, %v9692_v2   ;;  %v3035_v50 = vmul.f32 1.442695, %v2783_v28 }
 0x773   : > { %v3392_v33 = vpop.permute.xlu0 %3391 }
 0x774   : > { %v3386_v51 = vpop.permute.xlu1 %3385  ;;  %v3696_v59 = vperm.slane %v3392_v33, %v8338_v15  ;;  %v3700_v33 = vperm.slane %v9626_v53, %v8363_v20  ;;  %5948 = vpow2.f32 %v3035_v50  ;;  %v11596_v53 = vld [vmem:[#allocation198_spill] sm:$0xff] }
 0x775   : > { %v3692_v44 = vperm.slane %v3386_v51, %v8329_v16 }
 0x777   : > { %v3693_v3 = vsel %vm10953_vm7, %v3692_v44, %v3691_v49  ;;  %v2781_v49 = vsub.f32 %v11592_v40, %v9381_v24 }
 0x778   : > { %v3695_v5 = vsel %vm10950_vm8, %v3694_v29, %v3693_v3  ;;  %v9725_v29 = vpop.eup %5944  ;;  %v3434_v3 = vpop.permute.xlu2 %3433 }
 0x779   : > { %3526 = vperm.xlu0 %5375, %v9708_v17   ;;  %v3697_v6 = vsel %vm10949_vm9, %v3696_v59, %v3695_v5  ;;  %v3031_v44 = vmul.f32 1.442695, %v2781_v49  ;;  %v9728_v59 = vpop.eup %5946  ;;  %v2786_v5 = vsub.f32 %v11596_v53, %v9381_v24  ;;  %v3706_v49 = vperm.slane %v9660_v46, %v8397_v36 }
 0x77a   : > { %3520 = vperm.xlu1 %5376, %v9711_v18  }
 0x77b   : > { %v3401_v62 = vpop.permute.xlu0 %3400  ;;  %5950 = vpow2.f32 %v3031_v44 }
 0x77c   : > { %v3395_v61 = vpop.permute.xlu1 %3394  ;;  %v3702_v39 = vperm.slane %v3401_v62, %v8369_v14 }
 0x77d   : > { %v3698_v41 = vperm.slane %v3395_v61, %v8351_v35  ;;  %v3041_v61 = vmul.f32 1.442695, %v2786_v5  ;;  %v3711_v5 = vperm.slane %v9682_v26, %v8282_v10  ;;  %v3717_v26 = vperm.slane %v9704_v56, %v8298_v30 }
 0x77f   : > { %v3699_v51 = vsel %vm11593_vm6, %v3698_v41, %v3697_v6  ;;  %v11597_v6 = vld [vmem:[#allocation102_spill] sm:$0xff]  ;;  %5952 = vpow2.f32 %v3041_v61  ;;  %vm11598_vm6 = vcmask 458112  }
 0x780   : > { %v3701_v63 = vsel %vm11594_vm10, %v3700_v33, %v3699_v51  ;;  %v2784_v28 = vsub.f32 %v11597_v6, %v9381_v24  ;;  %v3443_v46 = vpop.permute.xlu2 %3442  ;;  %vm11599_vm10 = vcmask 720512  }
 0x781   : > { %3535 = vperm.xlu0 %5375, %v9725_v29   ;;  %v3703_v7 = vsel %vm11595_vm12, %v3702_v39, %v3701_v63  ;;  %v9742_v39 = vpop.eup %5948  ;;  %vm11600_vm12 = vcmask 786112  }
 0x782   : > { %3529 = vperm.xlu1 %5376, %v9728_v59   ;;  %v3037_v50 = vmul.f32 1.442695, %v2784_v28  ;;  %v9745_v44 = vpop.eup %5950 }
 0x783   : > { %v3410_v52 = vpop.permute.xlu0 %3409 }
 0x784   : > { %v3404_v62 = vpop.permute.xlu1 %3403  ;;  %v3708_v41 = vperm.slane %v3410_v52, %v8401_v48  ;;  %5954 = vpow2.f32 %v3037_v50 }
 0x785   : > { %v3704_v40 = vperm.slane %v3404_v62, %v8377_v9  ;;  %v9757_v28 = vpop.eup %5952 }
 0x787   : > { %v3705_v33 = vsel %vm10948_vm13, %v3704_v40, %v3703_v7 }
 0x788   : > { %v3707_v51 = vsel %vm10947_vm14, %v3706_v49, %v3705_v33 }
 0x789   : > { %v9748_v24 = vsel %vm10946_vm15, %v3708_v41, %v3707_v51  ;;  %3544 = vperm.xlu0 %5375, %v9742_v39   ;;  %v3452_v41 = vpop.permute.xlu2 %3451 }
 0x78a   : > { %3538 = vperm.xlu1 %5376, %v9745_v44   ;;  %v9760_v40 = vpop.eup %5954 }
 0x78b   : > { %v3419_v63 = vpop.permute.xlu0 %3418 }
 0x78c   : > { %v3713_v7 = vperm.slane %v3419_v63, %v8293_v22  ;;  %v3413_v53 = vpop.permute.xlu1 %3412 }
 0x78d   : > { %v3710_v52 = vperm.slane %v3413_v53, %v8279_v57 }
 0x78f   : > { %v3712_v6 = vsel %vm2349_vm1, %v3711_v5, %v3710_v52 }
 0x790   : > { %v3714_v62 = vsel %vm2353_vm2, %v3713_v7, %v3712_v6  ;;  %v3723_v6 = vperm.slane %v3434_v3, %v8329_v16 }
 0x791   : > { %3553 = vperm.xlu0 %5375, %v9757_v28   ;;  %v3461_v2 = vpop.permute.xlu2 %3460 }
 0x792   : > { %3547 = vperm.xlu1 %5376, %v9760_v40  }
 0x793   : > { %v3428_v49 = vpop.permute.xlu0 %3427 }
 0x794   : > { %v3422_v61 = vpop.permute.xlu1 %3421  ;;  %v3719_v50 = vperm.slane %v3428_v49, %v8306_v38 }
 0x795   : > { %v3715_v33 = vperm.slane %v3422_v61, %v8303_v13 }
 0x797   : > { %v3716_v51 = vsel %vm2357_vm3, %v3715_v33, %v3714_v62 }
 0x798   : > { %v3718_v63 = vsel %vm2361_vm4, %v3717_v26, %v3716_v51 }
 0x799   : > { %v3720_v7 = vsel %vm2365_vm5, %v3719_v50, %v3718_v63  ;;  %v3729_v50 = vperm.slane %v3443_v46, %v8351_v35 }
 0x79b   : > { %v3437_v53 = vpop.permute.xlu0 %3436 }
 0x79c   : > { %v3431_v5 = vpop.permute.xlu1 %3430  ;;  %v3725_v61 = vperm.slane %v3437_v53, %v8334_v32 }
 0x79d   : > { %v3721_v52 = vperm.slane %v3431_v5, %v8312_v42  ;;  %v3470_v5 = vpop.permute.xlu2 %3469 }
 0x79f   : > { %v3722_v8 = vsel %vm11598_vm6, %v3721_v52, %v3720_v7  ;;  %vm11601_vm6 = vcmask 851712  }
 0x7a0   : > { %v3724_v56 = vsel %vm10953_vm7, %v3723_v6, %v3722_v8  ;;  %v3735_v6 = vperm.slane %v3452_v41, %v8377_v9 }
 0x7a1   : > { %v3726_v49 = vsel %vm10950_vm8, %v3725_v61, %v3724_v56 }
 0x7a3   : > { %v3446_v62 = vpop.permute.xlu0 %3445 }
 0x7a4   : > { %v3440_v33 = vpop.permute.xlu1 %3439  ;;  %v3731_v51 = vperm.slane %v3446_v62, %v8363_v20 }
 0x7a5   : > { %v3727_v26 = vperm.slane %v3440_v33, %v8338_v15 }
 0x7a7   : > { %v3728_v63 = vsel %vm10949_vm9, %v3727_v26, %v3726_v49  ;;  %v3479_v49 = vpop.permute.xlu2 %3478  ;;  %v3741_v26 = vperm.slane %v3461_v2, %v8279_v57  ;;  %v3746_v2 = vperm.slane %v3470_v5, %v8303_v13 }
 0x7a8   : > { %v3730_v3 = vsel %vm11599_vm10, %v3729_v50, %v3728_v63  ;;  %vm11602_vm10 = vcmask 458112  }
 0x7a9   : > { %v3732_v53 = vsel %vm11600_vm12, %v3731_v51, %v3730_v3  ;;  %vm11603_vm12 = vcmask 720512  }
 0x7ab   : > { %v3455_v7 = vpop.permute.xlu0 %3454 }
 0x7ac   : > { %v3449_v52 = vpop.permute.xlu1 %3448  ;;  %v3737_v61 = vperm.slane %v3455_v7, %v8397_v36 }
 0x7ad   : > { %v3733_v8 = vperm.slane %v3449_v52, %v8369_v14 }
 0x7af   : > { %v3734_v56 = vsel %vm11601_vm6, %v3733_v8, %v3732_v53  ;;  %v3488_v53 = vpop.permute.xlu2 %3487  ;;  %vm11604_vm6 = vcmask 786112  }
 0x7b0   : > { %v3736_v46 = vsel %vm10948_vm13, %v3735_v6, %v3734_v56 }
 0x7b1   : > { %v3738_v62 = vsel %vm10947_vm14, %v3737_v61, %v3736_v46 }
 0x7b3   : > { %v3464_v33 = vpop.permute.xlu0 %3463 }
 0x7b4   : > { %v3742_v50 = vperm.slane %v3464_v33, %v8282_v10  ;;  %v3458_v51 = vpop.permute.xlu1 %3457 }
 0x7b5   : > { %v3739_v63 = vperm.slane %v3458_v51, %v8401_v48 }
 0x7b6   : > { %v3743_v3 = vsel %vm2349_vm1, %v3742_v50, %v3741_v26 }
 0x7b7   : > { %v3740_v41 = vsel %vm10946_vm15, %v3739_v63, %v3738_v62  ;;  %v3497_v56 = vpop.permute.xlu2 %3496 }
 0x7bb   : > { %v3473_v7 = vpop.permute.xlu0 %3472 }
 0x7bc   : > { %v3467_v52 = vpop.permute.xlu1 %3466  ;;  %v3748_v26 = vperm.slane %v3473_v7, %v8298_v30 }
 0x7bd   : > { %v3744_v6 = vperm.slane %v3467_v52, %v8293_v22  ;;  %v3752_v52 = vperm.slane %v3479_v49, %v8312_v42 }
 0x7bf   : > { %v3745_v46 = vsel %vm2353_vm2, %v3744_v6, %v3743_v3  ;;  %v3506_v25 = vpop.permute.xlu2 %3505 }
 0x7c0   : > { %v3747_v33 = vsel %vm2357_vm3, %v3746_v2, %v3745_v46  ;;  %v3758_v2 = vperm.slane %v3488_v53, %v8338_v15 }
 0x7c1   : > { %v3749_v50 = vsel %vm2361_vm4, %v3748_v26, %v3747_v33 }
 0x7c3   : > { %v3482_v8 = vpop.permute.xlu0 %3481 }
 0x7c4   : > { %v3476_v61 = vpop.permute.xlu1 %3475  ;;  %v3754_v5 = vperm.slane %v3482_v8, %v8329_v16 }
 0x7c5   : > { %v3750_v51 = vperm.slane %v3476_v61, %v8306_v38 }
 0x7c7   : > { %v3751_v63 = vsel %vm2365_vm5, %v3750_v51, %v3749_v50  ;;  %v3515_v26 = vpop.permute.xlu2 %3514 }
 0x7c8   : > { %v3753_v21 = vsel %vm11602_vm10, %v3752_v52, %v3751_v63  ;;  %v3764_v52 = vperm.slane %v3497_v56, %v8369_v14  ;;  %vm11605_vm10 = vcmask 851712   ;;  %v3806_v56 = vsel %vm10944_vm11, %v9748_v24, %v9654_v12 }
 0x7c9   : > { %v3755_v61 = vsel %vm10953_vm7, %v3754_v5, %v3753_v21 }
 0x7cb   : > { %v3491_v45 = vpop.permute.xlu0 %3490 }
 0x7cc   : > { %v3485_v62 = vpop.permute.xlu1 %3484  ;;  %v3760_v49 = vperm.slane %v3491_v45, %v8351_v35 }
 0x7cd   : > { %v3756_v3 = vperm.slane %v3485_v62, %v8334_v32 }
 0x7cf   : > { %v3757_v7 = vsel %vm10950_vm8, %v3756_v3, %v3755_v61 }
 0x7d0   : > { %v3759_v33 = vsel %vm10949_vm9, %v3758_v2, %v3757_v7  ;;  %v3770_v7 = vperm.slane %v3506_v25, %v8401_v48  ;;  %v3524_v2 = vpop.permute.xlu2 %3523  ;;  %v3775_v25 = vperm.slane %v3515_v26, %v8293_v22 }
 0x7d1   : > { %v3761_v62 = vsel %vm11603_vm12, %v3760_v49, %v3759_v33  ;;  %vm11606_vm12 = vcmask 1045509  }
 0x7d3   : > { %v3500_v6 = vpop.permute.xlu0 %3499 }
 0x7d4   : > { %v3494_v46 = vpop.permute.xlu1 %3493  ;;  %v3766_v53 = vperm.slane %v3500_v6, %v8377_v9  ;;  %v3807_v6 = vsel %vm11606_vm12, %v3740_v41, %v3806_v56  ;;  %v3781_v41 = vperm.slane %v3524_v2, %v8306_v38  ;;  %vm11609_vm12 = vcmask 720512  }
 0x7d5   : > { %v3762_v51 = vperm.slane %v3494_v46, %v8363_v20 }
 0x7d7   : > { %v3763_v8 = vsel %vm11604_vm6, %v3762_v51, %v3761_v62  ;;  %vm11607_vm6 = vcmask 1046534  }
 0x7d8   : > { %v3765_v21 = vsel %vm11605_vm10, %v3764_v52, %v3763_v8  ;;  %vm11608_vm10 = vcmask 458112  }
 0x7d9   : > { %v3767_v5 = vsel %vm10948_vm13, %v3766_v53, %v3765_v21  ;;  %v3533_v53 = vpop.permute.xlu2 %3532 }
 0x7db   : > { %v3509_v50 = vpop.permute.xlu0 %3508 }
 0x7dc   : > { %v3503_v63 = vpop.permute.xlu1 %3502  ;;  %v3772_v49 = vperm.slane %v3509_v50, %v8279_v57 }
 0x7dd   : > { %v3768_v3 = vperm.slane %v3503_v63, %v8397_v36 }
 0x7df   : > { %v3769_v45 = vsel %vm10947_vm14, %v3768_v3, %v3767_v5 }
 0x7e0   : > { %v3771_v51 = vsel %vm10946_vm15, %v3770_v7, %v3769_v45 }
 0x7e1   : > { %v3808_v62 = vsel %vm11607_vm6, %v3771_v51, %v3807_v6  ;;  %v3542_v51 = vpop.permute.xlu2 %3541  ;;  %vm11610_vm6 = vcmask 786112  }
 0x7e3   : > { %v3518_v46 = vpop.permute.xlu0 %3517 }
 0x7e4   : > { %v3512_v61 = vpop.permute.xlu1 %3511  ;;  %v3777_v5 = vperm.slane %v3518_v46, %v8303_v13  ;;  %v3787_v46 = vperm.slane %v3533_v53, %v8334_v32 }
 0x7e5   : > { %v3773_v33 = vperm.slane %v3512_v61, %v8282_v10 }
 0x7e7   : > { %v3774_v63 = vsel %vm2349_vm1, %v3773_v33, %v3772_v49 }
 0x7e8   : > { %v3776_v21 = vsel %vm2353_vm2, %v3775_v25, %v3774_v63 }
 0x7e9   : > { %v3778_v12 = vsel %vm2357_vm3, %v3777_v5, %v3776_v21 }
 0x7eb   : > { %v3527_v8 = vpop.permute.xlu0 %3526 }
 0x7ec   : > { %v3521_v52 = vpop.permute.xlu1 %3520  ;;  %v3783_v7 = vperm.slane %v3527_v8, %v8312_v42  ;;  %v3793_v8 = vperm.slane %v3542_v51, %v8363_v20 }
 0x7ed   : > { %v3779_v3 = vperm.slane %v3521_v52, %v8298_v30 }
 0x7ef   : > { %v3780_v24 = vsel %vm2361_vm4, %v3779_v3, %v3778_v12  ;;  %v3551_v3 = vpop.permute.xlu2 %3550 }
 0x7f0   : > { %v3782_v61 = vsel %vm2365_vm5, %v3781_v41, %v3780_v24 }
 0x7f1   : > { %v3784_v33 = vsel %vm11608_vm10, %v3783_v7, %v3782_v61  ;;  %vm11611_vm10 = vcmask 851712  }
 0x7f3   : > { %v3536_v50 = vpop.permute.xlu0 %3535 }
 0x7f4   : > { %v3530_v45 = vpop.permute.xlu1 %3529  ;;  %v3789_v2 = vperm.slane %v3536_v50, %v8338_v15 }
 0x7f5   : > { %v3785_v26 = vperm.slane %v3530_v45, %v8329_v16  ;;  %v3799_v45 = vperm.slane %v3551_v3, %v8397_v36 }
 0x7f7   : > { %v3786_v56 = vsel %vm10953_vm7, %v3785_v26, %v3784_v33 }
 0x7f8   : > { %v3788_v6 = vsel %vm10950_vm8, %v3787_v46, %v3786_v56 }
 0x7f9   : > { %v3790_v52 = vsel %vm10949_vm9, %v3789_v2, %v3788_v6 }
 0x7fb   : > { %v3545_v49 = vpop.permute.xlu0 %3544 }
 0x7fc   : > { %v3539_v63 = vpop.permute.xlu1 %3538  ;;  %v3795_v12 = vperm.slane %v3545_v49, %v8369_v14 }
 0x7fd   : > { %v3791_v25 = vperm.slane %v3539_v63, %v8351_v35 }
 0x7ff   : > { %v3792_v21 = vsel %vm11609_vm12, %v3791_v25, %v3790_v52  ;;  %vm11612_vm12 = vcmask 1047559  }
 0x800   : > { %v3794_v5 = vsel %vm11610_vm6, %v3793_v8, %v3792_v21 }
 0x801   : > { %v3796_v50 = vsel %vm11611_vm10, %v3795_v12, %v3794_v5 }
 0x803   : > { %v3554_v53 = vpop.permute.xlu0 %3553 }
 0x804   : > { %v3548_v24 = vpop.permute.xlu1 %3547  ;;  %v3801_v61 = vperm.slane %v3554_v53, %v8401_v48 }
 0x805   : > { %v3797_v41 = vperm.slane %v3548_v24, %v8377_v9 }
 0x807   : > { %v3798_v26 = vsel %vm10948_vm13, %v3797_v41, %v3796_v50 }
 0x808   : > { %v3800_v7 = vsel %vm10947_vm14, %v3799_v45, %v3798_v26 }
 0x809   : > { %v3802_v33 = vsel %vm10946_vm15, %v3801_v61, %v3800_v7 }
 0x80a   : > { %v3809_v51 = vsel %vm11612_vm12, %v3802_v33, %v3808_v62 }
 0x80b   : > { %3811 = vadd.xlane.f32.xlu1 %v3809_v51 }
 0x87e   : > { %v9859_v56 = vpop.xlane.xlu1 %3811 }
 0x87f   : > { %v3814_v46 = vperm.slane %v9859_v56, 0  ;;  %v3815_v49 = vperm.slane %v9859_v56, 1  ;;  %v3816_v6 = vperm.slane %v9859_v56, 2  ;;  %v9865_v62 = vperm.slane %v9859_v56, 3 }
 0x881   : > { %5956 = vrcp.f32 %v3814_v46  ;;  %v3841_v45 = vand.u32 2147483648, %v3814_v46  ;;  %v3871_v50 = vand.u32 2147483648, %v3815_v49  ;;  %vm3865_vm12 = vweird.f32 %v3815_v49 }
 0x882   : > { %5958 = vrcp.f32 %v3815_v49  ;;  %v3869_v26 = vand.u32 2147483647, %v3815_v49  ;;  %vm3835_vm11 = vweird.f32 %v3814_v46  ;;  %v3839_v7 = vand.u32 2147483647, %v3814_v46 }
 0x883   : > { %5960 = vrcp.f32 %v3816_v6  ;;  %vm3895_vm8 = vweird.f32 %v3816_v6  ;;  %v3899_v36 = vand.u32 2147483647, %v3816_v6 }
 0x884   : > { %5962 = vrcp.f32 %v9865_v62  ;;  %vm3870_vm14 = vcmp.eq.f32.partialorder %v3869_v26, 8.507059e+37  ;;  %vm3840_vm13 = vcmp.eq.f32.partialorder %v3839_v7, 8.507059e+37  ;;  %v11616_v7 = vld [vmem:[#allocation116_spill] sm:$0xff] }
 0x887   : > { %v5957_v63 = vpop.eup %5956 }
 0x888   : > { %v5959_v2 = vpop.eup %5958  ;;  %v3831_v25 = vmul.f32 %v5957_v63, %v3814_v46  ;;  %vm3836_vm10 = vweird.f32 %v5957_v63  ;;  %v11613_v46 = vld [vmem:[#allocation212_spill] sm:$0xff] }
 0x889   : > { %v5961_v52 = vpop.eup %5960  ;;  %v3861_v21 = vmul.f32 %v5959_v2, %v3815_v49  ;;  %vm3866_vm6 = vweird.f32 %v5959_v2  ;;  %vm3837_vm15 = vmor %vm3835_vm11, %vm3836_vm10  ;;  %v3901_v49 = vand.u32 2147483648, %v3816_v6 }
 0x88a   : > { %v3832_v8 = vsub.f32 1.0, %v3831_v25  ;;  %v3891_v3 = vmul.f32 %v5961_v52, %v3816_v6  ;;  %vm3867_vm0 = vmor %vm3865_vm12, %vm3866_vm6  ;;  %vm3896_vm9 = vweird.f32 %v5961_v52 }
 0x88b   : > { %v3862_v5 = vsub.f32 1.0, %v3861_v21  ;;  %v3872_v21 = vor.u32 1.1754944e-38, %v3871_v50  ;;  %vm3897_vm7 = vmor %vm3895_vm8, %vm3896_vm9  ;;  %v11615_v50 = vld [vmem:[#allocation110_spill] sm:$0xff]  ;;  %v3902_v26 = vor.u32 1.1754944e-38, %v3901_v49  ;;  %vm3900_vm8 = vcmp.eq.f32.partialorder %v3899_v36, 8.507059e+37  ;;  %v11619_v49 = vld [vmem:[#allocation181_spill] sm:$0xff] }
 0x88c   : > { %v3833_v12 = vmul.f32 %v5957_v63, %v3832_v8  ;;  %v3892_v53 = vsub.f32 1.0, %v3891_v3  ;;  %v3842_v8 = vor.u32 1.1754944e-38, %v3841_v45  ;;  %v11621_v36 = vld [vmem:[#allocation190_spill] sm:$0xff]  ;;  %vm3925_vm9 = vweird.f32 %v9865_v62 }
 0x88d   : > { %v3863_v24 = vmul.f32 %v5959_v2, %v3862_v5 }
 0x88e   : > { %v3834_v41 = vadd.f32 %v5957_v63, %v3833_v12  ;;  %v3893_v33 = vmul.f32 %v5961_v52, %v3892_v53  ;;  %v5963_v12 = vpop.eup %5962 }
 0x88f   : > { %v3864_v61 = vadd.f32 %v5959_v2, %v3863_v24 }
 0x890   : > { %v3838_v25 = vsel %vm3837_vm15, %v5957_v63, %v3834_v41  ;;  %v3894_v5 = vadd.f32 %v5961_v52, %v3893_v33  ;;  %v3921_v63 = vmul.f32 %v5963_v12, %v9865_v62  ;;  %v11614_v41 = vld [vmem:[#allocation180_spill] sm:$0xff] }
 0x891   : > { %v3868_v51 = vsel %vm3867_vm0, %v5959_v2, %v3864_v61  ;;  %v9870_v24 = vsel %vm3840_vm13, %v3842_v8, %v3838_v25 }
 0x892   : > { %v9868_v3 = vsel %vm3870_vm14, %v3872_v21, %v3868_v51  ;;  %v3898_v2 = vsel %vm3897_vm7, %v5961_v52, %v3894_v5  ;;  %v3846_v61 = vmul.f32 %v11615_v50, %v9870_v24  ;;  %v3847_v33 = vmul.f32 %v11616_v7, %v9870_v24  ;;  %v11617_v51 = vld [vmem:[#allocation97_spill] sm:$0xff]  ;;  %v11618_v21 = vld [vmem:[#allocation111_spill] sm:$0xff]  ;;  %v11620_v7 = vld [vmem:[#allocation232_spill] sm:$0xff] }
 0x893   : > { %v3880_v53 = vmul.f32 %v11613_v46, %v9868_v3  ;;  %v3881_v45 = vmul.f32 %v11614_v41, %v9868_v3  ;;  %v3844_v6 = vmul.f32 %v11617_v51, %v9870_v24  ;;  %v3845_v52 = vmul.f32 %v11618_v21, %v9870_v24 }
 0x894   : > { %v9885_v8 = vsel %vm3900_vm8, %v3902_v26, %v3898_v2  ;;  %v5382_v5 = vpack.i.bf16 %v3847_v33, %v3846_v61  ;;  %v3922_v46 = vsub.f32 1.0, %v3921_v63  ;;  %v11623_v61 = vld [vmem:[#allocation117_spill] sm:$0xff]  ;;  %v11624_v26 = vld [vmem:[#allocation119_spill] sm:$0xff]  ;;  %vm3926_vm7 = vweird.f32 %v5963_v12 }
 0x895   : > { %v5432_v25 = vpack.i.bf16 %v3881_v45, %v3880_v53  ;;  %v5377_v41 = vpack.i.bf16 %v3845_v52, %v3844_v6  ;;  %v3908_v50 = vmul.f32 %v11619_v49, %v9885_v8  ;;  %v3909_v48 = vmul.f32 %v11620_v7, %v9885_v8  ;;  %v11622_v45 = vld [vmem:[#allocation220_spill] sm:$0xff]  ;;  %vm3927_vm11 = vmor %vm3925_vm9, %vm3926_vm7 }
 0x896   : > { %5383 = vperm.xlu0 %5375, %v5382_v5   ;;  %v3850_v53 = vmul.f32 %v11621_v36, %v9870_v24  ;;  %v3851_v51 = vmul.f32 %v11622_v45, %v9870_v24  ;;  %v3923_v2 = vmul.f32 %v5963_v12, %v3922_v46  ;;  %v3848_v63 = vmul.f32 %v11623_v61, %v9870_v24  ;;  %v11625_v49 = vld [vmem:[#allocation200_spill] sm:$0xff]  ;;  %v11627_v36 = vld [vmem:[#allocation201_spill] sm:$0xff]  ;;  %v11628_v45 = vld [vmem:[#allocation78_spill] sm:$0xff] }
 0x897   : > { %5433 = vperm.xlu1 %5376, %v5432_v25   ;;  %5378 = vperm.xlu2 %5374, %v5377_v41   ;;  %v3849_v33 = vmul.f32 %v11624_v26, %v9870_v24  ;;  %v5467_v6 = vpack.i.bf16 %v3909_v48, %v3908_v50  ;;  %v9900_v25 = vperm.slane %v9859_v56, 4  ;;  %v3931_v41 = vand.u32 2147483648, %v9865_v62  ;;  %v11626_v48 = vld [vmem:[#allocation88_spill] sm:$0xff] }
 0x898   : > { %v5392_v21 = vpack.i.bf16 %v3851_v51, %v3850_v53  ;;  %v3924_v52 = vadd.f32 %v5963_v12, %v3923_v2  ;;  %v3929_v46 = vand.u32 2147483647, %v9865_v62  ;;  %v3914_v7 = vmul.f32 %v11625_v49, %v9885_v8  ;;  %v11629_v61 = vld [vmem:[#allocation168_spill] sm:$0xff] }
 0x899   : > { %v5387_v5 = vpack.i.bf16 %v3849_v33, %v3848_v63  ;;  %v3915_v50 = vmul.f32 %v11626_v48, %v9885_v8  ;;  %5964 = vrcp.f32 %v9900_v25  ;;  %v3854_v53 = vmul.f32 %v11627_v36, %v9870_v24  ;;  %v11630_v63 = vld [vmem:[#allocation196_spill] sm:$0xff] }
 0x89a   : > { %v3855_v51 = vmul.f32 %v11628_v45, %v9870_v24  ;;  %v3928_v2 = vsel %vm3927_vm11, %v5963_v12, %v3924_v52  ;;  %v3852_v62 = vmul.f32 %v11629_v61, %v9870_v24  ;;  %v3853_v26 = vmul.f32 %v11630_v63, %v9870_v24  ;;  %v11631_v36 = vld [vmem:[#allocation204_spill] sm:$0xff]  ;;  %v11632_v52 = vld [vmem:[#allocation63_spill] sm:$0xff] }
 0x89b   : > { %v3932_v33 = vor.u32 1.1754944e-38, %v3931_v41  ;;  %vm3930_vm13 = vcmp.eq.f32.partialorder %v3929_v46, 8.507059e+37  ;;  %v11633_v61 = vld [vmem:[#allocation176_spill] sm:$0xff]  ;;  %v11634_v41 = vld [vmem:[#allocation194_spill] sm:$0xff]  ;;  %vm3955_vm15 = vweird.f32 %v9900_v25 }
 0x89c   : > { %v5397_v49 = vpack.i.bf16 %v3853_v26, %v3852_v62  ;;  %v3858_v63 = vmul.f32 %v11633_v61, %v9870_v24  ;;  %v3859_v46 = vmul.f32 %v11634_v41, %v9870_v24  ;;  %v11639_v61 = vld [vmem:[#allocation87_spill] sm:$0xff] }
 0x89d   : > { %v3876_v41 = vmul.f32 %v11639_v61, %v9868_v3  ;;  %v11646_v61 = vld [vmem:[#allocation228_spill] sm:$0xff] }
 0x89e   : > { %5393 = vperm.xlu0 %5375, %v5392_v21   ;;  %v9918_v21 = vsel %vm3930_vm13, %v3932_v33, %v3928_v2  ;;  %v5412_v26 = vpack.i.bf16 %v3859_v46, %v3858_v63  ;;  %v11642_v63 = vld [vmem:[#allocation222_spill] sm:$0xff] }
 0x89f   : > { %5468 = vperm.xlu1 %5376, %v5467_v6   ;;  %5388 = vperm.xlu2 %5374, %v5387_v5   ;;  %v5482_v6 = vpack.i.bf16 %v3915_v50, %v3914_v7  ;;  %v5402_v5 = vpack.i.bf16 %v3855_v51, %v3854_v53  ;;  %v5965_v48 = vpop.eup %5964  ;;  %v3934_v12 = vmul.f32 %v11631_v36, %v9918_v21  ;;  %v11635_v50 = vld [vmem:[#allocation206_spill] sm:$0xff]  ;;  %v11636_v51 = vld [vmem:[#allocation233_spill] sm:$0xff] }
 0x8a0   : > { %v3935_v45 = vmul.f32 %v11632_v52, %v9918_v21  ;;  %v3951_v7 = vmul.f32 %v5965_v48, %v9900_v25  ;;  %v3856_v53 = vmul.f32 %v11635_v50, %v9870_v24  ;;  %v3857_v2 = vmul.f32 %v11636_v51, %v9870_v24  ;;  %v11638_v36 = vld [vmem:[#allocation93_spill] sm:$0xff]  ;;  %v11640_v50 = vld [vmem:[#allocation211_spill] sm:$0xff] }
 0x8a1   : > { %v3941_v52 = vmul.f32 %v11638_v36, %v9918_v21  ;;  %v3877_v9 = vmul.f32 %v11640_v50, %v9868_v3  ;;  %v3875_v46 = vmul.f32 %v11642_v63, %v9868_v3  ;;  %vm3956_vm14 = vweird.f32 %v5965_v48 }
 0x8a2   : > { %v5497_v62 = vpack.i.bf16 %v3935_v45, %v3934_v12  ;;  %v3952_v33 = vsub.f32 1.0, %v3951_v7  ;;  %v11641_v12 = vld [vmem:[#allocation210_spill] sm:$0xff]  ;;  %vm3957_vm0 = vmor %vm3955_vm15, %vm3956_vm14 }
 0x8a3   : > { %v3874_v45 = vmul.f32 %v11641_v12, %v9868_v3  ;;  %v5422_v51 = vpack.i.bf16 %v3877_v9, %v3876_v41  ;;  %v11645_v9 = vld [vmem:[#allocation105_spill] sm:$0xff]  ;;  %v3883_v41 = vmul.f32 %v11646_v61, %v9868_v3  ;;  %v11648_v12 = vld [vmem:[#allocation94_spill] sm:$0xff] }
 0x8a4   : > { %v3953_v24 = vmul.f32 %v5965_v48, %v3952_v33  ;;  %v3959_v33 = vand.u32 2147483647, %v9900_v25  ;;  %v11651_v61 = vld [vmem:[#allocation213_spill] sm:$0xff] }
 0x8a6   : > { %5403 = vperm.xlu0 %5375, %v5402_v5   ;;  %v11637_v5 = vld [vmem:[#allocation199_spill] sm:$0xff]  ;;  %vm3960_vm6 = vcmp.eq.f32.partialorder %v3959_v33, 8.507059e+37 }
 0x8a7   : > { %5483 = vperm.xlu1 %5376, %v5482_v6   ;;  %5398 = vperm.xlu2 %5374, %v5397_v49   ;;  %v5407_v6 = vpack.i.bf16 %v3857_v2, %v3856_v53  ;;  %v3940_v49 = vmul.f32 %v11637_v5, %v9918_v21  ;;  %v9946_v53 = vperm.slane %v9859_v56, 5  ;;  %v3954_v2 = vadd.f32 %v5965_v48, %v3953_v24  ;;  %v11647_v24 = vld [vmem:[#allocation234_spill] sm:$0xff] }
 0x8a9   : > { %v5512_v7 = vpack.i.bf16 %v3941_v52, %v3940_v49  ;;  %v11644_v49 = vld [vmem:[#allocation137_spill] sm:$0xff]  ;;  %5966 = vrcp.f32 %v9946_v53  ;;  %v3882_v52 = vmul.f32 %v11645_v9, %v9868_v3  ;;  %v3958_v50 = vsel %vm3957_vm0, %v5965_v48, %v3954_v2  ;;  %v11650_v2 = vld [vmem:[#allocation30_spill] sm:$0xff] }
 0x8aa   : > { %v3947_v36 = vmul.f32 %v11644_v49, %v9918_v21  ;;  %v11649_v49 = vld [vmem:[#allocation219_spill] sm:$0xff]  ;;  %vm3985_vm12 = vweird.f32 %v9946_v53 }
 0x8ae   : > { %5413 = vperm.xlu0 %5375, %v5412_v26   ;;  %v3961_v26 = vand.u32 2147483648, %v9900_v25  ;;  %v3878_v25 = vmul.f32 %v11647_v24, %v9868_v3  ;;  %v3886_v24 = vmul.f32 %v11651_v61, %v9868_v3  ;;  %v11657_v61 = vld [vmem:[#allocation209_spill] sm:$0xff] }
 0x8af   : > { %5498 = vperm.xlu1 %5376, %v5497_v62   ;;  %5408 = vperm.xlu2 %5374, %v5407_v6   ;;  %v5417_v62 = vpack.i.bf16 %v3875_v46, %v3874_v45  ;;  %v11643_v6 = vld [vmem:[#allocation227_spill] sm:$0xff]  ;;  %v3879_v45 = vmul.f32 %v11648_v12, %v9868_v3  ;;  %v9980_v12 = vperm.slane %v9859_v56, 6 }
 0x8b0   : > { %v3946_v5 = vmul.f32 %v11643_v6, %v9918_v21  ;;  %v3962_v63 = vor.u32 1.1754944e-38, %v3961_v26  ;;  %v5967_v6 = vpop.eup %5966  ;;  %v11652_v26 = vld [vmem:[#allocation215_spill] sm:$0xff] }
 0x8b1   : > { %v3887_v33 = vmul.f32 %v11652_v26, %v9868_v3  ;;  %5968 = vrcp.f32 %v9980_v12  ;;  %vm3986_vm10 = vweird.f32 %v5967_v6  ;;  %vm4015_vm11 = vweird.f32 %v9980_v12 }
 0x8b2   : > { %v5527_v46 = vpack.i.bf16 %v3947_v36, %v3946_v5  ;;  %v3981_v5 = vmul.f32 %v5967_v6, %v9946_v53  ;;  %v11653_v36 = vld [vmem:[#allocation208_spill] sm:$0xff]  ;;  %vm3987_vm8 = vmor %vm3985_vm12, %vm3986_vm10  ;;  %vm11706_vm12 = vcmask 458112  }
 0x8b6   : > { %5423 = vperm.xlu0 %5375, %v5422_v51   ;;  %v5437_v51 = vpack.i.bf16 %v3883_v41, %v3882_v52  ;;  %v3884_v52 = vmul.f32 %v11653_v36, %v9868_v3  ;;  %v11654_v41 = vld [vmem:[#allocation164_spill] sm:$0xff] }
 0x8b7   : > { %5513 = vperm.xlu1 %5376, %v5512_v7   ;;  %5418 = vperm.xlu2 %5374, %v5417_v62   ;;  %v9964_v7 = vsel %vm3960_vm6, %v3962_v63, %v3958_v50  ;;  %v5427_v62 = vpack.i.bf16 %v3879_v45, %v3878_v25  ;;  %v3885_v50 = vmul.f32 %v11654_v41, %v9868_v3  ;;  %v3982_v63 = vsub.f32 1.0, %v3981_v5  ;;  %v11660_v36 = vld [vmem:[#allocation224_spill] sm:$0xff] }
 0x8b8   : > { %v3966_v48 = vmul.f32 %v11649_v49, %v9964_v7  ;;  %v3967_v9 = vmul.f32 %v11650_v2, %v9964_v7  ;;  %v5447_v45 = vpack.i.bf16 %v3887_v33, %v3886_v24  ;;  %v11656_v49 = vld [vmem:[#allocation85_spill] sm:$0xff]  ;;  %v9996_v41 = vperm.slane %v9859_v56, 7  ;;  %v11661_v56 = vld [vmem:[#allocation46_spill] sm:$0xff] }
 0x8b9   : > { %v3973_v2 = vmul.f32 %v11656_v49, %v9964_v7  ;;  %v3983_v24 = vmul.f32 %v5967_v6, %v3982_v63  ;;  %v11659_v33 = vld [vmem:[#allocation185_spill] sm:$0xff]  ;;  %v3991_v63 = vand.u32 2147483648, %v9946_v53  ;;  %v3989_v49 = vand.u32 2147483647, %v9946_v53  ;;  %v11665_v53 = vld [vmem:[#allocation231_spill] sm:$0xff] }
 0x8ba   : > { %v5542_v25 = vpack.i.bf16 %v3967_v9, %v3966_v48  ;;  %v3904_v48 = vmul.f32 %v11657_v61, %v9885_v8  ;;  %v11658_v9 = vld [vmem:[#allocation172_spill] sm:$0xff]  ;;  %v3888_v5 = vmul.f32 %v11659_v33, %v9868_v3  ;;  %5970 = vrcp.f32 %v9996_v41  ;;  %v11663_v61 = vld [vmem:[#allocation81_spill] sm:$0xff] }
 0x8bb   : > { %v3905_v26 = vmul.f32 %v11658_v9, %v9885_v8  ;;  %v11664_v9 = vld [vmem:[#allocation226_spill] sm:$0xff]  ;;  %vm3990_vm7 = vcmp.eq.f32.partialorder %v3989_v49, 8.507059e+37  ;;  %vm4045_vm0 = vweird.f32 %v9996_v41 }
 0x8be   : > { %5438 = vperm.xlu0 %5375, %v5437_v51   ;;  %v11655_v51 = vld [vmem:[#allocation223_spill] sm:$0xff] }
 0x8bf   : > { %5528 = vperm.xlu1 %5376, %v5527_v46   ;;  %5428 = vperm.xlu2 %5374, %v5427_v62   ;;  %v5442_v46 = vpack.i.bf16 %v3885_v50, %v3884_v52  ;;  %v3972_v62 = vmul.f32 %v11655_v51, %v9964_v7  ;;  %v3889_v52 = vmul.f32 %v11660_v36, %v9868_v3  ;;  %v5969_v51 = vpop.eup %5968  ;;  %v11666_v36 = vld [vmem:[#allocation195_spill] sm:$0xff] }
 0x8c0   : > { %v3978_v3 = vmul.f32 %v11661_v56, %v9964_v7  ;;  %v4011_v33 = vmul.f32 %v5969_v51, %v9980_v12  ;;  %vm4016_vm9 = vweird.f32 %v5969_v51 }
 0x8c1   : > { %v5557_v50 = vpack.i.bf16 %v3973_v2, %v3972_v62  ;;  %v11662_v62 = vld [vmem:[#allocation101_spill] sm:$0xff]  ;;  %vm4017_vm13 = vmor %vm4015_vm11, %vm4016_vm9  ;;  %vm11713_vm9 = vcmask 654912   ;;  %vm11714_vm11 = vcmask 720512  }
 0x8c2   : > { %v3979_v2 = vmul.f32 %v11662_v62, %v9964_v7  ;;  %v5971_v62 = vpop.eup %5970 }
 0x8c3   : > { %vm4046_vm15 = vweird.f32 %v5971_v62 }
 0x8c4   : > { %vm4047_vm6 = vmor %vm4045_vm0, %vm4046_vm15  ;;  %vm11724_vm15 = vcmask 917312   ;;  %vm11725_vm0 = vcmask 982912  }
 0x8c6   : > { %5448 = vperm.xlu0 %5375, %v5447_v45   ;;  %v3984_v45 = vadd.f32 %v5967_v6, %v3983_v24 }
 0x8c7   : > { %5543 = vperm.xlu1 %5376, %v5542_v25   ;;  %5443 = vperm.xlu2 %5374, %v5442_v46   ;;  %v5457_v25 = vpack.i.bf16 %v3905_v26, %v3904_v48  ;;  %v5452_v46 = vpack.i.bf16 %v3889_v52, %v3888_v5  ;;  %v3910_v48 = vmul.f32 %v11663_v61, %v9885_v8  ;;  %v4012_v61 = vsub.f32 1.0, %v4011_v33 }
 0x8c8   : > { %v3911_v26 = vmul.f32 %v11664_v9, %v9885_v8  ;;  %v3988_v24 = vsel %vm3987_vm8, %v5967_v6, %v3984_v45  ;;  %v3906_v5 = vmul.f32 %v11665_v53, %v9885_v8  ;;  %v3907_v52 = vmul.f32 %v11666_v36, %v9885_v8  ;;  %v11667_v6 = vld [vmem:[#allocation54_spill] sm:$0xff] }
 0x8c9   : > { %v4041_v53 = vmul.f32 %v5971_v62, %v9996_v41  ;;  %vm11707_vm8 = vcmask 523712  }
 0x8ca   : > { %v5472_v56 = vpack.i.bf16 %v3911_v26, %v3910_v48  ;;  %v5462_v23 = vpack.i.bf16 %v3907_v52, %v3906_v5  ;;  %v4013_v48 = vmul.f32 %v5969_v51, %v4012_v61  ;;  %v11670_v26 = vld [vmem:[#allocation218_spill] sm:$0xff]  ;;  %v11672_v61 = vld [vmem:[#allocation91_spill] sm:$0xff] }
 0x8cb   : > { %v4042_v36 = vsub.f32 1.0, %v4041_v53  ;;  %v11673_v53 = vld [vmem:[#allocation225_spill] sm:$0xff] }
 0x8ce   : > { %5458 = vperm.xlu0 %5375, %v5457_v25   ;;  %v5572_v25 = vpack.i.bf16 %v3979_v2, %v3978_v3  ;;  %v11669_v3 = vld [vmem:[#allocation189_spill] sm:$0xff] }
 0x8cf   : > { %5558 = vperm.xlu1 %5376, %v5557_v50   ;;  %5453 = vperm.xlu2 %5374, %v5452_v46   ;;  %v3992_v50 = vor.u32 1.1754944e-38, %v3991_v63  ;;  %v11668_v63 = vld [vmem:[#allocation230_spill] sm:$0xff]  ;;  %v3917_v2 = vmul.f32 %v11669_v3, %v9885_v8 }
 0x8d0   : > { %v3916_v49 = vmul.f32 %v11668_v63, %v9885_v8  ;;  %v3936_v63 = vmul.f32 %v11673_v53, %v9918_v21 }
 0x8d1   : > { %v10015_v46 = vsel %vm3990_vm7, %v3992_v50, %v3988_v24  ;;  %v3912_v24 = vmul.f32 %v11670_v26, %v9885_v8  ;;  %v4014_v50 = vadd.f32 %v5969_v51, %v4013_v48  ;;  %v11675_v48 = vld [vmem:[#allocation79_spill] sm:$0xff]  ;;  %vm11711_vm7 = vcmask 589312  }
 0x8d2   : > { %v3998_v45 = vmul.f32 %v11667_v6, %v10015_v46  ;;  %v3999_v9 = vmul.f32 %v9363_v4, %v10015_v46  ;;  %v5487_v52 = vpack.i.bf16 %v3917_v2, %v3916_v49  ;;  %v4004_v6 = vmul.f32 %v11672_v61, %v10015_v46  ;;  %v11674_v49 = vld [vmem:[#allocation229_spill] sm:$0xff]  ;;  %v11678_v61 = vld [vmem:[#allocation131_spill] sm:$0xff] }
 0x8d3   : > { %v3937_v3 = vmul.f32 %v11674_v49, %v9918_v21  ;;  %v4018_v2 = vsel %vm4017_vm13, %v5969_v51, %v4014_v50  ;;  %v3918_v26 = vmul.f32 %v11675_v48, %v9885_v8  ;;  %v4049_v51 = vand.u32 2147483647, %v9996_v41  ;;  %v11681_v49 = vld [vmem:[#allocation40_spill] sm:$0xff] }
 0x8d4   : > { %v5587_v5 = vpack.i.bf16 %v3999_v9, %v3998_v45  ;;  %v4005_v45 = vmul.f32 %v9412_v60, %v10015_v46  ;;  %v4043_v9 = vmul.f32 %v5971_v62, %v4042_v36  ;;  %vm11715_vm13 = vcmask 786112  }
 0x8d5   : > { %v5502_v36 = vpack.i.bf16 %v3937_v3, %v3936_v63  ;;  %v11680_v63 = vld [vmem:[#allocation67_spill] sm:$0xff]  ;;  %v3939_v3 = vmul.f32 %v11681_v49, %v9918_v21  ;;  %vm4050_vm10 = vcmp.eq.f32.partialorder %v4049_v51, 8.507059e+37  ;;  %v11688_v49 = vld [vmem:[#allocation28_spill] sm:$0xff] }
 0x8d6   : > { %5473 = vperm.xlu0 %5375, %v5472_v56   ;;  %v4019_v56 = vand.u32 2147483647, %v9980_v12  ;;  %v4044_v60 = vadd.f32 %v5971_v62, %v4043_v9 }
 0x8d7   : > { %5573 = vperm.xlu1 %5376, %v5572_v25   ;;  %5463 = vperm.xlu2 %5374, %v5462_v23   ;;  %v11671_v23 = vld [vmem:[#allocation214_spill] sm:$0xff]  ;;  %v4021_v25 = vand.u32 2147483648, %v9980_v12  ;;  %v11676_v12 = vld [vmem:[#allocation217_spill] sm:$0xff] }
 0x8d8   : > { %v3913_v33 = vmul.f32 %v11671_v23, %v9885_v8  ;;  %vm4020_vm14 = vcmp.eq.f32.partialorder %v4019_v56, 8.507059e+37  ;;  %v4048_v56 = vsel %vm4047_vm6, %v5971_v62, %v4044_v60  ;;  %vm11726_vm6 = vcmask 1048512  }
 0x8d9   : > { %v4022_v23 = vor.u32 1.1754944e-38, %v4021_v25 }
 0x8da   : > { %v5477_v4 = vpack.i.bf16 %v3913_v33, %v3912_v24  ;;  %v3919_v24 = vmul.f32 %v11676_v12, %v9885_v8  ;;  %v5602_v33 = vpack.i.bf16 %v4005_v45, %v4004_v6  ;;  %v11677_v8 = vld [vmem:[#allocation133_spill] sm:$0xff]  ;;  %v3942_v6 = vmul.f32 %v11678_v61, %v9918_v21  ;;  %v11679_v45 = vld [vmem:[#allocation216_spill] sm:$0xff] }
 0x8db   : > { %v3943_v9 = vmul.f32 %v11679_v45, %v9918_v21  ;;  %v11687_v45 = vld [vmem:[#allocation141_spill] sm:$0xff] }
 0x8de   : > { %5488 = vperm.xlu0 %5375, %v5487_v52   ;;  %v4051_v52 = vand.u32 2147483648, %v9996_v41  ;;  %v3938_v41 = vmul.f32 %v11680_v63, %v9918_v21 }
 0x8df   : > { %5588 = vperm.xlu1 %5376, %v5587_v5   ;;  %5478 = vperm.xlu2 %5374, %v5477_v4   ;;  %v10045_v5 = vsel %vm4020_vm14, %v4022_v23, %v4018_v2  ;;  %v5492_v4 = vpack.i.bf16 %v3919_v24, %v3918_v26  ;;  %v5517_v26 = vpack.i.bf16 %v3943_v9, %v3942_v6  ;;  %v11682_v24 = vld [vmem:[#allocation73_spill] sm:$0xff]  ;;  %vm11720_vm14 = vcmask 851712  }
 0x8e0   : > { %v4024_v50 = vmul.f32 %v11677_v8, %v10045_v5  ;;  %v4025_v25 = vmul.f32 %v9486_v1, %v10045_v5  ;;  %v4052_v53 = vor.u32 1.1754944e-38, %v4051_v52  ;;  %v5507_v1 = vpack.i.bf16 %v3939_v3, %v3938_v41 }
 0x8e1   : > { %v4028_v62 = vmul.f32 %v9532_v34, %v10045_v5  ;;  %v3948_v23 = vmul.f32 %v11682_v24, %v9918_v21  ;;  %v10078_v8 = vmul.f32 %v9620_v47, %v10045_v5  ;;  %v10106_v9 = vmul.f32 %v11687_v45, %v10045_v5  ;;  %v11690_v24 = vld [vmem:[#allocation82_spill] sm:$0xff] }
 0x8e2   : > { %v10062_v2 = vsel %vm4050_vm10, %v4052_v53, %v4048_v56  ;;  %v5617_v48 = vpack.i.bf16 %v4025_v25, %v4024_v50  ;;  %v11686_v50 = vld [vmem:[#allocation138_spill] sm:$0xff]  ;;  %v10114_v63 = vmul.f32 %v9673_v19, %v10045_v5  ;;  %v10124_v3 = vmul.f32 %v11688_v49, %v10045_v5  ;;  %vm11736_vm10 = vmmov %vm11706_vm12 }
 0x8e3   : > { %v4056_v12 = vmul.f32 %v9435_v43, %v10062_v2  ;;  %v10082_v43 = vmul.f32 %v9708_v17, %v10062_v2  ;;  %v10086_v25 = vmul.f32 %v11686_v50, %v10045_v5  ;;  %v10090_v56 = vmul.f32 %v9711_v18, %v10062_v2 }
 0x8e4   : > { %v10102_v6 = vmul.f32 %v9725_v29, %v10062_v2  ;;  %v10120_v29 = vmul.f32 %v9742_v39, %v10062_v2  ;;  %v10138_v39 = vmul.f32 %v9760_v40, %v10062_v2  ;;  %v4034_v45 = vmul.f32 %v9614_v54, %v10045_v5 }
 0x8e5   : > { %v5632_v61 = vpack.i.bf16 %v4028_v62, %v4056_v12  ;;  %v5652_v47 = vpack.i.bf16 %v10078_v8, %v10082_v43  ;;  %v5642_v17 = vpack.i.bf16 %v10086_v25, %v10090_v56  ;;  %v11745_v43 = vld [vmem:[#allocation8_spill] sm:$0xff] }
 0x8e6   : > { %5503 = vperm.xlu0 %5375, %v5502_v36   ;;  %v11684_v36 = vld [vmem:[#allocation45_spill] sm:$0xff]  ;;  %v5682_v62 = vpack.i.bf16 %v10114_v63, %v10120_v29 }
 0x8e7   : > { %5603 = vperm.xlu1 %5376, %v5602_v33   ;;  %5493 = vperm.xlu2 %5374, %v5492_v4   ;;  %v11683_v33 = vld [vmem:[#allocation202_spill] sm:$0xff]  ;;  %v3944_v52 = vmul.f32 %v11684_v36, %v9918_v21  ;;  %v11761_v29 = vld [vmem:[#allocation49_spill] sm:$0xff] }
 0x8e8   : > { %v3949_v60 = vmul.f32 %v11683_v33, %v9918_v21  ;;  %v11685_v4 = vld [vmem:[#allocation62_spill] sm:$0xff]  ;;  %v11691_v33 = vld [vmem:[#allocation221_spill] sm:$0xff] }
 0x8e9   : > { %v3945_v51 = vmul.f32 %v11685_v4, %v9918_v21  ;;  %v10094_v21 = vmul.f32 %v9651_v11, %v10045_v5  ;;  %v10110_v11 = vmul.f32 %v9728_v59, %v10062_v2  ;;  %v10128_v59 = vmul.f32 %v9745_v44, %v10062_v2 }
 0x8ea   : > { %v5532_v18 = vpack.i.bf16 %v3949_v60, %v3948_v23  ;;  %v4059_v44 = vmul.f32 %v9480_v58, %v10062_v2  ;;  %v3968_v23 = vmul.f32 %v11690_v24, %v9964_v7  ;;  %v3969_v40 = vmul.f32 %v11691_v33, %v9964_v7  ;;  %v11693_v58 = vld [vmem:[#allocation76_spill] sm:$0xff] }
 0x8eb   : > { %v5522_v53 = vpack.i.bf16 %v3945_v51, %v3944_v52  ;;  %v5667_v41 = vpack.i.bf16 %v10094_v21, %v10102_v6  ;;  %v5657_v19 = vpack.i.bf16 %v10106_v9, %v10110_v11  ;;  %v5672_v12 = vpack.i.bf16 %v10124_v3, %v10128_v59  ;;  %v11754_v21 = vld [vmem:[#allocation52_spill] sm:$0xff] }
 0x8ec   : > { %v3965_v4 = vmul.f32 %v11693_v58, %v9964_v7  ;;  %v5547_v50 = vpack.i.bf16 %v3969_v40, %v3968_v23  ;;  %v11697_v23 = vld [vmem:[#allocation129_spill] sm:$0xff]  ;;  %v11755_v6 = vld [vmem:[#allocation60_spill] sm:$0xff] }
 0x8ed   : > { %v3971_v40 = vmul.f32 %v11697_v23, %v9964_v7 }
 0x8ee   : > { %5518 = vperm.xlu0 %5375, %v5517_v26  }
 0x8ef   : > { %5618 = vperm.xlu1 %5376, %v5617_v48   ;;  %5508 = vperm.xlu2 %5374, %v5507_v1   ;;  %v11689_v48 = vld [vmem:[#allocation39_spill] sm:$0xff]  ;;  %v4031_v1 = vmul.f32 %v9574_v31, %v10045_v5  ;;  %v11692_v31 = vld [vmem:[#allocation144_spill] sm:$0xff] }
 0x8f0   : > { %v10134_v26 = vmul.f32 %v11689_v48, %v10045_v5  ;;  %v3964_v52 = vmul.f32 %v11692_v31, %v9964_v7  ;;  %v11695_v48 = vld [vmem:[#allocation27_spill] sm:$0xff] }
 0x8f1   : > { %v5379_v34 = vpop.permute.xlu2 %5378  ;;  %v5647_v51 = vpack.i.bf16 %v4031_v1, %v4059_v44  ;;  %v3975_v24 = vmul.f32 %v11695_v48, %v9964_v7  ;;  %v11696_v1 = vld [vmem:[#allocation66_spill] sm:$0xff] }
 0x8f2   : > { %v3970_v44 = vmul.f32 %v11696_v1, %v9964_v7  ;;  %v5380_v54 = vunpack.i.l.bf16 %v5379_v34 }
 0x8f6   : > { %5533 = vperm.xlu0 %5375, %v5532_v18   ;;  %v4062_v18 = vmul.f32 %v9520_v37, %v10062_v2  ;;  %v5552_v37 = vpack.i.bf16 %v3971_v40, %v3970_v44 }
 0x8f7   : > { %5633 = vperm.xlu1 %5376, %v5632_v61   ;;  %5523 = vperm.xlu2 %5374, %v5522_v53   ;;  %v5537_v61 = vpack.i.bf16 %v3965_v4, %v3964_v52  ;;  %v11694_v53 = vld [vmem:[#allocation115_spill] sm:$0xff]  ;;  %v5381_v52 = vunpack.i.h.bf16 %v5379_v34  ;;  %v4037_v4 = vmul.f32 %v9646_v27, %v10045_v5  ;;  %v11699_v34 = vld [vmem:[#allocation53_spill] sm:$0xff] }
 0x8f8   : > { %v3974_v49 = vmul.f32 %v11694_v53, %v9964_v7  ;;  %v5662_v31 = vpack.i.bf16 %v4034_v45, %v4062_v18  ;;  %v11698_v45 = vld [vmem:[#allocation128_spill] sm:$0xff]  ;;  %v11700_v27 = vld [vmem:[#allocation95_spill] sm:$0xff] }
 0x8f9   : > { %v5389_v36 = vpop.permute.xlu2 %5388  ;;  %v3994_v18 = vmul.f32 %v11698_v45, %v10015_v46  ;;  %v3976_v44 = vmul.f32 %v11700_v27, %v9964_v7 }
 0x8fa   : > { %v5562_v58 = vpack.i.bf16 %v3975_v24, %v3974_v49  ;;  %v3995_v49 = vmul.f32 %v11699_v34, %v10015_v46  ;;  %v5390_v40 = vunpack.i.l.bf16 %v5389_v36  ;;  %v5391_v34 = vunpack.i.h.bf16 %v5389_v36  ;;  %v11704_v36 = vld [vmem:[#allocation107_spill] sm:$0xff] }
 0x8fc   : > { %v4141_v27 = vperm.slane %v5390_v40, %v8298_v30 }
 0x8fe   : > { %5548 = vperm.xlu0 %5375, %v5547_v50   ;;  %v4135_v50 = vperm.slane %v5381_v52, %v8282_v10 }
 0x8ff   : > { %5648 = vperm.xlu1 %5376, %v5647_v51   ;;  %5538 = vperm.xlu2 %5374, %v5537_v61   ;;  %v4065_v51 = vmul.f32 %v9559_v0, %v10062_v2  ;;  %v4134_v61 = vperm.slane %v5380_v54, %v8279_v57  ;;  %v11701_v0 = vld [vmem:[#allocation123_spill] sm:$0xff] }
 0x900   : > { %v3977_v23 = vmul.f32 %v11701_v0, %v9964_v7  ;;  %v4068_v7 = vmul.f32 %v9606_v55, %v10062_v2  ;;  %v11705_v55 = vld [vmem:[#allocation29_spill] sm:$0xff] }
 0x901   : > { %v10166_v33 = vpop.permute.xlu2 %5398  ;;  %v5677_v54 = vpack.i.bf16 %v4037_v4, %v4065_v51  ;;  %v4069_v4 = vmul.f32 %v9757_v28, %v10062_v2  ;;  %v3997_v40 = vmul.f32 %v11705_v55, %v10015_v46  ;;  %v4143_v28 = vperm.slane %v5391_v34, %v8306_v38  ;;  %v11712_v55 = vld [vmem:[#allocation150_spill] sm:$0xff] }
 0x906   : > { %5563 = vperm.xlu0 %5375, %v5562_v58   ;;  %v4136_v58 = vsel %vm2349_vm1, %v4135_v50, %v4134_v61  ;;  %v11702_v50 = vld [vmem:[#allocation64_spill] sm:$0xff] }
 0x907   : > { %5663 = vperm.xlu1 %5376, %v5662_v31   ;;  %5553 = vperm.xlu2 %5374, %v5552_v37   ;;  %v5577_v37 = vpack.i.bf16 %v3995_v49, %v3994_v18  ;;  %v4000_v61 = vmul.f32 %v11702_v50, %v10015_v46  ;;  %v11703_v18 = vld [vmem:[#allocation48_spill] sm:$0xff] }
 0x908   : > { %v5384_v53 = vpop.permute.xlu0 %5383  ;;  %v4001_v49 = vmul.f32 %v11703_v18, %v10015_v46 }
 0x909   : > { %v5386_v48 = vunpack.i.h.bf16 %v5384_v53  ;;  %v5385_v24 = vunpack.i.l.bf16 %v5384_v53  ;;  %v10182_v1 = vpop.permute.xlu2 %5408  ;;  %v5567_v53 = vpack.i.bf16 %v3977_v23, %v3976_v44 }
 0x90b   : > { %v4139_v31 = vperm.slane %v5386_v48, %v8303_v13  ;;  %v4137_v52 = vperm.slane %v5385_v24, %v8293_v22  ;;  %v3996_v48 = vmul.f32 %v11704_v36, %v10015_v46  ;;  %v11710_v36 = vld [vmem:[#allocation147_spill] sm:$0xff] }
 0x90d   : > { %v4138_v45 = vsel %vm2353_vm2, %v4137_v52, %v4136_v58  ;;  %v5692_v58 = vpack.i.bf16 %v4069_v4, %v4068_v7  ;;  %v11708_v7 = vld [vmem:[#allocation86_spill] sm:$0xff] }
 0x90e   : > { %v4140_v60 = vsel %vm2357_vm3, %v4139_v31, %v4138_v45  ;;  %5578 = vperm.xlu0 %5375, %v5577_v37   ;;  %v5400_v31 = vunpack.i.l.bf16 %v10166_v33  ;;  %v5592_v45 = vpack.i.bf16 %v4001_v49, %v4000_v61  ;;  %v4006_v4 = vmul.f32 %v11708_v7, %v10015_v46  ;;  %v11709_v61 = vld [vmem:[#allocation75_spill] sm:$0xff] }
 0x90f   : > { %5678 = vperm.xlu1 %5376, %v5677_v54   ;;  %5568 = vperm.xlu2 %5374, %v5567_v53   ;;  %v4142_v24 = vsel %vm2361_vm4, %v4141_v27, %v4140_v60  ;;  %v10214_v60 = vpop.permute.xlu1 %5433  ;;  %v5582_v27 = vpack.i.bf16 %v3997_v40, %v3996_v48  ;;  %v4007_v49 = vmul.f32 %v11709_v61, %v10015_v46  ;;  %v11716_v7 = vld [vmem:[#allocation83_spill] sm:$0xff] }
 0x910   : > { %v5394_v51 = vpop.permute.xlu0 %5393  ;;  %v4144_v37 = vsel %vm2365_vm5, %v4143_v28, %v4142_v24  ;;  %v4149_v50 = vperm.slane %v5400_v31, %v8334_v32  ;;  %v4002_v24 = vmul.f32 %v11710_v36, %v10015_v46  ;;  %v4003_v40 = vmul.f32 %v11712_v55, %v10015_v46  ;;  %v11717_v36 = vld [vmem:[#allocation156_spill] sm:$0xff] }
 0x911   : > { %v5396_v44 = vunpack.i.h.bf16 %v5394_v51  ;;  %v5395_v0 = vunpack.i.l.bf16 %v5394_v51  ;;  %v10205_v23 = vpop.permute.xlu2 %5418  ;;  %v5401_v51 = vunpack.i.h.bf16 %v10166_v33  ;;  %v5410_v31 = vunpack.i.l.bf16 %v10182_v1 }
 0x912   : > { %v4026_v61 = vmul.f32 %v11716_v7, %v10045_v5 }
 0x913   : > { %v4147_v52 = vperm.slane %v5396_v44, %v8329_v16  ;;  %v4145_v54 = vperm.slane %v5395_v0, %v8312_v42  ;;  %v4151_v28 = vperm.slane %v5401_v51, %v8338_v15 }
 0x915   : > { %v4146_v53 = vsel %vm11706_vm12, %v4145_v54, %v4144_v37  ;;  %v5607_v37 = vpack.i.bf16 %v4007_v49, %v4006_v4  ;;  %v4054_v4 = vmul.f32 %v11717_v36, %v10062_v2  ;;  %v11718_v49 = vld [vmem:[#allocation74_spill] sm:$0xff]  ;;  %vm11738_vm12 = vmmov %vm11707_vm8 }
 0x916   : > { %v4148_v34 = vsel %vm11707_vm8, %v4147_v52, %v4146_v53  ;;  %5593 = vperm.xlu0 %5375, %v5592_v45   ;;  %v5597_v53 = vpack.i.bf16 %v4003_v40, %v4002_v24  ;;  %v4008_v24 = vmul.f32 %v11718_v49, %v10015_v46  ;;  %vm11740_vm8 = vmmov %vm11711_vm7 }
 0x917   : > { %5693 = vperm.xlu1 %5376, %v5692_v58   ;;  %5583 = vperm.xlu2 %5374, %v5582_v27   ;;  %v4150_v48 = vsel %vm11711_vm7, %v4149_v50, %v4148_v34  ;;  %v5411_v27 = vunpack.i.h.bf16 %v10182_v1  ;;  %v4157_v50 = vperm.slane %v5410_v31, %v8369_v14  ;;  %v10240_v51 = vpop.permute.xlu1 %5468  ;;  %v5622_v7 = vpack.i.bf16 %v4054_v4, %v4026_v61  ;;  %v11729_v61 = vld [vmem:[#allocation92_spill] sm:$0xff]  ;;  %vm11741_vm7 = vmmov %vm11713_vm9 }
 0x918   : > { %v5404_v18 = vpop.permute.xlu0 %5403  ;;  %v4152_v58 = vsel %vm11713_vm9, %v4151_v28, %v4150_v48  ;;  %v11721_v28 = vld [vmem:[#allocation72_spill] sm:$0xff]  ;;  %v4057_v4 = vmul.f32 %v11729_v61, %v10062_v2  ;;  %vm11744_vm9 = vmmov %vm11714_vm11  ;;  %v5470_v9 = vunpack.i.l.bf16 %v10240_v51 }
 0x919   : > { %v5406_v44 = vunpack.i.h.bf16 %v5404_v18  ;;  %v5405_v33 = vunpack.i.l.bf16 %v5404_v18  ;;  %v10227_v0 = vpop.permute.xlu2 %5428  ;;  %v4159_v31 = vperm.slane %v5411_v27, %v11721_v28  ;;  %v11727_v27 = vld [vmem:[#allocation100_spill] sm:$0xff] }
 0x91b   : > { %v4155_v52 = vperm.slane %v5406_v44, %v8363_v20  ;;  %v4153_v54 = vperm.slane %v5405_v33, %v8351_v35  ;;  %v11719_v33 = vld [vmem:[#allocation153_spill] sm:$0xff] }
 0x91c   : > { %v4009_v55 = vmul.f32 %v11719_v33, %v10015_v46 }
 0x91d   : > { %v4154_v45 = vsel %vm11714_vm11, %v4153_v54, %v4152_v58  ;;  %v11723_v58 = vld [vmem:[#allocation104_spill] sm:$0xff]  ;;  %vm11746_vm11 = vmmov %vm11715_vm13 }
 0x91e   : > { %v4156_v34 = vsel %vm11715_vm13, %v4155_v52, %v4154_v45  ;;  %5608 = vperm.xlu0 %5375, %v5607_v37   ;;  %v11722_v52 = vld [vmem:[#allocation69_spill] sm:$0xff]  ;;  %v5421_v45 = vunpack.i.h.bf16 %v10205_v23  ;;  %v5612_v36 = vpack.i.bf16 %v4009_v55, %v4008_v24  ;;  %v11730_v24 = vld [vmem:[#allocation135_spill] sm:$0xff]  ;;  %vm11748_vm13 = vmmov %vm11720_vm14 }
 0x91f   : > { %5598 = vperm.xlu2 %5374, %v5597_v53   ;;  %v4158_v40 = vsel %vm11720_vm14, %v4157_v50, %v4156_v34  ;;  %v5420_v53 = vunpack.i.l.bf16 %v10205_v23  ;;  %v4029_v34 = vmul.f32 %v11727_v27, %v10045_v5  ;;  %v4027_v33 = vmul.f32 %v11730_v24, %v10045_v5  ;;  %v10270_v55 = vpop.permute.xlu1 %5483  ;;  %v11733_v27 = vld [vmem:[#allocation15_spill] sm:$0xff]  ;;  %vm11750_vm14 = vmmov %vm11724_vm15 }
 0x920   : > { %v5414_v18 = vpop.permute.xlu0 %5413  ;;  %v4251_v50 = vperm.slane %v5421_v45, %v8282_v10  ;;  %v11731_v45 = vld [vmem:[#allocation118_spill] sm:$0xff]  ;;  %v5485_v3 = vunpack.i.l.bf16 %v10270_v55 }
 0x921   : > { %v5416_v48 = vunpack.i.h.bf16 %v5414_v18  ;;  %v5415_v1 = vunpack.i.l.bf16 %v5414_v18  ;;  %v10248_v44 = vpop.permute.xlu2 %5443  ;;  %v4160_v18 = vsel %vm11724_vm15, %v4159_v31, %v4158_v40  ;;  %v5430_v40 = vunpack.i.l.bf16 %v10227_v0  ;;  %vm11751_vm15 = vmmov %vm11725_vm0 }
 0x923   : > { %v4163_v54 = vperm.slane %v5416_v48, %v11722_v52  ;;  %v4161_v37 = vperm.slane %v5415_v1, %v11723_v58  ;;  %v4250_v48 = vperm.slane %v5420_v53, %v8279_v57  ;;  %v11728_v1 = vld [vmem:[#allocation17_spill] sm:$0xff]  ;;  %v5431_v53 = vunpack.i.h.bf16 %v10227_v0 }
 0x924   : > { %v5436_v0 = vunpack.i.h.bf16 %v10214_v60 }
 0x925   : > { %v4162_v49 = vsel %vm11725_vm0, %v4161_v37, %v4160_v18  ;;  %v11732_v18 = vld [vmem:[#allocation16_spill] sm:$0xff]  ;;  %v4259_v24 = vperm.slane %v5431_v53, %v8306_v38  ;;  %v11737_v53 = vld [vmem:[#allocation11_spill] sm:$0xff]  ;;  %vm11753_vm0 = vmmov %vm11726_vm6 }
 0x926   : > { %5623 = vperm.xlu0 %5375, %v5622_v7   ;;  %v4164_v46 = vsel %vm11726_vm6, %v4163_v54, %v4162_v49  ;;  %v4055_v7 = vmul.f32 %v11731_v45, %v10062_v2  ;;  %vm11763_vm6 = vmmov %vm11736_vm10 }
 0x927   : > { %5613 = vperm.xlu2 %5374, %v5612_v36   ;;  %4182 = vmatmul.f32.vlgmr.msrb.gmra.mxu2 %v4164_v46  ;;  %v5435_v36 = vunpack.i.l.bf16 %v10214_v60  ;;  %v4252_v46 = vsel %vm2349_vm1, %v4251_v50, %v4250_v48  ;;  %v11735_v48 = vld [vmem:[#allocation13_spill] sm:$0xff] }
 0x928   : > { %4862 = vmatpush.msrb.mxu2 %v11728_v1  ;;  %v5424_v23 = vpop.permute.xlu0 %5423  ;;  %v5637_v1 = vpack.i.bf16 %v4029_v34, %v4057_v4  ;;  %v5627_v2 = vpack.i.bf16 %v4027_v33, %v4055_v7  ;;  %v4263_v7 = vperm.slane %v5436_v0, %v8329_v16  ;;  %v11742_v0 = vld [vmem:[#allocation10_spill] sm:$0xff] }
 0x929   : > { %v5426_v31 = vunpack.i.h.bf16 %v5424_v23  ;;  %v5425_v54 = vunpack.i.l.bf16 %v5424_v23  ;;  %v5454_v37 = vpop.permute.xlu2 %5453  ;;  %v4257_v23 = vperm.slane %v5430_v40, %v8298_v30 }
 0x92a   : > { %4863 = vmatpush.msrb.mxu2 %v11732_v18  ;;  %v11734_v18 = vld [vmem:[#allocation14_spill] sm:$0xff]  ;;  %v5456_v8 = vunpack.i.h.bf16 %v5454_v37 }
 0x92b   : > { %v4255_v49 = vperm.slane %v5426_v31, %v8303_v13  ;;  %v4253_v5 = vperm.slane %v5425_v54, %v8293_v22  ;;  %v4261_v31 = vperm.slane %v5435_v36, %v8312_v42  ;;  %v5445_v36 = vunpack.i.l.bf16 %v10248_v44 }
 0x92c   : > { %4864 = vmatpush.msrb.mxu2 %v11733_v27 }
 0x92d   : > { %v4254_v61 = vsel %vm2353_vm2, %v4253_v5, %v4252_v46 }
 0x92e   : > { %v4256_v45 = vsel %vm2357_vm3, %v4255_v49, %v4254_v61  ;;  %4865 = vmatpush.msrb.mxu2 %v11734_v18  ;;  %5638 = vperm.xlu0 %5375, %v5637_v1   ;;  %v10295_v49 = vpop.permute.xlu1 %5498  ;;  %v11739_v1 = vld [vmem:[#allocation12_spill] sm:$0xff]  ;;  %v5446_v61 = vunpack.i.h.bf16 %v10248_v44 }
 0x92f   : > { %v4258_v50 = vsel %vm2361_vm4, %v4257_v23, %v4256_v45  ;;  %5628 = vperm.xlu2 %5374, %v5627_v2   ;;  %v11743_v45 = vld [vmem:[#allocation9_spill] sm:$0xff] }
 0x930   : > { %v4260_v34 = vsel %vm2365_vm5, %v4259_v24, %v4258_v50  ;;  %4866 = vmatpush.msrb.mxu2 %v11735_v48  ;;  %v5439_v4 = vpop.permute.xlu0 %5438  ;;  %v4269_v24 = vperm.slane %v5445_v36, %v8351_v35 }
 0x931   : > { %v5441_v33 = vunpack.i.h.bf16 %v5439_v4  ;;  %v5440_v40 = vunpack.i.l.bf16 %v5439_v4  ;;  %v4262_v60 = vsel %vm11736_vm10, %v4261_v31, %v4260_v34  ;;  %v5464_v54 = vpop.permute.xlu2 %5463  ;;  %v5455_v31 = vunpack.i.l.bf16 %v5454_v37  ;;  %vm11764_vm10 = vmmov %vm11738_vm12 }
 0x932   : > { %4867 = vmatpush.msrb.mxu2 %v11737_v53  ;;  %v4264_v27 = vsel %vm11738_vm12, %v4263_v7, %v4262_v60  ;;  %v4271_v4 = vperm.slane %v5446_v61, %v8363_v20  ;;  %v4279_v7 = vperm.slane %v5456_v8, %v11722_v52  ;;  %v11749_v53 = vld [vmem:[#allocation70_spill] sm:$0xff]  ;;  %vm11766_vm12 = vmmov %vm11740_vm8 }
 0x933   : > { %v4267_v5 = vperm.slane %v5441_v33, %v8338_v15  ;;  %v4265_v46 = vperm.slane %v5440_v40, %v8334_v32  ;;  %v4277_v40 = vperm.slane %v5455_v31, %v11723_v58  ;;  %v5471_v31 = vunpack.i.h.bf16 %v10240_v51  ;;  %v11760_v51 = vld [vmem:[#allocation50_spill] sm:$0xff] }
 0x934   : > { %4868 = vmatpush.msrb.mxu2 %v11739_v1 }
 0x935   : > { %v4266_v23 = vsel %vm11740_vm8, %v4265_v46, %v4264_v27  ;;  %v11752_v46 = vld [vmem:[#allocation68_spill] sm:$0xff]  ;;  %vm11768_vm8 = vmmov %vm11741_vm7 }
 0x936   : > { %v4268_v2 = vsel %vm11741_vm7, %v4267_v5, %v4266_v23  ;;  %4869 = vmatpush.msrb.mxu2 %v11742_v0  ;;  %5653 = vperm.xlu0 %5375, %v5652_v47   ;;  %v10323_v33 = vpop.permute.xlu1 %5513  ;;  %v5465_v5 = vunpack.i.l.bf16 %v5464_v54  ;;  %v5466_v23 = vunpack.i.h.bf16 %v5464_v54  ;;  %v11757_v54 = vld [vmem:[#allocation57_spill] sm:$0xff]  ;;  %vm11770_vm7 = vmmov %vm11744_vm9 }
 0x937   : > { %5643 = vperm.xlu2 %5374, %v5642_v17   ;;  %v4270_v44 = vsel %vm11744_vm9, %v4269_v24, %v4268_v2  ;;  %v11747_v17 = vld [vmem:[#allocation59_spill] sm:$0xff]  ;;  %v11756_v24 = vld [vmem:[#allocation58_spill] sm:$0xff]  ;;  %vm11772_vm9 = vmmov %vm11746_vm11 }
 0x938   : > { %4870 = vmatpush.msrb.mxu2 %v11743_v45  ;;  %v5449_v18 = vpop.permute.xlu0 %5448  ;;  %v4272_v56 = vsel %vm11746_vm11, %v4271_v4, %v4270_v44  ;;  %v4371_v45 = vperm.slane %v5466_v23, %v8303_v13  ;;  %v4373_v4 = vperm.slane %v5470_v9, %v8298_v30  ;;  %vm11774_vm11 = vmmov %vm11748_vm13 }
 0x939   : > { %v5451_v50 = vunpack.i.h.bf16 %v5449_v18  ;;  %v5450_v34 = vunpack.i.l.bf16 %v5449_v18  ;;  %v10315_v48 = vpop.permute.xlu2 %5478 }
 0x93a   : > { %4871 = vmatpush.msrb.mxu2 %v11745_v43  ;;  %v5481_v63 = vunpack.i.h.bf16 %v10315_v48 }
 0x93b   : > { %v4275_v47 = vperm.slane %v5451_v50, %v11721_v28  ;;  %v4273_v25 = vperm.slane %v5450_v34, %v8369_v14  ;;  %v11758_v50 = vld [vmem:[#allocation56_spill] sm:$0xff] }
 0x93c   : > { %4872 = vmatpush.msrb.mxu2 %v11747_v17  ;;  %v11759_v34 = vld [vmem:[#allocation44_spill] sm:$0xff] }
 0x93d   : > { %v4274_v60 = vsel %vm11748_vm13, %v4273_v25, %v4272_v56  ;;  %v5480_v25 = vunpack.i.l.bf16 %v10315_v48  ;;  %v4383_v48 = vperm.slane %v5481_v63, %v8338_v15  ;;  %vm11775_vm13 = vmmov %vm11750_vm14 }
 0x93e   : > { %4873 = vmatpush.msrb.mxu2 %v11749_v53  ;;  %5668 = vperm.xlu0 %5375, %v5667_v41   ;;  %v4276_v37 = vsel %vm11750_vm14, %v4275_v47, %v4274_v60  ;;  %v10356_v8 = vpop.permute.xlu1 %5528  ;;  %v11762_v53 = vld [vmem:[#allocation35_spill] sm:$0xff]  ;;  %vm11777_vm14 = vmmov %vm11751_vm15 }
 0x93f   : > { %5658 = vperm.xlu2 %5374, %v5657_v19   ;;  %v4278_v36 = vsel %vm11751_vm15, %v4277_v40, %v4276_v37  ;;  %v4369_v19 = vperm.slane %v5465_v5, %v8293_v22  ;;  %v4381_v37 = vperm.slane %v5480_v25, %v8334_v32  ;;  %v5486_v5 = vunpack.i.h.bf16 %v10270_v55  ;;  %vm11779_vm15 = vmmov %vm11753_vm0 }
 0x940   : > { %4874 = vmatpush.msrb.mxu2 %v11752_v46  ;;  %v5459_v27 = vpop.permute.xlu0 %5458  ;;  %v4280_v1 = vsel %vm11753_vm0, %v4279_v7, %v4278_v36  ;;  %v4375_v7 = vperm.slane %v5471_v31, %v8306_v38  ;;  %v5501_v31 = vunpack.i.h.bf16 %v10295_v49  ;;  %vm11784_vm0 = vmmov %vm11763_vm6 }
 0x941   : > { %v5461_v61 = vunpack.i.h.bf16 %v5459_v27  ;;  %v5460_v2 = vunpack.i.l.bf16 %v5459_v27  ;;  %v10339_v0 = vpop.permute.xlu2 %5493  ;;  %4298 = vmatmul.f32.vlgmr.msrb.gmra.mxu3 %v4280_v1  ;;  %v11765_v27 = vld [vmem:[#allocation43_spill] sm:$0xff]  ;;  %v4385_v1 = vperm.slane %v5485_v3, %v8351_v35 }
 0x942   : > { %4875 = vmatpush.msrb.mxu2 %v11754_v21  ;;  %4978 = vmatpush.msrb.mxu3 %v11755_v6  ;;  %v11769_v21 = vld [vmem:[#allocation42_spill] sm:$0xff]  ;;  %v5495_v9 = vunpack.i.l.bf16 %v10339_v0 }
 0x943   : > { %v4367_v11 = vperm.slane %v5461_v61, %v8282_v10  ;;  %v4366_v41 = vperm.slane %v5460_v2, %v8279_v57  ;;  %v11767_v61 = vpack.i.bf16 %v10134_v26, %v10138_v39  ;;  %v11771_v26 = vld [vmem:[#allocation32_spill] sm:$0xff] }
 0x944   : > { %4876 = vmatpush.msrb.mxu2 %v11756_v24  ;;  %4979 = vmatpush.msrb.mxu3 %v11757_v54  ;;  %v4387_v54 = vperm.slane %v5486_v5, %v8363_v20 }
 0x945   : > { %v4368_v18 = vsel %vm2349_vm1, %v4367_v11, %v4366_v41 }
 0x946   : > { %v4370_v44 = vsel %vm2353_vm2, %v4369_v19, %v4368_v18  ;;  %4877 = vmatpush.msrb.mxu2 %v11758_v50  ;;  %4980 = vmatpush.msrb.mxu3 %v11759_v34  ;;  %v10391_v55 = vpop.permute.xlu1 %5543  ;;  %v11773_v34 = vld [vmem:[#allocation31_spill] sm:$0xff] }
 0x947   : > { %v4372_v43 = vsel %vm2357_vm3, %v4371_v45, %v4370_v44  ;;  %5683 = vperm.xlu0 %5375, %v5682_v62   ;;  %5673 = vperm.xlu2 %5374, %v5672_v12   ;;  %v5496_v45 = vunpack.i.h.bf16 %v10339_v0  ;;  %v5500_v44 = vunpack.i.l.bf16 %v10295_v49 }
 0x948   : > { %4981 = vmatpush.msrb.mxu3 %v11760_v51  ;;  %v5474_v47 = vpop.permute.xlu0 %5473  ;;  %v4374_v40 = vsel %vm2361_vm4, %v4373_v4, %v4372_v43  ;;  %v4393_v4 = vperm.slane %v5495_v9, %v11723_v58 }
 0x949   : > { %v5476_v56 = vunpack.i.h.bf16 %v5474_v47  ;;  %v5475_v17 = vunpack.i.l.bf16 %v5474_v47  ;;  %v10368_v60 = vpop.permute.xlu2 %5508  ;;  %v4376_v12 = vsel %vm2365_vm5, %v4375_v7, %v4374_v40  ;;  %v4395_v0 = vperm.slane %v5496_v45, %v11722_v52  ;;  %v11776_v47 = vld [vmem:[#allocation23_spill] sm:$0xff] }
 0x94a   : > { %4982 = vmatpush.msrb.mxu3 %v11761_v29  ;;  %v4482_v49 = vperm.slane %v5500_v44, %v8279_v57  ;;  %v5510_v63 = vunpack.i.l.bf16 %v10368_v60 }
 0x94b   : > { %v4379_v59 = vperm.slane %v5476_v56, %v8329_v16  ;;  %v4377_v62 = vperm.slane %v5475_v17, %v8312_v42  ;;  %v4483_v56 = vperm.slane %v5501_v31, %v8282_v10  ;;  %v11778_v17 = vld [vmem:[#allocation22_spill] sm:$0xff]  ;;  %v5530_v31 = vunpack.i.l.bf16 %v10356_v8 }
 0x94c   : > { %4983 = vmatpush.msrb.mxu3 %v11762_v53  ;;  %v5515_v53 = vunpack.i.l.bf16 %v10323_v33 }
 0x94d   : > { %v4378_v36 = vsel %vm11763_vm6, %v4377_v62, %v4376_v12  ;;  %v5511_v62 = vunpack.i.h.bf16 %v10368_v60  ;;  %v11780_v12 = vld [vmem:[#allocation21_spill] sm:$0xff]  ;;  %v5516_v60 = vunpack.i.h.bf16 %v10323_v33  ;;  %vm11785_vm6 = vmmov %vm11764_vm10 }
 0x94e   : > { %v4380_v46 = vsel %vm11764_vm10, %v4379_v59, %v4378_v36  ;;  %4984 = vmatpush.msrb.mxu3 %v11765_v27  ;;  %v4489_v27 = vperm.slane %v5510_v63, %v8298_v30  ;;  %vm11786_vm10 = vmmov %vm11766_vm12 }
 0x94f   : > { %v4382_v23 = vsel %vm11766_vm12, %v4381_v37, %v4380_v46  ;;  %5688 = vperm.xlu2 %5374, %v11767_v61   ;;  %v10418_v37 = vpop.permute.xlu1 %5558  ;;  %v11781_v46 = vld [vmem:[#allocation20_spill] sm:$0xff]  ;;  %vm11787_vm12 = vmmov %vm11768_vm8 }
 0x950   : > { %v4384_v2 = vsel %vm11768_vm8, %v4383_v48, %v4382_v23  ;;  %4985 = vmatpush.msrb.mxu3 %v11769_v21  ;;  %v5489_v6 = vpop.permute.xlu0 %5488  ;;  %v4484_v48 = vsel %vm2349_vm1, %v4483_v56, %v4482_v49  ;;  %v4491_v23 = vperm.slane %v5511_v62, %v8306_v38  ;;  %v4493_v21 = vperm.slane %v5515_v53, %v8312_v42  ;;  %vm11788_vm8 = vmmov %vm11770_vm7 }
 0x951   : > { %v5491_v11 = vunpack.i.h.bf16 %v5489_v6  ;;  %v5490_v41 = vunpack.i.l.bf16 %v5489_v6  ;;  %v4386_v19 = vsel %vm11770_vm7, %v4385_v1, %v4384_v2  ;;  %v5524_v24 = vpop.permute.xlu2 %5523  ;;  %v11782_v2 = vld [vmem:[#allocation19_spill] sm:$0xff]  ;;  %v4505_v49 = vperm.slane %v5530_v31, %v8369_v14  ;;  %vm11789_vm7 = vmmov %vm11772_vm9 }
 0x952   : > { %4986 = vmatpush.msrb.mxu3 %v11771_v26  ;;  %v4388_v50 = vsel %vm11772_vm9, %v4387_v54, %v4386_v19  ;;  %v5525_v19 = vunpack.i.l.bf16 %v5524_v24  ;;  %vm11790_vm9 = vmmov %vm11774_vm11  ;;  %v5545_v53 = vunpack.i.l.bf16 %v10391_v55 }
 0x953   : > { %v4391_v39 = vperm.slane %v5491_v11, %v11721_v28  ;;  %v4389_v18 = vperm.slane %v5490_v41, %v8369_v14  ;;  %v11783_v11 = vld [vmem:[#allocation18_spill] sm:$0xff] }
 0x954   : > { %4987 = vmatpush.msrb.mxu3 %v11773_v34 }
 0x955   : > { %v4390_v43 = vsel %vm11774_vm11, %v4389_v18, %v4388_v50  ;;  %v5526_v18 = vunpack.i.h.bf16 %v5524_v24  ;;  %vm11791_vm11 = vmmov %vm11775_vm13 }
 0x956   : > { %v4392_v51 = vsel %vm11775_vm13, %v4391_v39, %v4390_v43  ;;  %4988 = vmatpush.msrb.mxu3 %v11776_v47  ;;  %v4495_v39 = vperm.slane %v5516_v60, %v8329_v16  ;;  %vm11792_vm13 = vmmov %vm11777_vm14 }
 0x957   : > { %v4394_v25 = vsel %vm11777_vm14, %v4393_v4, %v4392_v51  ;;  %v5531_v4 = vunpack.i.h.bf16 %v10356_v8  ;;  %v10441_v43 = vpop.permute.xlu1 %5573  ;;  %v4503_v47 = vperm.slane %v5526_v18, %v8363_v20  ;;  %vm11793_vm14 = vmmov %vm11779_vm15 }
 0x958   : > { %4989 = vmatpush.msrb.mxu3 %v11778_v17  ;;  %v5504_v40 = vpop.permute.xlu0 %5503  ;;  %v4396_v7 = vsel %vm11779_vm15, %v4395_v0, %v4394_v25  ;;  %v4501_v0 = vperm.slane %v5525_v19, %v8351_v35  ;;  %vm11794_vm15 = vmmov %vm11784_vm0 }
 0x959   : > { %v5506_v29 = vunpack.i.h.bf16 %v5504_v40  ;;  %v5505_v3 = vunpack.i.l.bf16 %v5504_v40  ;;  %v5539_v59 = vpop.permute.xlu2 %5538  ;;  %4414 = vmatmul.f32.vlgmr.msra.gmra.mxu0 %v4396_v7  ;;  %v4507_v62 = vperm.slane %v5531_v4, %v11721_v28 }
 0x95a   : > { %4990 = vmatpush.msrb.mxu3 %v11780_v12  ;;  %v5541_v25 = vunpack.i.h.bf16 %v5539_v59  ;;  %v5540_v24 = vunpack.i.l.bf16 %v5539_v59 }
 0x95b   : > { %v4487_v36 = vperm.slane %v5506_v29, %v8303_v13  ;;  %v4485_v5 = vperm.slane %v5505_v3, %v8293_v22 }
 0x95c   : > { %4991 = vmatpush.msrb.mxu3 %v11781_v46  ;;  %v4599_v12 = vperm.slane %v5541_v25, %v8282_v10  ;;  %v4598_v59 = vperm.slane %v5540_v24, %v8279_v57 }
 0x95d   : > { %v4486_v1 = vsel %vm2353_vm2, %v4485_v5, %v4484_v48 }
 0x95e   : > { %v4488_v61 = vsel %vm2357_vm3, %v4487_v36, %v4486_v1  ;;  %4992 = vmatpush.msrb.mxu3 %v11782_v2  ;;  %v4600_v1 = vsel %vm2349_vm1, %v4599_v12, %v4598_v59 }
 0x95f   : > { %v4490_v6 = vsel %vm2361_vm4, %v4489_v27, %v4488_v61  ;;  %v5546_v27 = vunpack.i.h.bf16 %v10391_v55  ;;  %v10463_v61 = vpop.permute.xlu1 %5588  ;;  %v5560_v55 = vunpack.i.l.bf16 %v10418_v37 }
 0x960   : > { %v4492_v9 = vsel %vm2365_vm5, %v4491_v23, %v4490_v6  ;;  %4993 = vmatpush.msrb.mxu3 %v11783_v11  ;;  %v5519_v41 = vpop.permute.xlu0 %5518  ;;  %v4601_v23 = vperm.slane %v5545_v53, %v8293_v22 }
 0x961   : > { %v5521_v54 = vunpack.i.h.bf16 %v5519_v41  ;;  %v5520_v45 = vunpack.i.l.bf16 %v5519_v41  ;;  %v4494_v33 = vsel %vm11784_vm0, %v4493_v21, %v4492_v9  ;;  %v5554_v26 = vpop.permute.xlu2 %5553  ;;  %v4603_v19 = vperm.slane %v5546_v27, %v8303_v13  ;;  %vm11795_vm0 = vmmov %vm11785_vm6 }
 0x962   : > { %v4496_v34 = vsel %vm11785_vm6, %v4495_v39, %v4494_v33  ;;  %v4602_v21 = vsel %vm2353_vm2, %v4601_v23, %v4600_v1  ;;  %v5555_v6 = vunpack.i.l.bf16 %v5554_v26  ;;  %vm11796_vm6 = vmmov %vm11786_vm10 }
 0x963   : > { %v4499_v44 = vperm.slane %v5521_v54, %v8338_v15  ;;  %v4497_v50 = vperm.slane %v5520_v45, %v8334_v32  ;;  %v5556_v54 = vunpack.i.h.bf16 %v5554_v26  ;;  %v4604_v39 = vsel %vm2357_vm3, %v4603_v19, %v4602_v21 }
 0x964   : > { %v4609_v18 = vperm.slane %v5555_v6, %v8312_v42  ;;  %v4613_v26 = vperm.slane %v5560_v55, %v8334_v32  ;;  %v5590_v21 = vunpack.i.l.bf16 %v10463_v61 }
 0x965   : > { %v4498_v51 = vsel %vm11786_vm10, %v4497_v50, %v4496_v34  ;;  %v4611_v50 = vperm.slane %v5556_v54, %v8329_v16  ;;  %vm11797_vm10 = vmmov %vm11787_vm12 }
 0x966   : > { %v4500_v56 = vsel %vm11787_vm12, %v4499_v44, %v4498_v51  ;;  %v5561_v44 = vunpack.i.h.bf16 %v10418_v37  ;;  %vm11798_vm12 = vmmov %vm11788_vm8 }
 0x967   : > { %v4502_v17 = vsel %vm11788_vm8, %v4501_v0, %v4500_v56  ;;  %vm11799_vm8 = vmmov %vm11789_vm7 }
 0x968   : > { %v4504_v40 = vsel %vm11789_vm7, %v4503_v47, %v4502_v17  ;;  %v5534_v7 = vpop.permute.xlu0 %5533  ;;  %v10479_v47 = vpop.permute.xlu1 %5603  ;;  %v4615_v37 = vperm.slane %v5561_v44, %v8338_v15  ;;  %vm11800_vm7 = vmmov %vm11790_vm9 }
 0x969   : > { %v5536_v8 = vunpack.i.h.bf16 %v5534_v7  ;;  %v5535_v63 = vunpack.i.l.bf16 %v5534_v7  ;;  %v5569_v29 = vpop.permute.xlu2 %5568  ;;  %v4506_v3 = vsel %vm11790_vm9, %v4505_v49, %v4504_v40  ;;  %v5575_v7 = vunpack.i.l.bf16 %v10441_v43  ;;  %vm11801_vm9 = vmmov %vm11791_vm11 }
 0x96a   : > { %v4508_v48 = vsel %vm11791_vm11, %v4507_v62, %v4506_v3  ;;  %v5570_v25 = vunpack.i.l.bf16 %v5569_v29  ;;  %v5571_v17 = vunpack.i.h.bf16 %v5569_v29  ;;  %v5576_v3 = vunpack.i.h.bf16 %v10441_v43  ;;  %vm11802_vm11 = vmmov %vm11792_vm13 }
 0x96b   : > { %v4511_v36 = vperm.slane %v5536_v8, %v11722_v52  ;;  %v4509_v5 = vperm.slane %v5535_v63, %v11723_v58  ;;  %v4625_v29 = vperm.slane %v5575_v7, %v11723_v58  ;;  %v5606_v7 = vunpack.i.h.bf16 %v10479_v47 }
 0x96c   : > { %v4621_v12 = vperm.slane %v5570_v25, %v8369_v14  ;;  %v4623_v53 = vperm.slane %v5571_v17, %v11721_v28  ;;  %v5605_v25 = vunpack.i.l.bf16 %v10479_v47 }
 0x96d   : > { %v4510_v46 = vsel %vm11792_vm13, %v4509_v5, %v4508_v48  ;;  %v4627_v48 = vperm.slane %v5576_v3, %v11722_v52  ;;  %vm11803_vm13 = vmmov %vm11793_vm14 }
 0x96e   : > { %v4512_v60 = vsel %vm11793_vm14, %v4511_v36, %v4510_v46  ;;  %vm11804_vm14 = vmmov %vm11794_vm15  ;;  %v4733_v3 = vperm.slane %v5605_v25, %v8351_v35 }
 0x96f   : > { %4530 = vmatmul.f32.vlgmr.msra.gmra.mxu2 %v4512_v60 }
 0x970   : > { %v5549_v2 = vpop.permute.xlu0 %5548  ;;  %v5619_v6 = vpop.permute.xlu1 %5618 }
 0x971   : > { %v5551_v9 = vunpack.i.h.bf16 %v5549_v2  ;;  %v5550_v11 = vunpack.i.l.bf16 %v5549_v2  ;;  %v5584_v41 = vpop.permute.xlu2 %5583 }
 0x972   : > { %v5585_v46 = vunpack.i.l.bf16 %v5584_v41  ;;  %v5586_v1 = vunpack.i.h.bf16 %v5584_v41 }
 0x973   : > { %v4607_v45 = vperm.slane %v5551_v9, %v8306_v38  ;;  %v4605_v33 = vperm.slane %v5550_v11, %v8298_v30 }
 0x974   : > { %v4717_v54 = vperm.slane %v5585_v46, %v8293_v22 }
 0x975   : > { %v4606_v31 = vsel %vm2361_vm4, %v4605_v33, %v4604_v39  ;;  %v5591_v33 = vunpack.i.h.bf16 %v10463_v61 }
 0x976   : > { %v4608_v34 = vsel %vm2365_vm5, %v4607_v45, %v4606_v31  ;;  %v4719_v45 = vperm.slane %v5586_v1, %v8303_v13 }
 0x977   : > { %v4610_v4 = vsel %vm11794_vm15, %v4609_v18, %v4608_v34  ;;  %v4721_v18 = vperm.slane %v5590_v21, %v8298_v30  ;;  %vm11805_vm15 = vmmov %vm11795_vm0 }
 0x978   : > { %v4612_v0 = vsel %vm11795_vm0, %v4611_v50, %v4610_v4  ;;  %v5564_v51 = vpop.permute.xlu0 %5563  ;;  %vm11806_vm0 = vmmov %vm11796_vm6 }
 0x979   : > { %v5566_v24 = vunpack.i.h.bf16 %v5564_v51  ;;  %v5565_v56 = vunpack.i.l.bf16 %v5564_v51  ;;  %v4614_v49 = vsel %vm11796_vm6, %v4613_v26, %v4612_v0  ;;  %v5599_v40 = vpop.permute.xlu2 %5598  ;;  %v4723_v0 = vperm.slane %v5591_v33, %v8306_v38  ;;  %vm11807_vm6 = vmmov %vm11797_vm10 }
 0x97a   : > { %v4616_v62 = vsel %vm11797_vm10, %v4615_v37, %v4614_v49  ;;  %v5600_v50 = vunpack.i.l.bf16 %v5599_v40  ;;  %v5601_v51 = vunpack.i.h.bf16 %v5599_v40  ;;  %v5634_v49 = vpop.permute.xlu1 %5633  ;;  %vm11808_vm10 = vmmov %vm11798_vm12 }
 0x97b   : > { %v4619_v8 = vperm.slane %v5566_v24, %v8363_v20  ;;  %v4617_v63 = vperm.slane %v5565_v56, %v8351_v35  ;;  %v5636_v25 = vunpack.i.h.bf16 %v5634_v49 }
 0x97c   : > { %v4729_v37 = vperm.slane %v5600_v50, %v8334_v32 }
 0x97d   : > { %v4618_v59 = vsel %vm11798_vm12, %v4617_v63, %v4616_v62  ;;  %vm11809_vm12 = vmmov %vm11799_vm8 }
 0x97e   : > { %v4620_v36 = vsel %vm11799_vm8, %v4619_v8, %v4618_v59  ;;  %v4731_v8 = vperm.slane %v5601_v51, %v8338_v15  ;;  %vm11810_vm8 = vmmov %vm11800_vm7 }
 0x97f   : > { %v4622_v5 = vsel %vm11800_vm7, %v4621_v12, %v4620_v36  ;;  %vm11811_vm7 = vmmov %vm11801_vm9 }
 0x980   : > { %v5579_v27 = vpop.permute.xlu0 %5578  ;;  %v4624_v43 = vsel %vm11801_vm9, %v4623_v53, %v4622_v5  ;;  %vm11812_vm9 = vmmov %vm11802_vm11 }
 0x981   : > { %v5581_v60 = vunpack.i.h.bf16 %v5579_v27  ;;  %v5580_v23 = vunpack.i.l.bf16 %v5579_v27  ;;  %v4626_v2 = vsel %vm11802_vm11, %v4625_v29, %v4624_v43  ;;  %v5614_v55 = vpop.permute.xlu2 %5613  ;;  %vm11813_vm11 = vmmov %vm11803_vm13 }
 0x982   : > { %v4628_v19 = vsel %vm11803_vm13, %v4627_v48, %v4626_v2  ;;  %v5615_v53 = vunpack.i.l.bf16 %v5614_v55  ;;  %v4735_v48 = vperm.slane %v5606_v7, %v8363_v20  ;;  %v5616_v47 = vunpack.i.h.bf16 %v5614_v55  ;;  %v5649_v21 = vpop.permute.xlu1 %5648  ;;  %vm11818_vm13 = vmmov %vm11807_vm6 }
 0x983   : > { %v4715_v9 = vperm.slane %v5581_v60, %v8282_v10  ;;  %v4714_v11 = vperm.slane %v5580_v23, %v8279_v57  ;;  %4646 = vmatmul.f32.vlgmr.msra.gmra.mxu3 %v4628_v19  ;;  %v5621_v55 = vunpack.i.h.bf16 %v5619_v6 }
 0x984   : > { %v4741_v1 = vperm.slane %v5615_v53, %v11723_v58  ;;  %v4743_v23 = vperm.slane %v5616_v47, %v11722_v52 }
 0x985   : > { %v4716_v41 = vsel %vm2349_vm1, %v4715_v9, %v4714_v11  ;;  %v4831_v33 = vperm.slane %v5621_v55, %v8282_v10 }
 0x986   : > { %v4718_v39 = vsel %vm2353_vm2, %v4717_v54, %v4716_v41 }
 0x987   : > { %v4720_v31 = vsel %vm2357_vm3, %v4719_v45, %v4718_v39  ;;  %v5620_v45 = vunpack.i.l.bf16 %v5619_v6  ;;  %v5635_v6 = vunpack.i.l.bf16 %v5634_v49 }
 0x988   : > { %v5594_v44 = vpop.permute.xlu0 %5593  ;;  %v4722_v4 = vsel %vm2361_vm4, %v4721_v18, %v4720_v31 }
 0x989   : > { %v5596_v34 = vunpack.i.h.bf16 %v5594_v44  ;;  %v5595_v26 = vunpack.i.l.bf16 %v5594_v44  ;;  %v4724_v56 = vsel %vm2365_vm5, %v4723_v0, %v4722_v4  ;;  %v5629_v40 = vpop.permute.xlu2 %5628  ;;  %v4830_v39 = vperm.slane %v5620_v45, %v8279_v57 }
 0x98a   : > { %v5631_v44 = vunpack.i.h.bf16 %v5629_v40  ;;  %v5630_v50 = vunpack.i.l.bf16 %v5629_v40  ;;  %v4837_v40 = vperm.slane %v5636_v25, %v8298_v30  ;;  %v4949_v49 = vperm.slane %v5635_v6, %v8293_v22 }
 0x98b   : > { %v4727_v24 = vperm.slane %v5596_v34, %v8329_v16  ;;  %v4725_v61 = vperm.slane %v5595_v26, %v8312_v42  ;;  %v4832_v26 = vsel %vm2349_vm1, %v4831_v33, %v4830_v39 }
 0x98d   : > { %v4726_v17 = vsel %vm11804_vm14, %v4725_v61, %v4724_v56 }
 0x98e   : > { %v4728_v63 = vsel %vm11805_vm15, %v4727_v24, %v4726_v17  ;;  %v5664_v24 = vpop.permute.xlu1 %5663  ;;  %v4947_v17 = vperm.slane %v5630_v50, %v8282_v10 }
 0x98f   : > { %v4730_v62 = vsel %vm11806_vm0, %v4729_v37, %v4728_v63  ;;  %v4835_v37 = vperm.slane %v5631_v44, %v8303_v13  ;;  %v5665_v55 = vunpack.i.l.bf16 %v5664_v24 }
 0x990   : > { %v4732_v12 = vsel %vm11807_vm6, %v4731_v8, %v4730_v62  ;;  %v5609_v59 = vpop.permute.xlu0 %5608 }
 0x991   : > { %v5611_v36 = vunpack.i.h.bf16 %v5609_v59  ;;  %v5610_v29 = vunpack.i.l.bf16 %v5609_v59  ;;  %v4734_v5 = vsel %vm11808_vm10, %v4733_v3, %v4732_v12  ;;  %v5644_v11 = vpop.permute.xlu2 %5643  ;;  %v5651_v12 = vunpack.i.h.bf16 %v5649_v21 }
 0x992   : > { %v4736_v43 = vsel %vm11809_vm12, %v4735_v48, %v4734_v5  ;;  %v5646_v3 = vunpack.i.h.bf16 %v5644_v11  ;;  %v5645_v62 = vunpack.i.l.bf16 %v5644_v11  ;;  %v5650_v59 = vunpack.i.l.bf16 %v5649_v21 }
 0x993   : > { %v4739_v46 = vperm.slane %v5611_v36, %v11721_v28  ;;  %v4737_v27 = vperm.slane %v5610_v29, %v8369_v14 }
 0x994   : > { %v4955_v21 = vperm.slane %v5650_v59, %v8306_v38 }
 0x995   : > { %v4738_v60 = vsel %vm11810_vm8, %v4737_v27, %v4736_v43 }
 0x996   : > { %v4740_v2 = vsel %vm11811_vm7, %v4739_v46, %v4738_v60  ;;  %v4953_v46 = vperm.slane %v5645_v62, %v8298_v30 }
 0x997   : > { %v4742_v9 = vsel %vm11812_vm9, %v4741_v1, %v4740_v2  ;;  %v4843_v2 = vperm.slane %v5651_v12, %v8329_v16 }
 0x998   : > { %v5624_v19 = vpop.permute.xlu0 %5623  ;;  %v4744_v54 = vsel %vm11813_vm11, %v4743_v23, %v4742_v9 }
 0x999   : > { %4762 = vmatmul.f32.vlgmr.msrb.gmra.mxu0 %v4744_v54  ;;  %v5625_v41 = vunpack.i.l.bf16 %v5624_v19  ;;  %v5626_v18 = vunpack.i.h.bf16 %v5624_v19  ;;  %v5659_v56 = vpop.permute.xlu2 %5658  ;;  %v5666_v54 = vunpack.i.h.bf16 %v5664_v24 }
 0x99a   : > { %v5661_v9 = vunpack.i.h.bf16 %v5659_v56  ;;  %v5660_v11 = vunpack.i.l.bf16 %v5659_v56 }
 0x99b   : > { %v4833_v31 = vperm.slane %v5625_v41, %v8293_v22  ;;  %v4946_v4 = vperm.slane %v5626_v18, %v8279_v57  ;;  %v5679_v22 = vpop.permute.xlu1 %5678 }
 0x99c   : > { %v4847_v39 = vperm.slane %v5661_v9, %v8338_v15  ;;  %v5680_v56 = vunpack.i.l.bf16 %v5679_v22 }
 0x99d   : > { %v4834_v61 = vsel %vm2353_vm2, %v4833_v31, %v4832_v26  ;;  %v4948_v8 = vsel %vm2349_vm1, %v4947_v17, %v4946_v4  ;;  %vm11814_vm1 = vmmov %vm11804_vm14  ;;  %v4849_v26 = vperm.slane %v5666_v54, %v8351_v35  ;;  %v4961_v4 = vperm.slane %v5665_v55, %v8334_v32 }
 0x99e   : > { %v4836_v7 = vsel %vm2357_vm3, %v4835_v37, %v4834_v61  ;;  %v4950_v10 = vsel %vm2353_vm2, %v4949_v49, %v4948_v8  ;;  %vm11815_vm2 = vmmov %vm11805_vm15  ;;  %v5681_v61 = vunpack.i.h.bf16 %v5679_v22  ;;  %v4967_v59 = vperm.slane %v5680_v56, %v8363_v20 }
 0x99f   : > { %v4838_v53 = vsel %vm2361_vm4, %v4837_v40, %v4836_v7  ;;  %vm11819_vm14 = vmmov %vm11815_vm2 }
 0x9a0   : > { %v5639_v34 = vpop.permute.xlu0 %5638  ;;  %vm11821_vm15 = vmmov %vm11806_vm0  ;;  %v4855_v12 = vperm.slane %v5681_v61, %v11721_v28 }
 0x9a1   : > { %v5641_v0 = vunpack.i.h.bf16 %v5639_v34  ;;  %v5640_v51 = vunpack.i.l.bf16 %v5639_v34  ;;  %v5674_v1 = vpop.permute.xlu2 %5673 }
 0x9a3   : > { %v4839_v63 = vperm.slane %v5641_v0, %v8306_v38  ;;  %v4951_v57 = vperm.slane %v5640_v51, %v8303_v13  ;;  %v4841_v13 = vperm.slane %v5646_v3, %v8312_v42  ;;  %v5676_v0 = vunpack.i.h.bf16 %v5674_v1  ;;  %v5694_v25 = vpop.permute.xlu1 %5693 }
 0x9a4   : > { %v5675_v51 = vunpack.i.l.bf16 %v5674_v1  ;;  %v5695_v8 = vunpack.i.l.bf16 %v5694_v25 }
 0x9a5   : > { %v4840_v29 = vsel %vm2365_vm5, %v4839_v63, %v4838_v53  ;;  %v4952_v5 = vsel %vm2357_vm3, %v4951_v57, %v4950_v10  ;;  %vm11816_vm3 = vmmov %vm11806_vm0  ;;  %v5696_v53 = vunpack.i.h.bf16 %v5694_v25 }
 0x9a6   : > { %v4842_v27 = vsel %vm11814_vm1, %v4841_v13, %v4840_v29  ;;  %v4954_v43 = vsel %vm2361_vm4, %v4953_v46, %v4952_v5  ;;  %vm11817_vm4 = vmmov %vm11814_vm1  ;;  %v4965_v7 = vperm.slane %v5675_v51, %v8351_v35 }
 0x9a7   : > { %v4844_v19 = vsel %vm11815_vm2, %v4843_v2, %v4842_v27  ;;  %v4956_v30 = vsel %vm2365_vm5, %v4955_v21, %v4954_v43  ;;  %vm11820_vm5 = vmmov %vm11808_vm10  ;;  %v4975_v46 = vperm.slane %v5696_v53, %v11722_v52  ;;  %vm11829_vm2 = vcmask 1048512  }
 0x9a8   : > { %v5654_v36 = vpop.permute.xlu0 %5653  ;;  %vm11822_vm0 = vmmov %vm11809_vm12 }
 0x9a9   : > { %v5656_v48 = vunpack.i.h.bf16 %v5654_v36  ;;  %v5655_v47 = vunpack.i.l.bf16 %v5654_v36  ;;  %v5689_v6 = vpop.permute.xlu2 %5688  ;;  %vm11823_vm10 = vmmov %vm11810_vm8 }
 0x9aa   : > { %v5690_v63 = vunpack.i.l.bf16 %v5689_v6  ;;  %vm11824_vm12 = vmmov %vm11820_vm5 }
 0x9ab   : > { %v4845_v60 = vperm.slane %v5656_v48, %v8334_v32  ;;  %v4957_v23 = vperm.slane %v5655_v47, %v8312_v42  ;;  %v4959_v42 = vperm.slane %v5660_v11, %v8329_v16  ;;  %v5691_v32 = vunpack.i.h.bf16 %v5689_v6  ;;  %vm11825_vm8 = vmmov %vm11811_vm7 }
 0x9ac   : > { %v4971_v29 = vperm.slane %v5690_v63, %v11721_v28  ;;  %vm11826_vm7 = vmmov %vm11822_vm0  ;;  %v4973_v47 = vperm.slane %v5695_v8, %v11723_v58 }
 0x9ad   : > { %v4846_v45 = vsel %vm11816_vm3, %v4845_v60, %v4844_v19  ;;  %v4958_v41 = vsel %vm11817_vm4, %v4957_v23, %v4956_v30  ;;  %v4859_v36 = vperm.slane %v5691_v32, %v11722_v52  ;;  %vm11827_vm11 = vmmov %vm11823_vm10 }
 0x9ae   : > { %v4848_v38 = vsel %vm11818_vm13, %v4847_v39, %v4846_v45  ;;  %v4960_v44 = vsel %vm11819_vm14, %v4959_v42, %v4958_v41  ;;  %vm11828_vm1 = vmmov %vm11825_vm8 }
 0x9af   : > { %v4850_v16 = vsel %vm11820_vm5, %v4849_v26, %v4848_v38  ;;  %v4962_v24 = vsel %vm11821_vm15, %v4961_v4, %v4960_v44  ;;  %vm11830_vm3 = vmmov %vm11812_vm9 }
 0x9b0   : > { %v5669_v33 = vpop.permute.xlu0 %5668  ;;  %vm11831_vm4 = vmmov %vm11829_vm2 }
 0x9b1   : > { %v5671_v18 = vunpack.i.h.bf16 %v5669_v33  ;;  %v5670_v31 = vunpack.i.l.bf16 %v5669_v33 }
 0x9b3   : > { %v4851_v50 = vperm.slane %v5671_v18, %v8363_v20  ;;  %v4963_v34 = vperm.slane %v5670_v31, %v8338_v15  ;;  %v4853_v15 = vperm.slane %v5676_v0, %v8369_v14 }
 0x9b5   : > { %v4852_v37 = vsel %vm11822_vm0, %v4851_v50, %v4850_v16  ;;  %v4964_v17 = vsel %vm11807_vm6, %v4963_v34, %v4962_v24 }
 0x9b6   : > { %v4854_v40 = vsel %vm11823_vm10, %v4853_v15, %v4852_v37  ;;  %v4966_v49 = vsel %vm11824_vm12, %v4965_v7, %v4964_v17 }
 0x9b7   : > { %v4856_v5 = vsel %vm11825_vm8, %v4855_v12, %v4854_v40  ;;  %v4968_v48 = vsel %vm11826_vm7, %v4967_v59, %v4966_v49 }
 0x9b9   : > { %v5684_v57 = vpop.permute.xlu0 %5683 }
 0x9ba   : > { %v5686_v3 = vunpack.i.h.bf16 %v5684_v57  ;;  %v5685_v62 = vunpack.i.l.bf16 %v5684_v57 }
 0x9bc   : > { %v4857_v10 = vperm.slane %v5686_v3, %v11723_v58  ;;  %v4969_v35 = vperm.slane %v5685_v62, %v8369_v14 }
 0x9be   : > { %v4858_v20 = vsel %vm11812_vm9, %v4857_v10, %v4856_v5  ;;  %v4970_v13 = vsel %vm11827_vm11, %v4969_v35, %v4968_v48 }
 0x9bf   : > { %v4972_v14 = vsel %vm11828_vm1, %v4971_v29, %v4970_v13  ;;  %v4860_v22 = vsel %vm11829_vm2, %v4859_v36, %v4858_v20 }
 0x9c0   : > { %4878 = vmatmul.f32.vlgmr.msrb.gmra.mxu2 %v4860_v22  ;;  %v4974_v28 = vsel %vm11830_vm3, %v4973_v47, %v4972_v14 }
 0x9c1   : > { %v4976_v27 = vsel %vm11831_vm4, %v4975_v46, %v4974_v28 }
 0x9c2   : > { %4994 = vmatmul.f32.vlgmr.msrb.gmra.mxu3 %v4976_v27 }
 0x9c3   : > { %6001 = shalt.err (!%p5998_p4)
}
 0x9c4   : > { %5330 = dma.vmem_to_hbm [thread:$0]  (%p6154_p5), %s5055_s26, 128, %s5057_s12, %s5028_s13   ;;  %v4183_v52 = vpop.f32.mrf.mxu2  ;;  %v4299_v58 = vpop.f32.mrf.mxu3  ;;  %vm11832_vm13 = vcmask 1041409   ;;  %vm11833_vm14 = vcmask 1042434   ;;  %vm11834_vm5 = vcmask 1043459   ;;  %vm11835_vm15 = vcmask 1044484  }
 0x9c5   : > { %v5006_v60 = vrot.slane %v4299_v58, 7  ;;  %s5038_s2 = scalar_lea.hbm %s10662_s7, %s5301_s10  ;;  %s11836_s22 = sshll.u32 %s8748_s18, 3  ;;  %vm11837_vm0 = vcmask 1045509   ;;  %vm11838_vm6 = vcmask 1046534   ;;  %vm11839_vm10 = vcmask 1047559  }
 0x9c6   : > { %s316_s24 = scalar_lea.vmem [#allocation2], %s11836_s22  ;;  %s5042_s17 = sshll.u32 %s5038_s2, 4  ;;  %s5043_s17 = int_to_ptr.hbm [resolvable:$true] %s5042_s17 }
 0x9c7   : > { %v5007_v19 = vsel %vm11832_vm13, %v5006_v60, %v4183_v52  ;;  %s5040_s20 = sshll.u32 %s316_s24, 4  ;;  %s5023_s9 = scalar_lea.sflag [#allocation3], %s8748_s18  ;;  %s5041_s20 = int_to_ptr.vmem [resolvable:$true] %s5040_s20 }
 0x9c8   : > { %s6016_s10 = sshra.s32 %s5043_s17, 4  ;;  %s6022_s13 = scalar_lea.hbm %s10662_s7, 32  ;;  %s6017_s10 = int_to_ptr.hbm [resolvable:$true] %s6016_s10 }
 0x9c9   : > { %s6018_s25 = scalar_lea.hbm %s6017_s10, 8  ;;  %p6023_p10 = scmp.lt.s32.totalorder %s6017_s10, %s10662_s7 }
 0x9ca   : > { %p6019_p7 = scmp.ne.s32.totalorder %s6017_s10, %s6018_s25  ;;  %p6024_p11 = scmp.lt.s32.totalorder %s6022_s13, %s6018_s25 }
 0x9cc   : > { %p6020_p8 = pnand %p6019_p7, %p6154_p5  ;;  %p6025_p12 = por %p6024_p11, %p6023_p10 }
 0x9ce   : > { %p6021_p9 = pneg %p6020_p8 }
 0x9d0   : > { %p6026_p13 = pnand %p6025_p12, %p6021_p9 }
 0x9d6   : > { %v4415_v43 = vpop.f32.mrf.mxu0 }
 0x9d7   : > { %v5008_v2 = vrot.slane %v4415_v43, 6 }
 0x9d9   : > { %v5009_v54 = vsel %vm11833_vm14, %v5008_v2, %v5007_v19 }
 0x9f2   : > { %v4531_v1 = vpop.f32.mrf.mxu2 }
 0x9f3   : > { %v5010_v9 = vrot.slane %v4531_v1, 5 }
 0x9f5   : > { %v5011_v55 = vsel %vm11834_vm5, %v5010_v9, %v5009_v54 }
 0xa06   : > { %v4647_v23 = vpop.f32.mrf.mxu3 }
 0xa07   : > { %v5012_v11 = vrot.slane %v4647_v23, 4 }
 0xa09   : > { %v5013_v41 = vsel %vm11835_vm15, %v5012_v11, %v5011_v55 }
 0xa16   : > { %v4763_v21 = vpop.f32.mrf.mxu0 }
 0xa17   : > { %v5014_v30 = vrot.slane %v4763_v21, 3 }
 0xa19   : > { %v5015_v39 = vsel %vm11837_vm0, %v5014_v30, %v5013_v41 }
 0xa43   : > { %v4879_v45 = vpop.f32.mrf.mxu2 }
 0xa44   : > { %v5016_v33 = vrot.slane %v4879_v45, 2 }
 0xa45   : > { %v4995_v42 = vpop.f32.mrf.mxu3 }
 0xa46   : > { %v5017_v18 = vsel %vm11838_vm6, %v5016_v33, %v5015_v39  ;;  %v5018_v31 = vrot.slane %v4995_v42, 1 }
 0xa48   : > { %v5019_v38 = vsel %vm11839_vm10, %v5018_v31, %v5017_v18 }
 0xa49   : > { %5021 = vst [vmem:[%s316_s24] sm:$0xff] %v5019_v38 }
 0xa4a   : > { %6029 = shalt.err (!%p6026_p13)
}
 0xa4b   : > { %5329 = dma.vmem_to_hbm [thread:$0]  (%p6154_p5), %s5041_s20, 128, %s5043_s17, %s5023_s9  }
 0xa4c PF: > { %p5340_p0 = scmp.ge.s32.totalorder %s6068_s30, 2  ;;  %s5068_s18 = sand.u32 1, %s6056_s27  }
 0xa4d   : > { %s5069_s21 = scalar_lea.sflag [#allocation3], %s5068_s18 }
 0xa4e   : > { %p5334_p1 = pnand %p5340_p0, %p6158_p6 }
 0xa50   : > { %p5335_p2 = pneg %p5334_p1 }
 0xa52   : > { %6047 = dma.done.wait (%p5335_p2), %s5069_s21, 128  }
 0xa53   : > { %6049 = vsyncadd (%p5335_p2), %s5069_s21, 4294967168  ;;  %s5079_s0 = scalar_lea.sflag [#allocation5], %s5068_s18 }
 0xa54   : > { %6051 = dma.done.wait (%p5335_p2), %s5079_s0, 128  }
 0xa55   : > { %6053 = vsyncadd (%p5335_p2), %s5079_s0, 4294967168  ;;  %p22_p5 = scmp.ge.s32.totalorder %s6141_s11, 6   ;;  %s11840_s27 = smov %s6060_s28 }
 0xa56   : > { %s11841_s28 = smov %s6064_s29  ;;  %s11842_s29 = smov %s6152_s14 }
 0xa57   : > { %s11843_s30 = smov %s6141_s11  ;;  %24 = sbr.rel (!%p22_p5) target bundleno = 9 (0x9), region = 103 }
 0xa5c   :  { %5085 = vsyncpa [#allocation3], 1 }
 0xa5d   :  { %5087 = vsyncpa [#allocation3 + $0x1], 1 }
 0xa5e   :  { %5088 = vsyncpa [#allocation5], 1 }
 0xa5f   :  { %5090 = vsyncpa [#allocation5 + $0x1], 1 }

</bundles_post_ra>
